<compile_context>
chip_gen: v5e
topology: v5e:2x2
jax: 0.10.0
libtpu: 0.0.40
codegen_flags: <defaults>
</compile_context>

<pallas_src>
import math

import jax
import jax.numpy as jnp
from jax.experimental import pallas as pl
from jax.experimental.pallas import tpu as pltpu

# ------------------------- problem sizes -------------------------
B      = 256    # batch (synthetic)
D_DET  = 64     # fake_news_detector.last_output
D_ENV  = 64     # macro_env_output_dim == micro_env_output_dim (gate requires ==)
C      = 2      # category_num
# num_mlp_layers = 3  ->  MLP: (D_DET+D_ENV) -> 64 -> 32 -> C, GELU after each
D_IN   = D_DET + D_ENV          # 128
H1     = D_IN // 2              # 64
H2     = H1 // 2                # 32
N_PAD  = 128                    # lane-dense padded width of all MLP outputs

# row offsets of the segments inside the packed bf16 weight blob (all multiples
# of 16 -> aligned with bf16 (16,128) sublane tiles, static slices are free)
R_CAT0, R_CAT1 = 0, 128         # fused [[w1_det, wg_det],[0, wg_mac]]  (128,128)
R_V0,   R_V1   = 128, 192       # fc1 v_p-side weight, cols 0:64        (64,128)
R_W20,  R_W21  = 192, 320       # fc2, rows 0:64 / cols 0:32            (128,128)
R_W30,  R_W31  = 320, 448       # fc3, rows 0:32 / cols 0:C             (128,128)
W_BLOB_ROWS = 448


def _gelu_exact(x):
    # matches torch.nn.functional.gelu(approximate='none')
    return 0.5 * x * (1.0 + jax.lax.erf(x * (1.0 / math.sqrt(2.0))))


def _round_up(x, m):
    return ((x + m - 1) // m) * m


# ------------------------- Pallas kernel -------------------------
def env_framework_kernel(det_ref, mac_ref, mic_ref, w_ref, b_ref, out_ref):
    det_f = det_ref[...]                      # (BT, D_DET) f32
    mac_f = mac_ref[...]                      # (BT, D_ENV) f32
    mic_f = mic_ref[...]                      # (BT, D_ENV) f32

    # in-kernel bf16 casts (hide under the input DMA; f32 streams from HBM)
    det = det_f.astype(jnp.bfloat16)
    mac = mac_f.astype(jnp.bfloat16)

    # Single K=128, N=128 MXU pass computing both the fc1 det-partial (cols
    # 0:64) and the gate logits (cols 64:128).
    x_cat = jnp.concatenate([det, mac], axis=1)                    # (BT, 128) bf16
    proj = jnp.dot(x_cat, w_ref[R_CAT0:R_CAT1, :],
                   preferred_element_type=jnp.float32)             # (BT, 128) f32
    # bias row 0 = [b_fc1 (64) | b_gate (64)]
    proj = proj + b_ref[0:1, :]

    # gate fusion: g = sigmoid(W_gate @ concat([det, mac]) + b_gate)
    g = jax.nn.sigmoid(proj[:, H1:])                               # (BT, 64) f32 (EUP)
    v_p = mic_f + g * (mac_f - mic_f)                              # g*mac + (1-g)*mic

    # fc1: cols 0:64 = det@w1_det + v_p@w1_v + b1 ; cols 64:128 are garbage
    # (gelu of the gate logits) and are killed by fc2's zero rows 64:128.
    h = _gelu_exact(proj + jnp.dot(v_p.astype(jnp.bfloat16), w_ref[R_V0:R_V1, :],
                                   preferred_element_type=jnp.float32))
    # fc2: cols 0:32 valid, cols 32:128 exactly 0 (zero weights + zero bias, gelu(0)=0)
    h = _gelu_exact(jnp.dot(h.astype(jnp.bfloat16), w_ref[R_W20:R_W21, :],
                            preferred_element_type=jnp.float32) + b_ref[1:2, :])
    # fc3: cols 0:C valid, rest exactly 0 — unmasked, lane-dense bf16 store.
    h = _gelu_exact(jnp.dot(h.astype(jnp.bfloat16), w_ref[R_W30:R_W31, :],
                            preferred_element_type=jnp.float32) + b_ref[2:3, :])
    out_ref[...] = h.astype(out_ref.dtype)


# ------------------------- one-time parameter prep -------------------------
def prepare_params(params):
    """Fuse/pad/pack all weights into one bf16 blob and all biases into one f32 blob.

    Done once (not on the per-forward hot path)."""
    wg, bg, w1, b1, w2, b2, w3, b3 = params
    wg_d, wg_m = wg[:D_DET], wg[D_DET:]
    w1d, w1v = w1[:D_DET], w1[D_DET:]

    # Fused first weight: rows = [det(64) | mac(64)], cols = [fc1-det(64) | gate(64)].
    w_cat = jnp.zeros((D_IN, N_PAD), jnp.float32)
    w_cat = w_cat.at[:D_DET, :H1].set(w1d)       # fc1 det partial
    w_cat = w_cat.at[:D_DET, H1:].set(wg_d)      # gate det partial
    w_cat = w_cat.at[D_DET:, H1:].set(wg_m)      # gate mac partial (mac->fc1 stays 0)

    w1v_p = jnp.zeros((D_ENV, N_PAD), jnp.float32).at[:, :H1].set(w1v)
    w2_p  = jnp.zeros((N_PAD, N_PAD), jnp.float32).at[:H1, :H2].set(w2)
    w3_p  = jnp.zeros((N_PAD, N_PAD), jnp.float32).at[:H2, :C].set(w3)

    w_blob = jnp.concatenate([w_cat, w1v_p, w2_p, w3_p], axis=0).astype(jnp.bfloat16)
    assert w_blob.shape == (W_BLOB_ROWS, N_PAD)

    b_blob = jnp.zeros((8, N_PAD), jnp.float32)
    b_blob = b_blob.at[0, :H1].set(b1[0])        # fc1 bias (cols 0:64)
    b_blob = b_blob.at[0, H1:].set(bg[0])        # gate bias (cols 64:128)
    b_blob = b_blob.at[1, :H2].set(b2[0])        # fc2 bias
    b_blob = b_blob.at[2, :C].set(b3[0])         # fc3 bias
    return w_blob, b_blob


# ------------------------- wrapper -------------------------
def env_enhanced_framework_forward(det, mac, mic, h_mac, h_mic, prepped):
    w_blob, b_blob = prepped
    b = det.shape[0]

    # Single grid step for small batches (v5e/v6e have one TensorCore; extra grid
    # steps are pure per-step overhead).  Large batches tile at 256 rows with a
    # "parallel" grid so v7x can shard across its 2 TCs.
    if b <= 512:
        bt = max(16, _round_up(b, 16))
    else:
        bt = 256
    bp = _round_up(b, bt)
    if bp != b:
        # TODO(synk): for large ragged batches a clamped index_map + masked final
        # store would avoid these copies; here the pad touches < bt rows.
        pad = ((0, bp - b), (0, 0))
        det, mac, mic = (jnp.pad(x, pad) for x in (det, mac, mic))

    full = lambda shape: pl.BlockSpec(shape, lambda i: tuple(0 for _ in shape))

    out = pl.pallas_call(
        env_framework_kernel,
        out_shape=jax.ShapeDtypeStruct((bp, N_PAD), jnp.bfloat16),
        grid_spec=pltpu.PrefetchScalarGridSpec(
            num_scalar_prefetch=0,
            grid=(bp // bt,),
            in_specs=[
                pl.BlockSpec((bt, D_DET), lambda i: (i, 0)),    # detector_output (f32)
                pl.BlockSpec((bt, D_ENV), lambda i: (i, 0)),    # v_p_mac (f32)
                pl.BlockSpec((bt, D_ENV), lambda i: (i, 0)),    # v_p_mic (f32)
                full(w_blob.shape),                             # packed bf16 weights
                full(b_blob.shape),                             # packed f32 biases
            ],
            out_specs=pl.BlockSpec((bt, N_PAD), lambda i: (i, 0)),
        ),
        compiler_params=pltpu.CompilerParams(
            dimension_semantics=("parallel",)),
    )(det, mac, mic, w_blob, b_blob)

    # module returns (output, h_mac, h_mic) — h_mac / h_mic pass through untouched
    return out[:b, :C].astype(jnp.float32), h_mac, h_mic


# ------------------------- pure-JAX reference -------------------------
def reference_forward(det, mac, mic, params):
    (wg, bg, w1, b1, w2, b2, w3, b3) = params
    g = jax.nn.sigmoid(jnp.concatenate([det, mac], axis=-1) @ wg + bg)
    v_p = g * mac + (1.0 - g) * mic
    x = jnp.concatenate([det, v_p], axis=-1)
    x = _gelu_exact(x @ w1 + b1)
    x = _gelu_exact(x @ w2 + b2)
    x = _gelu_exact(x @ w3 + b3)
    return x


if __name__ == "__main__":
    key = jax.random.PRNGKey(0)
    keys = jax.random.split(key, 16)

    # deterministic synthetic parameters (weights stored [in, out])
    def winit(k, shape):
        fan_in = shape[0]
        return jax.random.normal(k, shape, jnp.float32) / math.sqrt(fan_in)

    wg = winit(keys[0], (D_DET + D_ENV, D_ENV))
    bg = winit(keys[1], (1, D_ENV)) * 0.1
    w1 = winit(keys[2], (D_IN, H1))
    b1 = winit(keys[3], (1, H1)) * 0.1
    w2 = winit(keys[4], (H1, H2))
    b2 = winit(keys[5], (1, H2)) * 0.1
    w3 = winit(keys[6], (H2, C))
    b3 = winit(keys[7], (1, C)) * 0.1
    params = (wg, bg, w1, b1, w2, b2, w3, b3)
    prepped = prepare_params(params)   # one-time weight fusion / padding / packing

    # synthetic submodule outputs (detector + news-env extractor features)
    det   = jax.random.normal(keys[8],  (B, D_DET), jnp.float32)
    v_mac = jax.random.normal(keys[9],  (B, D_ENV), jnp.float32)
    v_mic = jax.random.normal(keys[10], (B, D_ENV), jnp.float32)
    h_mac = jax.random.normal(keys[11], (B, D_ENV), jnp.float32)
    h_mic = jax.random.normal(keys[12], (B, D_ENV), jnp.float32)

    out, out_h_mac, out_h_mic = env_enhanced_framework_forward(
        det, v_mac, v_mic, h_mac, h_mic, prepped)
    out = jax.block_until_ready(out)

    # pure f32 reference of the module math; kernel uses bf16 weights/dot inputs
    # with f32 accumulation plus a bf16 output store -> loosened tolerance.
    ref = reference_forward(det, v_mac, v_mic, params)

    assert out.shape == (B, C)
    err = jnp.max(jnp.abs(out - ref))
    assert jnp.allclose(out, ref, rtol=5e-2, atol=5e-2), f"max abs err {err}"

    print("KERNEL_OK")
</pallas_src>

<mosaic_0001>
module attributes {stable_mosaic.version = 11 : i64} {
  func.func @env_framework_kernel(%arg0: i32, %arg1: memref<256x64xf32, #tpu.memory_space<vmem>>, %arg2: memref<256x64xf32, #tpu.memory_space<vmem>>, %arg3: memref<256x64xf32, #tpu.memory_space<vmem>>, %arg4: memref<448x128xbf16, #tpu.memory_space<vmem>>, %arg5: memref<8x128xf32, #tpu.memory_space<vmem>>, %arg6: memref<256x128xbf16, #tpu.memory_space<vmem>>) attributes {dimension_semantics = [#tpu.dimension_semantics<parallel>], iteration_bounds = array<i64: 1>, scalar_prefetch = 0 : i64, scratch_operands = 0 : i64, tpu.core_type = #tpu.core_type<tc>, window_params = [{transform_indices = @transform_0, window_bounds = array<i64: 256, 64>}, {transform_indices = @transform_1, window_bounds = array<i64: 256, 64>}, {transform_indices = @transform_2, window_bounds = array<i64: 256, 64>}, {pipeline_mode = #tpu.pipeline_mode<synchronous>, transform_indices = @transform_3, window_bounds = array<i64: 448, 128>}, {pipeline_mode = #tpu.pipeline_mode<synchronous>, transform_indices = @transform_4, window_bounds = array<i64: 8, 128>}, {transform_indices = @transform_5, window_bounds = array<i64: 256, 128>}]} {
    %c0 = arith.constant 0 : index
    %c0_0 = arith.constant 0 : index
    %0 = vector.load %arg1[%c0, %c0_0] : memref<256x64xf32, #tpu.memory_space<vmem>>, vector<256x64xf32>
    %c0_1 = arith.constant 0 : index
    %c0_2 = arith.constant 0 : index
    %1 = vector.load %arg2[%c0_1, %c0_2] : memref<256x64xf32, #tpu.memory_space<vmem>>, vector<256x64xf32>
    %c0_3 = arith.constant 0 : index
    %c0_4 = arith.constant 0 : index
    %2 = vector.load %arg3[%c0_3, %c0_4] : memref<256x64xf32, #tpu.memory_space<vmem>>, vector<256x64xf32>
    %3 = arith.truncf %0 : vector<256x64xf32> to vector<256x64xbf16>
    %4 = arith.truncf %1 : vector<256x64xf32> to vector<256x64xbf16>
    %5 = tpu.concatenate %3, %4 in 1 : vector<256x64xbf16>, vector<256x64xbf16> -> vector<256x128xbf16>
    %c0_5 = arith.constant 0 : index
    %c0_6 = arith.constant 0 : index
    %6 = vector.load %arg4[%c0_5, %c0_6] : memref<448x128xbf16, #tpu.memory_space<vmem>>, vector<128x128xbf16>
    %cst = arith.constant dense<0.000000e+00> : vector<256x128xf32>
    %7 = tpu.matmul %5, %6, %cst {dimension_numbers = #tpu.dot_dimension_numbers<[1], [0], [0], [1], [0, 0, 1, 1], [], []>} : vector<256x128xbf16>, vector<128x128xbf16>, vector<256x128xf32> -> vector<256x128xf32>
    %c0_7 = arith.constant 0 : index
    %c0_8 = arith.constant 0 : index
    %8 = vector.load %arg5[%c0_7, %c0_8] : memref<8x128xf32, #tpu.memory_space<vmem>>, vector<1x128xf32>
    %9 = vector.broadcast %8 : vector<1x128xf32> to vector<256x128xf32>
    %10 = arith.addf %7, %9 : vector<256x128xf32>
    %11 = vector.extract_strided_slice %10 {offsets = [0, 64], sizes = [256, 64], strides = [1, 1]} : vector<256x128xf32> to vector<256x64xf32>
    %12 = arith.negf %11 : vector<256x64xf32>
    %13 = math.exp %12 : vector<256x64xf32>
    %cst_9 = arith.constant 1.000000e+00 : f32
    %14 = vector.broadcast %cst_9 : f32 to vector<256x64xf32>
    %15 = arith.addf %14, %13 : vector<256x64xf32>
    %16 = arith.divf %14, %15 : vector<256x64xf32>
    %17 = arith.subf %1, %2 : vector<256x64xf32>
    %18 = arith.mulf %16, %17 : vector<256x64xf32>
    %19 = arith.addf %2, %18 : vector<256x64xf32>
    %20 = arith.truncf %19 : vector<256x64xf32> to vector<256x64xbf16>
    %c128 = arith.constant 128 : index
    %c0_10 = arith.constant 0 : index
    %21 = vector.load %arg4[%c128, %c0_10] : memref<448x128xbf16, #tpu.memory_space<vmem>>, vector<64x128xbf16>
    %cst_11 = arith.constant dense<0.000000e+00> : vector<256x128xf32>
    %22 = tpu.matmul %20, %21, %cst_11 {dimension_numbers = #tpu.dot_dimension_numbers<[1], [0], [0], [1], [0, 0, 1, 1], [], []>} : vector<256x64xbf16>, vector<64x128xbf16>, vector<256x128xf32> -> vector<256x128xf32>
    %23 = arith.addf %10, %22 : vector<256x128xf32>
    %cst_12 = arith.constant 5.000000e-01 : f32
    %24 = vector.broadcast %cst_12 : f32 to vector<256x128xf32>
    %25 = arith.mulf %24, %23 : vector<256x128xf32>
    %cst_13 = arith.constant 0.707106769 : f32
    %26 = vector.broadcast %cst_13 : f32 to vector<256x128xf32>
    %27 = arith.mulf %23, %26 : vector<256x128xf32>
    %28 = math.erf %27 : vector<256x128xf32>
    %cst_14 = arith.constant 1.000000e+00 : f32
    %29 = vector.broadcast %cst_14 : f32 to vector<256x128xf32>
    %30 = arith.addf %29, %28 : vector<256x128xf32>
    %31 = arith.mulf %25, %30 : vector<256x128xf32>
    %32 = arith.truncf %31 : vector<256x128xf32> to vector<256x128xbf16>
    %c192 = arith.constant 192 : index
    %c0_15 = arith.constant 0 : index
    %33 = vector.load %arg4[%c192, %c0_15] : memref<448x128xbf16, #tpu.memory_space<vmem>>, vector<128x128xbf16>
    %cst_16 = arith.constant dense<0.000000e+00> : vector<256x128xf32>
    %34 = tpu.matmul %32, %33, %cst_16 {dimension_numbers = #tpu.dot_dimension_numbers<[1], [0], [0], [1], [0, 0, 1, 1], [], []>} : vector<256x128xbf16>, vector<128x128xbf16>, vector<256x128xf32> -> vector<256x128xf32>
    %c1 = arith.constant 1 : index
    %c0_17 = arith.constant 0 : index
    %35 = vector.load %arg5[%c1, %c0_17] : memref<8x128xf32, #tpu.memory_space<vmem>>, vector<1x128xf32>
    %36 = vector.broadcast %35 : vector<1x128xf32> to vector<256x128xf32>
    %37 = arith.addf %34, %36 : vector<256x128xf32>
    %cst_18 = arith.constant 5.000000e-01 : f32
    %38 = vector.broadcast %cst_18 : f32 to vector<256x128xf32>
    %39 = arith.mulf %38, %37 : vector<256x128xf32>
    %cst_19 = arith.constant 0.707106769 : f32
    %40 = vector.broadcast %cst_19 : f32 to vector<256x128xf32>
    %41 = arith.mulf %37, %40 : vector<256x128xf32>
    %42 = math.erf %41 : vector<256x128xf32>
    %cst_20 = arith.constant 1.000000e+00 : f32
    %43 = vector.broadcast %cst_20 : f32 to vector<256x128xf32>
    %44 = arith.addf %43, %42 : vector<256x128xf32>
    %45 = arith.mulf %39, %44 : vector<256x128xf32>
    %46 = arith.truncf %45 : vector<256x128xf32> to vector<256x128xbf16>
    %c320 = arith.constant 320 : index
    %c0_21 = arith.constant 0 : index
    %47 = vector.load %arg4[%c320, %c0_21] : memref<448x128xbf16, #tpu.memory_space<vmem>>, vector<128x128xbf16>
    %cst_22 = arith.constant dense<0.000000e+00> : vector<256x128xf32>
    %48 = tpu.matmul %46, %47, %cst_22 {dimension_numbers = #tpu.dot_dimension_numbers<[1], [0], [0], [1], [0, 0, 1, 1], [], []>} : vector<256x128xbf16>, vector<128x128xbf16>, vector<256x128xf32> -> vector<256x128xf32>
    %c2 = arith.constant 2 : index
    %c0_23 = arith.constant 0 : index
    %49 = vector.load %arg5[%c2, %c0_23] : memref<8x128xf32, #tpu.memory_space<vmem>>, vector<1x128xf32>
    %50 = vector.broadcast %49 : vector<1x128xf32> to vector<256x128xf32>
    %51 = arith.addf %48, %50 : vector<256x128xf32>
    %cst_24 = arith.constant 5.000000e-01 : f32
    %52 = vector.broadcast %cst_24 : f32 to vector<256x128xf32>
    %53 = arith.mulf %52, %51 : vector<256x128xf32>
    %cst_25 = arith.constant 0.707106769 : f32
    %54 = vector.broadcast %cst_25 : f32 to vector<256x128xf32>
    %55 = arith.mulf %51, %54 : vector<256x128xf32>
    %56 = math.erf %55 : vector<256x128xf32>
    %cst_26 = arith.constant 1.000000e+00 : f32
    %57 = vector.broadcast %cst_26 : f32 to vector<256x128xf32>
    %58 = arith.addf %57, %56 : vector<256x128xf32>
    %59 = arith.mulf %53, %58 : vector<256x128xf32>
    %60 = arith.truncf %59 : vector<256x128xf32> to vector<256x128xbf16>
    %c0_27 = arith.constant 0 : index
    %c0_28 = arith.constant 0 : index
    %61 = vector.load %arg6[%c0_27, %c0_28] : memref<256x128xbf16, #tpu.memory_space<vmem>>, vector<256x128xbf16>
    tpu.vector_store %arg6[%c0_27, %c0_28], %60 {strides = array<i32>} : memref<256x128xbf16, #tpu.memory_space<vmem>>, vector<256x128xbf16>,
    return
  }
  func.func @transform_0(%arg0: i32) -> (i32, i32) {
    %c0_i32 = arith.constant 0 : i32
    %c0_i32_0 = arith.constant 0 : i32
    return %arg0, %c0_i32 : i32, i32
  }
  func.func @transform_1(%arg0: i32) -> (i32, i32) {
    %c0_i32 = arith.constant 0 : i32
    %c0_i32_0 = arith.constant 0 : i32
    return %arg0, %c0_i32 : i32, i32
  }
  func.func @transform_2(%arg0: i32) -> (i32, i32) {
    %c0_i32 = arith.constant 0 : i32
    %c0_i32_0 = arith.constant 0 : i32
    return %arg0, %c0_i32 : i32, i32
  }
  func.func @transform_3(%arg0: i32) -> (i32, i32) {
    %c0_i32 = arith.constant 0 : i32
    %c0_i32_0 = arith.constant 0 : i32
    %c0_i32_1 = arith.constant 0 : i32
    return %c0_i32, %c0_i32_0 : i32, i32
  }
  func.func @transform_4(%arg0: i32) -> (i32, i32) {
    %c0_i32 = arith.constant 0 : i32
    %c0_i32_0 = arith.constant 0 : i32
    %c0_i32_1 = arith.constant 0 : i32
    return %c0_i32, %c0_i32_0 : i32, i32
  }
  func.func @transform_5(%arg0: i32) -> (i32, i32) {
    %c0_i32 = arith.constant 0 : i32
    %c0_i32_0 = arith.constant 0 : i32
    return %arg0, %c0_i32 : i32, i32
  }
}

</mosaic_0001>

<bundles_post_ra>
// kernel: tpu_custom_call.1
= control target key start
LH: loop header
LB: loop body
LE: loop exit
PB: predicated region body
PF: predicated region fallthrough
CT: control target
= control target key end

     0   :  { %s7205_s23 = smov 64   ;;  %s12395_s0 = inlined_call_operand.vmem [shape: f32[256,64], index: 0, kind: input, shape index: {}]   ;;  %s12396_s1 = inlined_call_operand.vmem [shape: f32[256,64], index: 1, kind: input, shape index: {}]   ;;  %s12397_s2 = inlined_call_operand.vmem [shape: f32[256,64], index: 2, kind: input, shape index: {}]   ;;  %s12398_s3 = inlined_call_operand.vmem [shape: bf16[448,128], index: 3, kind: input, shape index: {}]   ;;  %s12399_s4 = inlined_call_operand.vmem [shape: f32[8,128], index: 4, kind: input, shape index: {}]   ;;  %s12400_s5 = inlined_call_operand.hbm [shape: bf16[256,128], index: 5, kind: output, shape index: {}]  }
   0x1   :  { %v7241_v0 = vld [vmem:[%s12396_s1] sm:$0xff]  ;;  %v7246_v1 = vld [vmem:[%s12396_s1 + $0x8] sm:$0xff]  ;;  %v7251_v2 = vld [vmem:[%s12396_s1 + $0x10] sm:$0xff] }
   0x2   :  { %v150_v3 = vpack.c.bf16 %v7241_v0, %v7241_v0  ;;  %v151_v4 = vpack.c.bf16 %v7246_v1, %v7246_v1  ;;  %v7260_v5 = vld [vmem:[%s12396_s1 + $0x18] sm:$0xff]  ;;  %v7265_v6 = vld [vmem:[%s12396_s1 + $0x20] sm:$0xff]  ;;  %v7270_v7 = vld [vmem:[%s12396_s1 + $0x28] sm:$0xff]  ;;  %v152_v8 = vpack.c.bf16 %v7251_v2, %v7251_v2 }
   0x3   :  { %v153_v9 = vpack.c.bf16 %v7260_v5, %v7260_v5  ;;  %v154_v10 = vpack.c.bf16 %v7265_v6, %v7265_v6  ;;  %v155_v11 = vpack.c.bf16 %v7270_v7, %v7270_v7  ;;  %v7283_v12 = vld [vmem:[%s12396_s1 + $0x30] sm:$0xff]  ;;  %v7288_v13 = vld [vmem:[%s12396_s1 + $0x38] sm:$0xff]  ;;  %v7296_v17 = vld [vmem:[%s12396_s1 + $0x40] sm:$0xff] }
   0x4   :  { %v6682_v14 = vld [vmem:[%s12398_s3 + $0x38] sm:$0xff]  ;;  %v294_v15 = vunpack.c.l.b16 %v150_v3  ;;  %v295_v16 = vunpack.c.l.b16 %v151_v4  ;;  %v156_v20 = vpack.c.bf16 %v7283_v12, %v7283_v12  ;;  %v157_v21 = vpack.c.bf16 %v7288_v13, %v7288_v13  ;;  %v6681_v22 = vld [vmem:[%s12398_s3 + $0x30] sm:$0xff]  ;;  %v7308_v23 = vld [vmem:[%s12396_s1 + $0x48] sm:$0xff] }
   0x5   :  { %v298_v18 = vunpack.c.l.b16 %v154_v10  ;;  %v299_v19 = vunpack.c.l.b16 %v155_v11  ;;  %505 = vmatpush.bf16.msra.mxu0 %v6682_v14  ;;  %v158_v25 = vpack.c.bf16 %v7296_v17, %v7296_v17  ;;  %v159_v26 = vpack.c.bf16 %v7308_v23, %v7308_v23  ;;  %v6680_v30 = vld [vmem:[%s12398_s3 + $0x28] sm:$0xff]  ;;  %v7320_v31 = vld [vmem:[%s12396_s1 + $0x50] sm:$0xff]  ;;  %v7325_v32 = vld [vmem:[%s12396_s1 + $0x58] sm:$0xff] }
   0x6   :  { %v326_v24 = vpack.c.b16 %v295_v16, %v294_v15  ;;  %v296_v27 = vunpack.c.l.b16 %v152_v8  ;;  %v297_v28 = vunpack.c.l.b16 %v153_v9  ;;  %v7331_v35 = vld [vmem:[%s12396_s1 + $0x60] sm:$0xff]  ;;  %v160_v36 = vpack.c.bf16 %v7320_v31, %v7320_v31  ;;  %v67_v39 = vld [vmem:[%s12396_s1 + $0x68] sm:$0xff] }
   0x7   :  { %v328_v29 = vpack.c.b16 %v299_v19, %v298_v18  ;;  %v302_v33 = vunpack.c.l.b16 %v158_v25  ;;  %v303_v34 = vunpack.c.l.b16 %v159_v26  ;;  %v300_v37 = vunpack.c.l.b16 %v156_v20 }
   0x8   :  { %342 = vrot.lane.b32.xlu0 %v326_v24, %s7205_s23  ;;  %v301_v38 = vunpack.c.l.b16 %v157_v21  ;;  %v161_v40 = vpack.c.bf16 %v7325_v32, %v7325_v32 }
   0x9   :  { %346 = vrot.lane.b32.xlu1 %v328_v29, %s7205_s23  ;;  %506 = vmatpush.bf16.msra.mxu0 %v6681_v22 }
   0xa   :  { %10 = vsyncpa [#allocation3], 0  ;;  %v330_v41 = vpack.c.b16 %v303_v34, %v302_v33  ;;  %v327_v42 = vpack.c.b16 %v297_v28, %v296_v27  ;;  %v162_v43 = vpack.c.bf16 %v7331_v35, %v7331_v35  ;;  %v163_v44 = vpack.c.bf16 %v67_v39, %v67_v39  ;;  %v6679_v48 = vld [vmem:[%s12398_s3 + $0x20] sm:$0xff]  ;;  %v6678_v52 = vld [vmem:[%s12398_s3 + $0x18] sm:$0xff]  ;;  %s6407_s10 = sshll.u32 %s12400_s5, 4  ;;  %s7206_s11 = smov [#allocation2]   ;;  %s6408_s10 = int_to_ptr.hbm [resolvable:$true] %s6407_s10 }
   0xb   :  { %v304_v45 = vunpack.c.l.b16 %v160_v36  ;;  %v305_v46 = vunpack.c.l.b16 %v161_v40  ;;  %v329_v47 = vpack.c.b16 %v301_v38, %v300_v37  ;;  %v6677_v54 = vld [vmem:[%s12398_s3 + $0x10] sm:$0xff]  ;;  %v6676_v55 = vld [vmem:[%s12398_s3 + $0x8] sm:$0xff]  ;;  %v6675_v56 = vld [vmem:[%s12398_s3] sm:$0xff]  ;;  %vm374_vm0 = vcmask 523264   ;;  %s6405_s12 = sshll.u32 %s7206_s11, 4  ;;  %s7207_s13 = smov 4   ;;  %s6406_s12 = int_to_ptr.vmem [resolvable:$true] %s6405_s12 }
   0xc   :  { %350 = vrot.lane.b32.xlu2 %v330_v41, %s7205_s23  ;;  %v306_v49 = vunpack.c.l.b16 %v162_v43  ;;  %v307_v50 = vunpack.c.l.b16 %v163_v44  ;;  %v68_v57 = vld [vmem:[%s12396_s1 + $0x70] sm:$0xff]  ;;  %v69_v58 = vld [vmem:[%s12396_s1 + $0x78] sm:$0xff]  ;;  %v22_v3 = vld [vmem:[%s12395_s0] sm:$0xff] }
   0xd   :  { %507 = vmatpush.bf16.msra.mxu0 %v6680_v30  ;;  %v331_v51 = vpack.c.b16 %v305_v46, %v304_v45  ;;  %v164_v59 = vpack.c.bf16 %v68_v57, %v68_v57  ;;  %v165_v60 = vpack.c.bf16 %v69_v58, %v69_v58  ;;  %v23_v4 = vld [vmem:[%s12395_s0 + $0x8] sm:$0xff]  ;;  %v118_v8 = vpack.c.bf16 %v22_v3, %v22_v3  ;;  %v24_v15 = vld [vmem:[%s12395_s0 + $0x10] sm:$0xff]  ;;  %v25_v18 = vld [vmem:[%s12395_s0 + $0x18] sm:$0xff] }
   0xe   :  { %v332_v53 = vpack.c.b16 %v307_v50, %v306_v49  ;;  %v119_v9 = vpack.c.bf16 %v23_v4, %v23_v4  ;;  %v120_v20 = vpack.c.bf16 %v24_v15, %v24_v15  ;;  %v72_v21 = vld [vmem:[%s12396_s1 + $0x90] sm:$0xff]  ;;  %v73_v22 = vld [vmem:[%s12396_s1 + $0x98] sm:$0xff]  ;;  %v70_v24 = vld [vmem:[%s12396_s1 + $0x80] sm:$0xff]  ;;  %v121_v25 = vpack.c.bf16 %v25_v18, %v25_v18 }
   0xf   :  { %v308_v61 = vunpack.c.l.b16 %v164_v59  ;;  %v309_v62 = vunpack.c.l.b16 %v165_v60  ;;  %v214_v10 = vunpack.c.l.b16 %v118_v8  ;;  %v168_v26 = vpack.c.bf16 %v72_v21, %v72_v21  ;;  %v71_v28 = vld [vmem:[%s12396_s1 + $0x88] sm:$0xff]  ;;  %v7415_v49 = vld [vmem:[%s12397_s2] sm:$0xff]  ;;  %v28_v59 = vld [vmem:[%s12395_s0 + $0x30] sm:$0xff] }
  0x10   :  { %344 = vrot.lane.b32.xlu0 %v327_v42, %s7205_s23  ;;  %v215_v11 = vunpack.c.l.b16 %v119_v9  ;;  %v169_v27 = vpack.c.bf16 %v73_v22, %v73_v22  ;;  %v166_v29 = vpack.c.bf16 %v70_v24, %v70_v24  ;;  %v167_v30 = vpack.c.bf16 %v71_v28, %v71_v28  ;;  %v7400_v42 = vld [vmem:[%s12397_s2 + $0x8] sm:$0xff]  ;;  %v74_v15 = vld [vmem:[%s12396_s1 + $0xa0] sm:$0xff] }
  0x11   :  { %348 = vrot.lane.b32.xlu1 %v329_v47, %s7205_s23  ;;  %508 = vmatpush.bf16.msra.mxu0 %v6679_v48  ;;  %v333_v63 = vpack.c.b16 %v309_v62, %v308_v61  ;;  %v312_v33 = vunpack.c.l.b16 %v168_v26  ;;  %v216_v38 = vunpack.c.l.b16 %v120_v20  ;;  %v217_v39 = vunpack.c.l.b16 %v121_v25  ;;  %v26_v47 = vld [vmem:[%s12395_s0 + $0x20] sm:$0xff]  ;;  %v27_v48 = vld [vmem:[%s12395_s0 + $0x28] sm:$0xff] }
  0x12   :  { %v246_v14 = vpack.c.b16 %v215_v11, %v214_v10  ;;  %v313_v34 = vunpack.c.l.b16 %v169_v27  ;;  %v310_v36 = vunpack.c.l.b16 %v166_v29  ;;  %v311_v37 = vunpack.c.l.b16 %v167_v30  ;;  %v91_v60 = vld [vmem:[%s12397_s2 + $0x28] sm:$0xff]  ;;  %v7464_v18 = vld [vmem:[%s12397_s2 + $0x20] sm:$0xff] }
  0x13   :  { %v247_v43 = vpack.c.b16 %v217_v39, %v216_v38  ;;  %v1203_v45 = vsub.f32 %v7246_v1, %v7400_v42  ;;  %v7420_v1 = vld [vmem:[%s12397_s2 + $0x18] sm:$0xff]  ;;  %v122_v50 = vpack.c.bf16 %v26_v47, %v26_v47  ;;  %v124_v61 = vpack.c.bf16 %v28_v59, %v28_v59 }
  0x14   :  { %352 = vrot.lane.b32.xlu2 %v331_v51, %s7205_s23  ;;  %v335_v40 = vpack.c.b16 %v313_v34, %v312_v33  ;;  %v334_v41 = vpack.c.b16 %v311_v37, %v310_v36  ;;  %v123_v51 = vpack.c.bf16 %v27_v48, %v27_v48  ;;  %v1207_v3 = vsub.f32 %v7270_v7, %v91_v60  ;;  %v32_v34 = vld [vmem:[%s12395_s0 + $0x50] sm:$0xff]  ;;  %v77_v37 = vld [vmem:[%s12396_s1 + $0xb8] sm:$0xff]  ;;  %v79_v60 = vld [vmem:[%s12396_s1 + $0xc8] sm:$0xff] }
  0x15   :  { %509 = vmatpush.bf16.msra.mxu0 %v6678_v52  ;;  %v1202_v52 = vsub.f32 %v7241_v0, %v7415_v49  ;;  %v29_v0 = vld [vmem:[%s12395_s0 + $0x38] sm:$0xff]  ;;  %v220_v4 = vunpack.c.l.b16 %v124_v61  ;;  %v170_v20 = vpack.c.bf16 %v74_v15, %v74_v15  ;;  %v1206_v22 = vsub.f32 %v7265_v6, %v7464_v18  ;;  %v76_v36 = vld [vmem:[%s12396_s1 + $0xb0] sm:$0xff] }
  0x16   :  { %v125_v62 = vpack.c.bf16 %v29_v0, %v29_v0  ;;  %v33_v6 = vld [vmem:[%s12395_s0 + $0x58] sm:$0xff]  ;;  %v128_v38 = vpack.c.bf16 %v32_v34, %v32_v34  ;;  %v78_v0 = vld [vmem:[%s12396_s1 + $0xc0] sm:$0xff] }
  0x17   :  { %v314_v24 = vunpack.c.l.b16 %v170_v20  ;;  %v129_v39 = vpack.c.bf16 %v33_v6, %v33_v6  ;;  %v174_v61 = vpack.c.bf16 %v78_v0, %v78_v0  ;;  %v81_v20 = vld [vmem:[%s12396_s1 + $0xd8] sm:$0xff] }
  0x18   :  { %354 = vrot.lane.b32.xlu0 %v332_v53, %s7205_s23  ;;  %v1205_v53 = vsub.f32 %v7260_v5, %v7420_v1  ;;  %v7438_v5 = vld [vmem:[%s12397_s2 + $0x10] sm:$0xff]  ;;  %v221_v8 = vunpack.c.l.b16 %v125_v62  ;;  %v175_v62 = vpack.c.bf16 %v79_v60, %v79_v60 }
  0x19   :  { %510 = vmatpush.bf16.msra.mxu0 %v6677_v54  ;;  %356 = vrot.lane.b32.xlu1 %v333_v63, %s7205_s23  ;;  %v218_v54 = vunpack.c.l.b16 %v122_v50  ;;  %v1204_v63 = vsub.f32 %v7251_v2, %v7438_v5  ;;  %v31_v2 = vld [vmem:[%s12395_s0 + $0x48] sm:$0xff] }
  0x1a   :  { %v249_v9 = vpack.c.b16 %v221_v8, %v220_v4  ;;  %v319_v4 = vunpack.c.l.b16 %v175_v62  ;;  %v36_v8 = vld [vmem:[%s12395_s0 + $0x70] sm:$0xff] }
  0x1c   :  { %358 = vrot.lane.b32.xlu2 %v334_v41, %s7205_s23  ;;  %v173_v41 = vpack.c.bf16 %v77_v37, %v77_v37  ;;  %v7522_v37 = vld [vmem:[%s12399_s4] ss:$0 sm:$0xff] }
  0x1d   :  { %511 = vmatpush.bf16.msra.mxu0 %v6676_v55  ;;  %v219_v55 = vunpack.c.l.b16 %v123_v51 }
  0x20   :  { %360 = vrot.lane.b32.xlu0 %v335_v40, %s7205_s23  ;;  %v172_v40 = vpack.c.bf16 %v76_v36, %v76_v36 }
  0x21   :  { %512 = vmatpush.bf16.msra.mxu0 %v6675_v56  ;;  %v248_v56 = vpack.c.b16 %v219_v55, %v218_v54 }
  0x24   :  { %1266 = vrot.lane.b32.xlu2 %v1202_v52, %s7205_s23  ;;  %v34_v52 = vld [vmem:[%s12395_s0 + $0x60] sm:$0xff] }
  0x25   :  { %v130_v54 = vpack.c.bf16 %v34_v52, %v34_v52 }
  0x28   :  { %1268 = vrot.lane.b32.xlu0 %v1203_v45, %s7205_s23  ;;  %v224_v45 = vunpack.c.l.b16 %v128_v38 }
  0x2c   :  { %1270 = vrot.lane.b32.xlu2 %v1204_v63, %s7205_s23 }
  0x30   :  { %1272 = vrot.lane.b32.xlu0 %v1205_v53, %s7205_s23  ;;  %v35_v53 = vld [vmem:[%s12395_s0 + $0x68] sm:$0xff] }
  0x31   :  { %v131_v55 = vpack.c.bf16 %v35_v53, %v35_v53 }
  0x34   :  { %1274 = vrot.lane.b32.xlu2 %v1206_v22, %s7205_s23  ;;  %v177_v22 = vpack.c.bf16 %v81_v20, %v81_v20 }
  0x38   :  { %1276 = vrot.lane.b32.xlu0 %v1207_v3, %s7205_s23  ;;  %v318_v3 = vunpack.c.l.b16 %v174_v61 }
  0x66   :  { %v351_v30 = vpop.permute.xlu2 %350 }
  0x6e   :  { %v353_v50 = vpop.permute.xlu2 %352 }
  0x76   :  { %v359_v38 = vpop.permute.xlu2 %358 }
  0x7a   :  { %v343_v16 = vpop.permute.xlu0 %342 }
  0x7b   :  { %v377_v19 = vsel %vm374_vm0, %v246_v14, %v343_v16  ;;  %v347_v57 = vpop.permute.xlu1 %346  ;;  %v30_v14 = vld [vmem:[%s12395_s0 + $0x40] sm:$0xff]  ;;  %v75_v16 = vld [vmem:[%s12396_s1 + $0xa8] sm:$0xff] }
  0x7c   :  { %513 = vmatmul.bf16.vlgmr.msra.gmra.mxu0 %v377_v19  ;;  %v385_v58 = vsel %vm374_vm0, %v248_v56, %v347_v57  ;;  %v126_v7 = vpack.c.bf16 %v30_v14, %v30_v14  ;;  %v127_v19 = vpack.c.bf16 %v31_v2, %v31_v2  ;;  %v171_v21 = vpack.c.bf16 %v75_v16, %v75_v16 }
  0x7d   :  { %v226_v56 = vunpack.c.l.b16 %v130_v54  ;;  %v227_v57 = vunpack.c.l.b16 %v131_v55 }
  0x7e   :  { %v315_v25 = vunpack.c.l.b16 %v171_v21  ;;  %v222_v26 = vunpack.c.l.b16 %v126_v7  ;;  %v223_v27 = vunpack.c.l.b16 %v127_v19  ;;  %v80_v19 = vld [vmem:[%s12396_s1 + $0xd0] sm:$0xff]  ;;  %v1267_v20 = vpop.permute.xlu2 %1266 }
  0x7f   :  { %v176_v21 = vpack.c.bf16 %v80_v19, %v80_v19 }
  0x80   :  { %v336_v28 = vpack.c.b16 %v315_v25, %v314_v24  ;;  %v250_v29 = vpack.c.b16 %v223_v27, %v222_v26  ;;  %v321_v26 = vunpack.c.l.b16 %v177_v22  ;;  %v38_v27 = vld [vmem:[%s12395_s0 + $0x80] sm:$0xff] }
  0x81   :  { %v320_v25 = vunpack.c.l.b16 %v176_v21 }
  0x82   :  { %v345_v44 = vpop.permute.xlu0 %344  ;;  %362 = vrot.lane.b32.xlu1 %v336_v28, %s7205_s23  ;;  %v393_v33 = vsel %vm374_vm0, %v250_v29, %v351_v30  ;;  %v39_v28 = vld [vmem:[%s12395_s0 + $0x88] sm:$0xff]  ;;  %v134_v30 = vpack.c.bf16 %v38_v27, %v38_v27 }
  0x83   :  { %v381_v46 = vsel %vm374_vm0, %v247_v43, %v345_v44  ;;  %v349_v10 = vpop.permute.xlu1 %348  ;;  %v316_v43 = vunpack.c.l.b16 %v172_v40  ;;  %v317_v44 = vunpack.c.l.b16 %v173_v41  ;;  %v339_v29 = vpack.c.b16 %v321_v26, %v320_v25 }
  0x84   :  { %v389_v11 = vsel %vm374_vm0, %v249_v9, %v349_v10  ;;  %v37_v9 = vld [vmem:[%s12395_s0 + $0x78] sm:$0xff]  ;;  %v338_v10 = vpack.c.b16 %v319_v4, %v318_v3  ;;  %v230_v34 = vunpack.c.l.b16 %v134_v30 }
  0x85   :  { %v337_v47 = vpack.c.b16 %v317_v44, %v316_v43  ;;  %v133_v14 = vpack.c.bf16 %v37_v9, %v37_v9  ;;  %368 = vrot.lane.b32.xlu0 %v339_v29, %s7205_s23  ;;  %v40_v43 = vld [vmem:[%s12395_s0 + $0x90] sm:$0xff]  ;;  %v41_v44 = vld [vmem:[%s12395_s0 + $0x98] sm:$0xff] }
  0x87   :  { %v229_v7 = vunpack.c.l.b16 %v133_v14 }
  0x8a   :  { %364 = vrot.lane.b32.xlu1 %v337_v47, %s7205_s23  ;;  %v355_v59 = vpop.permute.xlu0 %354  ;;  %v137_v47 = vpack.c.bf16 %v41_v44, %v41_v44 }
  0x8b   :  { %v357_v16 = vpop.permute.xlu1 %356 }
  0x8c   :  { %518 = vmatmul.bf16.gmra.mxu0 %v381_v46  ;;  %v225_v46 = vunpack.c.l.b16 %v129_v39 }
  0x8e   :  { %v251_v48 = vpack.c.b16 %v225_v46, %v224_v45  ;;  %v136_v46 = vpack.c.bf16 %v40_v43, %v40_v43 }
  0x90   :  { %v397_v51 = vsel %vm374_vm0, %v251_v48, %v353_v50  ;;  %v232_v50 = vunpack.c.l.b16 %v136_v46 }
  0x92   :  { %366 = vrot.lane.b32.xlu1 %v338_v10, %s7205_s23 }
  0x9c   :  { %523 = vmatmul.bf16.gmra.mxu0 %v385_v58  ;;  %v252_v58 = vpack.c.b16 %v227_v57, %v226_v56  ;;  %v361_v57 = vpop.permute.xlu0 %360 }
  0x9e   :  { %v401_v63 = vsel %vm374_vm0, %v252_v58, %v355_v59 }
  0xa4   :  { %v1269_v44 = vpop.permute.xlu0 %1268 }
  0xac   :  { %528 = vmatmul.bf16.gmra.mxu0 %v389_v11  ;;  %v132_v11 = vpack.c.bf16 %v36_v8, %v36_v8 }
  0xae   :  { %v228_v2 = vunpack.c.l.b16 %v132_v11 }
  0xb0   :  { %v253_v15 = vpack.c.b16 %v229_v7, %v228_v2 }
  0xb2   :  { %v405_v24 = vsel %vm374_vm0, %v253_v15, %v357_v16 }
  0xbc   :  { %533 = vmatmul.bf16.gmra.mxu0 %v393_v33  ;;  %v135_v33 = vpack.c.bf16 %v39_v28, %v39_v28 }
  0xbe   :  { %v231_v6 = vunpack.c.l.b16 %v135_v33 }
  0xc0   :  { %v254_v36 = vpack.c.b16 %v231_v6, %v230_v34  ;;  %v7558_v6 = vld [vmem:[%s12397_s2 + $0x30] sm:$0xff] }
  0xc1   :  { %v1208_v46 = vsub.f32 %v7283_v12, %v7558_v6  ;;  %v83_v12 = vld [vmem:[%s12396_s1 + $0xe8] sm:$0xff] }
  0xc2   :  { %v409_v40 = vsel %vm374_vm0, %v254_v36, %v359_v38 }
  0xcc   :  { %538 = vmatmul.bf16.gmra.mxu0 %v397_v51  ;;  %v233_v51 = vunpack.c.l.b16 %v137_v47 }
  0xce   :  { %v255_v56 = vpack.c.b16 %v233_v51, %v232_v50 }
  0xd0   :  { %v413_v59 = vsel %vm374_vm0, %v255_v56, %v361_v57 }
  0xdc   :  { %543 = vmatmul.bf16.gmra.mxu0 %v401_v63 }
  0xec   :  { %548 = vmatmul.bf16.gmra.mxu0 %v405_v24 }
  0xf9   :  { %v514_v39 = vpop.f32.mrf.mxu0 }
  0xfa   :  { %v7526_v41 = vadd.f32 %v7522_v37, %v514_v39 }
  0xfc   :  { %v6451_v45 = vmul.f32 -1.442695, %v7526_v41  ;;  %553 = vmatmul.bf16.gmra.mxu0 %v409_v40 }
  0xfe   :  { %6804 = vpow2.f32 %v6451_v45 }
 0x101   :  { %v516_v48 = vpop.f32.mrf.mxu0 }
 0x102   :  { %v7536_v52 = vadd.f32 %v7522_v37, %v516_v48 }
 0x104   :  { %v6805_v53 = vpop.eup %6804  ;;  %v6452_v54 = vmul.f32 -1.442695, %v7536_v52 }
 0x105   :  { %v690_v55 = vadd.f32 1.0, %v6805_v53 }
 0x106   :  { %6806 = vpow2.f32 %v6452_v54  ;;  %v82_v54 = vld [vmem:[%s12396_s1 + $0xe0] sm:$0xff] }
 0x107   :  { %6808 = vrcp.f32 %v690_v55  ;;  %v733_v9 = vand.u32 2147483648, %v690_v55  ;;  %v731_v14 = vand.u32 2147483647, %v690_v55  ;;  %vm727_vm2 = vweird.f32 %v690_v55 }
 0x109   :  { %v519_v58 = vpop.f32.mrf.mxu0  ;;  %v734_v21 = vor.u32 1.1754944e-38, %v733_v9  ;;  %vm732_vm4 = vcmp.eq.f32.partialorder %v731_v14, 8.507059e+37 }
 0x10a   :  { %v7541_v0 = vadd.f32 %v7522_v37, %v519_v58 }
 0x10c   :  { %v6807_v60 = vpop.eup %6806  ;;  %v6453_v61 = vmul.f32 -1.442695, %v7541_v0  ;;  %558 = vmatmul.bf16.gmra.mxu0 %v413_v59 }
 0x10d   :  { %v6809_v62 = vpop.eup %6808  ;;  %v691_v63 = vadd.f32 1.0, %v6807_v60  ;;  %v7583_v60 = vld [vmem:[%s12397_s2 + $0x38] sm:$0xff] }
 0x10e   :  { %6810 = vpow2.f32 %v6453_v61  ;;  %v723_v3 = vmul.f32 %v6809_v62, %v690_v55  ;;  %vm728_vm1 = vweird.f32 %v6809_v62  ;;  %v178_v61 = vpack.c.bf16 %v82_v54, %v82_v54 }
 0x10f   :  { %6812 = vrcp.f32 %v691_v63  ;;  %vm729_vm3 = vmor %vm727_vm2, %vm728_vm1  ;;  %v748_v29 = vand.u32 2147483648, %v691_v63  ;;  %v746_v34 = vand.u32 2147483647, %v691_v63  ;;  %vm742_vm6 = vweird.f32 %v691_v63 }
 0x110   :  { %v724_v4 = vsub.f32 1.0, %v723_v3 }
 0x111   :  { %v521_v8 = vpop.f32.mrf.mxu0  ;;  %v749_v45 = vor.u32 1.1754944e-38, %v748_v29  ;;  %vm747_vm8 = vcmp.eq.f32.partialorder %v746_v34, 8.507059e+37 }
 0x112   :  { %v7545_v10 = vadd.f32 %v7522_v37, %v521_v8  ;;  %v725_v11 = vmul.f32 %v6809_v62, %v724_v4  ;;  %v179_v4 = vpack.c.bf16 %v83_v12, %v83_v12 }
 0x114   :  { %v6811_v2 = vpop.eup %6810  ;;  %v6454_v7 = vmul.f32 -1.442695, %v7545_v10  ;;  %v726_v15 = vadd.f32 %v6809_v62, %v725_v11  ;;  %v1271_v11 = vpop.permute.xlu2 %1270 }
 0x115   :  { %v6813_v16 = vpop.eup %6812  ;;  %v7548_v19 = vadd.f32 1.0, %v6811_v2  ;;  %v1209_v2 = vsub.f32 %v7288_v13, %v7583_v60 }
 0x116   :  { %6814 = vpow2.f32 %v6454_v7  ;;  %v730_v22 = vsel %vm729_vm3, %v6809_v62, %v726_v15  ;;  %v738_v24 = vmul.f32 %v6813_v16, %v691_v63  ;;  %vm743_vm5 = vweird.f32 %v6813_v16 }
 0x117   :  { %6816 = vrcp.f32 %v7548_v19  ;;  %v735_v25 = vsel %vm732_vm4, %v734_v21, %v730_v22  ;;  %vm744_vm7 = vmor %vm742_vm6, %vm743_vm5  ;;  %v763_v56 = vand.u32 2147483648, %v7548_v19  ;;  %v761_v59 = vand.u32 2147483647, %v7548_v19 }
 0x118   :  { %v1362_v26 = vmul.f32 %v1267_v20, %v735_v25  ;;  %v739_v27 = vsub.f32 1.0, %v738_v24  ;;  %vm757_vm10 = vweird.f32 %v7548_v19  ;;  %v322_v22 = vunpack.c.l.b16 %v178_v61  ;;  %v94_v25 = vld [vmem:[%s12397_s2 + $0x40] sm:$0xff] }
 0x119   :  { %v524_v28 = vpop.f32.mrf.mxu0  ;;  %v764_v14 = vor.u32 1.1754944e-38, %v763_v56  ;;  %vm762_vm12 = vcmp.eq.f32.partialorder %v761_v59, 8.507059e+37  ;;  %v363_v56 = vpop.permute.xlu1 %362 }
 0x11a   :  { %v7552_v30 = vadd.f32 %v7522_v37, %v524_v28  ;;  %1426 = vrot.lane.b32.xlu1 %v1362_v26, %s7205_s23  ;;  %v740_v33 = vmul.f32 %v6813_v16, %v739_v27  ;;  %v42_v27 = vld [vmem:[%s12395_s0 + $0xa0] sm:$0xff]  ;;  %v43_v28 = vld [vmem:[%s12395_s0 + $0xa8] sm:$0xff] }
 0x11b   :  { %v138_v29 = vpack.c.bf16 %v42_v27, %v42_v27 }
 0x11c   :  { %v6815_v36 = vpop.eup %6814  ;;  %v6455_v38 = vmul.f32 -1.442695, %v7552_v30  ;;  %v741_v39 = vadd.f32 %v6813_v16, %v740_v33  ;;  %v139_v33 = vpack.c.bf16 %v43_v28, %v43_v28 }
 0x11d   :  { %v6817_v40 = vpop.eup %6816  ;;  %v7561_v43 = vadd.f32 1.0, %v6815_v36 }
 0x11e   :  { %6818 = vpow2.f32 %v6455_v38  ;;  %v745_v47 = vsel %vm744_vm7, %v6813_v16, %v741_v39  ;;  %v753_v48 = vmul.f32 %v6817_v40, %v7548_v19  ;;  %vm758_vm9 = vweird.f32 %v6817_v40 }
 0x11f   :  { %6820 = vrcp.f32 %v7561_v43  ;;  %v750_v50 = vsel %vm747_vm8, %v749_v45, %v745_v47  ;;  %vm759_vm11 = vmor %vm757_vm10, %vm758_vm9  ;;  %v323_v19 = vunpack.c.l.b16 %v179_v4  ;;  %v778_v24 = vand.u32 2147483648, %v7561_v43  ;;  %v1273_v45 = vpop.permute.xlu0 %1272  ;;  %v1275_v4 = vpop.permute.xlu2 %1274 }
 0x120   :  { %v1363_v51 = vmul.f32 %v1269_v44, %v750_v50  ;;  %v754_v53 = vsub.f32 1.0, %v753_v48  ;;  %v776_v26 = vand.u32 2147483647, %v7561_v43  ;;  %vm772_vm14 = vweird.f32 %v7561_v43 }
 0x121   :  { %v526_v55 = vpop.f32.mrf.mxu0  ;;  %v1210_v38 = vsub.f32 %v7296_v17, %v94_v25  ;;  %v340_v39 = vpack.c.b16 %v323_v19, %v322_v22  ;;  %v234_v47 = vunpack.c.l.b16 %v138_v29  ;;  %v235_v48 = vunpack.c.l.b16 %v139_v33  ;;  %v45_v22 = vld [vmem:[%s12395_s0 + $0xb8] sm:$0xff] }
 0x122   :  { %v7575_v57 = vadd.f32 %v7522_v37, %v526_v55  ;;  %1428 = vrot.lane.b32.xlu2 %v1363_v51, %s7205_s23  ;;  %1278 = vrot.lane.b32.xlu1 %v1208_v46, %s7205_s23  ;;  %v755_v58 = vmul.f32 %v6817_v40, %v754_v53  ;;  %v779_v46 = vor.u32 1.1754944e-38, %v778_v24  ;;  %vm777_vm1 = vcmp.eq.f32.partialorder %v776_v26, 8.507059e+37 }
 0x123   :  { %v256_v17 = vpack.c.b16 %v235_v48, %v234_v47  ;;  %v141_v24 = vpack.c.bf16 %v45_v22, %v45_v22  ;;  %v47_v47 = vld [vmem:[%s12395_s0 + $0xc8] sm:$0xff]  ;;  %v98_v48 = vld [vmem:[%s12397_s2 + $0x60] sm:$0xff]  ;;  %v6686_v22 = vld [vmem:[%s12398_s3 + $0x58] sm:$0xff] }
 0x124   :  { %v6819_v62 = vpop.eup %6818  ;;  %v6456_v63 = vmul.f32 -1.442695, %v7575_v57  ;;  %v756_v3 = vadd.f32 %v6817_v40, %v755_v58  ;;  %1654 = vmatpush.bf16.msra.mxu1 %v6686_v22 }
 0x125   :  { %v6821_v8 = vpop.eup %6820  ;;  %v694_v9 = vadd.f32 1.0, %v6819_v62  ;;  %v417_v59 = vsel %vm374_vm0, %v256_v17, %v363_v56  ;;  %v7613_v62 = vld [vmem:[%s12397_s2 + $0x48] sm:$0xff]  ;;  %v237_v28 = vunpack.c.l.b16 %v141_v24 }
 0x126   :  { %6822 = vpow2.f32 %v6456_v63  ;;  %v760_v7 = vsel %vm759_vm11, %v6817_v40, %v756_v3  ;;  %v768_v15 = vmul.f32 %v6821_v8, %v7561_v43  ;;  %vm773_vm13 = vweird.f32 %v6821_v8  ;;  %563 = vmatmul.bf16.gmra.mxu0 %v417_v59  ;;  %v48_v59 = vld [vmem:[%s12395_s0 + $0xd0] sm:$0xff] }
 0x127   :  { %6824 = vrcp.f32 %v694_v9  ;;  %v765_v16 = vsel %vm762_vm12, %v764_v14, %v760_v7  ;;  %vm774_vm15 = vmor %vm772_vm14, %vm773_vm13  ;;  %vm787_vm2 = vweird.f32 %v694_v9  ;;  %v791_v54 = vand.u32 2147483647, %v694_v9  ;;  %v1277_v26 = vpop.permute.xlu0 %1276 }
 0x128   :  { %v1364_v20 = vmul.f32 %v1271_v11, %v765_v16  ;;  %v769_v21 = vsub.f32 1.0, %v768_v15  ;;  %v793_v55 = vand.u32 2147483648, %v694_v9  ;;  %v1211_v11 = vsub.f32 %v7308_v23, %v7613_v62 }
 0x129   :  { %vm792_vm5 = vcmp.eq.f32.partialorder %v791_v54, 8.507059e+37 }
 0x12a   :  { %1430 = vrot.lane.b32.xlu0 %v1364_v20, %s7205_s23  ;;  %1280 = vrot.lane.b32.xlu2 %v1209_v2, %s7205_s23  ;;  %v770_v13 = vmul.f32 %v6821_v8, %v769_v21  ;;  %v794_v61 = vor.u32 1.1754944e-38, %v793_v55  ;;  %v44_v21 = vld [vmem:[%s12395_s0 + $0xb0] sm:$0xff] }
 0x12b   :  { %v140_v19 = vpack.c.bf16 %v44_v21, %v44_v21 }
 0x12c   :  { %v6823_v34 = vpop.eup %6822  ;;  %v771_v36 = vadd.f32 %v6821_v8, %v770_v13  ;;  %v96_v13 = vld [vmem:[%s12397_s2 + $0x50] sm:$0xff] }
 0x12d   :  { %v6825_v40 = vpop.eup %6824  ;;  %v695_v44 = vadd.f32 1.0, %v6823_v34  ;;  %v236_v27 = vunpack.c.l.b16 %v140_v19  ;;  %v1212_v34 = vsub.f32 %v7320_v31, %v96_v13  ;;  %v46_v31 = vld [vmem:[%s12395_s0 + $0xc0] sm:$0xff] }
 0x12e   :  { %v775_v50 = vsel %vm774_vm15, %v6821_v8, %v771_v36  ;;  %v783_v51 = vmul.f32 %v6825_v40, %v694_v9  ;;  %vm788_vm3 = vweird.f32 %v6825_v40  ;;  %v365_v36 = vpop.permute.xlu1 %364 }
 0x12f   :  { %6826 = vrcp.f32 %v695_v44  ;;  %v780_v53 = vsel %vm777_vm1, %v779_v46, %v775_v50  ;;  %vm789_vm4 = vmor %vm787_vm2, %vm788_vm3  ;;  %vm802_vm6 = vweird.f32 %v695_v44  ;;  %v808_v9 = vand.u32 2147483648, %v695_v44 }
 0x130   :  { %v1365_v43 = vmul.f32 %v1273_v45, %v780_v53  ;;  %v784_v12 = vsub.f32 1.0, %v783_v51  ;;  %v806_v16 = vand.u32 2147483647, %v695_v44  ;;  %v529_v45 = vpop.f32.mrf.mxu0  ;;  %v142_v50 = vpack.c.bf16 %v46_v31, %v46_v31 }
 0x131   :  { %v809_v23 = vor.u32 1.1754944e-38, %v808_v9  ;;  %v143_v51 = vpack.c.bf16 %v47_v47, %v47_v47  ;;  %v7670_v24 = vadd.f32 %v7522_v37, %v529_v45 }
 0x132   :  { %1282 = vrot.lane.b32.xlu0 %v1210_v38, %s7205_s23  ;;  %1432 = vrot.lane.b32.xlu1 %v1365_v43, %s7205_s23  ;;  %v785_v58 = vmul.f32 %v6825_v40, %v784_v12  ;;  %vm807_vm9 = vcmp.eq.f32.partialorder %v806_v16, 8.507059e+37  ;;  %v257_v38 = vpack.c.b16 %v237_v28, %v236_v27  ;;  %v238_v53 = vunpack.c.l.b16 %v142_v50  ;;  %v6684_v27 = vld [vmem:[%s12398_s3 + $0x48] sm:$0xff] }
 0x133   :  { %370 = vrot.lane.b32.xlu2 %v340_v39, %s7205_s23  ;;  %v239_v54 = vunpack.c.l.b16 %v143_v51  ;;  %v6457_v13 = vmul.f32 -1.442695, %v7670_v24 }
 0x134   :  { %v786_v63 = vadd.f32 %v6825_v40, %v785_v58 }
 0x135   :  { %v6827_v3 = vpop.eup %6826  ;;  %v258_v56 = vpack.c.b16 %v239_v54, %v238_v53 }
 0x136   :  { %v790_v8 = vsel %vm789_vm4, %v6825_v40, %v786_v63  ;;  %v798_v14 = vmul.f32 %v6827_v3, %v695_v44  ;;  %vm803_vm7 = vweird.f32 %v6827_v3  ;;  %v421_v40 = vsel %vm374_vm0, %v257_v38, %v365_v36  ;;  %v97_v44 = vld [vmem:[%s12397_s2 + $0x58] sm:$0xff]  ;;  %v367_v55 = vpop.permute.xlu1 %366 }
 0x137   :  { %v795_v2 = vsel %vm792_vm5, %v794_v61, %v790_v8  ;;  %vm804_vm8 = vmor %vm802_vm6, %vm803_vm7  ;;  %568 = vmatmul.bf16.gmra.mxu0 %v421_v40  ;;  %v1213_v46 = vsub.f32 %v7325_v32, %v97_v44  ;;  %v1214_v32 = vsub.f32 %v7331_v35, %v98_v48  ;;  %v425_v17 = vsel %vm374_vm0, %v258_v56, %v367_v55  ;;  %v49_v35 = vld [vmem:[%s12395_s0 + $0xd8] sm:$0xff] }
 0x138   :  { %v1366_v7 = vmul.f32 %v1275_v4, %v795_v2  ;;  %v799_v15 = vsub.f32 1.0, %v798_v14  ;;  %v531_v43 = vpop.f32.mrf.mxu0  ;;  %v144_v61 = vpack.c.bf16 %v48_v59, %v48_v59  ;;  %v145_v63 = vpack.c.bf16 %v49_v35, %v49_v35  ;;  %v85_v4 = vld [vmem:[%s12396_s1 + $0xf8] sm:$0xff] }
 0x139   :  { %v7648_v12 = vadd.f32 %v7522_v37, %v531_v43  ;;  %v181_v2 = vpack.c.bf16 %v85_v4, %v85_v4 }
 0x13a   :  { %1284 = vrot.lane.b32.xlu1 %v1211_v11, %s7205_s23  ;;  %v800_v20 = vmul.f32 %v6827_v3, %v799_v15  ;;  %v240_v8 = vunpack.c.l.b16 %v144_v61  ;;  %v241_v11 = vunpack.c.l.b16 %v145_v63 }
 0x13b   :  { %1434 = vrot.lane.b32.xlu2 %v1366_v7, %s7205_s23  ;;  %v6458_v58 = vmul.f32 -1.442695, %v7648_v12  ;;  %v369_v7 = vpop.permute.xlu0 %368 }
 0x13c   :  { %v801_v25 = vadd.f32 %v6827_v3, %v800_v20  ;;  %v259_v15 = vpack.c.b16 %v241_v11, %v240_v8  ;;  %v325_v20 = vunpack.c.l.b16 %v181_v2 }
 0x13d   :  { %6828 = vpow2.f32 %v6458_v58 }
 0x13e   :  { %v805_v29 = vsel %vm804_vm8, %v6827_v3, %v801_v25  ;;  %v84_v3 = vld [vmem:[%s12396_s1 + $0xf0] sm:$0xff]  ;;  %v429_v21 = vsel %vm374_vm0, %v259_v15, %v369_v7 }
 0x13f   :  { %v810_v33 = vsel %vm807_vm9, %v809_v23, %v805_v29  ;;  %v180_v14 = vpack.c.bf16 %v84_v3, %v84_v3  ;;  %v6685_v25 = vld [vmem:[%s12398_s3 + $0x50] sm:$0xff]  ;;  %v6683_v29 = vld [vmem:[%s12398_s3 + $0x40] sm:$0xff] }
 0x140   :  { %v1367_v39 = vmul.f32 %v1277_v26, %v810_v33  ;;  %1655 = vmatpush.bf16.msra.mxu1 %v6685_v25  ;;  %v534_v26 = vpop.f32.mrf.mxu0 }
 0x141   :  { %v324_v16 = vunpack.c.l.b16 %v180_v14  ;;  %v7684_v38 = vadd.f32 %v7522_v37, %v534_v26 }
 0x142   :  { %1436 = vrot.lane.b32.xlu0 %v1367_v39, %s7205_s23 }
 0x143   :  { %1286 = vrot.lane.b32.xlu2 %v1212_v34, %s7205_s23  ;;  %v6829_v9 = vpop.eup %6828  ;;  %v341_v19 = vpack.c.b16 %v325_v20, %v324_v16  ;;  %v6459_v44 = vmul.f32 -1.442695, %v7684_v38 }
 0x144   :  { %v697_v23 = vadd.f32 1.0, %v6829_v9  ;;  %1656 = vmatpush.bf16.msra.mxu1 %v6684_v27 }
 0x145   :  { %372 = vrot.lane.b32.xlu1 %v341_v19, %s7205_s23 }
 0x146   :  { %6830 = vrcp.f32 %v697_v23  ;;  %vm832_vm10 = vweird.f32 %v697_v23  ;;  %v838_v31 = vand.u32 2147483648, %v697_v23  ;;  %v836_v48 = vand.u32 2147483647, %v697_v23 }
 0x147   :  { %573 = vmatmul.bf16.gmra.mxu0 %v425_v17  ;;  %6832 = vpow2.f32 %v6457_v13 }
 0x148   :  { %1657 = vmatpush.bf16.msra.mxu1 %v6683_v29  ;;  %v536_v36 = vpop.f32.mrf.mxu0  ;;  %vm837_vm13 = vcmp.eq.f32.partialorder %v836_v48, 8.507059e+37 }
 0x14a   :  { %1288 = vrot.lane.b32.xlu0 %v1213_v46, %s7205_s23  ;;  %v7688_v46 = vadd.f32 %v7522_v37, %v536_v36 }
 0x14c   :  { %v6831_v28 = vpop.eup %6830  ;;  %v6460_v54 = vmul.f32 -1.442695, %v7688_v46 }
 0x14d   :  { %v828_v33 = vmul.f32 %v6831_v28, %v697_v23  ;;  %v6833_v34 = vpop.eup %6832  ;;  %vm833_vm11 = vweird.f32 %v6831_v28 }
 0x14e   :  { %v696_v40 = vadd.f32 1.0, %v6833_v34  ;;  %vm834_vm12 = vmor %vm832_vm10, %vm833_vm11 }
 0x14f   :  { %v829_v39 = vsub.f32 1.0, %v828_v33 }
 0x150   :  { %6834 = vrcp.f32 %v696_v40  ;;  %v539_v50 = vpop.f32.mrf.mxu0  ;;  %vm817_vm14 = vweird.f32 %v696_v40  ;;  %v823_v7 = vand.u32 2147483648, %v696_v40 }
 0x151   :  { %v830_v45 = vmul.f32 %v6831_v28, %v829_v39  ;;  %6836 = vpow2.f32 %v6459_v44  ;;  %v7692_v43 = vadd.f32 %v7522_v37, %v539_v50  ;;  %v7124_v50 = vld [vmem:[%s12396_s1 + $0x68] sm:$0xff] }
 0x152   :  { %1290 = vrot.lane.b32.xlu0 %v1214_v32, %s7205_s23  ;;  %v839_v32 = vor.u32 1.1754944e-38, %v838_v31  ;;  %6838 = vpow2.f32 %v6460_v54  ;;  %v824_v26 = vor.u32 1.1754944e-38, %v823_v7  ;;  %v7125_v7 = vld [vmem:[%s12396_s1 + $0x70] sm:$0xff] }
 0x153   :  { %v831_v47 = vadd.f32 %v6831_v28, %v830_v45  ;;  %v6461_v61 = vmul.f32 -1.442695, %v7692_v43  ;;  %v99_v45 = vld [vmem:[%s12397_s2 + $0x68] sm:$0xff] }
 0x155   :  { %v835_v55 = vsel %vm834_vm12, %v6831_v28, %v831_v47 }
 0x156   :  { %v6835_v53 = vpop.eup %6834  ;;  %v840_v58 = vsel %vm837_vm13, %v839_v32, %v835_v55 }
 0x157   :  { %578 = vmatmul.bf16.gmra.mxu0 %v429_v21  ;;  %v6837_v56 = vpop.eup %6836  ;;  %v813_v17 = vmul.f32 %v6835_v53, %v696_v40  ;;  %vm818_vm15 = vweird.f32 %v6835_v53  ;;  %v821_v21 = vand.u32 2147483647, %v696_v40 }
 0x158   :  { %v7694_v59 = vadd.f32 1.0, %v6837_v56  ;;  %v541_v4 = vpop.f32.mrf.mxu0  ;;  %v6839_v8 = vpop.eup %6838  ;;  %vm819_vm1 = vmor %vm817_vm14, %vm818_vm15 }
 0x159   :  { %v814_v3 = vsub.f32 1.0, %v813_v17  ;;  %v7700_v14 = vadd.f32 %v7522_v37, %v541_v4  ;;  %v7702_v2 = vadd.f32 1.0, %v6839_v8  ;;  %vm822_vm2 = vcmp.eq.f32.partialorder %v821_v21, 8.507059e+37  ;;  %v100_v4 = vld [vmem:[%s12397_s2 + $0x70] sm:$0xff] }
 0x15a   :  { %6840 = vrcp.f32 %v7694_v59  ;;  %vm847_vm3 = vweird.f32 %v7694_v59  ;;  %v853_v32 = vand.u32 2147483648, %v7694_v59  ;;  %v851_v17 = vand.u32 2147483647, %v7694_v59 }
 0x15b   :  { %6842 = vpow2.f32 %v6461_v61  ;;  %v815_v11 = vmul.f32 %v6835_v53, %v814_v3  ;;  %v6462_v23 = vmul.f32 -1.442695, %v7700_v14  ;;  %vm862_vm7 = vweird.f32 %v7702_v2 }
 0x15c   :  { %6844 = vrcp.f32 %v7702_v2  ;;  %v854_v3 = vor.u32 1.1754944e-38, %v853_v32  ;;  %vm852_vm6 = vcmp.eq.f32.partialorder %v851_v17, 8.507059e+37 }
 0x15d   :  { %v816_v20 = vadd.f32 %v6835_v53, %v815_v11  ;;  %6846 = vpow2.f32 %v6462_v23 }
 0x160   :  { %v6841_v22 = vpop.eup %6840  ;;  %v544_v13 = vpop.f32.mrf.mxu0 }
 0x161   :  { %v6843_v19 = vpop.eup %6842  ;;  %v7709_v27 = vadd.f32 %v7522_v37, %v544_v13  ;;  %vm848_vm4 = vweird.f32 %v6841_v22 }
 0x162   :  { %v7713_v28 = vadd.f32 1.0, %v6843_v19  ;;  %v7715_v34 = vpop.eup %6844  ;;  %vm7735_vm5 = vmor %vm847_vm3, %vm848_vm4 }
 0x163   :  { %v6463_v36 = vmul.f32 -1.442695, %v7709_v27  ;;  %v6847_v44 = vpop.eup %6846  ;;  %v858_v31 = vmul.f32 %v7715_v34, %v7702_v2  ;;  %vm863_vm8 = vweird.f32 %v7715_v34 }
 0x164   :  { %6848 = vrcp.f32 %v7713_v28  ;;  %v7725_v48 = vadd.f32 1.0, %v6847_v44  ;;  %vm7763_vm9 = vmor %vm862_vm7, %vm863_vm8  ;;  %vm877_vm10 = vweird.f32 %v7713_v28  ;;  %v881_v32 = vand.u32 2147483647, %v7713_v28 }
 0x165   :  { %6850 = vpow2.f32 %v6463_v36  ;;  %v859_v55 = vsub.f32 1.0, %v858_v31 }
 0x166   :  { %6852 = vrcp.f32 %v7725_v48  ;;  %vm882_vm14 = vcmp.eq.f32.partialorder %v881_v32, 8.507059e+37  ;;  %vm892_vm15 = vweird.f32 %v7725_v48  ;;  %v7130_v32 = vld [vmem:[%s12396_s1 + $0x90] sm:$0xff] }
 0x17c   :  { %v1429_v51 = vpop.permute.xlu2 %1428 }
 0x17d   :  { %v1523_v15 = vadd.f32 %v1429_v51, %v7400_v42  ;;  %v820_v42 = vsel %vm819_vm1, %v6835_v53, %v816_v20  ;;  %v1215_v51 = vsub.f32 %v7124_v50, %v99_v45  ;;  %v7731_v53 = vpop.eup %6848 }
 0x17e   :  { %v825_v29 = vsel %vm822_vm2, %v824_v26, %v820_v42  ;;  %v6851_v61 = vpop.eup %6850  ;;  %v866_v42 = vand.u32 2147483647, %v7702_v2  ;;  %vm878_vm11 = vweird.f32 %v7731_v53 }
 0x17f   :  { %v7749_v11 = vadd.f32 1.0, %v6851_v61  ;;  %v7758_v19 = vpop.eup %6852  ;;  %vm7794_vm13 = vmor %vm877_vm10, %vm878_vm11 }
 0x180   :  { %vm867_vm12 = vcmp.eq.f32.partialorder %v866_v42, 8.507059e+37  ;;  %vm893_vm1 = vweird.f32 %v7758_v19 }
 0x181   :  { %6854 = vrcp.f32 %v7749_v11  ;;  %vm894_vm2 = vmor %vm892_vm15, %vm893_vm1  ;;  %vm907_vm4 = vweird.f32 %v7749_v11 }
 0x184   :  { %v1281_v35 = vpop.permute.xlu2 %1280 }
 0x185   :  { %v1369_v63 = vmul.f32 %v1281_v35, %v840_v58 }
 0x187   :  { %1440 = vrot.lane.b32.xlu2 %v1369_v63, %s7205_s23  ;;  %v873_v63 = vmul.f32 %v7731_v53, %v7713_v28 }
 0x18c   :  { %v1427_v9 = vpop.permute.xlu1 %1426 }
 0x18d   :  { %v1522_v16 = vadd.f32 %v1427_v9, %v7415_v49  ;;  %v843_v49 = vmul.f32 %v6841_v22, %v7694_v59  ;;  %v371_v58 = vpop.permute.xlu2 %370  ;;  %v860_v59 = vmul.f32 %v7715_v34, %v859_v55  ;;  %v874_v9 = vsub.f32 1.0, %v873_v63  ;;  %v7126_v55 = vld [vmem:[%s12396_s1 + $0x78] sm:$0xff]  ;;  %v6855_v63 = vpop.eup %6854 }
 0x18f   :  { %v1554_v25 = vpack.c.bf16 %v1523_v15, %v1522_v16  ;;  %v844_v40 = vsub.f32 1.0, %v843_v49  ;;  %v1216_v15 = vsub.f32 %v7125_v7, %v100_v4  ;;  %v861_v23 = vadd.f32 %v7715_v34, %v860_v59 }
 0x191   :  { %6499 = vmatmul.msk.bf16.vlgmr.msra.gmra.mxu1 %vm374_vm0, %v1554_v25  ;;  %v845_v47 = vmul.f32 %v6841_v22, %v844_v40  ;;  %v888_v40 = vmul.f32 %v7758_v19, %v7725_v48  ;;  %v865_v31 = vsel %vm7763_vm9, %v7715_v34, %v861_v23 }
 0x193   :  { %v846_v56 = vadd.f32 %v6841_v22, %v845_v47  ;;  %v883_v47 = vand.u32 2147483648, %v7713_v28  ;;  %v889_v4 = vsub.f32 1.0, %v888_v40 }
 0x194   :  { %v1279_v33 = vpop.permute.xlu1 %1278 }
 0x195   :  { %v1368_v39 = vmul.f32 %v1279_v33, %v825_v29  ;;  %v850_v8 = vsel %vm7735_vm5, %v6841_v22, %v846_v56  ;;  %v868_v22 = vand.u32 2147483648, %v7702_v2  ;;  %v875_v29 = vmul.f32 %v7731_v53, %v874_v9  ;;  %v1435_v2 = vpop.permute.xlu2 %1434  ;;  %v102_v9 = vld [vmem:[%s12397_s2 + $0x80] sm:$0xff] }
 0x196   :  { %v855_v16 = vsel %vm852_vm6, %v854_v3, %v850_v8  ;;  %v884_v59 = vor.u32 1.1754944e-38, %v883_v47  ;;  %v890_v7 = vmul.f32 %v7758_v19, %v889_v4  ;;  %vm908_vm5 = vweird.f32 %v6855_v63 }
 0x197   :  { %1438 = vrot.lane.b32.xlu1 %v1368_v39, %s7205_s23  ;;  %v869_v36 = vor.u32 1.1754944e-38, %v868_v22  ;;  %v101_v39 = vld [vmem:[%s12397_s2 + $0x78] sm:$0xff]  ;;  %v896_v22 = vand.u32 2147483647, %v7725_v48  ;;  %v911_v47 = vand.u32 2147483647, %v7749_v11  ;;  %vm909_vm6 = vmor %vm907_vm4, %vm908_vm5 }
 0x198   :  { %v1217_v56 = vsub.f32 %v7126_v55, %v101_v39  ;;  %v891_v42 = vadd.f32 %v7758_v19, %v890_v7  ;;  %v106_v7 = vld [vmem:[%s12397_s2 + $0xa0] sm:$0xff] }
 0x199   :  { %v870_v35 = vsel %vm867_vm12, %v869_v36, %v865_v31  ;;  %vm897_vm3 = vcmp.eq.f32.partialorder %v896_v22, 8.507059e+37  ;;  %vm912_vm7 = vcmp.eq.f32.partialorder %v911_v47, 8.507059e+37 }
 0x19c   :  { %v1431_v54 = vpop.permute.xlu0 %1430 }
 0x19d   :  { %v1524_v25 = vadd.f32 %v1431_v54, %v7438_v5  ;;  %v50_v5 = vld [vmem:[%s12395_s0 + $0xe0] sm:$0xff]  ;;  %v876_v54 = vadd.f32 %v7731_v53, %v875_v29 }
 0x19e   :  { %v146_v44 = vpack.c.bf16 %v50_v5, %v50_v5  ;;  %v895_v5 = vsel %vm894_vm2, %v7758_v19, %v891_v42  ;;  %v546_v19 = vpop.f32.mrf.mxu0 }
 0x19f   :  { %1292 = vrot.lane.b32.xlu1 %v1215_v51, %s7205_s23  ;;  %v880_v28 = vsel %vm7794_vm13, %v7731_v53, %v876_v54  ;;  %v7127_v53 = vld [vmem:[%s12396_s1 + $0x80] sm:$0xff] }
 0x1a0   :  { %v242_v50 = vunpack.c.l.b16 %v146_v44  ;;  %v913_v44 = vand.u32 2147483648, %v7749_v11 }
 0x1a4   :  { %v1283_v20 = vpop.permute.xlu0 %1282  ;;  %v1433_v21 = vpop.permute.xlu1 %1432 }
 0x1a5   :  { %v1370_v13 = vmul.f32 %v1283_v20, %v855_v16  ;;  %v1525_v26 = vadd.f32 %v1433_v21, %v7420_v1  ;;  %v51_v1 = vld [vmem:[%s12395_s0 + $0xe8] sm:$0xff]  ;;  %v885_v16 = vsel %vm882_vm14, %v884_v59, %v880_v28  ;;  %v1526_v20 = vadd.f32 %v1435_v2, %v7464_v18 }
 0x1a6   :  { %v147_v45 = vpack.c.bf16 %v51_v1, %v51_v1  ;;  %v1218_v21 = vsub.f32 %v7127_v53, %v102_v9  ;;  %v7129_v2 = vld [vmem:[%s12396_s1 + $0x88] sm:$0xff] }
 0x1a7   :  { %v1555_v33 = vpack.c.bf16 %v1525_v26, %v1524_v25  ;;  %1442 = vrot.lane.b32.xlu2 %v1370_v13, %s7205_s23  ;;  %1294 = vrot.lane.b32.xlu1 %v1216_v15, %s7205_s23  ;;  %v903_v15 = vmul.f32 %v6855_v63, %v7749_v11  ;;  %v898_v25 = vand.u32 2147483648, %v7725_v48  ;;  %v7128_v26 = vld [vmem:[%s12397_s2 + $0x28] sm:$0xff] }
 0x1a8   :  { %v243_v51 = vunpack.c.l.b16 %v147_v45  ;;  %v103_v48 = vld [vmem:[%s12397_s2 + $0x88] sm:$0xff] }
 0x1a9   :  { %6500 = vmatmul.msk.bf16.gmra.mxu1 %vm374_vm0, %v1555_v33  ;;  %v904_v49 = vsub.f32 1.0, %v903_v15  ;;  %v899_v33 = vor.u32 1.1754944e-38, %v898_v25  ;;  %v1219_v36 = vsub.f32 %v7129_v2, %v103_v48  ;;  %v7132_v15 = vld [vmem:[%s12396_s1 + $0xa0] sm:$0xff]  ;;  %v7870_v25 = vadd.f32 %v7522_v37, %v546_v19 }
 0x1aa   :  { %v260_v61 = vpack.c.b16 %v243_v51, %v242_v50  ;;  %v914_v50 = vor.u32 1.1754944e-38, %v913_v44  ;;  %v104_v51 = vld [vmem:[%s12397_s2 + $0x90] sm:$0xff] }
 0x1ab   :  { %v905_v1 = vmul.f32 %v6855_v63, %v904_v49  ;;  %v900_v39 = vsel %vm897_vm3, %v899_v33, %v895_v5  ;;  %v1220_v55 = vsub.f32 %v7130_v32, %v104_v51 }
 0x1ac   :  { %v1285_v34 = vpop.permute.xlu1 %1284  ;;  %v433_v8 = vsel %vm374_vm0, %v260_v61, %v371_v58  ;;  %v1287_v58 = vpop.permute.xlu2 %1286  ;;  %v53_v61 = vld [vmem:[%s12395_s0 + $0xf8] sm:$0xff] }
 0x1ad   :  { %v1371_v3 = vmul.f32 %v1285_v34, %v870_v35  ;;  %583 = vmatmul.bf16.gmra.mxu0 %v433_v8  ;;  %v1372_v13 = vmul.f32 %v1287_v58, %v885_v16  ;;  %v906_v31 = vadd.f32 %v6855_v63, %v905_v1  ;;  %v105_v35 = vld [vmem:[%s12397_s2 + $0x98] sm:$0xff]  ;;  %v52_v34 = vld [vmem:[%s12395_s0 + $0xf0] sm:$0xff]  ;;  %v149_v8 = vpack.c.bf16 %v53_v61, %v53_v61  ;;  %v7908_v61 = vld [vmem:[%s12399_s4] ss:$0 sm:$0xff] }
 0x1ae   :  { %v148_v59 = vpack.c.bf16 %v52_v34, %v52_v34  ;;  %v1222_v16 = vsub.f32 %v7132_v15, %v106_v7 }
 0x1af   :  { %1296 = vrot.lane.b32.xlu2 %v1217_v56, %s7205_s23  ;;  %1444 = vrot.lane.b32.xlu0 %v1371_v3, %s7205_s23  ;;  %v910_v54 = vsel %vm909_vm6, %v6855_v63, %v906_v31  ;;  %v549_v63 = vpop.f32.mrf.mxu0  ;;  %v7131_v3 = vld [vmem:[%s12396_s1 + $0x98] sm:$0xff]  ;;  %v245_v9 = vunpack.c.l.b16 %v149_v8 }
 0x1b0   :  { %v915_v56 = vsel %vm912_vm7, %v914_v50, %v910_v54  ;;  %v1221_v4 = vsub.f32 %v7131_v3, %v105_v35  ;;  %v244_v28 = vunpack.c.l.b16 %v148_v59 }
 0x1b2   :  { %v261_v58 = vpack.c.b16 %v245_v9, %v244_v28 }
 0x1b4   :  { %v1437_v23 = vpop.permute.xlu0 %1436 }
 0x1b5   :  { %v1527_v18 = vadd.f32 %v7128_v26, %v1437_v23 }
 0x1b7   :  { %v1556_v29 = vpack.c.bf16 %v1527_v18, %v1526_v20  ;;  %1298 = vrot.lane.b32.xlu2 %v1218_v21, %s7205_s23  ;;  %1446 = vrot.lane.b32.xlu0 %v1372_v13, %s7205_s23  ;;  %v551_v20 = vpop.f32.mrf.mxu0  ;;  %v373_v53 = vpop.permute.xlu1 %372  ;;  %v6464_v18 = vmul.f32 -1.442695, %v7870_v25 }
 0x1b8   :  { %v437_v21 = vsel %vm374_vm0, %v261_v58, %v373_v53  ;;  %v7866_v23 = vadd.f32 %v7522_v37, %v551_v20 }
 0x1b9   :  { %6501 = vmatmul.msk.bf16.gmra.mxu1 %vm374_vm0, %v1556_v29  ;;  %v7878_v29 = vadd.f32 %v7522_v37, %v549_v63 }
 0x1ba   :  { %v6466_v22 = vmul.f32 -1.442695, %v7866_v23 }
 0x1bb   :  { %v6465_v1 = vmul.f32 -1.442695, %v7878_v29 }
 0x1bc   :  { %v1289_v40 = vpop.permute.xlu0 %1288  ;;  %6856 = vpow2.f32 %v6466_v22 }
 0x1bd   :  { %v1373_v45 = vmul.f32 %v1289_v40, %v900_v39  ;;  %588 = vmatmul.bf16.gmra.mxu0 %v437_v21  ;;  %6858 = vpow2.f32 %v6464_v18 }
 0x1bf   :  { %1448 = vrot.lane.b32.xlu1 %v1373_v45, %s7205_s23  ;;  %1300 = vrot.lane.b32.xlu0 %v1219_v36, %s7205_s23  ;;  %v554_v13 = vpop.f32.mrf.mxu0 }
 0x1c0   :  { %v7873_v26 = vadd.f32 %v7522_v37, %v554_v13 }
 0x1c2   :  { %v6467_v42 = vmul.f32 -1.442695, %v7873_v26  ;;  %v6857_v49 = vpop.eup %6856 }
 0x1c3   :  { %v705_v33 = vadd.f32 1.0, %v6857_v49  ;;  %v6859_v5 = vpop.eup %6858 }
 0x1c4   :  { %v1291_v11 = vpop.permute.xlu0 %1290  ;;  %6860 = vpow2.f32 %v6467_v42  ;;  %v7881_v36 = vadd.f32 1.0, %v6859_v5 }
 0x1c5   :  { %v1374_v17 = vmul.f32 %v1291_v11, %v915_v56  ;;  %6862 = vrcp.f32 %v705_v33  ;;  %vm952_vm8 = vweird.f32 %v705_v33  ;;  %v956_v9 = vand.u32 2147483647, %v705_v33 }
 0x1c6   :  { %6864 = vpow2.f32 %v6465_v1  ;;  %vm922_vm14 = vweird.f32 %v7881_v36  ;;  %v928_v42 = vand.u32 2147483648, %v7881_v36 }
 0x1c7   :  { %1450 = vrot.lane.b32.xlu1 %v1374_v17, %s7205_s23  ;;  %1302 = vrot.lane.b32.xlu0 %v1220_v55, %s7205_s23  ;;  %v556_v48 = vpop.f32.mrf.mxu0  ;;  %6866 = vrcp.f32 %v7881_v36  ;;  %vm957_vm12 = vcmp.eq.f32.partialorder %v956_v9, 8.507059e+37 }
 0x1c8   :  { %v7894_v32 = vadd.f32 %v7522_v37, %v556_v48 }
 0x1ca   :  { %v6861_v2 = vpop.eup %6860  ;;  %v6468_v34 = vmul.f32 -1.442695, %v7894_v32 }
 0x1cb   :  { %v7883_v39 = vadd.f32 1.0, %v6861_v2  ;;  %v6863_v40 = vpop.eup %6862 }
 0x1cc   :  { %v6865_v45 = vpop.eup %6864  ;;  %v948_v31 = vmul.f32 %v6863_v40, %v705_v33  ;;  %vm953_vm9 = vweird.f32 %v6863_v40 }
 0x1cd   :  { %6868 = vrcp.f32 %v7883_v39  ;;  %v7887_v47 = vpop.eup %6866  ;;  %v7889_v19 = vadd.f32 1.0, %v6865_v45  ;;  %vm7918_vm10 = vmor %vm952_vm8, %vm953_vm9  ;;  %vm967_vm11 = vweird.f32 %v7883_v39  ;;  %v971_v13 = vand.u32 2147483647, %v7883_v39 }
 0x1ce   :  { %v949_v54 = vsub.f32 1.0, %v948_v31  ;;  %v918_v17 = vmul.f32 %v7887_v47, %v7881_v36  ;;  %vm923_vm15 = vweird.f32 %v7887_v47  ;;  %v973_v18 = vand.u32 2147483648, %v7883_v39 }
 0x1cf   :  { %1304 = vrot.lane.b32.xlu1 %v1221_v4, %s7205_s23  ;;  %v559_v44 = vpop.f32.mrf.mxu0  ;;  %6870 = vrcp.f32 %v7889_v19  ;;  %v958_v4 = vand.u32 2147483648, %v705_v33  ;;  %vm7951_vm2 = vmor %vm922_vm14, %vm923_vm15  ;;  %vm972_vm3 = vcmp.eq.f32.partialorder %v971_v13, 8.507059e+37  ;;  %vm937_vm5 = vweird.f32 %v7889_v19 }
 0x1d0   :  { %v7898_v55 = vadd.f32 %v7522_v37, %v559_v44  ;;  %v950_v35 = vmul.f32 %v6863_v40, %v949_v54  ;;  %v919_v8 = vsub.f32 1.0, %v918_v17  ;;  %6872 = vpow2.f32 %v6468_v34 }
 0x1d1   :  { %v959_v58 = vor.u32 1.1754944e-38, %v958_v4  ;;  %v974_v34 = vor.u32 1.1754944e-38, %v973_v18 }
 0x1d2   :  { %v6469_v37 = vmul.f32 -1.442695, %v7898_v55  ;;  %v951_v28 = vadd.f32 %v6863_v40, %v950_v35  ;;  %v920_v53 = vmul.f32 %v7887_v47, %v919_v8  ;;  %v6694_v8 = vld [vmem:[%s12398_s3 + $0x98] sm:$0xff] }
 0x1d3   :  { %v7891_v51 = vpop.eup %6868  ;;  %3261 = vmatpush.bf16.msra.mxu2 %v6694_v8 }
 0x1d4   :  { %v963_v11 = vmul.f32 %v7891_v51, %v7883_v39  ;;  %6874 = vpow2.f32 %v6469_v37  ;;  %v955_v21 = vsel %vm7918_vm10, %v6863_v40, %v951_v28  ;;  %vm968_vm13 = vweird.f32 %v7891_v51  ;;  %v7134_v39 = vld [vmem:[%s12396_s1 + $0xb8] sm:$0xff] }
 0x1d5   :  { %v7916_v7 = vpop.eup %6870  ;;  %v960_v49 = vsel %vm957_vm12, %v959_v58, %v955_v21  ;;  %vm7939_vm1 = vmor %vm967_vm11, %vm968_vm13  ;;  %v921_v2 = vadd.f32 %v7887_v47, %v920_v53  ;;  %v926_v40 = vand.u32 2147483647, %v7881_v36 }
 0x1d6   :  { %v964_v59 = vsub.f32 1.0, %v963_v11  ;;  %v933_v22 = vmul.f32 %v7916_v7, %v7889_v19  ;;  %v6873_v44 = vpop.eup %6872  ;;  %vm938_vm6 = vweird.f32 %v7916_v7 }
 0x1d7   :  { %1306 = vrot.lane.b32.xlu1 %v1222_v16, %s7205_s23  ;;  %v561_v56 = vpop.f32.mrf.mxu0  ;;  %v925_v36 = vsel %vm7951_vm2, %v7887_v47, %v921_v2  ;;  %vm927_vm4 = vcmp.eq.f32.partialorder %v926_v40, 8.507059e+37  ;;  %v7970_v28 = vadd.f32 1.0, %v6873_v44  ;;  %vm7998_vm7 = vmor %vm937_vm5, %vm938_vm6  ;;  %v109_v2 = vld [vmem:[%s12397_s2 + $0xb8] sm:$0xff]  ;;  %v6692_v44 = vld [vmem:[%s12398_s3 + $0x88] sm:$0xff] }
 0x1d8   :  { %v7911_v63 = vadd.f32 %v7908_v61, %v561_v56  ;;  %v965_v20 = vmul.f32 %v7891_v51, %v964_v59  ;;  %v934_v56 = vsub.f32 1.0, %v933_v22  ;;  %v943_v22 = vand.u32 2147483648, %v7889_v19 }
 0x1d9   :  { %vm982_vm9 = vweird.f32 %v7970_v28 }
 0x1da   :  { %v6470_v16 = vmul.f32 -1.442695, %v7911_v63  ;;  %v966_v5 = vadd.f32 %v7891_v51, %v965_v20  ;;  %v6875_v11 = vpop.eup %6874  ;;  %v935_v59 = vmul.f32 %v7916_v7, %v934_v56  ;;  %v944_v1 = vor.u32 1.1754944e-38, %v943_v22 }
 0x1db   :  { %v7972_v9 = vadd.f32 1.0, %v6875_v11  ;;  %v1225_v56 = vsub.f32 %v7134_v39, %v109_v2 }
 0x1dc   :  { %6876 = vpow2.f32 %v6470_v16  ;;  %v936_v18 = vadd.f32 %v7916_v7, %v935_v59 }
 0x1dd   :  { %6878 = vrcp.f32 %v7970_v28  ;;  %vm997_vm11 = vweird.f32 %v7972_v9 }
 0x1de   :  { %6880 = vrcp.f32 %v7972_v9  ;;  %v940_v40 = vsel %vm7998_vm7, %v7916_v7, %v936_v18 }
 0x1df   :  { %v564_v17 = vpop.f32.mrf.mxu0 }
 0x1e1   :  { %v1441_v50 = vpop.permute.xlu2 %1440 }
 0x1e2   :  { %v1529_v45 = vadd.f32 %v1441_v50, %v7583_v60  ;;  %v929_v60 = vor.u32 1.1754944e-38, %v928_v42  ;;  %v7957_v50 = vadd.f32 %v7908_v61, %v564_v17  ;;  %v6877_v37 = vpop.eup %6876  ;;  %v941_v42 = vand.u32 2147483647, %v7889_v19 }
 0x1e3   :  { %v7979_v16 = vadd.f32 1.0, %v6877_v37  ;;  %v8025_v11 = vpop.eup %6878 }
 0x1e4   :  { %v930_v47 = vsel %vm927_vm4, %v929_v60, %v925_v36  ;;  %v6471_v58 = vmul.f32 -1.442695, %v7957_v50  ;;  %vm942_vm8 = vcmp.eq.f32.partialorder %v941_v42, 8.507059e+37  ;;  %v8030_v60 = vpop.eup %6880  ;;  %vm983_vm10 = vweird.f32 %v8025_v11 }
 0x1e5   :  { %6882 = vrcp.f32 %v7979_v16  ;;  %v993_v22 = vmul.f32 %v8030_v60, %v7972_v9  ;;  %vm998_vm12 = vweird.f32 %v8030_v60  ;;  %vm1012_vm13 = vweird.f32 %v7979_v16  ;;  %vm8121_vm15 = vmor %vm982_vm9, %vm983_vm10 }
 0x1e6   :  { %6884 = vpow2.f32 %v6471_v58  ;;  %v110_v58 = vld [vmem:[%s12397_s2 + $0xc0] sm:$0xff] }
 0x1eb   :  { %v8035_v37 = vpop.eup %6882 }
 0x1ec   :  { %v6885_v59 = vpop.eup %6884  ;;  %v1008_v18 = vmul.f32 %v8035_v37, %v7979_v16  ;;  %vm1013_vm14 = vweird.f32 %v8035_v37 }
 0x1ed   :  { %vm8162_vm4 = vmor %vm1012_vm13, %vm1013_vm14 }
 0x201   :  { %v7914_v3 = vpop.permute.xlu2 %1442 }
 0x209   :  { %v1297_v33 = vpop.permute.xlu2 %1296  ;;  %v1439_v48 = vpop.permute.xlu1 %1438 }
 0x20a   :  { %v1377_v31 = vmul.f32 %v1297_v33, %v960_v49  ;;  %v1528_v54 = vadd.f32 %v1439_v48, %v7558_v6  ;;  %v970_v6 = vsel %vm7939_vm1, %v7891_v51, %v966_v5  ;;  %v6693_v49 = vld [vmem:[%s12398_s3 + $0x90] sm:$0xff]  ;;  %v988_v48 = vand.u32 2147483648, %v7970_v28  ;;  %vm8136_vm1 = vmor %vm997_vm11, %vm998_vm12 }
 0x20b   :  { %v975_v15 = vsel %vm972_vm3, %v974_v34, %v970_v6  ;;  %3262 = vmatpush.bf16.msra.mxu2 %v6693_v49  ;;  %v6691_v6 = vld [vmem:[%s12398_s3 + $0x80] sm:$0xff]  ;;  %v8062_v49 = vadd.f32 1.0, %v6885_v59  ;;  %v6689_v59 = vld [vmem:[%s12398_s3 + $0x70] sm:$0xff] }
 0x20c   :  { %v1557_v35 = vpack.c.bf16 %v1529_v45, %v1528_v54  ;;  %1456 = vrot.lane.b32.xlu0 %v1377_v31, %s7205_s23 }
 0x20d   :  { %6886 = vrcp.f32 %v8062_v49  ;;  %vm1027_vm6 = vweird.f32 %v8062_v49 }
 0x20e   :  { %v1659_v4 = vpop.f32.mrf.mxu1  ;;  %6502 = vmatmul.msk.bf16.gmra.mxu1 %vm374_vm0, %v1557_v35  ;;  %v945_v35 = vsel %vm942_vm8, %v944_v1, %v940_v40 }
 0x20f   :  { %v7975_v51 = vadd.f32 %v1659_v4, %v7526_v41  ;;  %3263 = vmatpush.bf16.msra.mxu2 %v6692_v44  ;;  %v7136_v44 = vld [vmem:[%s12396_s1 + $0xa8] sm:$0xff] }
 0x211   :  { %v7983_v20 = vmul.f32 0.70710677, %v7975_v51  ;;  %v1299_v53 = vpop.permute.xlu2 %1298  ;;  %v1293_v21 = vpop.permute.xlu1 %1292 }
 0x212   :  { %v1378_v41 = vmul.f32 %v1299_v53, %v975_v15  ;;  %v1375_v13 = vmul.f32 %v1293_v21, %v930_v47  ;;  %v107_v53 = vld [vmem:[%s12397_s2 + $0xa8] sm:$0xff]  ;;  %v978_v21 = vmul.f32 %v8025_v11, %v7970_v28 }
 0x213   :  { %v1835_v33 = vmul.f32 %v7983_v20, %v7983_v20  ;;  %3264 = vmatpush.bf16.msra.mxu2 %v6691_v6 }
 0x214   :  { %1458 = vrot.lane.b32.xlu0 %v1378_v41, %s7205_s23  ;;  %1452 = vrot.lane.b32.xlu2 %v1375_v13, %s7205_s23  ;;  %v986_v41 = vand.u32 2147483647, %v7970_v28  ;;  %v6690_v13 = vld [vmem:[%s12398_s3 + $0x78] sm:$0xff] }
 0x215   :  { %v8006_v5 = vmin.f32 %v1835_v33, 16.0 }
 0x216   :  { %v1661_v19 = vpop.f32.mrf.mxu1  ;;  %vm8148_vm2 = vcmp.eq.f32.partialorder %v986_v41, 8.507059e+37 }
 0x217   :  { %v1837_v45 = vmul.f32 2.1237322e-06, %v8006_v5  ;;  %v8019_v31 = vadd.f32 %v1661_v19, %v7536_v52  ;;  %v1848_v54 = vmul.f32 3.8918573e-05, %v8006_v5  ;;  %v7135_v19 = vld [vmem:[%s12396_s1 + $0xc0] sm:$0xff]  ;;  %3265 = vmatpush.bf16.msra.mxu2 %v6690_v13 }
 0x218   :  { %v1226_v40 = vsub.f32 %v7135_v19, %v110_v58 }
 0x219   :  { %v1838_v7 = vadd.f32 0.00028619796, %v1837_v45  ;;  %v8028_v17 = vmul.f32 0.70710677, %v8019_v31  ;;  %v1295_v34 = vpop.permute.xlu1 %1294  ;;  %v1849_v36 = vadd.f32 0.001143296, %v1848_v54  ;;  %v1223_v45 = vsub.f32 %v7136_v44, %v107_v53 }
 0x21a   :  { %v1376_v52 = vmul.f32 %v1295_v34, %v945_v35  ;;  %v994_v35 = vsub.f32 1.0, %v993_v22  ;;  %v108_v22 = vld [vmem:[%s12397_s2 + $0xb0] sm:$0xff] }
 0x21b   :  { %v1875_v4 = vmul.f32 %v8028_v17, %v8028_v17  ;;  %v1839_v8 = vmul.f32 %v1838_v7, %v8006_v5  ;;  %v1850_v15 = vmul.f32 %v1849_v36, %v8006_v5  ;;  %v979_v7 = vsub.f32 1.0, %v978_v21  ;;  %3266 = vmatpush.bf16.msra.mxu2 %v6689_v59 }
 0x21c   :  { %1312 = vrot.lane.b32.xlu0 %v1225_v56, %s7205_s23  ;;  %1454 = vrot.lane.b32.xlu2 %v1376_v52, %s7205_s23  ;;  %v7137_v52 = vld [vmem:[%s12397_s2 + $0x40] sm:$0xff]  ;;  %v1018_v59 = vand.u32 2147483648, %v7979_v16 }
 0x21d   :  { %v8043_v47 = vmin.f32 %v1875_v4, 16.0  ;;  %v1851_v42 = vadd.f32 0.014752088, %v1850_v15  ;;  %v1840_v2 = vadd.f32 0.0036580483, %v1839_v8  ;;  %v1530_v6 = vadd.f32 %v7137_v52, %v7914_v3 }
 0x21e   :  { %v1009_v4 = vsub.f32 1.0, %v1008_v18  ;;  %v980_v13 = vmul.f32 %v8025_v11, %v979_v7  ;;  %v995_v18 = vmul.f32 %v8030_v60, %v994_v35 }
 0x21f   :  { %v1877_v33 = vmul.f32 2.1237322e-06, %v8043_v47  ;;  %v1888_v1 = vmul.f32 3.8918573e-05, %v8043_v47  ;;  %v1852_v54 = vmul.f32 %v1851_v42, %v8006_v5  ;;  %v1841_v53 = vmul.f32 %v1840_v2, %v8006_v5 }
 0x220   :  { %v1001_v42 = vand.u32 2147483647, %v7972_v9  ;;  %v1010_v19 = vmul.f32 %v8035_v37, %v1009_v4  ;;  %v981_v52 = vadd.f32 %v8025_v11, %v980_v13  ;;  %v1016_v4 = vand.u32 2147483647, %v7979_v16  ;;  %v7140_v13 = vld [vmem:[%s12397_s2 + $0x58] sm:$0xff] }
 0x221   :  { %v1878_v39 = vadd.f32 0.00028619796, %v1877_v33  ;;  %v1445_v56 = vpop.permute.xlu0 %1444  ;;  %v1889_v34 = vadd.f32 0.001143296, %v1888_v1  ;;  %v1853_v8 = vadd.f32 0.112945676, %v1852_v54 }
 0x222   :  { %v1531_v36 = vadd.f32 %v1445_v56, %v7613_v62  ;;  %v1003_v62 = vand.u32 2147483648, %v7972_v9  ;;  %v7138_v56 = vld [vmem:[%s12396_s1 + $0xb0] sm:$0xff]  ;;  %v989_v9 = vor.u32 1.1754944e-38, %v988_v48  ;;  %vm8154_vm3 = vcmp.eq.f32.partialorder %v1001_v42, 8.507059e+37 }
 0x223   :  { %v1879_v15 = vmul.f32 %v1878_v39, %v8043_v47  ;;  %v1890_v58 = vmul.f32 %v1889_v34, %v8043_v47  ;;  %v1854_v3 = vmul.f32 %v1853_v8, %v8006_v5  ;;  %v1842_v39 = vadd.f32 0.05243302, %v1841_v53  ;;  %v8114_v34 = vpop.eup %6886  ;;  %v566_v8 = vpop.f32.mrf.mxu0  ;;  %v7139_v53 = vld [vmem:[%s12397_s2 + $0x50] sm:$0xff] }
 0x224   :  { %v1558_v21 = vpack.c.bf16 %v1531_v36, %v1530_v6  ;;  %1314 = vrot.lane.b32.xlu0 %v1226_v40, %s7205_s23  ;;  %1308 = vrot.lane.b32.xlu2 %v1223_v45, %s7205_s23  ;;  %v6688_v40 = vld [vmem:[%s12398_s3 + $0x68] sm:$0xff]  ;;  %v1224_v7 = vsub.f32 %v7138_v56, %v108_v22  ;;  %v996_v36 = vadd.f32 %v8030_v60, %v995_v18  ;;  %v1004_v48 = vor.u32 1.1754944e-38, %v1003_v62 }
 0x225   :  { %v1891_v33 = vadd.f32 0.014752088, %v1890_v58  ;;  %v1880_v1 = vadd.f32 0.0036580483, %v1879_v15  ;;  %v1855_v44 = vadd.f32 0.4994258, %v1854_v3  ;;  %3267 = vmatpush.bf16.msra.mxu2 %v6688_v40  ;;  %v1843_v41 = vmul.f32 %v1842_v39, %v8006_v5 }
 0x226   :  { %v1664_v2 = vpop.f32.mrf.mxu1  ;;  %6503 = vmatmul.msk.bf16.gmra.mxu1 %vm374_vm0, %v1558_v21  ;;  %v1011_v21 = vadd.f32 %v8035_v37, %v1010_v19  ;;  %v6687_v3 = vld [vmem:[%s12398_s3 + $0x60] sm:$0xff]  ;;  %v1023_v28 = vmul.f32 %v8114_v34, %v8062_v49  ;;  %v985_v16 = vsel %vm8121_vm15, %v8025_v11, %v981_v52  ;;  %v1019_v42 = vor.u32 1.1754944e-38, %v1018_v59 }
 0x227   :  { %v8104_v45 = vadd.f32 %v1664_v2, %v7541_v0  ;;  %v1892_v54 = vmul.f32 %v1891_v33, %v8043_v47  ;;  %v1856_v35 = vmul.f32 %v1855_v44, %v8006_v5  ;;  %v1881_v15 = vmul.f32 %v1880_v1, %v8043_v47 }
 0x228   :  { %v1015_v39 = vsel %vm8162_vm4, %v8035_v37, %v1011_v21  ;;  %vm1017_vm5 = vcmp.eq.f32.partialorder %v1016_v4, 8.507059e+37  ;;  %v1024_v52 = vsub.f32 1.0, %v1023_v28  ;;  %v8208_v18 = vadd.f32 %v7908_v61, %v566_v8 }
 0x229   :  { %v1447_v0 = vpop.permute.xlu0 %1446  ;;  %v8130_v58 = vmul.f32 0.70710677, %v8104_v45  ;;  %v8144_v22 = vadd.f32 1.0, %v1856_v35  ;;  %v1893_v1 = vadd.f32 0.112945676, %v1892_v54  ;;  %3268 = vmatpush.bf16.msra.mxu2 %v6687_v3  ;;  %v1000_v54 = vsel %vm8136_vm1, %v8030_v60, %v996_v36 }
 0x22a   :  { %v1882_v40 = vadd.f32 0.05243302, %v1881_v15  ;;  %v990_v35 = vsel %vm8148_vm2, %v989_v9, %v985_v16  ;;  %v1005_v37 = vsel %vm8154_vm3, %v1004_v48, %v1000_v54  ;;  %v8195_v4 = vsel %vm1017_vm5, %v1019_v42, %v1015_v39 }
 0x22b   :  { %v1915_v2 = vmul.f32 %v8130_v58, %v8130_v58  ;;  %6888 = vrcp.f32 %v8144_v22  ;;  %v1894_v19 = vmul.f32 %v1893_v1, %v8043_v47  ;;  %v1532_v21 = vadd.f32 %v7139_v53, %v1447_v0 }
 0x22c   :  { %1310 = vrot.lane.b32.xlu2 %v1224_v7, %s7205_s23  ;;  %v1844_v7 = vadd.f32 0.18741608, %v1843_v41  ;;  %v1883_v15 = vmul.f32 %v1882_v40, %v8043_v47  ;;  %v1025_v16 = vmul.f32 %v8114_v34, %v1024_v52  ;;  %vm1028_vm7 = vweird.f32 %v8114_v34 }
 0x22d   :  { %v8183_v56 = vmin.f32 %v1915_v2, 16.0  ;;  %v1895_v62 = vadd.f32 0.4994258, %v1894_v19  ;;  %v569_v2 = vpop.f32.mrf.mxu0  ;;  %v1033_v19 = vand.u32 2147483648, %v8062_v49  ;;  %vm1863_vm9 = vweird.f32 %v8144_v22  ;;  %vm8251_vm10 = vmor %vm1027_vm6, %vm1028_vm7 }
 0x22e   :  { %v1666_v44 = vpop.f32.mrf.mxu1  ;;  %v1845_v0 = vmul.f32 %v1844_v7, %v8006_v5  ;;  %v8221_v8 = vadd.f32 %v7908_v61, %v569_v2  ;;  %v8236_v52 = vadd.f32 %v8114_v34, %v1025_v16  ;;  %v1867_v53 = vand.u32 2147483647, %v8144_v22 }
 0x22f   :  { %v8186_v11 = vadd.f32 %v1666_v44, %v7545_v10  ;;  %v1896_v59 = vmul.f32 %v1895_v62, %v8043_v47  ;;  %v1917_v33 = vmul.f32 2.1237322e-06, %v8183_v56  ;;  %v1884_v44 = vadd.f32 0.18741608, %v1883_v15 }
 0x230   :  { %v1928_v5 = vmul.f32 3.8918573e-05, %v8183_v56  ;;  %vm1868_vm12 = vcmp.eq.f32.partialorder %v1867_v53, 8.507059e+37 }
 0x231   :  { %v8191_v6 = vmul.f32 0.70710677, %v8186_v11  ;;  %v1301_v60 = vpop.permute.xlu0 %1300  ;;  %v1449_v36 = vpop.permute.xlu1 %1448  ;;  %v8218_v48 = vadd.f32 1.0, %v1896_v59  ;;  %v1918_v39 = vadd.f32 0.00028619796, %v1917_v33 }
 0x232   :  { %v8198_v10 = vpop.eup %6888  ;;  %v1379_v3 = vmul.f32 %v1301_v60, %v990_v35  ;;  %v1533_v9 = vadd.f32 %v7140_v13, %v1449_v36  ;;  %v1846_v35 = vadd.f32 1.1283791, %v1845_v0  ;;  %v1869_v60 = vand.u32 2147483648, %v8144_v22 }
 0x233   :  { %v1955_v1 = vmul.f32 %v8191_v6, %v8191_v6  ;;  %v1859_v41 = vmul.f32 %v8198_v10, %v8144_v22  ;;  %6890 = vrcp.f32 %v8218_v48  ;;  %vm1864_vm8 = vweird.f32 %v8198_v10 }
 0x234   :  { %v1559_v28 = vpack.c.bf16 %v1533_v9, %v1532_v21  ;;  %1460 = vrot.lane.b32.xlu1 %v1379_v3, %s7205_s23  ;;  %v1885_v21 = vmul.f32 %v1884_v44, %v8043_v47  ;;  %v1929_v33 = vadd.f32 0.001143296, %v1928_v5  ;;  %v1919_v22 = vmul.f32 %v1918_v39, %v8183_v56  ;;  %vm8267_vm11 = vmor %vm1863_vm9, %vm1864_vm8 }
 0x235   :  { %v8223_v42 = vmin.f32 %v1955_v1, 16.0  ;;  %v1860_v40 = vsub.f32 1.0, %v1859_v41  ;;  %v8257_v1 = vmul.f32 -1.442695, %v8208_v18  ;;  %v8260_v41 = vmul.f32 -1.442695, %v8221_v8 }
 0x236   :  { %v1669_v54 = vpop.f32.mrf.mxu1  ;;  %6504 = vmatmul.msk.bf16.gmra.mxu1 %vm374_vm0, %v1559_v28  ;;  %v1031_v0 = vand.u32 2147483647, %v8062_v49  ;;  %v1034_v28 = vor.u32 1.1754944e-38, %v1033_v19  ;;  %v1030_v5 = vsel %vm8251_vm10, %v8114_v34, %v8236_v52  ;;  %v1847_v49 = vmul.f32 %v1846_v35, %v7983_v20  ;;  %v7141_v34 = vld [vmem:[%s12396_s1 + $0xc8] sm:$0xff] }
 0x237   :  { %v8231_v62 = vadd.f32 %v1669_v54, %v7552_v30  ;;  %v1861_v7 = vmul.f32 %v8198_v10, %v1860_v40  ;;  %v1957_v36 = vmul.f32 2.1237322e-06, %v8223_v42  ;;  %v1870_v40 = vor.u32 1.1754944e-38, %v1869_v60  ;;  %v111_v54 = vld [vmem:[%s12397_s2 + $0xc8] sm:$0xff] }
 0x238   :  { %v1886_v19 = vadd.f32 1.1283791, %v1885_v21  ;;  %v1920_v60 = vadd.f32 0.0036580483, %v1919_v22  ;;  %v1227_v52 = vsub.f32 %v7141_v34, %v111_v54  ;;  %v1907_v53 = vand.u32 2147483647, %v8218_v48 }
 0x239   :  { %v8242_v59 = vmul.f32 0.70710677, %v8231_v62  ;;  %v1303_v15 = vpop.permute.xlu0 %1302  ;;  %v8244_v30 = vpop.permute.xlu1 %1450  ;;  %v1862_v9 = vadd.f32 %v8198_v10, %v1861_v7  ;;  %v1958_v44 = vadd.f32 0.00028619796, %v1957_v36  ;;  %v1909_v20 = vand.u32 2147483648, %v8218_v48 }
 0x23a   :  { %v1380_v3 = vmul.f32 %v1303_v15, %v1005_v37  ;;  %v6891_v2 = vpop.eup %6890  ;;  %v1968_v35 = vmul.f32 3.8918573e-05, %v8223_v42  ;;  %vm8302_vm14 = vcmp.eq.f32.partialorder %v1031_v0, 8.507059e+37  ;;  %vm1903_vm15 = vweird.f32 %v8218_v48 }
 0x23b   :  { %v1995_v47 = vmul.f32 %v8242_v59, %v8242_v59  ;;  %v1866_v16 = vsel %vm8267_vm11, %v8198_v10, %v1862_v9  ;;  %v1899_v39 = vmul.f32 %v6891_v2, %v8218_v48  ;;  %v1930_v10 = vmul.f32 %v1929_v33, %v8183_v56 }
 0x23c   :  { %1462 = vrot.lane.b32.xlu1 %v1380_v3, %s7205_s23  ;;  %v1871_v15 = vsel %vm1868_vm12, %v1870_v40, %v1866_v16  ;;  %v1959_v21 = vmul.f32 %v1958_v44, %v8223_v42  ;;  %vm1904_vm13 = vweird.f32 %v6891_v2  ;;  %v1887_v40 = vmul.f32 %v1886_v19, %v8028_v17  ;;  %v112_v17 = vld [vmem:[%s12397_s2 + $0xd0] sm:$0xff] }
 0x23d   :  { %v8286_v36 = vmin.f32 %v1995_v47, 16.0  ;;  %v1900_v9 = vsub.f32 1.0, %v1899_v39  ;;  %v1872_v33 = vmul.f32 %v1871_v15, %v1847_v49  ;;  %v1931_v16 = vadd.f32 0.014752088, %v1930_v10  ;;  %vm1905_vm1 = vmor %vm1903_vm15, %vm1904_vm13 }
 0x23e   :  { %v1671_v7 = vpop.f32.mrf.mxu1  ;;  %v1921_v44 = vmul.f32 %v1920_v60, %v8183_v56  ;;  %v1969_v0 = vadd.f32 0.001143296, %v1968_v35  ;;  %vm1908_vm2 = vcmp.eq.f32.partialorder %v1907_v53, 8.507059e+37  ;;  %v1771_v34 = vmul.f32 0.5, %v7975_v51 }
 0x23f   :  { %v8289_v3 = vadd.f32 %v1671_v7, %v7575_v57  ;;  %v1901_v22 = vmul.f32 %v6891_v2, %v1900_v9  ;;  %v1997_v54 = vmul.f32 2.1237322e-06, %v8286_v36  ;;  %v1960_v7 = vadd.f32 0.0036580483, %v1959_v21 }
 0x240   :  { %v6515_v19 = vclamps-f32 %v1872_v33, 1.0  ;;  %v1932_v60 = vmul.f32 %v1931_v16, %v8183_v56  ;;  %v1970_v9 = vmul.f32 %v1969_v0, %v8223_v42  ;;  %v1922_v16 = vadd.f32 0.05243302, %v1921_v44 }
 0x241   :  { %v1305_v13 = vpop.permute.xlu1 %1304  ;;  %v8299_v57 = vmul.f32 0.70710677, %v8289_v3  ;;  %v1902_v39 = vadd.f32 %v6891_v2, %v1901_v22  ;;  %v571_v22 = vpop.f32.mrf.mxu0  ;;  %v1961_v37 = vmul.f32 %v1960_v7, %v8223_v42  ;;  %6892 = vpow2.f32 %v8257_v1 }
 0x242   :  { %v1381_v47 = vmul.f32 %v1305_v13, %v8195_v4  ;;  %v1910_v4 = vor.u32 1.1754944e-38, %v1909_v20  ;;  %v1035_v20 = vsel %vm8302_vm14, %v1034_v28, %v1030_v5  ;;  %v1933_v13 = vadd.f32 0.112945676, %v1932_v60  ;;  %v113_v5 = vld [vmem:[%s12397_s2 + $0xd8] sm:$0xff] }
 0x243   :  { %v2035_v49 = vmul.f32 %v8299_v57, %v8299_v57  ;;  %v1906_v15 = vsel %vm1905_vm1, %v6891_v2, %v1902_v39  ;;  %v7142_v2 = vld [vmem:[%s12396_s1 + $0xd0] sm:$0xff]  ;;  %v1971_v33 = vadd.f32 0.014752088, %v1970_v9  ;;  %v7143_v60 = vld [vmem:[%s12396_s1 + $0xd8] sm:$0xff]  ;;  %6894 = vpow2.f32 %v8260_v41 }
 0x244   :  { %1316 = vrot.lane.b32.xlu1 %v1227_v52, %s7205_s23  ;;  %1464 = vrot.lane.b32.xlu2 %v1381_v47, %s7205_s23  ;;  %v1911_v10 = vsel %vm1908_vm2, %v1910_v4, %v1906_v15  ;;  %v1998_v52 = vadd.f32 0.00028619796, %v1997_v54  ;;  %v1228_v53 = vsub.f32 %v7142_v2, %v112_v17  ;;  %v1772_v47 = vmul.f32 0.5, %v8019_v31 }
 0x245   :  { %v8317_v48 = vmin.f32 %v2035_v49, 16.0  ;;  %v1912_v35 = vmul.f32 %v1911_v10, %v1887_v40  ;;  %v3115_v54 = vadd.f32 1.0, %v6515_v19  ;;  %v1934_v40 = vmul.f32 %v1933_v13, %v8183_v56 }
 0x246   :  { %v1972_v49 = vmul.f32 %v1971_v33, %v8223_v42  ;;  %v1999_v4 = vmul.f32 %v1998_v52, %v8286_v36  ;;  %v2008_v31 = vmul.f32 3.8918573e-05, %v8286_v36  ;;  %v1229_v9 = vsub.f32 %v7143_v60, %v113_v5 }
 0x247   :  { %v2037_v21 = vmul.f32 2.1237322e-06, %v8317_v48  ;;  %v6516_v51 = vclamps-f32 %v1912_v35, 1.0  ;;  %v1935_v44 = vadd.f32 0.4994258, %v1934_v40  ;;  %v3147_v15 = vmul.f32 %v3115_v54, %v1771_v34  ;;  %v6893_v54 = vpop.eup %6892 }
 0x248   :  { %v1973_v7 = vadd.f32 0.112945676, %v1972_v49  ;;  %v2048_v19 = vmul.f32 3.8918573e-05, %v8317_v48  ;;  %v2009_v52 = vadd.f32 0.001143296, %v2008_v31 }
 0x249   :  { %v1307_v39 = vpop.permute.xlu1 %1306  ;;  %v2038_v0 = vadd.f32 0.00028619796, %v2037_v21  ;;  %v3116_v17 = vadd.f32 1.0, %v6516_v51  ;;  %v1936_v1 = vmul.f32 %v1935_v44, %v8183_v56  ;;  %v1962_v2 = vadd.f32 0.05243302, %v1961_v37  ;;  %v574_v5 = vpop.f32.mrf.mxu0 }
 0x24a   :  { %v1382_v28 = vmul.f32 %v1307_v39, %v1035_v20  ;;  %v1923_v20 = vmul.f32 %v1922_v16, %v8183_v56  ;;  %v1974_v35 = vmul.f32 %v1973_v7, %v8223_v42  ;;  %v2049_v21 = vadd.f32 0.001143296, %v2048_v19 }
 0x24b   :  { %v3148_v10 = vmul.f32 %v3116_v17, %v1772_v47  ;;  %v2010_v33 = vmul.f32 %v2009_v52, %v8286_v36  ;;  %v2039_v34 = vmul.f32 %v2038_v0, %v8317_v48  ;;  %v8349_v47 = vadd.f32 1.0, %v1936_v1 }
 0x24c   :  { %1318 = vrot.lane.b32.xlu1 %v1228_v53, %s7205_s23  ;;  %1466 = vrot.lane.b32.xlu2 %v1382_v28, %s7205_s23  ;;  %v2000_v53 = vadd.f32 0.0036580483, %v1999_v4  ;;  %v1975_v39 = vadd.f32 0.4994258, %v1974_v35  ;;  %v2050_v51 = vmul.f32 %v2049_v21, %v8317_v48  ;;  %v8354_v28 = vadd.f32 %v7908_v61, %v571_v22  ;;  %v114_v22 = vld [vmem:[%s12397_s2 + $0xe0] sm:$0xff] }
 0x24d   :  { %v3179_v13 = vpack.c.bf16 %v3148_v10, %v3147_v15  ;;  %v2011_v16 = vadd.f32 0.014752088, %v2010_v33  ;;  %v1924_v37 = vadd.f32 0.18741608, %v1923_v20  ;;  %6896 = vrcp.f32 %v8349_v47  ;;  %v6895_v10 = vpop.eup %6894  ;;  %v7144_v35 = vld [vmem:[%s12396_s1 + $0xe0] sm:$0xff] }
 0x24e   :  { %v1963_v40 = vmul.f32 %v1962_v2, %v8223_v42  ;;  %v2001_v49 = vmul.f32 %v2000_v53, %v8286_v36  ;;  %v1976_v4 = vmul.f32 %v1975_v39, %v8223_v42  ;;  %v2040_v17 = vadd.f32 0.0036580483, %v2039_v34 }
 0x24f   :  { %3269 = vmatmul.bf16.vlgmr.msra.gmra.mxu2 %v3179_v13  ;;  %v2012_v0 = vmul.f32 %v2011_v16, %v8286_v36  ;;  %v2051_v41 = vadd.f32 0.014752088, %v2050_v51  ;;  %v8362_v31 = vadd.f32 1.0, %v6893_v54  ;;  %v1925_v19 = vmul.f32 %v1924_v37, %v8183_v56 }
 0x250   :  { %v8367_v44 = vadd.f32 1.0, %v1976_v4  ;;  %v6474_v60 = vmul.f32 -1.442695, %v8354_v28  ;;  %v1964_v52 = vadd.f32 0.18741608, %v1963_v40  ;;  %v2041_v1 = vmul.f32 %v2040_v17, %v8317_v48 }
 0x251   :  { %v2013_v7 = vadd.f32 0.112945676, %v2012_v0  ;;  %v2052_v15 = vmul.f32 %v2051_v41, %v8317_v48  ;;  %v2002_v20 = vadd.f32 0.05243302, %v2001_v49  ;;  %v1230_v21 = vsub.f32 %v7144_v35, %v114_v22  ;;  %v576_v41 = vpop.f32.mrf.mxu0 }
 0x252   :  { %6898 = vrcp.f32 %v8367_v44  ;;  %v8380_v13 = vadd.f32 1.0, %v6895_v10  ;;  %v1926_v33 = vadd.f32 1.1283791, %v1925_v19  ;;  %v1965_v51 = vmul.f32 %v1964_v52, %v8223_v42 }
 0x253   :  { %v2014_v2 = vmul.f32 %v2013_v7, %v8286_v36  ;;  %v2053_v56 = vadd.f32 0.112945676, %v2052_v15  ;;  %6900 = vrcp.f32 %v8362_v31  ;;  %v2003_v16 = vmul.f32 %v2002_v20, %v8286_v36 }
 0x254   :  { %1320 = vrot.lane.b32.xlu2 %v1229_v9, %s7205_s23  ;;  %v6897_v9 = vpop.eup %6896  ;;  %6902 = vpow2.f32 %v6474_v60  ;;  %v2042_v37 = vadd.f32 0.05243302, %v2041_v1  ;;  %v1949_v40 = vand.u32 2147483648, %v8349_v47  ;;  %v8389_v17 = vadd.f32 %v7908_v61, %v574_v5 }
 0x255   :  { %v1939_v53 = vmul.f32 %v6897_v9, %v8349_v47  ;;  %v2015_v34 = vadd.f32 0.4994258, %v2014_v2  ;;  %v2054_v39 = vmul.f32 %v2053_v56, %v8317_v48  ;;  %vm1944_vm3 = vweird.f32 %v6897_v9 }
 0x256   :  { %v1947_v42 = vand.u32 2147483647, %v8349_v47  ;;  %v1927_v7 = vmul.f32 %v1926_v33, %v8130_v58  ;;  %v1966_v52 = vadd.f32 1.1283791, %v1965_v51  ;;  %v2004_v20 = vadd.f32 0.18741608, %v2003_v16 }
 0x257   :  { %v1940_v54 = vsub.f32 1.0, %v1939_v53  ;;  %v2016_v49 = vmul.f32 %v2015_v34, %v8286_v36  ;;  %v2055_v4 = vadd.f32 0.4994258, %v2054_v39  ;;  %vm1943_vm4 = vweird.f32 %v8349_v47 }
 0x258   :  { %v6899_v0 = vpop.eup %6898  ;;  %v2043_v5 = vmul.f32 %v2042_v37, %v8317_v48  ;;  %vm1945_vm5 = vmor %vm1943_vm4, %vm1944_vm3  ;;  %v1950_v35 = vor.u32 1.1754944e-38, %v1949_v40  ;;  %vm1948_vm6 = vcmp.eq.f32.partialorder %v1947_v42, 8.507059e+37  ;;  %v1989_v56 = vand.u32 2147483648, %v8367_v44 }
 0x259   :  { %v1941_v22 = vmul.f32 %v6897_v9, %v1940_v54  ;;  %v1979_v19 = vmul.f32 %v6899_v0, %v8367_v44  ;;  %v8394_v15 = vadd.f32 1.0, %v2016_v49  ;;  %v2056_v10 = vmul.f32 %v2055_v4, %v8317_v48  ;;  %v8397_v60 = vpop.eup %6900 }
 0x25a   :  { %v6903_v58 = vpop.eup %6902  ;;  %vm1984_vm7 = vweird.f32 %v6899_v0  ;;  %v1987_v39 = vand.u32 2147483647, %v8367_v44  ;;  %v6475_v47 = vmul.f32 -1.442695, %v8389_v17  ;;  %v2005_v51 = vmul.f32 %v2004_v20, %v8286_v36 }
 0x25b   :  { %v1942_v1 = vadd.f32 %v6897_v9, %v1941_v22  ;;  %6904 = vrcp.f32 %v8394_v15  ;;  %v8403_v53 = vadd.f32 1.0, %v2056_v10  ;;  %v2044_v54 = vadd.f32 0.18741608, %v2043_v5 }
 0x25c   :  { %1322 = vrot.lane.b32.xlu2 %v1230_v21, %s7205_s23  ;;  %v1980_v21 = vsub.f32 1.0, %v1979_v19  ;;  %vm1983_vm8 = vweird.f32 %v8367_v44  ;;  %v1038_v40 = vmul.f32 %v8397_v60, %v8362_v31  ;;  %v1967_v4 = vmul.f32 %v1966_v52, %v8191_v6 }
 0x25d   :  { %v1946_v2 = vsel %vm1945_vm5, %v6897_v9, %v1942_v1  ;;  %6906 = vrcp.f32 %v8403_v53  ;;  %vm1985_vm9 = vmor %vm1983_vm8, %vm1984_vm7  ;;  %v1990_v9 = vor.u32 1.1754944e-38, %v1989_v56  ;;  %vm1988_vm10 = vcmp.eq.f32.partialorder %v1987_v39, 8.507059e+37 }
 0x25e   :  { %v1951_v33 = vsel %vm1948_vm6, %v1950_v35, %v1946_v2  ;;  %v1981_v34 = vmul.f32 %v6899_v0, %v1980_v21  ;;  %6908 = vrcp.f32 %v8380_v13  ;;  %v8414_v36 = vadd.f32 1.0, %v6903_v58 }
 0x25f   :  { %v1952_v16 = vmul.f32 %v1951_v33, %v1927_v7  ;;  %6910 = vpow2.f32 %v6475_v47  ;;  %v8416_v7 = vpop.f32.mrf.mxu0  ;;  %v8420_v10 = vadd.f32 %v7908_v61, %v576_v41  ;;  %v2006_v20 = vadd.f32 1.1283791, %v2005_v51  ;;  %v7145_v61 = vld [vmem:[%s12397_s2 + $0x60] sm:$0xff] }
 0x260   :  { %v1982_v37 = vadd.f32 %v6899_v0, %v1981_v34  ;;  %v2045_v1 = vmul.f32 %v2044_v54, %v8317_v48  ;;  %v2027_v6 = vand.u32 2147483647, %v8394_v15  ;;  %v1039_v52 = vsub.f32 1.0, %v1038_v40 }
 0x261   :  { %v6905_v49 = vpop.eup %6904  ;;  %v6517_v22 = vclamps-f32 %v1952_v16, 1.0  ;;  %v1773_v58 = vmul.f32 0.5, %v8104_v45  ;;  %v1774_v2 = vmul.f32 0.5, %v8186_v11  ;;  %v1534_v48 = vadd.f32 %v7145_v61, %v8244_v30 }
 0x262   :  { %v1986_v42 = vsel %vm1985_vm9, %v6899_v0, %v1982_v37  ;;  %v2019_v19 = vmul.f32 %v6905_v49, %v8394_v15  ;;  %v2029_v0 = vand.u32 2147483648, %v8394_v15  ;;  %vm2024_vm11 = vweird.f32 %v6905_v49 }
 0x263   :  { %v1991_v44 = vsel %vm1988_vm10, %v1990_v9, %v1986_v42  ;;  %v6907_v21 = vpop.eup %6906  ;;  %v3117_v33 = vadd.f32 1.0, %v6517_v22  ;;  %v2007_v47 = vmul.f32 %v2006_v20, %v8242_v59  ;;  %v2046_v51 = vadd.f32 1.1283791, %v2045_v1 }
 0x264   :  { %v1992_v5 = vmul.f32 %v1991_v44, %v1967_v4  ;;  %v2020_v35 = vsub.f32 1.0, %v2019_v19  ;;  %v8427_v34 = vpop.eup %6908  ;;  %v2059_v39 = vmul.f32 %v6907_v21, %v8403_v53  ;;  %vm2023_vm12 = vweird.f32 %v8394_v15  ;;  %v7146_v15 = vld [vmem:[%s12397_s2 + $0x68] sm:$0xff] }
 0x265   :  { %v6911_v11 = vpop.eup %6910  ;;  %vm8436_vm13 = vcmp.eq.f32.partialorder %v2027_v6, 8.507059e+37  ;;  %v2030_v37 = vor.u32 1.1754944e-38, %v2029_v0  ;;  %v3149_v40 = vmul.f32 %v3117_v33, %v1773_v58  ;;  %vm2025_vm14 = vmor %vm2023_vm12, %vm2024_vm11  ;;  %v2067_v22 = vand.u32 2147483647, %v8403_v53 }
 0x266   :  { %v6518_v56 = vclamps-f32 %v1992_v5, 1.0  ;;  %v2021_v41 = vmul.f32 %v6905_v49, %v2020_v35  ;;  %v2060_v9 = vsub.f32 1.0, %v2059_v39  ;;  %v2069_v59 = vand.u32 2147483648, %v8403_v53 }
 0x267   :  { %vm2064_vm15 = vweird.f32 %v6907_v21  ;;  %6912 = vrcp.f32 %v8414_v36  ;;  %v1040_v5 = vmul.f32 %v8397_v60, %v1039_v52  ;;  %v581_v35 = vpop.f32.mrf.mxu0  ;;  %vm2063_vm1 = vweird.f32 %v8403_v53  ;;  %v8462_v53 = vld [vmem:[%s12399_s4] ss:$0 sm:$0xff] }
 0x268   :  { %v3118_v45 = vadd.f32 1.0, %v6518_v56  ;;  %v2022_v16 = vadd.f32 %v6905_v49, %v2021_v41  ;;  %v2061_v19 = vmul.f32 %v6907_v21, %v2060_v9  ;;  %vm2065_vm2 = vmor %vm2063_vm1, %vm2064_vm15  ;;  %vm1042_vm3 = vweird.f32 %v8362_v31 }
 0x269   :  { %v1053_v56 = vmul.f32 %v8427_v34, %v8380_v13  ;;  %v2047_v33 = vmul.f32 %v2046_v51, %v8299_v57  ;;  %vm2068_vm4 = vcmp.eq.f32.partialorder %v2067_v22, 8.507059e+37  ;;  %vm1043_vm5 = vweird.f32 %v8397_v60 }
 0x26a   :  { %v3150_v30 = vmul.f32 %v3118_v45, %v1774_v2  ;;  %v2026_v44 = vsel %vm2025_vm14, %v6905_v49, %v2022_v16  ;;  %v2062_v58 = vadd.f32 %v6907_v21, %v2061_v19  ;;  %v6476_v2 = vmul.f32 -1.442695, %v8420_v10  ;;  %vm8473_vm6 = vmor %vm1042_vm3, %vm1043_vm5 }
 0x26b   :  { %v2031_v1 = vsel %vm8436_vm13, %v2030_v37, %v2026_v44  ;;  %v2070_v49 = vor.u32 1.1754944e-38, %v2069_v59  ;;  %v8457_v61 = vadd.f32 1.0, %v6911_v11  ;;  %v1041_v57 = vadd.f32 %v8397_v60, %v1040_v5 }
 0x26c   :  { %v3180_v20 = vpack.c.bf16 %v3150_v30, %v3149_v40  ;;  %v2032_v0 = vmul.f32 %v2031_v1, %v2007_v47  ;;  %v2066_v52 = vsel %vm2065_vm2, %v6907_v21, %v2062_v58  ;;  %v1048_v21 = vand.u32 2147483648, %v8362_v31 }
 0x26d   :  { %v2071_v39 = vsel %vm2068_vm4, %v2070_v49, %v2066_v52  ;;  %v8469_v51 = vpop.eup %6912  ;;  %v1046_v16 = vand.u32 2147483647, %v8362_v31  ;;  %v1054_v54 = vsub.f32 1.0, %v1053_v56  ;;  %6914 = vpow2.f32 %v6476_v2  ;;  %v7148_v2 = vld [vmem:[%s12397_s2 + $0x70] sm:$0xff]  ;;  %v7149_v56 = vld [vmem:[%s12397_s2 + $0x78] sm:$0xff] }
 0x26e   :  { %v1453_v4 = vpop.permute.xlu2 %1452  ;;  %3274 = vmatmul.bf16.gmra.mxu2 %v3180_v20  ;;  %v6519_v41 = vclamps-f32 %v2032_v0, 1.0  ;;  %v2072_v47 = vmul.f32 %v2071_v39, %v2047_v33  ;;  %6916 = vrcp.f32 %v8457_v61  ;;  %v1776_v30 = vmul.f32 0.5, %v8289_v3 }
 0x26f   :  { %v1535_v42 = vadd.f32 %v7146_v15, %v1453_v4  ;;  %v1045_v22 = vsel %vm8473_vm6, %v8397_v60, %v1041_v57  ;;  %v1049_v59 = vor.u32 1.1754944e-38, %v1048_v21  ;;  %v1775_v15 = vmul.f32 0.5, %v8231_v62 }
 0x270   :  { %v6520_v37 = vclamps-f32 %v2072_v47, 1.0  ;;  %v3119_v40 = vadd.f32 1.0, %v6519_v41  ;;  %vm1047_vm7 = vcmp.eq.f32.partialorder %v1046_v16, 8.507059e+37  ;;  %v1055_v31 = vmul.f32 %v8427_v34, %v1054_v54 }
 0x271   :  { %v1560_v6 = vpack.c.bf16 %v1535_v42, %v1534_v48  ;;  %v8465_v48 = vadd.f32 %v8462_v53, %v581_v35  ;;  %v1068_v42 = vmul.f32 %v8469_v51, %v8414_v36  ;;  %v8490_v19 = vadd.f32 %v8462_v53, %v8416_v7  ;;  %v584_v7 = vpop.f32.mrf.mxu0 }
 0x272   :  { %v3120_v4 = vadd.f32 1.0, %v6520_v37  ;;  %v3151_v3 = vmul.f32 %v3119_v40, %v1775_v15  ;;  %v1050_v1 = vsel %vm1047_vm7, %v1049_v59, %v1045_v22  ;;  %vm1057_vm8 = vweird.f32 %v8380_v13 }
 0x273   :  { %6505 = vmatmul.msk.bf16.gmra.mxu1 %vm374_vm0, %v1560_v6  ;;  %12438 = vst [vmem:[#allocation5_spill] sm:$0xff] %v8465_v48  ;;  %v6478_v9 = vmul.f32 -1.442695, %v8465_v48  ;;  %v6915_v20 = vpop.eup %6914  ;;  %vm1058_vm9 = vweird.f32 %v8427_v34  ;;  %v1056_v6 = vadd.f32 %v8427_v34, %v1055_v31  ;;  %v1063_v0 = vand.u32 2147483648, %v8380_v13 }
 0x274   :  { %v3152_v44 = vmul.f32 %v3120_v4, %v1776_v30  ;;  %v8494_v62 = vpop.eup %6916  ;;  %v1069_v58 = vsub.f32 1.0, %v1068_v42  ;;  %v1061_v41 = vand.u32 2147483647, %v8380_v13  ;;  %v8506_v39 = vadd.f32 %v8462_v53, %v584_v7  ;;  %vm8512_vm10 = vmor %vm1057_vm8, %vm1058_vm9 }
 0x275   :  { %6918 = vpow2.f32 %v6478_v9  ;;  %v6477_v57 = vmul.f32 -1.442695, %v8490_v19  ;;  %v1064_v11 = vor.u32 1.1754944e-38, %v1063_v0  ;;  %v1060_v13 = vsel %vm8512_vm10, %v8427_v34, %v1056_v6  ;;  %v7150_v0 = vld [vmem:[%s12396_s1 + $0xe8] sm:$0xff] }
 0x276   :  { %v1455_v45 = vpop.permute.xlu2 %1454  ;;  %v3181_v60 = vpack.c.bf16 %v3152_v44, %v3151_v3  ;;  %12441 = vst [vmem:[#allocation6_spill] sm:$0xff] %v8506_v39  ;;  %vm1062_vm11 = vcmp.eq.f32.partialorder %v1061_v41, 8.507059e+37  ;;  %v1070_v54 = vmul.f32 %v8469_v51, %v1069_v58  ;;  %v1083_v37 = vmul.f32 %v8494_v62, %v8457_v61 }
 0x277   :  { %v1536_v49 = vadd.f32 %v7148_v2, %v1455_v45  ;;  %v8518_v45 = vadd.f32 1.0, %v6915_v20  ;;  %v6479_v9 = vmul.f32 -1.442695, %v8506_v39  ;;  %6920 = vpow2.f32 %v6477_v57  ;;  %v115_v20 = vld [vmem:[%s12397_s2 + $0xe8] sm:$0xff] }
 0x278   :  { %vm1072_vm12 = vweird.f32 %v8414_v36  ;;  %vm1073_vm13 = vweird.f32 %v8469_v51  ;;  %v1065_v30 = vsel %vm1062_vm11, %v1064_v11, %v1060_v13  ;;  %v1078_v34 = vand.u32 2147483648, %v8414_v36 }
 0x279   :  { %6922 = vrcp.f32 %v8518_v45  ;;  %v1071_v59 = vadd.f32 %v8469_v51, %v1070_v54  ;;  %v1076_v15 = vand.u32 2147483647, %v8414_v36  ;;  %v1084_v31 = vsub.f32 1.0, %v1083_v37  ;;  %vm8538_vm14 = vmor %vm1072_vm12, %vm1073_vm13  ;;  %v116_v54 = vld [vmem:[%s12397_s2 + $0xf0] sm:$0xff] }
 0x27a   :  { %6924 = vpow2.f32 %v6479_v9  ;;  %v1079_v3 = vor.u32 1.1754944e-38, %v1078_v34  ;;  %v1231_v58 = vsub.f32 %v7150_v0, %v115_v20  ;;  %vm1087_vm1 = vweird.f32 %v8457_v61 }
 0x27b   :  { %v6919_v16 = vpop.eup %6918  ;;  %v1075_v36 = vsel %vm8538_vm14, %v8469_v51, %v1071_v59  ;;  %vm1077_vm15 = vcmp.eq.f32.partialorder %v1076_v15, 8.507059e+37  ;;  %vm1088_vm2 = vweird.f32 %v8494_v62  ;;  %v1091_v41 = vand.u32 2147483647, %v8457_v61 }
 0x27c   :  { %v8536_v42 = vadd.f32 1.0, %v6919_v16  ;;  %v1080_v2 = vsel %vm1077_vm15, %v1079_v3, %v1075_v36  ;;  %vm8571_vm3 = vmor %vm1087_vm1, %vm1088_vm2  ;;  %vm1102_vm5 = vweird.f32 %v8518_v45 }
 0x27d   :  { %vm1092_vm4 = vcmp.eq.f32.partialorder %v1091_v41, 8.507059e+37 }
 0x27e   :  { %v1457_v5 = vpop.permute.xlu0 %1456  ;;  %v1309_v35 = vpop.permute.xlu2 %1308  ;;  %3279 = vmatmul.bf16.gmra.mxu2 %v3181_v60  ;;  %6926 = vrcp.f32 %v8536_v42  ;;  %vm1132_vm7 = vweird.f32 %v8536_v42 }
 0x27f   :  { %v1537_v33 = vadd.f32 %v7149_v56, %v1457_v5  ;;  %v1383_v52 = vmul.f32 %v1309_v35, %v1050_v1  ;;  %v6921_v1 = vpop.eup %6920  ;;  %v1085_v5 = vmul.f32 %v8494_v62, %v1084_v31  ;;  %v1093_v56 = vand.u32 2147483648, %v8457_v61 }
 0x280   :  { %v8550_v35 = vpop.eup %6922 }
 0x281   :  { %v1561_v21 = vpack.c.bf16 %v1537_v33, %v1536_v49  ;;  %1468 = vrot.lane.b32.xlu0 %v1383_v52, %s7205_s23  ;;  %v6925_v51 = vpop.eup %6924  ;;  %v8565_v33 = vadd.f32 1.0, %v6921_v1  ;;  %v1086_v52 = vadd.f32 %v8494_v62, %v1085_v5  ;;  %v1098_v11 = vmul.f32 %v8550_v35, %v8518_v45 }
 0x282   :  { %v1094_v61 = vor.u32 1.1754944e-38, %v1093_v56  ;;  %vm1103_vm6 = vweird.f32 %v8550_v35 }
 0x283   :  { %6506 = vmatmul.msk.bf16.gmra.mxu1 %vm374_vm0, %v1561_v21  ;;  %v8575_v21 = vadd.f32 1.0, %v6925_v51  ;;  %6928 = vrcp.f32 %v8565_v33  ;;  %v1090_v9 = vsel %vm8571_vm3, %v8494_v62, %v1086_v52  ;;  %v1099_v31 = vsub.f32 1.0, %v1098_v11  ;;  %v7152_v11 = vld [vmem:[%s12396_s1 + $0xf8] sm:$0xff]  ;;  %vm8648_vm9 = vmor %vm1102_vm5, %vm1103_vm6 }
 0x284   :  { %v8581_v16 = vpop.eup %6926  ;;  %v1095_v44 = vsel %vm1092_vm4, %v1094_v61, %v1090_v9  ;;  %vm1117_vm11 = vweird.f32 %v8565_v33 }
 0x285   :  { %6930 = vrcp.f32 %v8575_v21  ;;  %v1128_v15 = vmul.f32 %v8581_v16, %v8536_v42  ;;  %v1100_v0 = vmul.f32 %v8550_v35, %v1099_v31  ;;  %vm1133_vm8 = vweird.f32 %v8581_v16 }
 0x286   :  { %v8531_v40 = vpop.permute.xlu0 %1458  ;;  %v1311_v4 = vpop.permute.xlu2 %1310  ;;  %vm8661_vm10 = vmor %vm1132_vm7, %vm1133_vm8  ;;  %vm1147_vm14 = vweird.f32 %v8575_v21 }
 0x287   :  { %v1384_v22 = vmul.f32 %v1311_v4, %v1065_v30  ;;  %v1129_v5 = vsub.f32 1.0, %v1128_v15 }
 0x289   :  { %1470 = vrot.lane.b32.xlu0 %v1384_v22, %s7205_s23  ;;  %v7151_v22 = vld [vmem:[%s12396_s1 + $0xf0] sm:$0xff]  ;;  %v8608_v36 = vpop.eup %6928 }
 0x28a   :  { %v1232_v59 = vsub.f32 %v7151_v22, %v116_v54  ;;  %v1130_v54 = vmul.f32 %v8581_v16, %v1129_v5  ;;  %v1138_v22 = vand.u32 2147483648, %v8536_v42  ;;  %vm1118_vm13 = vweird.f32 %v8608_v36 }
 0x28b   :  { %v1674_v60 = vpop.f32.mrf.mxu1  ;;  %vm8716_vm1 = vmor %vm1117_vm11, %vm1118_vm13 }
 0x28c   :  { %v8554_v6 = vadd.f32 %v1674_v60, %v7670_v24  ;;  %v1131_v5 = vadd.f32 %v8581_v16, %v1130_v54 }
 0x28e   :  { %v8562_v7 = vmul.f32 0.70710677, %v8554_v6  ;;  %v1313_v49 = vpop.permute.xlu0 %1312 }
 0x28f   :  { %v1385_v24 = vmul.f32 %v1313_v49, %v1080_v2  ;;  %v117_v2 = vld [vmem:[%s12397_s2 + $0xf8] sm:$0xff]  ;;  %v8619_v49 = vpop.eup %6930 }
 0x290   :  { %v2075_v47 = vmul.f32 %v8562_v7, %v8562_v7  ;;  %v1233_v61 = vsub.f32 %v7152_v11, %v117_v2  ;;  %vm1148_vm15 = vweird.f32 %v8619_v49 }
 0x291   :  { %1472 = vrot.lane.b32.xlu1 %v1385_v24, %s7205_s23  ;;  %1324 = vrot.lane.b32.xlu0 %v1231_v58, %s7205_s23  ;;  %v1108_v24 = vand.u32 2147483648, %v8518_v45  ;;  %vm8731_vm2 = vmor %vm1147_vm14, %vm1148_vm15 }
 0x292   :  { %v8583_v13 = vmin.f32 %v2075_v47, 16.0  ;;  %v1113_v47 = vmul.f32 %v8608_v36, %v8565_v33 }
 0x293   :  { %v1676_v37 = vpop.f32.mrf.mxu1 }
 0x294   :  { %v2077_v30 = vmul.f32 2.1237322e-06, %v8583_v13  ;;  %v8594_v4 = vadd.f32 %v1676_v37, %v7648_v12  ;;  %v2088_v34 = vmul.f32 3.8918573e-05, %v8583_v13  ;;  %v8634_v37 = vadd.f32 %v8550_v35, %v1100_v0 }
 0x295   :  { %v1136_v0 = vand.u32 2147483647, %v8536_v42  ;;  %v1139_v42 = vor.u32 1.1754944e-38, %v1138_v22 }
 0x296   :  { %v8604_v62 = vmul.f32 0.70710677, %v8594_v4  ;;  %v1315_v3 = vpop.permute.xlu0 %1314  ;;  %v2078_v12 = vadd.f32 0.00028619796, %v2077_v30  ;;  %v2089_v1 = vadd.f32 0.001143296, %v2088_v34 }
 0x297   :  { %v1386_v20 = vmul.f32 %v1315_v3, %v1095_v44  ;;  %vm8680_vm12 = vcmp.eq.f32.partialorder %v1136_v0, 8.507059e+37 }
 0x298   :  { %v2115_v60 = vmul.f32 %v8604_v62, %v8604_v62  ;;  %v2090_v58 = vmul.f32 %v2089_v1, %v8583_v13  ;;  %v2079_v56 = vmul.f32 %v2078_v12, %v8583_v13  ;;  %v1114_v1 = vsub.f32 1.0, %v1113_v47 }
 0x299   :  { %1474 = vrot.lane.b32.xlu1 %v1386_v20, %s7205_s23  ;;  %1326 = vrot.lane.b32.xlu0 %v1232_v59, %s7205_s23  ;;  %v1143_v59 = vmul.f32 %v8619_v49, %v8575_v21  ;;  %v1106_v20 = vand.u32 2147483647, %v8518_v45 }
 0x29a   :  { %v8614_v51 = vmin.f32 %v2115_v60, 16.0  ;;  %v2091_v52 = vadd.f32 0.014752088, %v2090_v58  ;;  %v2080_v31 = vadd.f32 0.0036580483, %v2079_v56  ;;  %v8658_v58 = vor.u32 1.1754944e-38, %v1108_v24 }
 0x29b   :  { %v1123_v24 = vand.u32 2147483648, %v8565_v33  ;;  %vm8735_vm3 = vcmp.eq.f32.partialorder %v1106_v20, 8.507059e+37 }
 0x29c   :  { %v2117_v41 = vmul.f32 2.1237322e-06, %v8614_v51  ;;  %v2128_v57 = vmul.f32 3.8918573e-05, %v8614_v51  ;;  %v2092_v9 = vmul.f32 %v2091_v52, %v8583_v13 }
 0x29e   :  { %v2118_v30 = vadd.f32 0.00028619796, %v2117_v41  ;;  %v8637_v34 = vpop.permute.xlu2 %1464  ;;  %v2129_v15 = vadd.f32 0.001143296, %v2128_v57  ;;  %v2093_v3 = vadd.f32 0.112945676, %v2092_v9  ;;  %v2081_v57 = vmul.f32 %v2080_v31, %v8583_v13 }
 0x29f   :  { %v1144_v41 = vsub.f32 1.0, %v1143_v59  ;;  %v1115_v9 = vmul.f32 %v8608_v36, %v1114_v1  ;;  %v1135_v59 = vsel %vm8661_vm10, %v8581_v16, %v1131_v5 }
 0x2a0   :  { %v2119_v12 = vmul.f32 %v2118_v30, %v8614_v51  ;;  %v2130_v60 = vmul.f32 %v2129_v15, %v8614_v51  ;;  %v2094_v2 = vmul.f32 %v2093_v3, %v8583_v13  ;;  %v2082_v5 = vadd.f32 0.05243302, %v2081_v57 }
 0x2a1   :  { %1328 = vrot.lane.b32.xlu1 %v1233_v61, %s7205_s23  ;;  %v1145_v16 = vmul.f32 %v8619_v49, %v1144_v41 }
 0x2a2   :  { %v2120_v56 = vadd.f32 0.0036580483, %v2119_v12  ;;  %v2131_v47 = vadd.f32 0.014752088, %v2130_v60  ;;  %v2095_v61 = vadd.f32 0.4994258, %v2094_v2 }
 0x2a3   :  { %v1679_v11 = vpop.f32.mrf.mxu1  ;;  %v1121_v60 = vand.u32 2147483647, %v8565_v33  ;;  %v7154_v2 = vld [vmem:[%s12397_s2 + $0x88] sm:$0xff] }
 0x2a4   :  { %v8672_v54 = vadd.f32 %v1679_v11, %v7684_v38  ;;  %v2132_v30 = vmul.f32 %v2131_v47, %v8614_v51  ;;  %v2096_v22 = vmul.f32 %v2095_v61, %v8583_v13  ;;  %v7153_v38 = vld [vmem:[%s12397_s2 + $0x80] sm:$0xff]  ;;  %v2121_v3 = vmul.f32 %v2120_v56, %v8614_v51 }
 0x2a5   :  { %v1538_v31 = vadd.f32 %v7153_v38, %v8531_v40  ;;  %v1153_v40 = vand.u32 2147483648, %v8575_v21  ;;  %v1116_v11 = vadd.f32 %v8608_v36, %v1115_v9  ;;  %v1146_v38 = vadd.f32 %v8619_v49, %v1145_v16 }
 0x2a6   :  { %v8691_v12 = vpop.permute.xlu2 %1466  ;;  %v1461_v1 = vpop.permute.xlu1 %1460  ;;  %v8696_v0 = vmul.f32 0.70710677, %v8672_v54  ;;  %v8701_v47 = vadd.f32 1.0, %v2096_v22  ;;  %v2133_v56 = vadd.f32 0.112945676, %v2132_v30  ;;  %vm8742_vm4 = vcmp.eq.f32.partialorder %v1121_v60, 8.507059e+37 }
 0x2a7   :  { %v1539_v52 = vadd.f32 %v7154_v2, %v1461_v1  ;;  %v2122_v61 = vadd.f32 0.05243302, %v2121_v3  ;;  %v1151_v22 = vand.u32 2147483647, %v8575_v21  ;;  %v1140_v3 = vsel %vm8680_vm12, %v1139_v42, %v1135_v59  ;;  %v586_v59 = vpop.f32.mrf.mxu0 }
 0x2a8   :  { %v2155_v41 = vmul.f32 %v8696_v0, %v8696_v0  ;;  %6932 = vrcp.f32 %v8701_v47  ;;  %v2134_v30 = vmul.f32 %v2133_v56, %v8614_v51  ;;  %v1124_v42 = vor.u32 1.1754944e-38, %v1123_v24 }
 0x2a9   :  { %v1562_v57 = vpack.c.bf16 %v1539_v52, %v1538_v31  ;;  %v2083_v31 = vmul.f32 %v2082_v5, %v8583_v13  ;;  %v1154_v52 = vor.u32 1.1754944e-38, %v1153_v40  ;;  %v1120_v15 = vsel %vm8716_vm1, %v8608_v36, %v1116_v11 }
 0x2aa   :  { %v8722_v9 = vmin.f32 %v2155_v41, 16.0  ;;  %v2135_v20 = vadd.f32 0.4994258, %v2134_v30  ;;  %v1150_v24 = vsel %vm8731_vm2, %v8619_v49, %v1146_v38  ;;  %vm1152_vm5 = vcmp.eq.f32.partialorder %v1151_v22, 8.507059e+37 }
 0x2ab   :  { %v1681_v2 = vpop.f32.mrf.mxu1  ;;  %6507 = vmatmul.msk.bf16.gmra.mxu1 %vm374_vm0, %v1562_v57  ;;  %v2123_v57 = vmul.f32 %v2122_v61, %v8614_v51  ;;  %v2084_v45 = vadd.f32 0.18741608, %v2083_v31  ;;  %v12462_v30 = vsel %vm8648_vm9, %v8550_v35, %v8634_v37  ;;  %v8773_v38 = vsel %vm8742_vm4, %v1124_v42, %v1120_v15 }
 0x2ac   :  { %v8740_v5 = vadd.f32 %v1681_v2, %v7688_v46  ;;  %v2157_v21 = vmul.f32 2.1237322e-06, %v8722_v9  ;;  %v2168_v41 = vmul.f32 3.8918573e-05, %v8722_v9  ;;  %v2136_v11 = vmul.f32 %v2135_v20, %v8614_v51 }
 0x2ad   :  { %v1110_v49 = vsel %vm8735_vm3, %v8658_v58, %v12462_v30  ;;  %v8778_v31 = vadd.f32 %v8462_v53, %v586_v59  ;;  %v1155_v44 = vsel %vm1152_vm5, %v1154_v52, %v1150_v24  ;;  %v2124_v37 = vadd.f32 0.18741608, %v2123_v57 }
 0x2ae   :  { %v8753_v46 = vmul.f32 0.70710677, %v8740_v5  ;;  %v1321_v60 = vpop.permute.xlu2 %1320  ;;  %v1463_v40 = vpop.permute.xlu1 %1462  ;;  %v2158_v1 = vadd.f32 0.00028619796, %v2157_v21  ;;  %v2169_v35 = vadd.f32 0.001143296, %v2168_v41  ;;  %v2085_v56 = vmul.f32 %v2084_v45, %v8583_v13 }
 0x2af   :  { %v8758_v2 = vpop.eup %6932  ;;  %v1389_v36 = vmul.f32 %v1321_v60, %v1140_v3  ;;  %12463 = vst [vmem:[#allocation7_spill] sm:$0xff] %v8778_v31  ;;  %v8781_v3 = vadd.f32 1.0, %v2136_v11  ;;  %vm2103_vm6 = vweird.f32 %v8701_v47  ;;  %v2107_v59 = vand.u32 2147483647, %v8701_v47  ;;  %v7155_v13 = vld [vmem:[%s12397_s2 + $0x90] sm:$0xff] }
 0x2b0   :  { %v2195_v61 = vmul.f32 %v8753_v46, %v8753_v46  ;;  %v2099_v22 = vmul.f32 %v8758_v2, %v8701_v47  ;;  %v2159_v33 = vmul.f32 %v2158_v1, %v8722_v9  ;;  %vm2104_vm7 = vweird.f32 %v8758_v2 }
 0x2b1   :  { %1480 = vrot.lane.b32.xlu0 %v1389_v36, %s7205_s23  ;;  %6934 = vrcp.f32 %v8781_v3  ;;  %v1540_v45 = vadd.f32 %v7155_v13, %v1463_v40  ;;  %v2109_v20 = vand.u32 2147483648, %v8701_v47  ;;  %v2170_v41 = vmul.f32 %v2169_v35, %v8722_v9  ;;  %v7156_v40 = vld [vmem:[%s12397_s2 + $0x98] sm:$0xff]  ;;  %vm8816_vm8 = vmor %vm2103_vm6, %vm2104_vm7 }
 0x2b2   :  { %v8784_v58 = vmin.f32 %v2195_v61, 16.0  ;;  %v2100_v16 = vsub.f32 1.0, %v2099_v22  ;;  %v2125_v60 = vmul.f32 %v2124_v37, %v8614_v51  ;;  %v2160_v24 = vadd.f32 0.0036580483, %v2159_v33 }
 0x2b3   :  { %v1684_v42 = vpop.f32.mrf.mxu1  ;;  %v6480_v61 = vmul.f32 -1.442695, %v8778_v31  ;;  %v1541_v30 = vadd.f32 %v7156_v40, %v8637_v34  ;;  %v2086_v37 = vadd.f32 1.1283791, %v2085_v56  ;;  %vm2108_vm9 = vcmp.eq.f32.partialorder %v2107_v59, 8.507059e+37 }
 0x2b4   :  { %v2197_v52 = vmul.f32 2.1237322e-06, %v8784_v58  ;;  %v8792_v21 = vadd.f32 %v1684_v42, %v7692_v43  ;;  %v2101_v15 = vmul.f32 %v8758_v2, %v2100_v16  ;;  %v2208_v57 = vmul.f32 3.8918573e-05, %v8784_v58 }
 0x2b5   :  { %v2171_v42 = vadd.f32 0.014752088, %v2170_v41  ;;  %v1563_v13 = vpack.c.bf16 %v1541_v30, %v1540_v45  ;;  %v2110_v34 = vor.u32 1.1754944e-38, %v2109_v20  ;;  %6936 = vpow2.f32 %v6480_v61 }
 0x2b6   :  { %v8804_v43 = vmul.f32 0.70710677, %v8792_v21  ;;  %v1323_v1 = vpop.permute.xlu2 %1322  ;;  %v1317_v36 = vpop.permute.xlu1 %1316  ;;  %v2102_v11 = vadd.f32 %v8758_v2, %v2101_v15  ;;  %v2198_v33 = vadd.f32 0.00028619796, %v2197_v52  ;;  %v2209_v47 = vadd.f32 0.001143296, %v2208_v57 }
 0x2b7   :  { %v1390_v22 = vmul.f32 %v1323_v1, %v1155_v44  ;;  %v1387_v35 = vmul.f32 %v1317_v36, %v1110_v49  ;;  %v6935_v15 = vpop.eup %6934  ;;  %v2126_v49 = vadd.f32 1.1283791, %v2125_v60  ;;  %v2161_v44 = vmul.f32 %v2160_v24, %v8722_v9 }
 0x2b8   :  { %v2106_v16 = vsel %vm8816_vm8, %v8758_v2, %v2102_v11  ;;  %v2235_v56 = vmul.f32 %v8804_v43, %v8804_v43  ;;  %v2139_v52 = vmul.f32 %v6935_v15, %v8781_v3  ;;  %v2172_v41 = vmul.f32 %v2171_v42, %v8722_v9 }
 0x2b9   :  { %1482 = vrot.lane.b32.xlu1 %v1390_v22, %s7205_s23  ;;  %1476 = vrot.lane.b32.xlu2 %v1387_v35, %s7205_s23  ;;  %v2111_v45 = vsel %vm2108_vm9, %v2110_v34, %v2106_v16  ;;  %v2210_v1 = vmul.f32 %v2209_v47, %v8784_v58  ;;  %v2087_v59 = vmul.f32 %v2086_v37, %v8562_v7  ;;  %v2147_v60 = vand.u32 2147483647, %v8781_v3  ;;  %v589_v16 = vpop.f32.mrf.mxu0 }
 0x2ba   :  { %v2199_v20 = vmul.f32 %v2198_v33, %v8784_v58  ;;  %v2140_v24 = vsub.f32 1.0, %v2139_v52  ;;  %v2149_v36 = vand.u32 2147483648, %v8781_v3  ;;  %v2173_v11 = vadd.f32 0.112945676, %v2172_v41 }
 0x2bb   :  { %v1686_v2 = vpop.f32.mrf.mxu1  ;;  %6508 = vmatmul.msk.bf16.gmra.mxu1 %vm374_vm0, %v1563_v13  ;;  %v2211_v61 = vadd.f32 0.014752088, %v2210_v1  ;;  %v2127_v40 = vmul.f32 %v2126_v49, %v8604_v62  ;;  %v2162_v30 = vadd.f32 0.05243302, %v2161_v44  ;;  %v8840_v22 = vmin.f32 %v2235_v56, 16.0  ;;  %v6937_v42 = vpop.eup %6936 }
 0x2bc   :  { %v8835_v57 = vadd.f32 %v1686_v2, %v7700_v14  ;;  %v2112_v51 = vmul.f32 %v2111_v45, %v2087_v59  ;;  %v2141_v37 = vmul.f32 %v6935_v15, %v2140_v24  ;;  %vm2144_vm10 = vweird.f32 %v6935_v15 }
 0x2bd   :  { %v2200_v33 = vadd.f32 0.0036580483, %v2199_v20  ;;  %vm2143_vm11 = vweird.f32 %v8781_v3  ;;  %vm8847_vm12 = vcmp.eq.f32.partialorder %v2147_v60, 8.507059e+37  ;;  %v2174_v62 = vmul.f32 %v2173_v11, %v8722_v9 }
 0x2be   :  { %v1319_v35 = vpop.permute.xlu1 %1318  ;;  %v8843_v7 = vmul.f32 0.70710677, %v8835_v57  ;;  %v2142_v34 = vadd.f32 %v6935_v15, %v2141_v37  ;;  %v2150_v47 = vor.u32 1.1754944e-38, %v2149_v36  ;;  %v2163_v49 = vmul.f32 %v2162_v30, %v8722_v9  ;;  %vm2145_vm13 = vmor %vm2143_vm11, %vm2144_vm10 }
 0x2bf   :  { %v1388_v14 = vmul.f32 %v1319_v35, %v8773_v38  ;;  %v2212_v38 = vmul.f32 %v2211_v61, %v8784_v58  ;;  %v2237_v3 = vmul.f32 2.1237322e-06, %v8840_v22  ;;  %v6521_v44 = vclamps-f32 %v2112_v51, 1.0 }
 0x2c0   :  { %v2275_v13 = vmul.f32 %v8843_v7, %v8843_v7  ;;  %v2175_v56 = vadd.f32 0.4994258, %v2174_v62  ;;  %v2146_v2 = vsel %vm2145_vm13, %v6935_v15, %v2142_v34  ;;  %v2248_v41 = vmul.f32 3.8918573e-05, %v8840_v22 }
 0x2c1   :  { %1478 = vrot.lane.b32.xlu2 %v1388_v14, %s7205_s23  ;;  %v2213_v45 = vadd.f32 0.112945676, %v2212_v38  ;;  %v2201_v1 = vmul.f32 %v2200_v33, %v8784_v58  ;;  %v2151_v59 = vsel %vm8847_vm12, %v2150_v47, %v2146_v2  ;;  %v2164_v11 = vadd.f32 0.18741608, %v2163_v49 }
 0x2c2   :  { %v8858_v52 = vmin.f32 %v2275_v13, 16.0  ;;  %v2176_v20 = vmul.f32 %v2175_v56, %v8722_v9  ;;  %v2152_v60 = vmul.f32 %v2151_v59, %v2127_v40  ;;  %v2249_v36 = vadd.f32 0.001143296, %v2248_v41 }
 0x2c3   :  { %v2214_v24 = vmul.f32 %v2213_v45, %v8784_v58  ;;  %v2238_v61 = vadd.f32 0.00028619796, %v2237_v3  ;;  %v3121_v30 = vadd.f32 1.0, %v6521_v44  ;;  %v8870_v33 = vadd.f32 1.0, %v6937_v42 }
 0x2c4   :  { %v8866_v35 = vadd.f32 1.0, %v2176_v20  ;;  %v2277_v15 = vmul.f32 2.1237322e-06, %v8858_v52  ;;  %v6522_v51 = vclamps-f32 %v2152_v60, 1.0  ;;  %v2250_v37 = vmul.f32 %v2249_v36, %v8840_v22 }
 0x2c5   :  { %v2215_v14 = vadd.f32 0.4994258, %v2214_v24  ;;  %v2202_v62 = vadd.f32 0.05243302, %v2201_v1  ;;  %v8874_v40 = vadd.f32 %v8462_v53, %v589_v16  ;;  %v1777_v13 = vmul.f32 0.5, %v8554_v6 }
 0x2c6   :  { %6938 = vrcp.f32 %v8866_v35  ;;  %v1778_v34 = vmul.f32 0.5, %v8594_v4  ;;  %v3122_v47 = vadd.f32 1.0, %v6522_v51  ;;  %v2239_v38 = vmul.f32 %v2238_v61, %v8840_v22  ;;  %v8895_v51 = vld [vmem:[%s12399_s4 + $0x1] ss:$0 sm:$0xff] }
 0x2c7   :  { %12468 = vst [vmem:[#allocation8_spill] sm:$0xff] %v8874_v40  ;;  %v2216_v49 = vmul.f32 %v2215_v14, %v8784_v58  ;;  %v2251_v3 = vadd.f32 0.014752088, %v2250_v37  ;;  %v2288_v42 = vmul.f32 3.8918573e-05, %v8858_v52  ;;  %v2165_v44 = vmul.f32 %v2164_v11, %v8722_v9 }
 0x2c8   :  { %v2278_v56 = vadd.f32 0.00028619796, %v2277_v15  ;;  %v3153_v2 = vmul.f32 %v3121_v30, %v1777_v13  ;;  %v3154_v45 = vmul.f32 %v3122_v47, %v1778_v34  ;;  %v2203_v41 = vmul.f32 %v2202_v62, %v8784_v58 }
 0x2c9   :  { %v8883_v1 = vadd.f32 1.0, %v2216_v49  ;;  %v2252_v6 = vmul.f32 %v2251_v3, %v8840_v22  ;;  %v2289_v4 = vadd.f32 0.001143296, %v2288_v42  ;;  %v6481_v59 = vmul.f32 -1.442695, %v8874_v40 }
 0x2ca   :  { %v3182_v20 = vpack.c.bf16 %v3154_v45, %v3153_v2  ;;  %v2240_v24 = vadd.f32 0.0036580483, %v2239_v38  ;;  %v2279_v9 = vmul.f32 %v2278_v56, %v8858_v52  ;;  %v2166_v11 = vadd.f32 1.1283791, %v2165_v44 }
 0x2cb   :  { %6940 = vrcp.f32 %v8883_v1  ;;  %v2204_v61 = vadd.f32 0.18741608, %v2203_v41  ;;  %v2253_v30 = vadd.f32 0.112945676, %v2252_v6  ;;  %v2290_v15 = vmul.f32 %v2289_v4, %v8858_v52 }
 0x2cc   :  { %v6939_v60 = vpop.eup %6938  ;;  %6942 = vrcp.f32 %v8870_v33  ;;  %3284 = vmatmul.bf16.gmra.mxu2 %v3182_v20  ;;  %v2241_v37 = vmul.f32 %v2240_v24, %v8840_v22  ;;  %v2189_v16 = vand.u32 2147483648, %v8866_v35  ;;  %v2280_v34 = vadd.f32 0.0036580483, %v2279_v9 }
 0x2cd   :  { %v2179_v36 = vmul.f32 %v6939_v60, %v8866_v35  ;;  %6944 = vpow2.f32 %v6481_v59  ;;  %v2254_v62 = vmul.f32 %v2253_v30, %v8840_v22  ;;  %v2291_v13 = vadd.f32 0.014752088, %v2290_v15 }
 0x2ce   :  { %vm2184_vm14 = vweird.f32 %v6939_v60  ;;  %v2187_v38 = vand.u32 2147483647, %v8866_v35  ;;  %v2167_v3 = vmul.f32 %v2166_v11, %v8696_v0  ;;  %v2205_v42 = vmul.f32 %v2204_v61, %v8784_v58 }
 0x2cf   :  { %v2180_v14 = vsub.f32 1.0, %v2179_v36  ;;  %v2255_v56 = vadd.f32 0.4994258, %v2254_v62  ;;  %v2292_v2 = vmul.f32 %v2291_v13, %v8858_v52  ;;  %vm2183_vm15 = vweird.f32 %v8866_v35 }
 0x2d0   :  { %v2242_v59 = vadd.f32 0.05243302, %v2241_v37  ;;  %vm2185_vm1 = vmor %vm2183_vm15, %vm2184_vm14  ;;  %v2190_v20 = vor.u32 1.1754944e-38, %v2189_v16  ;;  %v2281_v9 = vmul.f32 %v2280_v34, %v8858_v52  ;;  %vm2188_vm2 = vcmp.eq.f32.partialorder %v2187_v38, 8.507059e+37 }
 0x2d1   :  { %v2181_v47 = vmul.f32 %v6939_v60, %v2180_v14  ;;  %v6941_v49 = vpop.eup %6940  ;;  %v2256_v0 = vmul.f32 %v2255_v56, %v8840_v22  ;;  %v2293_v58 = vadd.f32 0.112945676, %v2292_v2  ;;  %v591_v14 = vpop.f32.mrf.mxu0  ;;  %v2206_v37 = vadd.f32 1.1283791, %v2205_v42 }
 0x2d2   :  { %v3270_v44 = vpop.f32.mrf.mxu2  ;;  %v8904_v45 = vpop.eup %6942  ;;  %v2219_v4 = vmul.f32 %v6941_v49, %v8883_v1  ;;  %v2227_v62 = vand.u32 2147483647, %v8883_v1  ;;  %v2229_v13 = vand.u32 2147483648, %v8883_v1  ;;  %vm2224_vm3 = vweird.f32 %v6941_v49 }
 0x2d3   :  { %v8907_v41 = vadd.f32 %v8895_v51, %v3270_v44  ;;  %v2182_v6 = vadd.f32 %v6939_v60, %v2181_v47  ;;  %v6945_v24 = vpop.eup %6944  ;;  %v8916_v15 = vadd.f32 1.0, %v2256_v0  ;;  %v2294_v35 = vmul.f32 %v2293_v58, %v8858_v52 }
 0x2d4   :  { %v2220_v30 = vsub.f32 1.0, %v2219_v4  ;;  %v2282_v38 = vadd.f32 0.05243302, %v2281_v9  ;;  %v8928_v42 = vadd.f32 %v8462_v53, %v591_v14  ;;  %vm2223_vm4 = vweird.f32 %v8883_v1 }
 0x2d5   :  { %v8914_v36 = vmul.f32 0.70710677, %v8907_v41  ;;  %v2186_v11 = vsel %vm2185_vm1, %v6939_v60, %v2182_v6  ;;  %6946 = vrcp.f32 %v8916_v15  ;;  %v2243_v60 = vmul.f32 %v2242_v59, %v8840_v22  ;;  %vm2225_vm5 = vmor %vm2223_vm4, %vm2224_vm3 }
 0x2d6   :  { %v2191_v61 = vsel %vm2188_vm2, %v2190_v20, %v2186_v11  ;;  %v2221_v47 = vmul.f32 %v6941_v49, %v2220_v30  ;;  %v2295_v56 = vadd.f32 0.4994258, %v2294_v35  ;;  %12469 = vst [vmem:[#allocation9_spill] sm:$0xff] %v8928_v42  ;;  %v2207_v4 = vmul.f32 %v2206_v37, %v8753_v46  ;;  %v6702_v35 = vld [vmem:[%s12398_s3 + $0xd8] sm:$0xff] }
 0x2d7   :  { %v3414_v16 = vmul.f32 %v8914_v36, %v8914_v36  ;;  %v2192_v34 = vmul.f32 %v2191_v61, %v2167_v3  ;;  %vm2228_vm6 = vcmp.eq.f32.partialorder %v2227_v62, 8.507059e+37  ;;  %v2230_v20 = vor.u32 1.1754944e-38, %v2229_v13  ;;  %4840 = vmatpush.bf16.msra.mxu3 %v6702_v35 }
 0x2d8   :  { %v2222_v6 = vadd.f32 %v6941_v49, %v2221_v47  ;;  %v2296_v58 = vmul.f32 %v2295_v56, %v8858_v52  ;;  %v2244_v53 = vadd.f32 0.18741608, %v2243_v60  ;;  %v2283_v11 = vmul.f32 %v2282_v38, %v8858_v52 }
 0x2d9   :  { %v8925_v44 = vmin.f32 %v3414_v16, 16.0  ;;  %v6523_v59 = vclamps-f32 %v2192_v34, 1.0  ;;  %v8950_v16 = vadd.f32 1.0, %v6945_v24  ;;  %v6482_v62 = vmul.f32 -1.442695, %v8928_v42 }
 0x2da   :  { %v3272_v2 = vpop.f32.mrf.mxu2  ;;  %v2226_v0 = vsel %vm2225_vm5, %v6941_v49, %v2222_v6  ;;  %v8944_v14 = vadd.f32 1.0, %v2296_v58  ;;  %v8948_v49 = vmul.f32 %v8904_v45, %v8870_v33  ;;  %v1779_v47 = vmul.f32 0.5, %v8672_v54  ;;  %v6701_v54 = vld [vmem:[%s12398_s3 + $0xd0] sm:$0xff] }
 0x2db   :  { %v8933_v3 = vadd.f32 %v8895_v51, %v3272_v2  ;;  %v3427_v9 = vmul.f32 3.8918573e-05, %v8925_v44  ;;  %v2231_v1 = vsel %vm2228_vm6, %v2230_v20, %v2226_v0  ;;  %v6947_v46 = vpop.eup %6946  ;;  %v3123_v38 = vadd.f32 1.0, %v6523_v59  ;;  %4841 = vmatpush.bf16.msra.mxu3 %v6701_v54 }
 0x2dc   :  { %v2232_v30 = vmul.f32 %v2231_v1, %v2207_v4  ;;  %v2259_v34 = vmul.f32 %v6947_v46, %v8916_v15  ;;  %6948 = vrcp.f32 %v8944_v14  ;;  %v2245_v56 = vmul.f32 %v2244_v53, %v8840_v22 }
 0x2dd   :  { %v8939_v61 = vmul.f32 0.70710677, %v8933_v3  ;;  %v3428_v37 = vadd.f32 0.001143296, %v3427_v9  ;;  %v2284_v2 = vadd.f32 0.18741608, %v2283_v11  ;;  %6950 = vpow2.f32 %v6482_v62 }
 0x2de   :  { %v6524_v60 = vclamps-f32 %v2232_v30, 1.0  ;;  %v2260_v24 = vsub.f32 1.0, %v2259_v34  ;;  %v1780_v4 = vmul.f32 0.5, %v8740_v5  ;;  %v2269_v0 = vand.u32 2147483648, %v8916_v15  ;;  %v6700_v62 = vld [vmem:[%s12398_s3 + $0xc8] sm:$0xff] }
 0x2df   :  { %v3454_v13 = vmul.f32 %v8939_v61, %v8939_v61  ;;  %v3429_v59 = vmul.f32 %v3428_v37, %v8925_v44  ;;  %vm2264_vm7 = vweird.f32 %v6947_v46  ;;  %v2267_v22 = vand.u32 2147483647, %v8916_v15  ;;  %4842 = vmatpush.bf16.msra.mxu3 %v6700_v62 }
 0x2e0   :  { %v3124_v20 = vadd.f32 1.0, %v6524_v60  ;;  %v2261_v58 = vmul.f32 %v6947_v46, %v2260_v24  ;;  %v3155_v9 = vmul.f32 %v3123_v38, %v1779_v47  ;;  %v2246_v1 = vadd.f32 1.1283791, %v2245_v56 }
 0x2e1   :  { %v8959_v6 = vmin.f32 %v3454_v13, 16.0  ;;  %v3430_v11 = vadd.f32 0.014752088, %v3429_v59  ;;  %v2285_v30 = vmul.f32 %v2284_v2, %v8858_v52  ;;  %vm2263_vm8 = vweird.f32 %v8916_v15 }
 0x2e2   :  { %v3156_v53 = vmul.f32 %v3124_v20, %v1780_v4  ;;  %v2262_v35 = vadd.f32 %v6947_v46, %v2261_v58  ;;  %v6949_v13 = vpop.eup %6948  ;;  %vm2265_vm9 = vmor %vm2263_vm8, %vm2264_vm7  ;;  %v2270_v37 = vor.u32 1.1754944e-38, %v2269_v0  ;;  %v3416_v38 = vmul.f32 2.1237322e-06, %v8925_v44 }
 0x2e3   :  { %v3467_v5 = vmul.f32 3.8918573e-05, %v8959_v6  ;;  %v3431_v47 = vmul.f32 %v3430_v11, %v8925_v44  ;;  %vm2268_vm10 = vcmp.eq.f32.partialorder %v2267_v22, 8.507059e+37  ;;  %v2299_v52 = vmul.f32 %v6949_v13, %v8944_v14  ;;  %v6951_v20 = vpop.eup %6950  ;;  %v6699_v22 = vld [vmem:[%s12398_s3 + $0xc0] sm:$0xff] }
 0x2e4   :  { %v3183_v34 = vpack.c.bf16 %v3156_v53, %v3155_v9  ;;  %v2266_v24 = vsel %vm2265_vm9, %v6947_v46, %v2262_v35  ;;  %v3456_v56 = vmul.f32 2.1237322e-06, %v8959_v6  ;;  %6952 = vrcp.f32 %v8950_v16  ;;  %4843 = vmatpush.bf16.msra.mxu3 %v6699_v22  ;;  %v7158_v22 = vld [vmem:[%s12397_s2 + $0xa8] sm:$0xff] }
 0x2e5   :  { %v3468_v60 = vadd.f32 0.001143296, %v3467_v5  ;;  %v2271_v15 = vsel %vm2268_vm10, %v2270_v37, %v2266_v24  ;;  %v3432_v2 = vadd.f32 0.112945676, %v3431_v47  ;;  %v2247_v0 = vmul.f32 %v2246_v1, %v8804_v43 }
 0x2e6   :  { %3289 = vmatmul.bf16.gmra.mxu2 %v3183_v34  ;;  %v2300_v54 = vsub.f32 1.0, %v2299_v52  ;;  %v1159_v59 = vsub.f32 1.0, %v8948_v49  ;;  %v2286_v46 = vadd.f32 1.1283791, %v2285_v30  ;;  %v2309_v58 = vand.u32 2147483648, %v8944_v14 }
 0x2e7   :  { %v3469_v4 = vmul.f32 %v3468_v60, %v8959_v6  ;;  %v3433_v9 = vmul.f32 %v3432_v2, %v8925_v44  ;;  %v2272_v11 = vmul.f32 %v2271_v15, %v2247_v0  ;;  %vm2304_vm11 = vweird.f32 %v6949_v13 }
 0x2e8   :  { %v2301_v5 = vmul.f32 %v6949_v13, %v2300_v54  ;;  %v2307_v35 = vand.u32 2147483647, %v8944_v14  ;;  %v3417_v34 = vadd.f32 0.00028619796, %v3416_v38  ;;  %v3457_v43 = vadd.f32 0.00028619796, %v3456_v56 }
 0x2e9   :  { %v3470_v53 = vadd.f32 0.014752088, %v3469_v4  ;;  %v3434_v1 = vadd.f32 0.4994258, %v3433_v9  ;;  %vm2303_vm12 = vweird.f32 %v8944_v14  ;;  %v1160_v30 = vmul.f32 %v8904_v45, %v1159_v59  ;;  %v6698_v38 = vld [vmem:[%s12398_s3 + $0xb8] sm:$0xff] }
 0x2ea   :  { %v2302_v49 = vadd.f32 %v6949_v13, %v2301_v5  ;;  %v8991_v62 = vadd.f32 1.0, %v6951_v20  ;;  %v2287_v47 = vmul.f32 %v2286_v46, %v8843_v7  ;;  %vm2305_vm13 = vmor %vm2303_vm12, %vm2304_vm11  ;;  %v2310_v24 = vor.u32 1.1754944e-38, %v2309_v58  ;;  %v8998_v56 = vpop.eup %6952  ;;  %4844 = vmatpush.bf16.msra.mxu3 %v6698_v38 }
 0x2eb   :  { %v3471_v37 = vmul.f32 %v3470_v53, %v8959_v6  ;;  %v3435_v52 = vmul.f32 %v3434_v1, %v8925_v44  ;;  %v6525_v15 = vclamps-f32 %v2272_v11, 1.0  ;;  %vm2308_vm14 = vcmp.eq.f32.partialorder %v2307_v35, 8.507059e+37  ;;  %v6697_v53 = vld [vmem:[%s12398_s3 + $0xb0] sm:$0xff] }
 0x2ec   :  { %v2306_v2 = vsel %vm2305_vm13, %v6949_v13, %v2302_v49  ;;  %v3418_v4 = vmul.f32 %v3417_v34, %v8925_v44  ;;  %v3458_v7 = vmul.f32 %v3457_v43, %v8959_v6  ;;  %vm1162_vm15 = vweird.f32 %v8870_v33  ;;  %v7157_v13 = vld [vmem:[%s12397_s2 + $0xa0] sm:$0xff] }
 0x2ed   :  { %v2311_v20 = vsel %vm2308_vm14, %v2310_v24, %v2306_v2  ;;  %v9009_v46 = vadd.f32 1.0, %v3435_v52  ;;  %6954 = vrcp.f32 %v8991_v62  ;;  %v1542_v58 = vadd.f32 %v7157_v13, %v8691_v12 }
 0x2ee   :  { %v2312_v59 = vmul.f32 %v2311_v20, %v2287_v47  ;;  %vm1163_vm1 = vweird.f32 %v8904_v45  ;;  %v1781_v11 = vmul.f32 0.5, %v8792_v21  ;;  %v3125_v34 = vadd.f32 1.0, %v6525_v15  ;;  %4845 = vmatpush.bf16.msra.mxu3 %v6697_v53  ;;  %v6696_v15 = vld [vmem:[%s12398_s3 + $0xa8] sm:$0xff] }
 0x2ef   :  { %v1173_v43 = vmul.f32 %v8998_v56, %v8950_v16  ;;  %v1782_v12 = vmul.f32 0.5, %v8835_v57  ;;  %v3419_v1 = vadd.f32 0.0036580483, %v3418_v4  ;;  %v3459_v49 = vadd.f32 0.0036580483, %v3458_v7  ;;  %vm9051_vm2 = vmor %vm1162_vm15, %vm1163_vm1 }
 0x2f0   :  { %v1689_v60 = vpop.f32.mrf.mxu1  ;;  %v6526_v35 = vclamps-f32 %v2312_v59, 1.0  ;;  %6956 = vrcp.f32 %v9009_v46  ;;  %v1161_v57 = vadd.f32 %v8904_v45, %v1160_v30  ;;  %v1166_v52 = vand.u32 2147483647, %v8870_v33 }
 0x2f1   :  { %v9001_v14 = vadd.f32 %v1689_v60, %v7709_v27  ;;  %v3472_v27 = vadd.f32 0.112945676, %v3471_v37  ;;  %v3275_v5 = vpop.f32.mrf.mxu2  ;;  %v3157_v2 = vmul.f32 %v3125_v34, %v1781_v11  ;;  %v1168_v20 = vand.u32 2147483648, %v8870_v33  ;;  %v6695_v33 = vld [vmem:[%s12398_s3 + $0xa0] sm:$0xff] }
 0x2f2   :  { %v3126_v60 = vadd.f32 1.0, %v6526_v35  ;;  %v9032_v24 = vadd.f32 %v8895_v51, %v3275_v5  ;;  %v3420_v59 = vmul.f32 %v3419_v1, %v8925_v44  ;;  %4846 = vmatpush.bf16.msra.mxu3 %v6696_v15  ;;  %v3460_v13 = vmul.f32 %v3459_v49, %v8959_v6 }
 0x2f3   :  { %v9007_v0 = vmul.f32 0.70710677, %v9001_v14  ;;  %v1469_v54 = vpop.permute.xlu0 %1468  ;;  %v3473_v21 = vmul.f32 %v3472_v27, %v8959_v6  ;;  %v1174_v27 = vsub.f32 1.0, %v1173_v43  ;;  %v1165_v34 = vsel %vm9051_vm2, %v8904_v45, %v1161_v57 }
 0x2f4   :  { %v1543_v9 = vadd.f32 %v7158_v22, %v1469_v54  ;;  %v3158_v4 = vmul.f32 %v3126_v60, %v1782_v12  ;;  %v9044_v54 = vpop.eup %6954  ;;  %v9059_v53 = vmul.f32 0.70710677, %v9032_v24  ;;  %vm9072_vm3 = vcmp.eq.f32.partialorder %v1166_v52, 8.507059e+37 }
 0x2f5   :  { %v2315_v47 = vmul.f32 %v9007_v0, %v9007_v0  ;;  %v1169_v12 = vor.u32 1.1754944e-38, %v1168_v20  ;;  %v1175_v49 = vmul.f32 %v8998_v56, %v1174_v27  ;;  %vm1177_vm4 = vweird.f32 %v8950_v16 }
 0x2f6   :  { %v1564_v37 = vpack.c.bf16 %v1543_v9, %v1542_v58  ;;  %v3184_v58 = vpack.c.bf16 %v3158_v4, %v3157_v2  ;;  %v3474_v9 = vadd.f32 0.4994258, %v3473_v21  ;;  %v9067_v5 = vpop.eup %6956  ;;  %4847 = vmatpush.bf16.msra.mxu3 %v6695_v33  ;;  %v3461_v60 = vadd.f32 0.05243302, %v3460_v13 }
 0x2f7   :  { %vm1178_vm5 = vweird.f32 %v8998_v56  ;;  %v3438_v52 = vmul.f32 %v9067_v5, %v9009_v46  ;;  %v1170_v2 = vsel %vm9072_vm3, %v1169_v12, %v1165_v34  ;;  %v1176_v4 = vadd.f32 %v8998_v56, %v1175_v49 }
 0x2f8   :  { %v1691_v38 = vpop.f32.mrf.mxu1  ;;  %6509 = vmatmul.msk.bf16.gmra.mxu1 %vm374_vm0, %v1564_v37  ;;  %3294 = vmatmul.bf16.gmra.mxu2 %v3184_v58  ;;  %v1188_v37 = vmul.f32 %v9044_v54, %v8991_v62  ;;  %v3475_v21 = vmul.f32 %v3474_v9, %v8959_v6  ;;  %v1181_v20 = vand.u32 2147483647, %v8950_v16  ;;  %v3462_v13 = vmul.f32 %v3461_v60, %v8959_v6  ;;  %vm9104_vm6 = vmor %vm1177_vm4, %vm1178_vm5  ;;  %v7159_v60 = vld [vmem:[%s12397_s2 + $0xb0] sm:$0xff] }
 0x2f9   :  { %v9041_v7 = vadd.f32 %v1691_v38, %v7870_v25  ;;  %v9056_v25 = vmin.f32 %v2315_v47, 16.0  ;;  %v3277_v35 = vpop.f32.mrf.mxu2  ;;  %v3421_v47 = vadd.f32 0.05243302, %v3420_v59  ;;  %v3494_v38 = vmul.f32 %v9059_v53, %v9059_v53 }
 0x2fa   :  { %v9077_v1 = vadd.f32 %v8895_v51, %v3277_v35  ;;  %v1183_v59 = vand.u32 2147483648, %v8950_v16  ;;  %v1189_v30 = vsub.f32 1.0, %v1188_v37  ;;  %v9108_v34 = vadd.f32 1.0, %v3475_v21 }
 0x2fb   :  { %v1471_v22 = vpop.permute.xlu0 %1470  ;;  %v9062_v11 = vmul.f32 0.70710677, %v9041_v7  ;;  %v2317_v45 = vmul.f32 2.1237322e-06, %v9056_v25  ;;  %v3422_v27 = vmul.f32 %v3421_v47, %v8925_v44  ;;  %v9110_v43 = vmin.f32 %v3494_v38, 16.0 }
 0x2fc   :  { %v9093_v15 = vmul.f32 0.70710677, %v9077_v1  ;;  %v3439_v37 = vsub.f32 1.0, %v3438_v52  ;;  %v1544_v16 = vadd.f32 %v7159_v60, %v1471_v22  ;;  %v1180_v38 = vsel %vm9104_vm6, %v8998_v56, %v1176_v4 }
 0x2fd   :  { %v2355_v57 = vmul.f32 %v9062_v11, %v9062_v11  ;;  %v2318_v58 = vadd.f32 0.00028619796, %v2317_v45  ;;  %v7160_v45 = vld [vmem:[%s12397_s2 + $0xb8] sm:$0xff]  ;;  %vm9126_vm7 = vcmp.eq.f32.partialorder %v1181_v20, 8.507059e+37  ;;  %v1184_v52 = vor.u32 1.1754944e-38, %v1183_v59 }
 0x2fe   :  { %v3534_v47 = vmul.f32 %v9093_v15, %v9093_v15  ;;  %v3423_v22 = vadd.f32 0.18741608, %v3422_v27  ;;  %6958 = vrcp.f32 %v9108_v34  ;;  %vm1192_vm8 = vweird.f32 %v8991_v62 }
 0x2ff   :  { %v9112_v12 = vmin.f32 %v2355_v57, 16.0  ;;  %v2319_v60 = vmul.f32 %v2318_v58, %v9056_v25  ;;  %vm1193_vm9 = vweird.f32 %v9044_v54  ;;  %v1185_v20 = vsel %vm9126_vm7, %v1184_v52, %v1180_v38 }
 0x300   :  { %v1694_v42 = vpop.f32.mrf.mxu1  ;;  %v9136_v56 = vmin.f32 %v3534_v47, 16.0  ;;  %v1198_v27 = vand.u32 2147483648, %v8991_v62  ;;  %vm3443_vm10 = vweird.f32 %v9067_v5  ;;  %vm9155_vm11 = vmor %vm1192_vm8, %vm1193_vm9  ;;  %v3448_v57 = vand.u32 2147483648, %v9009_v46 }
 0x301   :  { %v9139_v4 = vadd.f32 %v1694_v42, %v7878_v29  ;;  %v2320_v42 = vadd.f32 0.0036580483, %v2319_v60  ;;  %vm3442_vm12 = vweird.f32 %v9009_v46  ;;  %vm3482_vm2 = vweird.f32 %v9108_v34 }
 0x302   :  { %vm9171_vm13 = vmor %vm3442_vm12, %vm3443_vm10 }
 0x303   :  { %v1325_v9 = vpop.permute.xlu0 %1324  ;;  %v1473_v33 = vpop.permute.xlu1 %1472 }
 0x304   :  { %v1391_v49 = vmul.f32 %v1325_v9, %v1170_v2  ;;  %v1545_v21 = vadd.f32 %v7160_v45, %v1473_v33  ;;  %v1190_v2 = vmul.f32 %v9044_v54, %v1189_v30  ;;  %v3463_v9 = vadd.f32 0.18741608, %v3462_v13  ;;  %v9164_v52 = vpop.eup %6958 }
 0x305   :  { %v3496_v33 = vmul.f32 2.1237322e-06, %v9110_v43  ;;  %v3440_v45 = vmul.f32 %v9067_v5, %v3439_v37  ;;  %v1196_v30 = vand.u32 2147483647, %v8991_v62  ;;  %v3424_v13 = vmul.f32 %v3423_v22, %v8925_v44  ;;  %v3280_v44 = vpop.f32.mrf.mxu2 }
 0x306   :  { %1484 = vrot.lane.b32.xlu2 %v1391_v49, %s7205_s23  ;;  %v1565_v40 = vpack.c.bf16 %v1545_v21, %v1544_v16  ;;  %v2357_v49 = vmul.f32 2.1237322e-06, %v9112_v12  ;;  %v1191_v59 = vadd.f32 %v9044_v54, %v1190_v2  ;;  %v3464_v29 = vmul.f32 %v3463_v9, %v8959_v6 }
 0x307   :  { %v3441_v47 = vadd.f32 %v9067_v5, %v3440_v45  ;;  %v3536_v21 = vmul.f32 2.1237322e-06, %v9136_v56  ;;  %v9161_v6 = vmul.f32 0.70710677, %v9139_v4  ;;  %v3446_v62 = vand.u32 2147483647, %v9009_v46 }
 0x308   :  { %6510 = vmatmul.msk.bf16.gmra.mxu1 %vm374_vm0, %v1565_v40  ;;  %v3497_v40 = vadd.f32 0.00028619796, %v3496_v33  ;;  %v2358_v35 = vadd.f32 0.00028619796, %v2357_v49  ;;  %v1199_v2 = vor.u32 1.1754944e-38, %v1198_v27  ;;  %v1195_v33 = vsel %vm9155_vm11, %v9044_v54, %v1191_v59 }
 0x309   :  { %v3425_v22 = vadd.f32 1.1283791, %v3424_v13  ;;  %v3465_v9 = vadd.f32 1.1283791, %v3464_v29  ;;  %vm1197_vm14 = vcmp.eq.f32.partialorder %v1196_v30, 8.507059e+37  ;;  %v2321_v45 = vmul.f32 %v2320_v42, %v9056_v25 }
 0x30a   :  { %v3498_v49 = vmul.f32 %v3497_v40, %v9110_v43  ;;  %v2359_v46 = vmul.f32 %v2358_v35, %v9112_v12  ;;  %v3537_v27 = vadd.f32 0.00028619796, %v3536_v21  ;;  %v2395_v13 = vmul.f32 %v9161_v6, %v9161_v6 }
 0x30b   :  { %v1327_v58 = vpop.permute.xlu0 %1326  ;;  %v1475_v38 = vpop.permute.xlu1 %1474  ;;  %v3449_v29 = vor.u32 1.1754944e-38, %v3448_v57  ;;  %v9189_v54 = vadd.f32 %v8895_v51, %v3280_v44  ;;  %vm3447_vm15 = vcmp.eq.f32.partialorder %v3446_v62, 8.507059e+37  ;;  %v1200_v59 = vsel %vm1197_vm14, %v1199_v2, %v1195_v33 }
 0x30c   :  { %v1392_v37 = vmul.f32 %v1327_v58, %v1185_v20  ;;  %v3445_v20 = vsel %vm9171_vm13, %v9067_v5, %v3441_v47  ;;  %v3478_v58 = vmul.f32 %v9164_v52, %v9108_v34  ;;  %v9192_v30 = vmul.f32 0.5, %v8907_v41 }
 0x30d   :  { %v3426_v42 = vmul.f32 %v3425_v22, %v8914_v36  ;;  %v9196_v5 = vmul.f32 0.5, %v8933_v3  ;;  %v3450_v40 = vsel %vm3447_vm15, %v3449_v29, %v3445_v20  ;;  %v3466_v35 = vmul.f32 %v3465_v9, %v8939_v61  ;;  %v3282_v61 = vpop.f32.mrf.mxu2  ;;  %v7161_v9 = vld [vmem:[%s12397_s2 + $0xc0] sm:$0xff] }
 0x30e   :  { %1486 = vrot.lane.b32.xlu0 %v1392_v37, %s7205_s23  ;;  %v3499_v37 = vadd.f32 0.0036580483, %v3498_v49  ;;  %v2322_v47 = vadd.f32 0.05243302, %v2321_v45  ;;  %v2360_v16 = vadd.f32 0.0036580483, %v2359_v46  ;;  %v3538_v44 = vmul.f32 %v3537_v27, %v9136_v56 }
 0x30f   :  { %v9200_v57 = vmin.f32 %v2395_v13, 16.0  ;;  %v3479_v62 = vsub.f32 1.0, %v3478_v58  ;;  %v3486_v41 = vand.u32 2147483647, %v9108_v34  ;;  %v9204_v2 = vmul.f32 0.70710677, %v9189_v54 }
 0x310   :  { %v3451_v36 = vmul.f32 %v3450_v40, %v3426_v42  ;;  %v3488_v3 = vand.u32 2147483648, %v9108_v34  ;;  %v3507_v22 = vmul.f32 3.8918573e-05, %v9110_v43  ;;  %v1546_v60 = vadd.f32 %v7161_v9, %v1475_v38  ;;  %v7162_v49 = vld [vmem:[%s12397_s2 + $0xc8] sm:$0xff] }
 0x311   :  { %v3480_v33 = vmul.f32 %v9164_v52, %v3479_v62  ;;  %vm3483_vm1 = vweird.f32 %v9164_v52  ;;  %v3500_v20 = vmul.f32 %v3499_v37, %v9110_v43  ;;  %v2323_v27 = vmul.f32 %v2322_v47, %v9056_v25  ;;  %v1696_v47 = vpop.f32.mrf.mxu1 }
 0x312   :  { %v2361_v13 = vmul.f32 %v2360_v16, %v9112_v12  ;;  %v3539_v29 = vadd.f32 0.0036580483, %v3538_v44  ;;  %v2397_v38 = vmul.f32 2.1237322e-06, %v9200_v57  ;;  %v9223_v40 = vadd.f32 %v8895_v51, %v3282_v61  ;;  %vm3484_vm3 = vmor %vm3482_vm2, %vm3483_vm1 }
 0x313   :  { %v1477_v21 = vpop.permute.xlu2 %1476  ;;  %v1329_v46 = vpop.permute.xlu1 %1328  ;;  %v3481_v58 = vadd.f32 %v9164_v52, %v3480_v33  ;;  %vm3487_vm4 = vcmp.eq.f32.partialorder %v3486_v41, 8.507059e+37  ;;  %v3574_v37 = vmul.f32 %v9204_v2, %v9204_v2  ;;  %v6579_v16 = vclamps-f32 %v3451_v36, 1.0 }
 0x314   :  { %v1547_v45 = vadd.f32 %v7162_v49, %v1477_v21  ;;  %v3489_v21 = vor.u32 1.1754944e-38, %v3488_v3  ;;  %v1393_v62 = vmul.f32 %v1329_v46, %v1200_v59  ;;  %v3508_v44 = vadd.f32 0.001143296, %v3507_v22 }
 0x315   :  { %v3485_v34 = vsel %vm3484_vm3, %v9164_v52, %v3481_v58  ;;  %v3501_v9 = vadd.f32 0.05243302, %v3500_v20  ;;  %v9229_v33 = vadd.f32 0.18741608, %v2323_v27  ;;  %v3540_v41 = vmul.f32 %v3539_v29, %v9136_v56 }
 0x316   :  { %v1566_v42 = vpack.c.bf16 %v1547_v45, %v1546_v60  ;;  %v2362_v60 = vadd.f32 0.05243302, %v2361_v13  ;;  %v3490_v51 = vsel %vm3487_vm4, %v3489_v21, %v3485_v34  ;;  %1488 = vrot.lane.b32.xlu1 %v1393_v62, %s7205_s23  ;;  %v2398_v59 = vadd.f32 0.00028619796, %v2397_v38 }
 0x317   :  { %v3491_v3 = vmul.f32 %v3490_v51, %v3466_v35  ;;  %v3509_v61 = vmul.f32 %v3508_v44, %v9110_v43  ;;  %v9235_v36 = vmul.f32 0.70710677, %v9223_v40  ;;  %v9238_v52 = vadd.f32 %v1696_v47, %v7866_v23 }
 0x318   :  { %6511 = vmatmul.msk.bf16.gmra.mxu1 %vm374_vm0, %v1566_v42  ;;  %v3547_v22 = vmul.f32 3.8918573e-05, %v9136_v56  ;;  %v2328_v49 = vmul.f32 3.8918573e-05, %v9056_v25  ;;  %v9242_v45 = vmin.f32 %v3574_v37, 16.0  ;;  %v4694_v20 = vadd.f32 1.0, %v6579_v16 }
 0x319   :  { %v6580_v46 = vclamps-f32 %v3491_v3, 1.0  ;;  %v3510_v27 = vadd.f32 0.014752088, %v3509_v61  ;;  %v3502_v13 = vmul.f32 %v3501_v9, %v9110_v43  ;;  %v2368_v38 = vmul.f32 3.8918573e-05, %v9112_v12  ;;  %v7163_v61 = vld [vmem:[%s12397_s2 + $0xd8] sm:$0xff] }
 0x31a   :  { %v3548_v35 = vadd.f32 0.001143296, %v3547_v22  ;;  %v2329_v29 = vadd.f32 0.001143296, %v2328_v49  ;;  %v3541_v58 = vadd.f32 0.05243302, %v3540_v41  ;;  %v2363_v42 = vmul.f32 %v2362_v60, %v9112_v12 }
 0x31b   :  { %v4695_v23 = vadd.f32 1.0, %v6580_v46  ;;  %v3511_v21 = vmul.f32 %v3510_v27, %v9110_v43  ;;  %v3614_v62 = vmul.f32 %v9235_v36, %v9235_v36  ;;  %v1479_v37 = vpop.permute.xlu2 %1478  ;;  %v2369_v34 = vadd.f32 0.001143296, %v2368_v38 }
 0x31c   :  { %v3549_v47 = vmul.f32 %v3548_v35, %v9136_v56  ;;  %v2330_v16 = vmul.f32 %v2329_v29, %v9056_v25  ;;  %v9253_v44 = vmul.f32 0.70710677, %v9238_v52  ;;  %v4726_v9 = vmul.f32 %v4694_v20, %v9192_v30  ;;  %v7164_v35 = vld [vmem:[%s12397_s2 + $0xd0] sm:$0xff] }
 0x31d   :  { %v4727_v51 = vmul.f32 %v4695_v23, %v9196_v5  ;;  %v3512_v41 = vadd.f32 0.112945676, %v3511_v21  ;;  %v3576_v3 = vmul.f32 2.1237322e-06, %v9242_v45  ;;  %v1548_v29 = vadd.f32 %v7164_v35, %v1479_v37 }
 0x31e   :  { %v3550_v49 = vadd.f32 0.014752088, %v3549_v47  ;;  %v2331_v46 = vadd.f32 0.014752088, %v2330_v16  ;;  %v2370_v5 = vmul.f32 %v2369_v34, %v9112_v12  ;;  %v3542_v20 = vmul.f32 %v3541_v58, %v9136_v56 }
 0x31f   :  { %v4758_v27 = vpack.c.bf16 %v4727_v51, %v4726_v9  ;;  %v3513_v30 = vmul.f32 %v3512_v41, %v9110_v43  ;;  %v9267_v38 = vmin.f32 %v3614_v62, 16.0  ;;  %v3587_v51 = vmul.f32 3.8918573e-05, %v9242_v45 }
 0x320   :  { %v3551_v23 = vmul.f32 %v3550_v49, %v9136_v56  ;;  %v2332_v21 = vmul.f32 %v2331_v46, %v9056_v25  ;;  %v2371_v9 = vadd.f32 0.014752088, %v2370_v5  ;;  %v2364_v41 = vadd.f32 0.18741608, %v2363_v42 }
 0x321   :  { %4848 = vmatmul.bf16.vlgmr.msra.gmra.mxu3 %v4758_v27  ;;  %v3514_v16 = vadd.f32 0.4994258, %v3513_v30  ;;  %v2399_v34 = vmul.f32 %v2398_v59, %v9200_v57  ;;  %v3577_v35 = vadd.f32 0.00028619796, %v3576_v3  ;;  %v3543_v27 = vadd.f32 0.18741608, %v3542_v20 }
 0x322   :  { %v3552_v37 = vadd.f32 0.112945676, %v3551_v23  ;;  %v2372_v62 = vmul.f32 %v2371_v9, %v9112_v12  ;;  %v2325_v59 = vmul.f32 %v9229_v33, %v9056_v25  ;;  %v2365_v20 = vmul.f32 %v2364_v41, %v9112_v12 }
 0x323   :  { %v1481_v60 = vpop.permute.xlu0 %1480  ;;  %v3515_v58 = vmul.f32 %v3514_v16, %v9110_v43  ;;  %v3578_v33 = vmul.f32 %v3577_v35, %v9242_v45  ;;  %v9301_v41 = vmul.f32 0.5, %v9032_v24 }
 0x324   :  { %v1549_v22 = vadd.f32 %v7163_v61, %v1481_v60  ;;  %v3503_v60 = vadd.f32 0.18741608, %v3502_v13  ;;  %v2333_v61 = vadd.f32 0.112945676, %v2332_v21  ;;  %v3553_v49 = vmul.f32 %v3552_v37, %v9136_v56 }
 0x325   :  { %v2435_v13 = vmul.f32 %v9253_v44, %v9253_v44  ;;  %v9281_v42 = vadd.f32 1.0, %v3515_v58  ;;  %v2373_v5 = vadd.f32 0.112945676, %v2372_v62  ;;  %v2400_v21 = vadd.f32 0.0036580483, %v2399_v34 }
 0x326   :  { %v1567_v47 = vpack.c.bf16 %v1549_v22, %v1548_v29  ;;  %v2334_v46 = vmul.f32 %v2333_v61, %v9056_v25  ;;  %v3588_v22 = vadd.f32 0.001143296, %v3587_v51  ;;  %v3616_v29 = vmul.f32 2.1237322e-06, %v9267_v38 }
 0x327   :  { %v3554_v30 = vadd.f32 0.4994258, %v3553_v49  ;;  %v3504_v23 = vmul.f32 %v3503_v60, %v9110_v43  ;;  %6960 = vrcp.f32 %v9281_v42  ;;  %v3544_v51 = vmul.f32 %v3543_v27, %v9136_v56 }
 0x328   :  { %6512 = vmatmul.msk.bf16.gmra.mxu1 %vm374_vm0, %v1567_v47  ;;  %v2335_v3 = vadd.f32 0.4994258, %v2334_v46  ;;  %v3589_v47 = vmul.f32 %v3588_v22, %v9242_v45  ;;  %v9293_v37 = vmin.f32 %v2435_v13, 16.0  ;;  %v2374_v61 = vmul.f32 %v2373_v5, %v9112_v12 }
 0x329   :  { %v3555_v16 = vmul.f32 %v3554_v30, %v9136_v56  ;;  %v2326_v43 = vadd.f32 1.1283791, %v2325_v59  ;;  %v3617_v60 = vadd.f32 0.00028619796, %v3616_v29  ;;  %v2401_v62 = vmul.f32 %v2400_v21, %v9200_v57 }
 0x32a   :  { %v2336_v9 = vmul.f32 %v2335_v3, %v9056_v25  ;;  %v3505_v25 = vadd.f32 1.1283791, %v3504_v23  ;;  %v3627_v56 = vmul.f32 3.8918573e-05, %v9267_v38  ;;  %v2366_v49 = vadd.f32 1.1283791, %v2365_v20 }
 0x32b   :  { %v9296_v34 = vadd.f32 1.0, %v3555_v16  ;;  %v2375_v35 = vadd.f32 0.4994258, %v2374_v61  ;;  %v3590_v46 = vadd.f32 0.014752088, %v3589_v47  ;;  %v9309_v24 = vmul.f32 %v2326_v43, %v9007_v0 }
 0x32c   :  { %v9298_v58 = vadd.f32 1.0, %v2336_v9  ;;  %v3545_v27 = vadd.f32 1.1283791, %v3544_v51  ;;  %v3579_v29 = vadd.f32 0.0036580483, %v3578_v33  ;;  %v9312_v59 = vmul.f32 0.5, %v9077_v1 }
 0x32d   :  { %6962 = vrcp.f32 %v9296_v34  ;;  %v6961_v22 = vpop.eup %6960  ;;  %v2437_v13 = vmul.f32 2.1237322e-06, %v9293_v37  ;;  %v3618_v30 = vmul.f32 %v3617_v60, %v9267_v38  ;;  %v3506_v5 = vmul.f32 %v3505_v25, %v9059_v53 }
 0x32e   :  { %6964 = vrcp.f32 %v9298_v58  ;;  %v3518_v3 = vmul.f32 %v6961_v22, %v9281_v42  ;;  %v9317_v23 = vadd.f32 0.05243302, %v2401_v62  ;;  %v3526_v21 = vand.u32 2147483647, %v9281_v42 }
 0x32f   :  { %v3628_v20 = vadd.f32 0.001143296, %v3627_v56  ;;  %v9321_v16 = vmul.f32 %v2366_v49, %v9062_v11  ;;  %v2376_v0 = vmul.f32 %v2375_v35, %v9112_v12  ;;  %v3591_v1 = vmul.f32 %v3590_v46, %v9242_v45 }
 0x330   :  { %v3519_v9 = vsub.f32 1.0, %v3518_v3  ;;  %v3546_v47 = vmul.f32 %v3545_v27, %v9093_v15  ;;  %v3580_v51 = vmul.f32 %v3579_v29, %v9242_v45  ;;  %v2438_v33 = vadd.f32 0.00028619796, %v2437_v13 }
 0x331   :  { %v3528_v53 = vand.u32 2147483648, %v9281_v42  ;;  %v3619_v43 = vadd.f32 0.0036580483, %v3618_v30  ;;  %vm3523_vm5 = vweird.f32 %v6961_v22  ;;  %v9328_v25 = vadd.f32 1.0, %v2376_v0 }
 0x332   :  { %v3520_v60 = vmul.f32 %v6961_v22, %v3519_v9  ;;  %vm3522_vm6 = vweird.f32 %v9281_v42  ;;  %vm9331_vm7 = vcmp.eq.f32.partialorder %v3526_v21, 8.507059e+37  ;;  %v3629_v62 = vmul.f32 %v3628_v20, %v9267_v38 }
 0x333   :  { %v6963_v61 = vpop.eup %6962  ;;  %6966 = vrcp.f32 %v9328_v25  ;;  %v3592_v35 = vadd.f32 0.112945676, %v3591_v1  ;;  %vm3524_vm8 = vmor %vm3522_vm6, %vm3523_vm5  ;;  %v3529_v46 = vor.u32 1.1754944e-38, %v3528_v53  ;;  %v3566_v29 = vand.u32 2147483647, %v9296_v34 }
 0x334   :  { %v6965_v11 = vpop.eup %6964  ;;  %v3558_v15 = vmul.f32 %v6963_v61, %v9296_v34  ;;  %v3521_v56 = vadd.f32 %v6961_v22, %v3520_v60  ;;  %v3568_v42 = vand.u32 2147483648, %v9296_v34  ;;  %v2347_v3 = vand.u32 2147483647, %v9298_v58 }
 0x335   :  { %v2339_v49 = vmul.f32 %v6965_v11, %v9298_v58  ;;  %v2349_v21 = vand.u32 2147483648, %v9298_v58  ;;  %vm3563_vm9 = vweird.f32 %v6963_v61  ;;  %v3630_v0 = vadd.f32 0.014752088, %v3629_v62 }
 0x336   :  { %v3559_v27 = vsub.f32 1.0, %v3558_v15  ;;  %v3525_v13 = vsel %vm3524_vm8, %v6961_v22, %v3521_v56  ;;  %vm2344_vm10 = vweird.f32 %v6965_v11  ;;  %v3593_v53 = vmul.f32 %v3592_v35, %v9242_v45  ;;  %v1699_v56 = vpop.f32.mrf.mxu1 }
 0x337   :  { %v2340_v30 = vsub.f32 1.0, %v2339_v49  ;;  %v3530_v20 = vsel %vm9331_vm7, %v3529_v46, %v3525_v13  ;;  %v3620_v15 = vmul.f32 %v3619_v43, %v9267_v38  ;;  %vm3562_vm11 = vweird.f32 %v9296_v34 }
 0x338   :  { %v3560_v9 = vmul.f32 %v6963_v61, %v3559_v27  ;;  %v3531_v1 = vmul.f32 %v3530_v20, %v3506_v5  ;;  %vm3567_vm12 = vcmp.eq.f32.partialorder %v3566_v29, 8.507059e+37  ;;  %vm3564_vm13 = vmor %vm3562_vm11, %vm3563_vm9  ;;  %v3569_v49 = vor.u32 1.1754944e-38, %v3568_v42 }
 0x339   :  { %v2341_v60 = vmul.f32 %v6965_v11, %v2340_v30  ;;  %v6967_v22 = vpop.eup %6966  ;;  %vm2343_vm14 = vweird.f32 %v9298_v58  ;;  %vm2348_vm15 = vcmp.eq.f32.partialorder %v2347_v3, 8.507059e+37  ;;  %v2350_v46 = vor.u32 1.1754944e-38, %v2349_v21 }
 0x33a   :  { %v3561_v31 = vadd.f32 %v6963_v61, %v3560_v9  ;;  %v6581_v62 = vclamps-f32 %v3531_v1, 1.0  ;;  %vm2345_vm1 = vmor %vm2343_vm14, %vm2344_vm10  ;;  %v2379_v35 = vmul.f32 %v6967_v22, %v9328_v25  ;;  %v3594_v13 = vadd.f32 0.4994258, %v3593_v53 }
 0x33b   :  { %v2342_v12 = vadd.f32 %v6965_v11, %v2341_v60  ;;  %v3631_v34 = vmul.f32 %v3630_v0, %v9267_v38  ;;  %v3581_v29 = vadd.f32 0.05243302, %v3580_v51  ;;  %v9353_v30 = vadd.f32 %v1699_v56, %v7873_v26 }
 0x33c   :  { %v3565_v5 = vsel %vm3564_vm13, %v6963_v61, %v3561_v31  ;;  %v3621_v58 = vadd.f32 0.05243302, %v3620_v15  ;;  %v2439_v3 = vmul.f32 %v2438_v33, %v9293_v37  ;;  %v2380_v31 = vsub.f32 1.0, %v2379_v35 }
 0x33d   :  { %v3570_v43 = vsel %vm3567_vm12, %v3569_v49, %v3565_v5  ;;  %v2346_v27 = vsel %vm2345_vm1, %v6965_v11, %v2342_v12  ;;  %v2387_v61 = vand.u32 2147483647, %v9328_v25  ;;  %v4696_v9 = vadd.f32 1.0, %v6581_v62 }
 0x33e   :  { %v3571_v42 = vmul.f32 %v3570_v43, %v3546_v47  ;;  %v2351_v20 = vsel %vm2348_vm15, %v2350_v46, %v2346_v27  ;;  %vm2384_vm2 = vweird.f32 %v6967_v22  ;;  %v2389_v11 = vand.u32 2147483648, %v9328_v25 }
 0x33f   :  { %v2352_v1 = vmul.f32 %v2351_v20, %v9309_v24  ;;  %v2381_v0 = vmul.f32 %v6967_v22, %v2380_v31  ;;  %v3595_v51 = vmul.f32 %v3594_v13, %v9242_v45  ;;  %v3632_v26 = vadd.f32 0.112945676, %v3631_v34 }
 0x340   :  { %v6582_v21 = vclamps-f32 %v3571_v42, 1.0  ;;  %v3582_v47 = vmul.f32 %v3581_v29, %v9242_v45  ;;  %v9362_v60 = vmul.f32 0.70710677, %v9353_v30  ;;  %v2408_v53 = vmul.f32 3.8918573e-05, %v9200_v57  ;;  %v1701_v42 = vpop.f32.mrf.mxu1 }
 0x341   :  { %v2382_v15 = vadd.f32 %v6967_v22, %v2381_v0  ;;  %vm2383_vm3 = vweird.f32 %v9328_v25  ;;  %v9366_v56 = vadd.f32 1.0, %v3595_v51  ;;  %v3633_v49 = vmul.f32 %v3632_v26, %v9267_v38 }
 0x342   :  { %v4697_v33 = vadd.f32 1.0, %v6582_v21  ;;  %v4728_v24 = vmul.f32 %v4696_v9, %v9301_v41  ;;  %vm2385_vm4 = vmor %vm2383_vm3, %vm2384_vm2  ;;  %v2390_v62 = vor.u32 1.1754944e-38, %v2389_v11  ;;  %v2409_v5 = vadd.f32 0.001143296, %v2408_v53 }
 0x343   :  { %v6527_v46 = vclamps-f32 %v2352_v1, 1.0  ;;  %v2386_v35 = vsel %vm2385_vm4, %v6967_v22, %v2382_v15  ;;  %vm2388_vm5 = vcmp.eq.f32.partialorder %v2387_v61, 8.507059e+37  ;;  %6968 = vrcp.f32 %v9366_v56 }
 0x344   :  { %v4729_v12 = vmul.f32 %v4697_v33, %v9312_v59  ;;  %v3583_v43 = vadd.f32 0.18741608, %v3582_v47  ;;  %v2440_v27 = vadd.f32 0.0036580483, %v2439_v3  ;;  %v2391_v13 = vsel %vm2388_vm5, %v2390_v62, %v2386_v35 }
 0x345   :  { %v2392_v34 = vmul.f32 %v2391_v13, %v9321_v16  ;;  %v3634_v29 = vadd.f32 0.4994258, %v3633_v49  ;;  %v2403_v41 = vmul.f32 %v9317_v23, %v9200_v57  ;;  %v3622_v59 = vmul.f32 %v3621_v58, %v9267_v38 }
 0x346   :  { %v4759_v25 = vpack.c.bf16 %v4729_v12, %v4728_v24  ;;  %v2410_v20 = vmul.f32 %v2409_v5, %v9200_v57  ;;  %v2448_v22 = vmul.f32 3.8918573e-05, %v9293_v37  ;;  %v2475_v31 = vmul.f32 %v9362_v60, %v9362_v60 }
 0x347   :  { %v6528_v3 = vclamps-f32 %v2392_v34, 1.0  ;;  %v3127_v61 = vadd.f32 1.0, %v6527_v46  ;;  %v3635_v21 = vmul.f32 %v3634_v29, %v9267_v38  ;;  %v1783_v16 = vmul.f32 0.5, %v9001_v14 }
 0x348   :  { %4853 = vmatmul.bf16.gmra.mxu3 %v4759_v25  ;;  %v1784_v9 = vmul.f32 0.5, %v9041_v7  ;;  %v3584_v23 = vmul.f32 %v3583_v43, %v9242_v45  ;;  %v2441_v58 = vmul.f32 %v2440_v27, %v9293_v37  ;;  %v2411_v51 = vadd.f32 0.014752088, %v2410_v20 }
 0x349   :  { %v6969_v11 = vpop.eup %6968  ;;  %v3128_v1 = vadd.f32 1.0, %v6528_v3  ;;  %v9386_v0 = vadd.f32 1.0, %v3635_v21  ;;  %v2449_v26 = vadd.f32 0.001143296, %v2448_v22  ;;  %v2404_v47 = vadd.f32 0.18741608, %v2403_v41 }
 0x34a   :  { %v3623_v33 = vadd.f32 0.18741608, %v3622_v59  ;;  %v3598_v53 = vmul.f32 %v6969_v11, %v9366_v56  ;;  %v9389_v15 = vmin.f32 %v2475_v31, 16.0  ;;  %v3159_v49 = vmul.f32 %v3127_v61, %v1783_v16 }
 0x34b   :  { %v3160_v14 = vmul.f32 %v3128_v1, %v1784_v9  ;;  %6970 = vrcp.f32 %v9386_v0  ;;  %v3585_v7 = vadd.f32 1.1283791, %v3584_v23  ;;  %v2442_v45 = vadd.f32 0.05243302, %v2441_v58 }
 0x34c   :  { %v9393_v24 = vadd.f32 %v1701_v42, %v7894_v32  ;;  %v3599_v12 = vsub.f32 1.0, %v3598_v53  ;;  %v3608_v5 = vand.u32 2147483648, %v9366_v56  ;;  %v2412_v46 = vmul.f32 %v2411_v51, %v9200_v57  ;;  %v1704_v42 = vpop.f32.mrf.mxu1 }
 0x34d   :  { %v3185_v62 = vpack.c.bf16 %v3160_v14, %v3159_v49  ;;  %v2450_v35 = vmul.f32 %v2449_v26, %v9293_v37  ;;  %v3624_v43 = vmul.f32 %v3623_v33, %v9267_v38  ;;  %vm3603_vm6 = vweird.f32 %v6969_v11 }
 0x34e   :  { %v3600_v27 = vmul.f32 %v6969_v11, %v3599_v12  ;;  %v3606_v25 = vand.u32 2147483647, %v9366_v56  ;;  %v2405_v13 = vmul.f32 %v2404_v47, %v9200_v57  ;;  %v2413_v34 = vadd.f32 0.112945676, %v2412_v46 }
 0x34f   :  { %3299 = vmatmul.bf16.gmra.mxu2 %v3185_v62  ;;  %v2451_v32 = vadd.f32 0.014752088, %v2450_v35  ;;  %v2488_v29 = vmul.f32 3.8918573e-05, %v9389_v15  ;;  %v3586_v41 = vmul.f32 %v3585_v7, %v9204_v2  ;;  %v9404_v59 = vmul.f32 0.70710677, %v9393_v24 }
 0x350   :  { %v3601_v20 = vadd.f32 %v6969_v11, %v3600_v27  ;;  %vm3602_vm7 = vweird.f32 %v9366_v56  ;;  %v3609_v22 = vor.u32 1.1754944e-38, %v3608_v5  ;;  %v2414_v31 = vmul.f32 %v2413_v34, %v9200_v57 }
 0x351   :  { %v6971_v38 = vpop.eup %6970  ;;  %vm3604_vm8 = vmor %vm3602_vm7, %vm3603_vm6  ;;  %v2452_v3 = vmul.f32 %v2451_v32, %v9293_v37  ;;  %v2489_v61 = vadd.f32 0.001143296, %v2488_v29  ;;  %v3625_v21 = vadd.f32 1.1283791, %v3624_v43  ;;  %vm3607_vm9 = vcmp.eq.f32.partialorder %v3606_v25, 8.507059e+37 }
 0x352   :  { %v3605_v16 = vsel %vm3604_vm8, %v6969_v11, %v3601_v20  ;;  %v3638_v2 = vmul.f32 %v6971_v38, %v9386_v0  ;;  %v9411_v9 = vadd.f32 %v1704_v42, %v7898_v55  ;;  %v2415_v58 = vadd.f32 0.4994258, %v2414_v31  ;;  %v1483_v20 = vpop.permute.xlu1 %1482 }
 0x353   :  { %v3610_v23 = vsel %vm3607_vm9, %v3609_v22, %v3605_v16  ;;  %v2453_v1 = vadd.f32 0.112945676, %v2452_v3  ;;  %v2477_v56 = vmul.f32 2.1237322e-06, %v9389_v15  ;;  %v2515_v51 = vmul.f32 %v9404_v59, %v9404_v59 }
 0x354   :  { %v3639_v26 = vsub.f32 1.0, %v3638_v2  ;;  %v2490_v47 = vmul.f32 %v2489_v61, %v9389_v15  ;;  %v3646_v33 = vand.u32 2147483647, %v9386_v0  ;;  %v3648_v11 = vand.u32 2147483648, %v9386_v0 }
 0x355   :  { %v2416_v53 = vmul.f32 %v2415_v58, %v9200_v57  ;;  %v2454_v55 = vmul.f32 %v2453_v1, %v9293_v37  ;;  %v3611_v49 = vmul.f32 %v3610_v23, %v3586_v41  ;;  %vm3643_vm10 = vweird.f32 %v6971_v38  ;;  %v1706_v23 = vpop.f32.mrf.mxu1 }
 0x356   :  { %v3640_v14 = vmul.f32 %v6971_v38, %v3639_v26  ;;  %v2491_v7 = vadd.f32 0.014752088, %v2490_v47  ;;  %v2443_v12 = vmul.f32 %v2442_v45, %v9293_v37  ;;  %v9423_v62 = vmul.f32 0.70710677, %v9411_v9 }
 0x357   :  { %v9425_v5 = vadd.f32 1.0, %v2416_v53  ;;  %v2455_v46 = vadd.f32 0.4994258, %v2454_v55  ;;  %v3626_v35 = vmul.f32 %v3625_v21, %v9235_v36  ;;  %v2478_v43 = vadd.f32 0.00028619796, %v2477_v56 }
 0x358   :  { %v3641_v27 = vadd.f32 %v6971_v38, %v3640_v14  ;;  %vm3642_vm11 = vweird.f32 %v9386_v0  ;;  %v9429_v57 = vmin.f32 %v2515_v51, 16.0  ;;  %vm3647_vm13 = vcmp.eq.f32.partialorder %v3646_v33, 8.507059e+37  ;;  %v7165_v51 = vld [vmem:[%s12397_s2 + $0xe0] sm:$0xff] }
 0x359   :  { %vm3644_vm12 = vmor %vm3642_vm11, %vm3643_vm10  ;;  %v3649_v25 = vor.u32 1.1754944e-38, %v3648_v11  ;;  %6972 = vrcp.f32 %v9425_v5  ;;  %v6583_v45 = vclamps-f32 %v3611_v49, 1.0  ;;  %v2456_v32 = vmul.f32 %v2455_v46, %v9293_v37 }
 0x35a   :  { %v3645_v34 = vsel %vm3644_vm12, %v6971_v38, %v3641_v27  ;;  %v2492_v29 = vmul.f32 %v2491_v7, %v9389_v15  ;;  %v2555_v36 = vmul.f32 %v9423_v62, %v9423_v62  ;;  %v2444_v42 = vadd.f32 0.18741608, %v2443_v12 }
 0x35b   :  { %v3650_v41 = vsel %vm3647_vm13, %v3649_v25, %v3645_v34  ;;  %v2479_v0 = vmul.f32 %v2478_v43, %v9389_v15  ;;  %v9437_v31 = vadd.f32 1.0, %v2456_v32  ;;  %v3354_v3 = vmul.f32 0.5, %v9189_v54  ;;  %v7166_v54 = vld [vmem:[%s12397_s2 + $0xe8] sm:$0xff] }
 0x35c   :  { %v3651_v22 = vmul.f32 %v3650_v41, %v3626_v35  ;;  %v2406_v61 = vadd.f32 1.1283791, %v2405_v13  ;;  %v3355_v38 = vmul.f32 0.5, %v9223_v40  ;;  %v2517_v21 = vmul.f32 2.1237322e-06, %v9429_v57 }
 0x35d   :  { %v4698_v2 = vadd.f32 1.0, %v6583_v45  ;;  %6974 = vrcp.f32 %v9437_v31  ;;  %v2493_v1 = vadd.f32 0.112945676, %v2492_v29  ;;  %v1550_v26 = vadd.f32 %v7165_v51, %v1483_v20 }
 0x35e   :  { %v6584_v16 = vclamps-f32 %v3651_v22, 1.0  ;;  %v9446_v47 = vmin.f32 %v2555_v36, 16.0  ;;  %v2528_v13 = vmul.f32 3.8918573e-05, %v9429_v57  ;;  %v2445_v33 = vmul.f32 %v2444_v42, %v9293_v37 }
 0x35f   :  { %v6973_v56 = vpop.eup %6972  ;;  %v2480_v11 = vadd.f32 0.0036580483, %v2479_v0  ;;  %v2518_v49 = vadd.f32 0.00028619796, %v2517_v21  ;;  %v9455_v14 = vadd.f32 %v1706_v23, %v7911_v63  ;;  %v2427_v7 = vand.u32 2147483647, %v9425_v5 }
 0x360   :  { %v1485_v58 = vpop.permute.xlu2 %1484  ;;  %v4699_v53 = vadd.f32 1.0, %v6584_v16  ;;  %v2419_v55 = vmul.f32 %v6973_v56, %v9425_v5  ;;  %v4730_v46 = vmul.f32 %v4698_v2, %v3354_v3  ;;  %v2494_v27 = vmul.f32 %v2493_v1, %v9389_v15 }
 0x361   :  { %v1551_v40 = vadd.f32 %v7166_v54, %v1485_v58  ;;  %v2407_v25 = vmul.f32 %v2406_v61, %v9161_v6  ;;  %v2429_v37 = vand.u32 2147483648, %v9425_v5  ;;  %v2529_v45 = vadd.f32 0.001143296, %v2528_v13 }
 0x362   :  { %v4731_v35 = vmul.f32 %v4699_v53, %v3355_v38  ;;  %v2420_v43 = vsub.f32 1.0, %v2419_v55  ;;  %v2568_v34 = vmul.f32 3.8918573e-05, %v9446_v47  ;;  %v2446_v63 = vadd.f32 1.1283791, %v2445_v33 }
 0x363   :  { %v1568_v12 = vpack.c.bf16 %v1551_v40, %v1550_v26  ;;  %v6975_v32 = vpop.eup %6974  ;;  %vm2424_vm14 = vweird.f32 %v6973_v56  ;;  %v2481_v41 = vmul.f32 %v2480_v11, %v9389_v15  ;;  %v2519_v42 = vmul.f32 %v2518_v49, %v9429_v57 }
 0x364   :  { %v4760_v29 = vpack.c.bf16 %v4731_v35, %v4730_v46  ;;  %v2421_v36 = vmul.f32 %v6973_v56, %v2420_v43  ;;  %v9466_v0 = vmul.f32 0.70710677, %v9455_v14  ;;  %v2459_v6 = vmul.f32 %v6975_v32, %v9437_v31 }
 0x365   :  { %6513 = vmatmul.msk.bf16.gmra.mxu1 %vm374_vm0, %v1568_v12  ;;  %vm2423_vm15 = vweird.f32 %v9425_v5  ;;  %v2495_v22 = vadd.f32 0.4994258, %v2494_v27  ;;  %v2530_v3 = vmul.f32 %v2529_v45, %v9429_v57  ;;  %vm2428_vm2 = vcmp.eq.f32.partialorder %v2427_v7, 8.507059e+37  ;;  %v3285_v5 = vpop.f32.mrf.mxu2 }
 0x366   :  { %4858 = vmatmul.bf16.gmra.mxu3 %v4760_v29  ;;  %v2422_v20 = vadd.f32 %v6973_v56, %v2421_v36  ;;  %vm2425_vm1 = vmor %vm2423_vm15, %vm2424_vm14  ;;  %v2430_v61 = vor.u32 1.1754944e-38, %v2429_v37  ;;  %v2460_v38 = vsub.f32 1.0, %v2459_v6  ;;  %v2569_v21 = vadd.f32 0.001143296, %v2568_v34 }
 0x367   :  { %v2469_v2 = vand.u32 2147483648, %v9437_v31  ;;  %v2496_v23 = vmul.f32 %v2495_v22, %v9389_v15  ;;  %v2531_v58 = vadd.f32 0.014752088, %v2530_v3  ;;  %vm2464_vm3 = vweird.f32 %v6975_v32 }
 0x368   :  { %v2426_v16 = vsel %vm2425_vm1, %v6973_v56, %v2422_v20  ;;  %v2461_v51 = vmul.f32 %v6975_v32, %v2460_v38  ;;  %v2467_v26 = vand.u32 2147483647, %v9437_v31  ;;  %v2520_v54 = vadd.f32 0.0036580483, %v2519_v42 }
 0x369   :  { %v2431_v1 = vsel %vm2428_vm2, %v2430_v61, %v2426_v16  ;;  %v9474_v13 = vadd.f32 1.0, %v2496_v23  ;;  %v2447_v33 = vmul.f32 %v2446_v63, %v9253_v44  ;;  %vm2463_vm4 = vweird.f32 %v9437_v31  ;;  %v9487_v31 = vld [vmem:[%s12399_s4 + $0x1] ss:$0 sm:$0xff] }
 0x36a   :  { %v2432_v40 = vmul.f32 %v2431_v1, %v2407_v25  ;;  %v2462_v11 = vadd.f32 %v6975_v32, %v2461_v51  ;;  %v2570_v56 = vmul.f32 %v2569_v21, %v9446_v47  ;;  %v2482_v53 = vadd.f32 0.05243302, %v2481_v41  ;;  %vm2465_vm5 = vmor %vm2463_vm4, %vm2464_vm3 }
 0x36b   :  { %v2595_v55 = vmul.f32 %v9466_v0, %v9466_v0  ;;  %v2470_v49 = vor.u32 1.1754944e-38, %v2469_v2  ;;  %v2532_v7 = vmul.f32 %v2531_v58, %v9429_v57  ;;  %vm2468_vm6 = vcmp.eq.f32.partialorder %v2467_v26, 8.507059e+37 }
 0x36c   :  { %v6529_v12 = vclamps-f32 %v2432_v40, 1.0  ;;  %v2466_v46 = vsel %vm2465_vm5, %v6975_v32, %v2462_v11  ;;  %6976 = vrcp.f32 %v9474_v13  ;;  %v2521_v44 = vmul.f32 %v2520_v54, %v9429_v57 }
 0x36d   :  { %v2471_v35 = vsel %vm2468_vm6, %v2470_v49, %v2466_v46  ;;  %v9490_v43 = vadd.f32 %v9487_v31, %v3285_v5  ;;  %v2571_v25 = vadd.f32 0.014752088, %v2570_v56  ;;  %v2557_v37 = vmul.f32 2.1237322e-06, %v9446_v47  ;;  %v3287_v61 = vpop.f32.mrf.mxu2 }
 0x36e   :  { %v2472_v27 = vmul.f32 %v2471_v35, %v2447_v33  ;;  %v9493_v45 = vmin.f32 %v2595_v55, 16.0  ;;  %v2533_v34 = vadd.f32 0.112945676, %v2532_v7  ;;  %v2483_v32 = vmul.f32 %v2482_v53, %v9389_v15 }
 0x36f   :  { %v3129_v29 = vadd.f32 1.0, %v6529_v12  ;;  %v2522_v36 = vadd.f32 0.05243302, %v2521_v44  ;;  %v9497_v41 = vmul.f32 0.70710677, %v9490_v43  ;;  %v1785_v20 = vmul.f32 0.5, %v9139_v4 }
 0x370   :  { %v6530_v63 = vclamps-f32 %v2472_v27, 1.0  ;;  %v2534_v42 = vmul.f32 %v2533_v34, %v9429_v57  ;;  %v1786_v22 = vmul.f32 0.5, %v9238_v52  ;;  %v2572_v38 = vmul.f32 %v2571_v25, %v9446_v47 }
 0x371   :  { %v2558_v21 = vadd.f32 0.00028619796, %v2557_v37  ;;  %v2597_v16 = vmul.f32 2.1237322e-06, %v9493_v45  ;;  %v2484_v23 = vadd.f32 0.18741608, %v2483_v32  ;;  %v3161_v58 = vmul.f32 %v3129_v29, %v1785_v20 }
 0x372   :  { %v6977_v6 = vpop.eup %6976  ;;  %v3130_v3 = vadd.f32 1.0, %v6530_v63  ;;  %v2535_v51 = vadd.f32 0.4994258, %v2534_v42  ;;  %v2523_v26 = vmul.f32 %v2522_v36, %v9429_v57  ;;  %v3654_v4 = vmul.f32 %v9497_v41, %v9497_v41 }
 0x373   :  { %v2499_v2 = vmul.f32 %v6977_v6, %v9474_v13  ;;  %v9509_v52 = vadd.f32 %v9487_v31, %v3287_v61  ;;  %v2573_v33 = vadd.f32 0.112945676, %v2572_v38  ;;  %v2559_v11 = vmul.f32 %v2558_v21, %v9446_v47 }
 0x374   :  { %v3162_v1 = vmul.f32 %v3130_v3, %v1786_v22  ;;  %v2536_v40 = vmul.f32 %v2535_v51, %v9429_v57  ;;  %v2598_v56 = vadd.f32 0.00028619796, %v2597_v16  ;;  %v2608_v55 = vmul.f32 3.8918573e-05, %v9493_v45 }
 0x375   :  { %v2500_v5 = vsub.f32 1.0, %v2499_v2  ;;  %v2485_v7 = vmul.f32 %v2484_v23, %v9389_v15  ;;  %v2524_v12 = vadd.f32 0.18741608, %v2523_v26  ;;  %v9517_v46 = vmin.f32 %v3654_v4, 16.0  ;;  %v3290_v36 = vpop.f32.mrf.mxu2 }
 0x376   :  { %v3186_v54 = vpack.c.bf16 %v3162_v1, %v3161_v58  ;;  %v9514_v49 = vadd.f32 1.0, %v2536_v40  ;;  %v9520_v44 = vmul.f32 0.70710677, %v9509_v52  ;;  %vm2504_vm7 = vweird.f32 %v6977_v6 }
 0x377   :  { %v2501_v53 = vmul.f32 %v6977_v6, %v2500_v5  ;;  %v2574_v27 = vmul.f32 %v2573_v33, %v9446_v47  ;;  %v2560_v25 = vadd.f32 0.0036580483, %v2559_v11  ;;  %v2599_v37 = vmul.f32 %v2598_v56, %v9493_v45 }
 0x378   :  { %3304 = vmatmul.bf16.gmra.mxu2 %v3186_v54  ;;  %6978 = vrcp.f32 %v9514_v49  ;;  %v2509_v34 = vand.u32 2147483648, %v9474_v13  ;;  %v2609_v32 = vadd.f32 0.001143296, %v2608_v55  ;;  %vm2503_vm8 = vweird.f32 %v9474_v13 }
 0x379   :  { %v2502_v35 = vadd.f32 %v6977_v6, %v2501_v53  ;;  %v2507_v15 = vand.u32 2147483647, %v9474_v13  ;;  %v2486_v63 = vadd.f32 1.1283791, %v2485_v7  ;;  %v2525_v29 = vmul.f32 %v2524_v12, %v9429_v57  ;;  %vm2505_vm9 = vmor %vm2503_vm8, %vm2504_vm7 }
 0x37a   :  { %v3656_v42 = vmul.f32 2.1237322e-06, %v9517_v46  ;;  %v3694_v20 = vmul.f32 %v9520_v44, %v9520_v44  ;;  %v2575_v3 = vadd.f32 0.4994258, %v2574_v27  ;;  %v2561_v61 = vmul.f32 %v2560_v25, %v9446_v47 }
 0x37b   :  { %v2506_v22 = vsel %vm2505_vm9, %v6977_v6, %v2502_v35  ;;  %v2600_v38 = vadd.f32 0.0036580483, %v2599_v37  ;;  %v2510_v21 = vor.u32 1.1754944e-38, %v2509_v34  ;;  %v2610_v16 = vmul.f32 %v2609_v32, %v9493_v45 }
 0x37c   :  { %vm2508_vm10 = vcmp.eq.f32.partialorder %v2507_v15, 8.507059e+37  ;;  %v2576_v13 = vmul.f32 %v2575_v3, %v9446_v47  ;;  %v2487_v57 = vmul.f32 %v2486_v63, %v9362_v60  ;;  %v2526_v1 = vadd.f32 1.1283791, %v2525_v29 }
 0x37d   :  { %v2511_v23 = vsel %vm2508_vm10, %v2510_v21, %v2506_v22  ;;  %v3657_v51 = vadd.f32 0.00028619796, %v3656_v42  ;;  %v9537_v26 = vmin.f32 %v3694_v20, 16.0  ;;  %v2562_v4 = vadd.f32 0.05243302, %v2561_v61  ;;  %v3292_v25 = vpop.f32.mrf.mxu2  ;;  %v1709_v21 = vpop.f32.mrf.mxu1 }
 0x37e   :  { %v6979_v2 = vpop.eup %6978  ;;  %v9539_v6 = vadd.f32 1.0, %v2576_v13  ;;  %v2601_v5 = vmul.f32 %v2600_v38, %v9493_v45  ;;  %v2611_v40 = vadd.f32 0.014752088, %v2610_v16  ;;  %v9543_v33 = vadd.f32 %v9487_v31, %v3290_v36 }
 0x37f   :  { %v2539_v58 = vmul.f32 %v6979_v2, %v9514_v49  ;;  %v2512_v11 = vmul.f32 %v2511_v23, %v2487_v57  ;;  %v2549_v60 = vand.u32 2147483648, %v9514_v49  ;;  %vm2544_vm11 = vweird.f32 %v6979_v2 }
 0x380   :  { %6980 = vrcp.f32 %v9539_v6  ;;  %v2547_v53 = vand.u32 2147483647, %v9514_v49  ;;  %v2527_v55 = vmul.f32 %v2526_v1, %v9404_v59  ;;  %v3658_v7 = vmul.f32 %v3657_v51, %v9517_v46 }
 0x381   :  { %v2540_v54 = vsub.f32 1.0, %v2539_v58  ;;  %v3696_v12 = vmul.f32 2.1237322e-06, %v9537_v26  ;;  %v2563_v35 = vmul.f32 %v2562_v4, %v9446_v47  ;;  %vm2543_vm12 = vweird.f32 %v9514_v49 }
 0x382   :  { %v2612_v37 = vmul.f32 %v2611_v40, %v9493_v45  ;;  %v2602_v34 = vadd.f32 0.05243302, %v2601_v5  ;;  %v9555_v32 = vmul.f32 0.70710677, %v9543_v33  ;;  %v6531_v15 = vclamps-f32 %v2512_v11, 1.0  ;;  %vm2545_vm13 = vmor %vm2543_vm12, %vm2544_vm11 }
 0x383   :  { %v2541_v56 = vmul.f32 %v6979_v2, %v2540_v54  ;;  %v2550_v63 = vor.u32 1.1754944e-38, %v2549_v60  ;;  %vm2548_vm14 = vcmp.eq.f32.partialorder %v2547_v53, 8.507059e+37  ;;  %v3667_v36 = vmul.f32 3.8918573e-05, %v9517_v46 }
 0x384   :  { %v2613_v29 = vadd.f32 0.112945676, %v2612_v37  ;;  %v3659_v20 = vadd.f32 0.0036580483, %v3658_v7  ;;  %v3697_v22 = vadd.f32 0.00028619796, %v3696_v12  ;;  %v9561_v3 = vadd.f32 %v9487_v31, %v3292_v25 }
 0x385   :  { %v2542_v27 = vadd.f32 %v6979_v2, %v2541_v56  ;;  %v1787_v61 = vmul.f32 0.5, %v9353_v30  ;;  %v2564_v13 = vadd.f32 0.18741608, %v2563_v35  ;;  %v2603_v57 = vmul.f32 %v2602_v34, %v9493_v45 }
 0x386   :  { %v9558_v42 = vpop.eup %6980  ;;  %v3734_v23 = vmul.f32 %v9555_v32, %v9555_v32  ;;  %v3131_v58 = vadd.f32 1.0, %v6531_v15  ;;  %v3668_v5 = vadd.f32 0.001143296, %v3667_v36  ;;  %v3660_v30 = vmul.f32 %v3659_v20, %v9517_v46 }
 0x387   :  { %v2546_v59 = vsel %vm2545_vm13, %v6979_v2, %v2542_v27  ;;  %v2579_v16 = vmul.f32 %v9558_v42, %v9539_v6  ;;  %v2614_v2 = vmul.f32 %v2613_v29, %v9493_v45  ;;  %v3698_v54 = vmul.f32 %v3697_v22, %v9537_v26  ;;  %v3295_v22 = vpop.f32.mrf.mxu2 }
 0x388   :  { %v2551_v49 = vsel %vm2548_vm14, %v2550_v63, %v2546_v59  ;;  %v9573_v40 = vmul.f32 0.70710677, %v9561_v3  ;;  %v9576_v11 = vadd.f32 %v1709_v21, %v7957_v50  ;;  %v1788_v60 = vmul.f32 0.5, %v9393_v24 }
 0x389   :  { %v2552_v38 = vmul.f32 %v2551_v49, %v2527_v55  ;;  %v2580_v51 = vsub.f32 1.0, %v2579_v16  ;;  %v2615_v4 = vadd.f32 0.4994258, %v2614_v2  ;;  %v2565_v7 = vmul.f32 %v2564_v13, %v9446_v47  ;;  %v1489_v13 = vpop.permute.xlu1 %1488 }
 0x38a   :  { %v2604_v12 = vadd.f32 0.18741608, %v2603_v57  ;;  %v9582_v35 = vmin.f32 %v3734_v23, 16.0  ;;  %v3163_v27 = vmul.f32 %v3131_v58, %v1787_v61  ;;  %v3669_v34 = vmul.f32 %v3668_v5, %v9517_v46  ;;  %v9600_v61 = vpop.f32.mrf.mxu1 }
 0x38b   :  { %v6532_v1 = vclamps-f32 %v2552_v38, 1.0  ;;  %v2581_v53 = vmul.f32 %v9558_v42, %v2580_v51  ;;  %v2616_v55 = vmul.f32 %v2615_v4, %v9493_v45  ;;  %v3661_v50 = vadd.f32 0.05243302, %v3660_v30 }
 0x38c   :  { %v3699_v15 = vadd.f32 0.0036580483, %v3698_v54  ;;  %v3774_v24 = vmul.f32 %v9573_v40, %v9573_v40  ;;  %v9590_v63 = vmul.f32 0.70710677, %v9576_v11  ;;  %vm2584_vm15 = vweird.f32 %v9558_v42 }
 0x38d   :  { %v3132_v56 = vadd.f32 1.0, %v6532_v1  ;;  %v9584_v37 = vadd.f32 1.0, %v2616_v55  ;;  %v2582_v47 = vadd.f32 %v9558_v42, %v2581_v53  ;;  %v2605_v29 = vmul.f32 %v2604_v12, %v9493_v45  ;;  %v1487_v1 = vpop.permute.xlu0 %1486 }
 0x38e   :  { %v3736_v36 = vmul.f32 2.1237322e-06, %v9582_v35  ;;  %v2589_v20 = vand.u32 2147483648, %v9539_v6  ;;  %vm2583_vm1 = vweird.f32 %v9539_v6  ;;  %v2587_v49 = vand.u32 2147483647, %v9539_v6 }
 0x38f   :  { %v3164_v25 = vmul.f32 %v3132_v56, %v1788_v60  ;;  %6982 = vrcp.f32 %v9584_v37  ;;  %v3670_v38 = vadd.f32 0.014752088, %v3669_v34  ;;  %v3707_v21 = vmul.f32 3.8918573e-05, %v9537_v26  ;;  %vm9604_vm2 = vmor %vm2583_vm1, %vm2584_vm15  ;;  %v7168_v60 = vld [vmem:[%s12397_s2 + $0xf8] sm:$0xff] }
 0x390   :  { %v2566_v16 = vadd.f32 1.1283791, %v2565_v7  ;;  %v3662_v2 = vmul.f32 %v3661_v50, %v9517_v46  ;;  %v3700_v57 = vmul.f32 %v3699_v15, %v9537_v26  ;;  %v9609_v23 = vmin.f32 %v3774_v24, 16.0 }
 0x391   :  { %v3187_v59 = vpack.c.bf16 %v3164_v25, %v3163_v27  ;;  %v2635_v6 = vmul.f32 %v9590_v63, %v9590_v63  ;;  %v2586_v58 = vsel %vm9604_vm2, %v9558_v42, %v2582_v47  ;;  %v2606_v51 = vadd.f32 1.1283791, %v2605_v29  ;;  %v7169_v27 = vld [vmem:[%s12397_s2 + $0xf0] sm:$0xff] }
 0x392   :  { %v3737_v4 = vadd.f32 0.00028619796, %v3736_v36  ;;  %v9617_v5 = vadd.f32 %v9487_v31, %v3295_v22  ;;  %v2590_v30 = vor.u32 1.1754944e-38, %v2589_v20  ;;  %vm2588_vm3 = vcmp.eq.f32.partialorder %v2587_v49, 8.507059e+37 }
 0x393   :  { %3309 = vmatmul.bf16.gmra.mxu2 %v3187_v59  ;;  %v1553_v56 = vadd.f32 %v7168_v60, %v1489_v13  ;;  %v3671_v53 = vmul.f32 %v3670_v38, %v9517_v46  ;;  %v3708_v55 = vadd.f32 0.001143296, %v3707_v21  ;;  %v3663_v7 = vadd.f32 0.18741608, %v3662_v2 }
 0x394   :  { %v2591_v12 = vsel %vm2588_vm3, %v2590_v30, %v2586_v58  ;;  %v1552_v25 = vadd.f32 %v7169_v27, %v1487_v1  ;;  %v2567_v34 = vmul.f32 %v2566_v16, %v9423_v62  ;;  %v3701_v50 = vadd.f32 0.05243302, %v3700_v57  ;;  %v9642_v57 = vpop.f32.mrf.mxu1 }
 0x395   :  { %v6983_v54 = vpop.eup %6982  ;;  %v3776_v15 = vmul.f32 2.1237322e-06, %v9609_v23  ;;  %v9629_v24 = vmin.f32 %v2635_v6, 16.0  ;;  %v9632_v59 = vmul.f32 0.70710677, %v9617_v5  ;;  %v3738_v20 = vmul.f32 %v3737_v4, %v9582_v35 }
 0x396   :  { %v2619_v42 = vmul.f32 %v6983_v54, %v9584_v37  ;;  %v1569_v29 = vpack.c.bf16 %v1553_v56, %v1552_v25  ;;  %v3672_v36 = vadd.f32 0.112945676, %v3671_v53  ;;  %v2592_v22 = vmul.f32 %v2591_v12, %v2567_v34 }
 0x397   :  { %v2629_v49 = vand.u32 2147483648, %v9584_v37  ;;  %v3709_v38 = vmul.f32 %v3708_v55, %v9537_v26  ;;  %vm2624_vm4 = vweird.f32 %v6983_v54  ;;  %v2627_v62 = vand.u32 2147483647, %v9584_v37 }
 0x398   :  { %v2620_v47 = vsub.f32 1.0, %v2619_v42  ;;  %6514 = vmatmul.msk.bf16.gmra.mxu1 %vm374_vm0, %v1569_v29  ;;  %v3673_v16 = vmul.f32 %v3672_v36, %v9517_v46  ;;  %v2607_v2 = vmul.f32 %v2606_v51, %v9466_v0  ;;  %v3777_v45 = vadd.f32 0.00028619796, %v3776_v15 }
 0x399   :  { %v2637_v13 = vmul.f32 2.1237322e-06, %v9629_v24  ;;  %v3710_v6 = vadd.f32 0.014752088, %v3709_v38  ;;  %v3814_v58 = vmul.f32 %v9632_v59, %v9632_v59  ;;  %vm2623_vm5 = vweird.f32 %v9584_v37 }
 0x39a   :  { %v2621_v21 = vmul.f32 %v6983_v54, %v2620_v47  ;;  %v3674_v4 = vadd.f32 0.4994258, %v3673_v16  ;;  %v3702_v30 = vmul.f32 %v3701_v50, %v9537_v26  ;;  %v3739_v60 = vadd.f32 0.0036580483, %v3738_v20  ;;  %vm2625_vm0 = vmor %vm2623_vm5, %vm2624_vm4 }
 0x39b   :  { %v6533_v56 = vclamps-f32 %v2592_v22, 1.0  ;;  %v2630_v0 = vor.u32 1.1754944e-38, %v2629_v49  ;;  %vm2628_vm6 = vcmp.eq.f32.partialorder %v2627_v62, 8.507059e+37  ;;  %v3711_v55 = vmul.f32 %v3710_v6, %v9537_v26 }
 0x39c   :  { %v2622_v1 = vadd.f32 %v6983_v54, %v2621_v21  ;;  %v3675_v53 = vmul.f32 %v3674_v4, %v9517_v46  ;;  %v3778_v12 = vmul.f32 %v3777_v45, %v9609_v23  ;;  %v2638_v42 = vadd.f32 0.00028619796, %v2637_v13 }
 0x39d   :  { %v9652_v25 = vmin.f32 %v3814_v58, 16.0  ;;  %v3712_v50 = vadd.f32 0.112945676, %v3711_v55  ;;  %v3664_v15 = vmul.f32 %v3663_v7, %v9517_v46  ;;  %v3703_v47 = vadd.f32 0.18741608, %v3702_v30  ;;  %v9664_v7 = vpop.f32.mrf.mxu1 }
 0x39e   :  { %v2626_v51 = vsel %vm2625_vm0, %v6983_v54, %v2622_v1  ;;  %v9654_v34 = vadd.f32 1.0, %v3675_v53  ;;  %v3740_v54 = vmul.f32 %v3739_v60, %v9582_v35  ;;  %v3133_v36 = vadd.f32 1.0, %v6533_v56 }
 0x39f   :  { %v2631_v27 = vsel %vm2628_vm6, %v2630_v0, %v2626_v51  ;;  %v3779_v20 = vadd.f32 0.0036580483, %v3778_v12  ;;  %v2639_v22 = vmul.f32 %v2638_v42, %v9629_v24  ;;  %v3713_v49 = vmul.f32 %v3712_v50, %v9537_v26 }
 0x3a0   :  { %v2632_v37 = vmul.f32 %v2631_v27, %v2607_v2  ;;  %6984 = vrcp.f32 %v9654_v34  ;;  %v1789_v38 = vmul.f32 0.5, %v9411_v9  ;;  %v1790_v21 = vmul.f32 0.5, %v9455_v14  ;;  %v9672_v9 = vld [vmem:[%s12399_s4 + $0x2] ss:$0 sm:$0xff] }
 0x3a1   :  { %v3816_v62 = vmul.f32 2.1237322e-06, %v9652_v25  ;;  %v3665_v46 = vadd.f32 1.1283791, %v3664_v15  ;;  %v3714_v2 = vadd.f32 0.4994258, %v3713_v49  ;;  %v3704_v45 = vmul.f32 %v3703_v47, %v9537_v26 }
 0x3a2   :  { %v6534_v29 = vclamps-f32 %v2632_v37, 1.0  ;;  %v3741_v13 = vadd.f32 0.05243302, %v3740_v54  ;;  %v3165_v6 = vmul.f32 %v3133_v36, %v1789_v38  ;;  %v3780_v1 = vmul.f32 %v3779_v20, %v9609_v23  ;;  %v3297_v37 = vpop.f32.mrf.mxu2 }
 0x3a3   :  { %v2640_v4 = vadd.f32 0.0036580483, %v2639_v22  ;;  %v3715_v30 = vmul.f32 %v3714_v2, %v9537_v26  ;;  %v9675_v56 = vmul.f32 0.5, %v9490_v43  ;;  %v3817_v0 = vadd.f32 0.00028619796, %v3816_v62 }
 0x3a4   :  { %v3134_v16 = vadd.f32 1.0, %v6534_v29  ;;  %v4849_v14 = vpop.f32.mrf.mxu3  ;;  %v9679_v53 = vadd.f32 %v9600_v61, %v8208_v18  ;;  %v3666_v55 = vmul.f32 %v3665_v46, %v9497_v41  ;;  %v9683_v26 = vmul.f32 0.5, %v9509_v52 }
 0x3a5   :  { %v9686_v12 = vmul.f32 0.5, %v9543_v33  ;;  %v3705_v27 = vadd.f32 1.1283791, %v3704_v45  ;;  %v3742_v43 = vmul.f32 %v3741_v13, %v9582_v35  ;;  %v9690_v50 = vadd.f32 1.0, %v3715_v30 }
 0x3a6   :  { %v3166_v58 = vmul.f32 %v3134_v16, %v1790_v21  ;;  %v6985_v60 = vpop.eup %6984  ;;  %v9693_v18 = vadd.f32 %v9672_v9, %v4849_v14  ;;  %v9696_v41 = vmul.f32 0.5, %v9561_v3  ;;  %v3781_v52 = vadd.f32 0.05243302, %v3780_v1 }
 0x3a7   :  { %12486 = vst [vmem:[#allocation10_spill] sm:$0xff] %v9686_v12  ;;  %v3678_v42 = vmul.f32 %v6985_v60, %v9654_v34  ;;  %v2641_v61 = vmul.f32 %v2640_v4, %v9629_v24  ;;  %v9700_v15 = vmul.f32 0.5, %v9576_v11  ;;  %v3818_v47 = vmul.f32 %v3817_v0, %v9652_v25 }
 0x3a8   :  { %v3188_v51 = vpack.c.bf16 %v3166_v58, %v3165_v6  ;;  %12487 = vst [vmem:[#allocation11_spill] sm:$0xff] %v9696_v41  ;;  %v9704_v54 = vmul.f32 0.70710677, %v9679_v53  ;;  %6986 = vrcp.f32 %v9690_v50  ;;  %v9708_v29 = vadd.f32 %v9487_v31, %v3297_v37  ;;  %v1719_v31 = vpop.f32.mrf.mxu1 }
 0x3a9   :  { %v3679_v33 = vsub.f32 1.0, %v3678_v42  ;;  %12488 = vst [vmem:[#allocation12_spill] sm:$0xff] %v9700_v15  ;;  %vm3683_vm7 = vweird.f32 %v6985_v60  ;;  %v3688_v3 = vand.u32 2147483648, %v9654_v34  ;;  %v9712_v20 = vmul.f32 %v3705_v27, %v9520_v44 }
 0x3aa   :  { %3314 = vmatmul.bf16.gmra.mxu2 %v3188_v51  ;;  %v3743_v22 = vadd.f32 0.18741608, %v3742_v43  ;;  %v3686_v11 = vand.u32 2147483647, %v9654_v34  ;;  %v9716_v49 = vmul.f32 0.70710677, %v9693_v18  ;;  %v3782_v38 = vmul.f32 %v3781_v52, %v9609_v23 }
 0x3ab   :  { %v3680_v36 = vmul.f32 %v6985_v60, %v3679_v33  ;;  %v2642_v21 = vadd.f32 0.05243302, %v2641_v61  ;;  %vm3682_vm8 = vweird.f32 %v9654_v34  ;;  %v2675_v16 = vmul.f32 %v9704_v54, %v9704_v54 }
 0x3ac   :  { %v9724_v44 = vadd.f32 %v9642_v57, %v8221_v8  ;;  %vm3684_vm9 = vmor %vm3682_vm8, %vm3683_vm7  ;;  %v4993_v46 = vmul.f32 %v9716_v49, %v9716_v49  ;;  %v9729_v2 = vadd.f32 %v1719_v31, %v8389_v17  ;;  %v3819_v45 = vadd.f32 0.0036580483, %v3818_v47 }
 0x3ad   :  { %v3681_v62 = vadd.f32 %v6985_v60, %v3680_v36  ;;  %v9732_v13 = vmul.f32 0.70710677, %v9708_v29  ;;  %v3689_v6 = vor.u32 1.1754944e-38, %v3688_v3  ;;  %v9735_v1 = vmul.f32 0.5, %v9617_v5  ;;  %v4851_v36 = vpop.f32.mrf.mxu3 }
 0x3ae   :  { %v6987_v58 = vpop.eup %6986  ;;  %vm3687_vm10 = vcmp.eq.f32.partialorder %v3686_v11, 8.507059e+37  ;;  %v9737_v8 = vmin.f32 %v4993_v46, 16.0  ;;  %v9740_v57 = vmul.f32 0.70710677, %v9729_v2  ;;  %v9743_v4 = vmul.f32 %v3743_v22, %v9582_v35 }
 0x3af   :  { %v3685_v34 = vsel %vm3684_vm9, %v6985_v60, %v3681_v62  ;;  %12489 = vst [vmem:[#allocation13_spill] sm:$0xff] %v9735_v1  ;;  %v3783_v17 = vadd.f32 0.18741608, %v3782_v38  ;;  %v3718_v14 = vmul.f32 %v6987_v58, %v9690_v50  ;;  %v9747_v60 = vmul.f32 %v2642_v21, %v9629_v24 }
 0x3b0   :  { %v3690_v30 = vsel %vm3687_vm10, %v3689_v6, %v3685_v34  ;;  %v9749_v0 = vmin.f32 %v2675_v16, 16.0  ;;  %v9752_v5 = vmul.f32 0.70710677, %v9724_v44  ;;  %v5006_v51 = vmul.f32 3.8918573e-05, %v9737_v8 }
 0x3b1   :  { %v9756_v42 = vmul.f32 %v3819_v45, %v9652_v25  ;;  %v3854_v27 = vmul.f32 %v9732_v13, %v9732_v13  ;;  %v3719_v43 = vsub.f32 1.0, %v3718_v14  ;;  %v3726_v37 = vand.u32 2147483647, %v9690_v50 }
 0x3b2   :  { %v3691_v52 = vmul.f32 %v3690_v30, %v3666_v55  ;;  %v3728_v61 = vand.u32 2147483648, %v9690_v50  ;;  %v5007_v33 = vadd.f32 0.001143296, %v5006_v51  ;;  %v2795_v47 = vmul.f32 %v9740_v57, %v9740_v57 }
 0x3b3   :  { %v3720_v3 = vmul.f32 %v6987_v58, %v3719_v43  ;;  %vm3723_vm11 = vweird.f32 %v6987_v58  ;;  %v4995_v22 = vmul.f32 2.1237322e-06, %v9737_v8  ;;  %v9766_v11 = vadd.f32 %v9672_v9, %v4851_v36 }
 0x3b4   :  { %v2677_v38 = vmul.f32 2.1237322e-06, %v9749_v0  ;;  %v2715_v21 = vmul.f32 %v9752_v5, %v9752_v5  ;;  %v5008_v55 = vmul.f32 %v5007_v33, %v9737_v8  ;;  %v3747_v62 = vmul.f32 3.8918573e-05, %v9582_v35 }
 0x3b5   :  { %v9775_v31 = vadd.f32 %v9664_v7, %v8354_v28  ;;  %v3721_v16 = vadd.f32 %v6987_v58, %v3720_v3  ;;  %vm3722_vm12 = vweird.f32 %v9690_v50  ;;  %v9779_v46 = vmul.f32 0.70710677, %v9766_v11 }
 0x3b6   :  { %vm3724_vm13 = vmor %vm3722_vm12, %vm3723_vm11  ;;  %vm3727_vm14 = vcmp.eq.f32.partialorder %v3726_v37, 8.507059e+37  ;;  %v3729_v45 = vor.u32 1.1754944e-38, %v3728_v61  ;;  %v5009_v34 = vadd.f32 0.014752088, %v5008_v55  ;;  %v9781_v6 = vmin.f32 %v2795_v47, 16.0 }
 0x3b7   :  { %v6585_v30 = vclamps-f32 %v3691_v52, 1.0  ;;  %v3725_v14 = vsel %vm3724_vm13, %v6987_v58, %v3721_v16  ;;  %v4996_v51 = vadd.f32 0.00028619796, %v4995_v22  ;;  %v5033_v43 = vmul.f32 %v9779_v46, %v9779_v46 }
 0x3b8   :  { %v9785_v28 = vmin.f32 %v3854_v27, 16.0  ;;  %v3730_v7 = vsel %vm3727_vm14, %v3729_v45, %v3725_v14  ;;  %v5010_v50 = vmul.f32 %v5009_v34, %v9737_v8  ;;  %v3748_v33 = vadd.f32 0.001143296, %v3747_v62 }
 0x3b9   :  { %v2678_v36 = vadd.f32 0.00028619796, %v2677_v38  ;;  %v9788_v3 = vmin.f32 %v2715_v21, 16.0  ;;  %v3731_v37 = vmul.f32 %v3730_v7, %v9712_v20  ;;  %v9791_v61 = vmin.f32 %v5033_v43, 16.0  ;;  %v1721_v21 = vpop.f32.mrf.mxu1 }
 0x3ba   :  { %v3784_v52 = vmul.f32 %v3783_v17, %v9609_v23  ;;  %v9795_v58 = vmul.f32 0.70710677, %v9775_v31  ;;  %v5011_v47 = vadd.f32 0.112945676, %v5010_v50  ;;  %v2808_v27 = vmul.f32 3.8918573e-05, %v9781_v6 }
 0x3bb   :  { %v6586_v22 = vclamps-f32 %v3731_v37, 1.0  ;;  %v4700_v55 = vadd.f32 1.0, %v6585_v30  ;;  %v4997_v16 = vmul.f32 %v4996_v51, %v9737_v8  ;;  %v5035_v38 = vmul.f32 2.1237322e-06, %v9791_v61 }
 0x3bc   :  { %v3856_v62 = vmul.f32 2.1237322e-06, %v9785_v28  ;;  %v5012_v20 = vmul.f32 %v5011_v47, %v9737_v8  ;;  %v5046_v45 = vmul.f32 3.8918573e-05, %v9791_v61  ;;  %v3749_v17 = vmul.f32 %v3748_v33, %v9582_v35 }
 0x3bd   :  { %v2679_v34 = vmul.f32 %v2678_v36, %v9749_v0  ;;  %v2717_v14 = vmul.f32 2.1237322e-06, %v9788_v3  ;;  %v4701_v43 = vadd.f32 1.0, %v6586_v22  ;;  %v5036_v7 = vadd.f32 0.00028619796, %v5035_v38 }
 0x3be   :  { %v2755_v30 = vmul.f32 %v9795_v58, %v9795_v58  ;;  %v5013_v51 = vadd.f32 0.4994258, %v5012_v20  ;;  %v2809_v50 = vadd.f32 0.001143296, %v2808_v27  ;;  %v9809_v37 = vadd.f32 %v1721_v21, %v8420_v10 }
 0x3bf   :  { %v4732_v47 = vmul.f32 %v4700_v55, %v9675_v56  ;;  %v4733_v39 = vmul.f32 %v4701_v43, %v9683_v26  ;;  %v4998_v1 = vadd.f32 0.0036580483, %v4997_v16  ;;  %v5047_v33 = vadd.f32 0.001143296, %v5046_v45 }
 0x3c0   :  { %v3857_v15 = vadd.f32 0.00028619796, %v3856_v62  ;;  %v5014_v36 = vmul.f32 %v5013_v51, %v9737_v8  ;;  %v5037_v22 = vmul.f32 %v5036_v7, %v9791_v61  ;;  %v3750_v38 = vadd.f32 0.014752088, %v3749_v17 }
 0x3c1   :  { %v2680_v41 = vadd.f32 0.0036580483, %v2679_v34  ;;  %v2718_v12 = vadd.f32 0.00028619796, %v2717_v14  ;;  %v4761_v48 = vpack.c.bf16 %v4733_v39, %v4732_v47  ;;  %v5048_v27 = vmul.f32 %v5047_v33, %v9791_v61 }
 0x3c2   :  { %v9816_v20 = vmin.f32 %v2755_v30, 16.0  ;;  %v9818_v10 = vadd.f32 1.0, %v5014_v36  ;;  %v2810_v56 = vmul.f32 %v2809_v50, %v9781_v6  ;;  %v9822_v26 = vmul.f32 0.70710677, %v9809_v37 }
 0x3c3   :  { %v3745_v55 = vadd.f32 1.1283791, %v9743_v4  ;;  %v2644_v16 = vadd.f32 0.18741608, %v9747_v60  ;;  %4863 = vmatmul.bf16.gmra.mxu3 %v4761_v48  ;;  %v4999_v21 = vmul.f32 %v4998_v1, %v9737_v8  ;;  %v5049_v62 = vadd.f32 0.014752088, %v5048_v27 }
 0x3c4   :  { %v3821_v39 = vadd.f32 0.05243302, %v9756_v42  ;;  %6988 = vrcp.f32 %v9818_v10  ;;  %v5038_v45 = vadd.f32 0.0036580483, %v5037_v22  ;;  %v3751_v17 = vmul.f32 %v3750_v38, %v9582_v35 }
 0x3c5   :  { %v3785_v34 = vadd.f32 1.1283791, %v3784_v52  ;;  %v2681_v14 = vmul.f32 %v2680_v41, %v9749_v0  ;;  %v3858_v43 = vmul.f32 %v3857_v15, %v9785_v28  ;;  %v2719_v4 = vmul.f32 %v2718_v12, %v9788_v3 }
 0x3c6   :  { %v2757_v60 = vmul.f32 2.1237322e-06, %v9816_v20  ;;  %v2811_v48 = vadd.f32 0.014752088, %v2810_v56  ;;  %v5050_v1 = vmul.f32 %v5049_v62, %v9791_v61  ;;  %v2835_v42 = vmul.f32 %v9822_v26, %v9822_v26 }
 0x3c7   :  { %v9838_v7 = vmul.f32 %v3745_v55, %v9555_v32  ;;  %v2645_v30 = vmul.f32 %v2644_v16, %v9629_v24  ;;  %v9842_v52 = vmul.f32 0.5, %v9679_v53  ;;  %v5000_v41 = vadd.f32 0.05243302, %v4999_v21 }
 0x3c8   :  { %v3822_v15 = vmul.f32 %v3821_v39, %v9652_v25  ;;  %v5039_v12 = vmul.f32 %v5038_v45, %v9791_v61  ;;  %v5051_v51 = vadd.f32 0.112945676, %v5050_v1  ;;  %v3752_v50 = vadd.f32 0.112945676, %v3751_v17 }
 0x3c9   :  { %v9847_v47 = vmul.f32 %v3785_v34, %v9573_v40  ;;  %v2682_v33 = vadd.f32 0.05243302, %v2681_v14  ;;  %v3859_v36 = vadd.f32 0.0036580483, %v3858_v43  ;;  %v2720_v22 = vadd.f32 0.0036580483, %v2719_v4 }
 0x3ca   :  { %v9849_v32 = vpop.eup %6988  ;;  %v2758_v38 = vadd.f32 0.00028619796, %v2757_v60  ;;  %v2812_v27 = vmul.f32 %v2811_v48, %v9781_v6  ;;  %v5052_v53 = vmul.f32 %v5051_v51, %v9791_v61  ;;  %v9853_v56 = vmin.f32 %v2835_v42, 16.0 }
 0x3cb   :  { %v2646_v55 = vadd.f32 1.1283791, %v2645_v30  ;;  %v5001_v16 = vmul.f32 %v5000_v41, %v9737_v8  ;;  %v5017_v21 = vmul.f32 %v9849_v32, %v9818_v10  ;;  %v2797_v40 = vmul.f32 2.1237322e-06, %v9781_v6 }
 0x3cc   :  { %v3823_v62 = vadd.f32 0.18741608, %v3822_v15  ;;  %v5040_v39 = vadd.f32 0.05243302, %v5039_v12  ;;  %v5053_v45 = vadd.f32 0.4994258, %v5052_v53  ;;  %v3753_v17 = vmul.f32 %v3752_v50, %v9582_v35 }
 0x3cd   :  { %v2683_v34 = vmul.f32 %v2682_v33, %v9749_v0  ;;  %v3860_v14 = vmul.f32 %v3859_v36, %v9785_v28  ;;  %v2721_v43 = vmul.f32 %v2720_v22, %v9788_v3  ;;  %v5018_v4 = vsub.f32 1.0, %v5017_v21  ;;  %v1724_v21 = vpop.f32.mrf.mxu1 }
 0x3ce   :  { %v2759_v60 = vmul.f32 %v2758_v38, %v9816_v20  ;;  %v2813_v48 = vadd.f32 0.112945676, %v2812_v27  ;;  %v5054_v1 = vmul.f32 %v5053_v45, %v9791_v61  ;;  %v2848_v42 = vmul.f32 3.8918573e-05, %v9853_v56 }
 0x3cf   :  { %v9867_v30 = vmul.f32 %v2646_v55, %v9590_v63  ;;  %v5002_v41 = vadd.f32 0.18741608, %v5001_v16  ;;  %v5019_v15 = vmul.f32 %v9849_v32, %v5018_v4  ;;  %v2798_v12 = vadd.f32 0.00028619796, %v2797_v40 }
 0x3d0   :  { %v9871_v51 = vmul.f32 0.5, %v9708_v29  ;;  %v5041_v50 = vmul.f32 %v5040_v39, %v9791_v61  ;;  %v9874_v33 = vadd.f32 1.0, %v5054_v1  ;;  %v3754_v36 = vadd.f32 0.4994258, %v3753_v17 }
 0x3d1   :  { %v3824_v22 = vmul.f32 %v3823_v62, %v9652_v25  ;;  %v2684_v38 = vadd.f32 0.18741608, %v2683_v34  ;;  %v3861_v27 = vadd.f32 0.05243302, %v3860_v14  ;;  %v2722_v53 = vadd.f32 0.05243302, %v2721_v43 }
 0x3d2   :  { %v2760_v63 = vadd.f32 0.0036580483, %v2759_v60  ;;  %v2814_v55 = vmul.f32 %v2813_v48, %v9781_v6  ;;  %6990 = vrcp.f32 %v9874_v33  ;;  %v2849_v16 = vadd.f32 0.001143296, %v2848_v42 }
 0x3d3   :  { %v5003_v29 = vmul.f32 %v5002_v41, %v9737_v8  ;;  %v5020_v40 = vadd.f32 %v9849_v32, %v5019_v15  ;;  %vm5022_vm15 = vweird.f32 %v9849_v32  ;;  %v2799_v39 = vmul.f32 %v2798_v12, %v9781_v6 }
 0x3d4   :  { %v5027_v62 = vand.u32 2147483648, %v9818_v10  ;;  %v5042_v45 = vadd.f32 0.18741608, %v5041_v50  ;;  %v9885_v17 = vadd.f32 %v1724_v21, %v8490_v19  ;;  %v3755_v34 = vmul.f32 %v3754_v36, %v9582_v35 }
 0x3d5   :  { %v3862_v14 = vmul.f32 %v3861_v27, %v9785_v28  ;;  %v2723_v43 = vmul.f32 %v2722_v53, %v9788_v3  ;;  %vm5021_vm1 = vweird.f32 %v9818_v10  ;;  %v5025_v8 = vand.u32 2147483647, %v9818_v10 }
 0x3d6   :  { %v9892_v4 = vadd.f32 1.1283791, %v3824_v22  ;;  %v2761_v60 = vmul.f32 %v2760_v63, %v9816_v20  ;;  %vm9895_vm2 = vmor %vm5021_vm1, %vm5022_vm15  ;;  %v2815_v19 = vadd.f32 0.4994258, %v2814_v55  ;;  %v2850_v1 = vmul.f32 %v2849_v16, %v9853_v56 }
 0x3d7   :  { %v2685_v35 = vmul.f32 %v2684_v38, %v9749_v0  ;;  %v5004_v42 = vadd.f32 1.1283791, %v5003_v29  ;;  %v5024_v41 = vsel %vm9895_vm2, %v9849_v32, %v5020_v40  ;;  %v2800_v15 = vadd.f32 0.0036580483, %v2799_v39 }
 0x3d8   :  { %v6991_v10 = vpop.eup %6990  ;;  %v5028_v12 = vor.u32 1.1754944e-38, %v5027_v62  ;;  %v5043_v50 = vmul.f32 %v5042_v45, %v9791_v61  ;;  %v9906_v36 = vmul.f32 0.70710677, %v9885_v17  ;;  %v9908_v22 = vadd.f32 1.0, %v3755_v34 }
 0x3d9   :  { %v3863_v27 = vadd.f32 0.18741608, %v3862_v14  ;;  %v2724_v53 = vadd.f32 0.18741608, %v2723_v43  ;;  %vm5026_vm3 = vcmp.eq.f32.partialorder %v5025_v8, 8.507059e+37  ;;  %v5057_v38 = vmul.f32 %v6991_v10, %v9874_v33 }
 0x3da   :  { %v2762_v21 = vadd.f32 0.05243302, %v2761_v60  ;;  %v5029_v63 = vsel %vm5026_vm3, %v5028_v12, %v5024_v41  ;;  %v2816_v55 = vmul.f32 %v2815_v19, %v9781_v6  ;;  %v2851_v32 = vadd.f32 0.014752088, %v2850_v1 }
 0x3db   :  { %v5005_v16 = vmul.f32 %v5004_v42, %v9716_v49  ;;  %v2801_v29 = vmul.f32 %v2800_v15, %v9781_v6  ;;  %v5058_v61 = vsub.f32 1.0, %v5057_v38  ;;  %v2837_v40 = vmul.f32 2.1237322e-06, %v9853_v56 }
 0x3dc   :  { %v5044_v39 = vadd.f32 1.1283791, %v5043_v50  ;;  %v5067_v62 = vand.u32 2147483648, %v9874_v33  ;;  %v2875_v45 = vmul.f32 %v9906_v36, %v9906_v36  ;;  %6992 = vrcp.f32 %v9908_v22 }
 0x3dd   :  { %v5030_v34 = vmul.f32 %v5029_v63, %v5005_v16  ;;  %v5059_v14 = vmul.f32 %v6991_v10, %v5058_v61  ;;  %vm5062_vm4 = vweird.f32 %v6991_v10  ;;  %v5065_v43 = vand.u32 2147483647, %v9874_v33 }
 0x3de   :  { %v2763_v49 = vmul.f32 %v2762_v21, %v9816_v20  ;;  %v9921_v8 = vadd.f32 1.0, %v2816_v55  ;;  %v2852_v60 = vmul.f32 %v2851_v32, %v9853_v56  ;;  %v3787_v48 = vmul.f32 3.8918573e-05, %v9609_v23 }
 0x3df   :  { %v2802_v19 = vadd.f32 0.05243302, %v2801_v29  ;;  %v5060_v1 = vadd.f32 %v6991_v10, %v5059_v14  ;;  %vm5061_vm5 = vweird.f32 %v9874_v33  ;;  %v2838_v42 = vadd.f32 0.00028619796, %v2837_v40 }
 0x3e0   :  { %v5045_v41 = vmul.f32 %v5044_v39, %v9779_v46  ;;  %vm5063_vm0 = vmor %vm5061_vm5, %vm5062_vm4  ;;  %v5068_v15 = vor.u32 1.1754944e-38, %v5067_v62  ;;  %v9927_v12 = vmin.f32 %v2875_v45, 16.0  ;;  %v3788_v50 = vadd.f32 0.001143296, %v3787_v48 }
 0x3e1   :  { %v6643_v38 = vclamps-f32 %v5030_v34, 1.0  ;;  %v5064_v21 = vsel %vm5063_vm0, %v6991_v10, %v5060_v1  ;;  %vm5066_vm6 = vcmp.eq.f32.partialorder %v5065_v43, 8.507059e+37  ;;  %v2648_v63 = vmul.f32 3.8918573e-05, %v9629_v24 }
 0x3e2   :  { %v9930_v55 = vpop.eup %6992  ;;  %6994 = vrcp.f32 %v9921_v8  ;;  %v5069_v32 = vsel %vm5066_vm6, %v5068_v15, %v5064_v21  ;;  %v2853_v16 = vadd.f32 0.112945676, %v2852_v60  ;;  %v3789_v33 = vmul.f32 %v3788_v50, %v9609_v23 }
 0x3e3   :  { %v2686_v29 = vadd.f32 1.1283791, %v2685_v35  ;;  %v3864_v46 = vmul.f32 %v3863_v27, %v9785_v28  ;;  %v2725_v61 = vmul.f32 %v2724_v53, %v9788_v3  ;;  %v5070_v40 = vmul.f32 %v5069_v32, %v5045_v41 }
 0x3e4   :  { %v2764_v39 = vadd.f32 0.18741608, %v2763_v49  ;;  %v2803_v10 = vmul.f32 %v2802_v19, %v9781_v6  ;;  %v3790_v62 = vadd.f32 0.014752088, %v3789_v33  ;;  %v2649_v45 = vadd.f32 0.001143296, %v2648_v63 }
 0x3e5   :  { %v6273_v34 = vadd.f32 1.0, %v6643_v38  ;;  %v6644_v14 = vclamps-f32 %v5070_v40, 1.0  ;;  %v2888_v43 = vmul.f32 3.8918573e-05, %v9927_v12  ;;  %v3758_v60 = vmul.f32 %v9930_v55, %v9908_v22 }
 0x3e6   :  { %v2839_v48 = vmul.f32 %v2838_v42, %v9853_v56  ;;  %v2854_v35 = vmul.f32 %v2853_v16, %v9853_v56  ;;  %v3791_v27 = vmul.f32 %v3790_v62, %v9609_v23  ;;  %v2650_v53 = vmul.f32 %v2649_v45, %v9629_v24 }
 0x3e7   :  { %v3865_v49 = vadd.f32 1.1283791, %v3864_v46  ;;  %v4929_v19 = vmul.f32 0.5, %v9693_v18  ;;  %v4930_v1 = vmul.f32 0.5, %v9766_v11  ;;  %v6274_v41 = vadd.f32 1.0, %v6644_v14 }
 0x3e8   :  { %v9946_v15 = vpop.eup %6994  ;;  %v2726_v50 = vadd.f32 1.1283791, %v2725_v61  ;;  %v2765_v38 = vmul.f32 %v2764_v39, %v9816_v20  ;;  %v3792_v21 = vadd.f32 0.112945676, %v3791_v27  ;;  %v2651_v63 = vadd.f32 0.014752088, %v2650_v53 }
 0x3e9   :  { %v6305_v42 = vmul.f32 %v6273_v34, %v4929_v19  ;;  %v2804_v32 = vadd.f32 0.18741608, %v2803_v10  ;;  %v6306_v16 = vmul.f32 %v6274_v41, %v4930_v1  ;;  %v2889_v33 = vadd.f32 0.001143296, %v2888_v43 }
 0x3ea   :  { %v2840_v40 = vadd.f32 0.0036580483, %v2839_v48  ;;  %v2855_v62 = vadd.f32 0.4994258, %v2854_v35  ;;  %v3759_v45 = vsub.f32 1.0, %v3758_v60  ;;  %v3793_v46 = vmul.f32 %v3792_v21, %v9609_v23  ;;  %v4854_v35 = vpop.f32.mrf.mxu3 }
 0x3eb   :  { %v9952_v18 = vmul.f32 %v9892_v4, %v9632_v59  ;;  %v9955_v11 = vmul.f32 0.5, %v9724_v44  ;;  %v2819_v61 = vmul.f32 %v9946_v15, %v9921_v8  ;;  %v6706_v39 = vpack.c.bf16 %v6306_v16, %v6305_v42 }
 0x3ec   :  { %v9960_v10 = vmul.f32 %v2686_v29, %v9704_v54  ;;  %v9963_v34 = vmul.f32 0.5, %v9775_v31  ;;  %v2766_v14 = vadd.f32 1.1283791, %v2765_v38  ;;  %v2652_v43 = vmul.f32 %v2651_v63, %v9629_v24 }
 0x3ed   :  { %v9967_v60 = vmul.f32 %v3865_v49, %v9732_v13  ;;  %v9970_v59 = vmul.f32 %v2726_v50, %v9752_v5  ;;  %6707 = vst [vmem:[#allocation2] sm:$0xff] %v6706_v39   ;;  %v2890_v44 = vmul.f32 %v2889_v33, %v9927_v12  ;;  %v3794_v4 = vadd.f32 0.4994258, %v3793_v46 }
 0x3ee   :  { %v2805_v48 = vmul.f32 %v2804_v32, %v9781_v6  ;;  %v2841_v54 = vmul.f32 %v2840_v40, %v9853_v56  ;;  %v2856_v31 = vmul.f32 %v2855_v62, %v9853_v56  ;;  %v3760_v29 = vmul.f32 %v9930_v55, %v3759_v45 }
 0x3ef   :  { %v2820_v27 = vsub.f32 1.0, %v2819_v61  ;;  %v2877_v13 = vmul.f32 2.1237322e-06, %v9927_v12  ;;  %v3795_v53 = vmul.f32 %v3794_v4, %v9609_v23  ;;  %v9980_v5 = vadd.f32 %v9672_v9, %v4854_v35 }
 0x3f0   :  { %v9983_v49 = vmul.f32 %v2766_v14, %v9795_v58  ;;  %v9986_v6 = vmul.f32 0.5, %v9729_v2  ;;  %v9989_v19 = vmul.f32 0.5, %v9809_v37  ;;  %v2653_v1 = vadd.f32 0.112945676, %v2652_v43 }
 0x3f1   :  { %v2891_v41 = vadd.f32 0.014752088, %v2890_v44  ;;  %vm3762_vm7 = vweird.f32 %v9908_v22  ;;  %v9992_v50 = vadd.f32 1.0, %v3795_v53  ;;  %v9995_v23 = vmul.f32 0.70710677, %v9980_v5 }
 0x3f2   :  { %v2806_v38 = vadd.f32 1.1283791, %v2805_v48  ;;  %v2842_v21 = vadd.f32 0.05243302, %v2841_v54  ;;  %v9997_v63 = vadd.f32 1.0, %v2856_v31  ;;  %vm3763_vm8 = vweird.f32 %v9930_v55 }
 0x3f3   :  { %v2821_v2 = vmul.f32 %v9946_v15, %v2820_v27  ;;  %v2878_v58 = vadd.f32 0.00028619796, %v2877_v13  ;;  %v3761_v37 = vadd.f32 %v9930_v55, %v3760_v29  ;;  %6996 = vrcp.f32 %v9992_v50  ;;  %vm10019_vm10 = vmor %vm3762_vm7, %vm3763_vm8 }
 0x3f4   :  { %v2827_v42 = vand.u32 2147483647, %v9921_v8  ;;  %v3768_v32 = vand.u32 2147483648, %v9908_v22  ;;  %v5073_v16 = vmul.f32 %v9995_v23, %v9995_v23  ;;  %v2654_v33 = vmul.f32 %v2653_v1, %v9629_v24 }
 0x3f5   :  { %v2829_v40 = vand.u32 2147483648, %v9921_v8  ;;  %v2892_v62 = vmul.f32 %v2891_v41, %v9927_v12  ;;  %v3766_v45 = vand.u32 2147483647, %v9908_v22  ;;  %v2688_v46 = vmul.f32 3.8918573e-05, %v9749_v0 }
 0x3f6   :  { %vm2824_vm9 = vweird.f32 %v9946_v15  ;;  %v2843_v61 = vmul.f32 %v2842_v21, %v9853_v56  ;;  %6998 = vrcp.f32 %v9997_v63  ;;  %v10023_v14 = vmin.f32 %v5073_v16, 16.0 }
 0x3f7   :  { %v10026_v43 = vadd.f32 %v9946_v15, %v2821_v2  ;;  %v2879_v44 = vmul.f32 %v2878_v58, %v9927_v12  ;;  %v3765_v4 = vsel %vm10019_vm10, %v9930_v55, %v3761_v37  ;;  %v3827_v48 = vmul.f32 3.8918573e-05, %v9652_v25 }
 0x3f8   :  { %v10034_v54 = vmul.f32 %v2806_v38, %v9740_v57  ;;  %v3769_v22 = vor.u32 1.1754944e-38, %v3768_v32  ;;  %v5086_v31 = vmul.f32 3.8918573e-05, %v10023_v14  ;;  %v2655_v29 = vadd.f32 0.4994258, %v2654_v33 }
 0x3f9   :  { %v6997_v35 = vpop.eup %6996  ;;  %vm2823_vm11 = vweird.f32 %v9921_v8  ;;  %v2893_v27 = vadd.f32 0.112945676, %v2892_v62  ;;  %vm3767_vm12 = vcmp.eq.f32.partialorder %v3766_v45, 8.507059e+37  ;;  %v2689_v13 = vadd.f32 0.001143296, %v2688_v46 }
 0x3fa   :  { %vm10040_vm13 = vmor %vm2823_vm11, %vm2824_vm9  ;;  %v2830_v55 = vor.u32 1.1754944e-38, %v2829_v40  ;;  %v3770_v1 = vsel %vm3767_vm12, %v3769_v22, %v3765_v4  ;;  %v3798_v57 = vmul.f32 %v6997_v35, %v9992_v50  ;;  %v5087_v41 = vadd.f32 0.001143296, %v5086_v31 }
 0x3fb   :  { %v2826_v38 = vsel %vm10040_vm13, %v9946_v15, %v10026_v43  ;;  %v2844_v21 = vadd.f32 0.18741608, %v2843_v61  ;;  %v2880_v2 = vadd.f32 0.0036580483, %v2879_v44  ;;  %v3828_v58 = vadd.f32 0.001143296, %v3827_v48  ;;  %v4856_v44 = vpop.f32.mrf.mxu3 }
 0x3fc   :  { %v10049_v37 = vpop.eup %6998  ;;  %v3799_v32 = vsub.f32 1.0, %v3798_v57  ;;  %v5075_v16 = vmul.f32 2.1237322e-06, %v10023_v14  ;;  %v5088_v33 = vmul.f32 %v5087_v41, %v10023_v14  ;;  %v2656_v40 = vmul.f32 %v2655_v29, %v9629_v24  ;;  %v1726_v29 = vpop.f32.mrf.mxu1 }
 0x3fd   :  { %v2894_v62 = vmul.f32 %v2893_v27, %v9927_v12  ;;  %v3771_v45 = vmul.f32 %v3770_v1, %v9838_v7  ;;  %v3808_v46 = vand.u32 2147483648, %v9992_v50  ;;  %v2690_v15 = vmul.f32 %v2689_v13, %v9749_v0 }
 0x3fe   :  { %v3800_v61 = vmul.f32 %v6997_v35, %v3799_v32  ;;  %vm3803_vm14 = vweird.f32 %v6997_v35  ;;  %v3806_v39 = vand.u32 2147483647, %v9992_v50  ;;  %v5089_v43 = vadd.f32 0.014752088, %v5088_v33 }
 0x3ff   :  { %v2859_v4 = vmul.f32 %v10049_v37, %v9997_v63  ;;  %v2881_v48 = vmul.f32 %v2880_v2, %v9927_v12  ;;  %vm3802_vm15 = vweird.f32 %v9992_v50  ;;  %v3829_v24 = vmul.f32 %v3828_v58, %v9652_v25 }
 0x400   :  { %v3801_v7 = vadd.f32 %v6997_v35, %v3800_v61  ;;  %v5076_v22 = vadd.f32 0.00028619796, %v5075_v16  ;;  %v5090_v31 = vmul.f32 %v5089_v43, %v10023_v14  ;;  %v10065_v27 = vadd.f32 1.0, %v2656_v40  ;;  %vm3804_vm1 = vmor %vm3802_vm15, %vm3803_vm14  ;;  %v12496_v16 = vld [vmem:[#allocation5_spill] sm:$0xff] }
 0x401   :  { %v2895_v13 = vadd.f32 0.4994258, %v2894_v62  ;;  %v6587_v53 = vclamps-f32 %v3771_v45, 1.0  ;;  %v3809_v1 = vor.u32 1.1754944e-38, %v3808_v46  ;;  %v10069_v57 = vadd.f32 %v9672_v9, %v4856_v44 }
 0x402   :  { %v3805_v41 = vsel %vm3804_vm1, %v6997_v35, %v3801_v7  ;;  %vm3807_vm2 = vcmp.eq.f32.partialorder %v3806_v39, 8.507059e+37  ;;  %v5091_v50 = vadd.f32 0.112945676, %v5090_v31  ;;  %v2691_v2 = vadd.f32 0.014752088, %v2690_v15 }
 0x403   :  { %v2860_v58 = vsub.f32 1.0, %v2859_v4  ;;  %v3810_v32 = vsel %vm3807_vm2, %v3809_v1, %v3805_v41  ;;  %v10072_v33 = vadd.f32 %v1726_v29, %v12496_v16  ;;  %v3830_v61 = vadd.f32 0.014752088, %v3829_v24  ;;  %v12498_v1 = vld [vmem:[#allocation11_spill] sm:$0xff] }
 0x404   :  { %v3811_v40 = vmul.f32 %v3810_v32, %v9847_v47  ;;  %v5077_v62 = vmul.f32 %v5076_v22, %v10023_v14  ;;  %v5092_v45 = vmul.f32 %v5091_v50, %v10023_v14  ;;  %7000 = vrcp.f32 %v10065_v27 }
 0x405   :  { %v2882_v9 = vadd.f32 0.05243302, %v2881_v48  ;;  %v2896_v35 = vmul.f32 %v2895_v13, %v9927_v12  ;;  %v4702_v46 = vadd.f32 1.0, %v6587_v53  ;;  %v10080_v15 = vmul.f32 0.70710677, %v10069_v57 }
 0x406   :  { %vm2828_vm3 = vcmp.eq.f32.partialorder %v2827_v42, 8.507059e+37  ;;  %v6588_v39 = vclamps-f32 %v3811_v40, 1.0  ;;  %v5093_v43 = vadd.f32 0.4994258, %v5092_v45  ;;  %v2692_v47 = vmul.f32 %v2691_v2, %v9749_v0 }
 0x407   :  { %v2831_v44 = vsel %vm2828_vm3, %v2830_v55, %v2826_v38  ;;  %v2861_v4 = vmul.f32 %v10049_v37, %v2860_v58  ;;  %v5113_v24 = vmul.f32 %v10080_v15, %v10080_v15  ;;  %v3831_v48 = vmul.f32 %v3830_v61, %v9652_v25  ;;  %v12497_v55 = vld [vmem:[#allocation10_spill] sm:$0xff] }
 0x408   :  { %v4703_v7 = vadd.f32 1.0, %v6588_v39  ;;  %v5078_v22 = vadd.f32 0.0036580483, %v5077_v62  ;;  %v5094_v31 = vmul.f32 %v5093_v43, %v10023_v14  ;;  %v10091_v29 = vmul.f32 0.70710677, %v10072_v33 }
 0x409   :  { %v2845_v8 = vmul.f32 %v2844_v21, %v9853_v56  ;;  %v2883_v42 = vmul.f32 %v2882_v9, %v9927_v12  ;;  %v10095_v13 = vadd.f32 1.0, %v2896_v35  ;;  %v4734_v38 = vmul.f32 %v4702_v46, %v12497_v55 }
 0x40a   :  { %v10098_v53 = vpop.eup %7000  ;;  %v4735_v41 = vmul.f32 %v4703_v7, %v12498_v1  ;;  %v10101_v50 = vadd.f32 1.0, %v5094_v31  ;;  %v10103_v2 = vmin.f32 %v5113_v24, 16.0  ;;  %v2693_v58 = vadd.f32 0.112945676, %v2692_v47 }
 0x40b   :  { %v2832_v32 = vmul.f32 %v2831_v44, %v10034_v54  ;;  %v2862_v16 = vadd.f32 %v10049_v37, %v2861_v4  ;;  %vm2864_vm4 = vweird.f32 %v10049_v37  ;;  %v3832_v56 = vadd.f32 0.112945676, %v3831_v48 }
 0x40c   :  { %v4762_v21 = vpack.c.bf16 %v4735_v41, %v4734_v38  ;;  %v5079_v61 = vmul.f32 %v5078_v22, %v10023_v14  ;;  %7002 = vrcp.f32 %v10101_v50  ;;  %v2915_v40 = vmul.f32 %v10091_v29, %v10091_v29 }
 0x40d   :  { %vm2863_vm5 = vweird.f32 %v9997_v63  ;;  %v2869_v62 = vand.u32 2147483648, %v9997_v63  ;;  %v2884_v45 = vadd.f32 0.18741608, %v2883_v42  ;;  %v2659_v54 = vmul.f32 %v10098_v53, %v10065_v27 }
 0x40e   :  { %vm10116_vm0 = vmor %vm2863_vm5, %vm2864_vm4  ;;  %v2867_v35 = vand.u32 2147483647, %v9997_v63  ;;  %7004 = vrcp.f32 %v10095_v13  ;;  %4868 = vmatmul.bf16.gmra.mxu3 %v4762_v21  ;;  %v5115_v46 = vmul.f32 2.1237322e-06, %v10103_v2  ;;  %v2694_v39 = vmul.f32 %v2693_v58, %v9749_v0 }
 0x40f   :  { %v6539_v43 = vclamps-f32 %v2832_v32, 1.0  ;;  %v2846_v47 = vadd.f32 1.1283791, %v2845_v8  ;;  %v2866_v44 = vsel %vm10116_vm0, %v10049_v37, %v2862_v16  ;;  %v5126_v4 = vmul.f32 3.8918573e-05, %v10103_v2 }
 0x410   :  { %v5080_v24 = vadd.f32 0.05243302, %v5079_v61  ;;  %v10128_v48 = vmin.f32 %v2915_v40, 16.0  ;;  %v5116_v7 = vadd.f32 0.00028619796, %v5115_v46  ;;  %v3833_v63 = vmul.f32 %v3832_v56, %v9652_v25  ;;  %v3300_v61 = vpop.f32.mrf.mxu2 }
 0x411   :  { %v2870_v22 = vor.u32 1.1754944e-38, %v2869_v62  ;;  %v2885_v31 = vmul.f32 %v2884_v45, %v9927_v12  ;;  %v5127_v42 = vadd.f32 0.001143296, %v5126_v4  ;;  %v2660_v55 = vsub.f32 1.0, %v2659_v54 }
 0x412   :  { %v10132_v38 = vpop.eup %7002  ;;  %vm2868_vm6 = vcmp.eq.f32.partialorder %v2867_v35, 8.507059e+37  ;;  %v10135_v8 = vmul.f32 0.5, %v9885_v17  ;;  %v5117_v37 = vmul.f32 %v5116_v7, %v10103_v2  ;;  %v2695_v1 = vadd.f32 0.4994258, %v2694_v39 }
 0x413   :  { %v2847_v41 = vmul.f32 %v2846_v47, %v9822_v26  ;;  %v2871_v58 = vsel %vm2868_vm6, %v2870_v22, %v2866_v44  ;;  %v5097_v32 = vmul.f32 %v10132_v38, %v10101_v50  ;;  %v5128_v16 = vmul.f32 %v5127_v42, %v10103_v2  ;;  %v10161_v44 = vld [vmem:[%s12399_s4 + $0x1] ss:$0 sm:$0xff] }
 0x414   :  { %v10142_v12 = vpop.eup %7004  ;;  %v10144_v56 = vadd.f32 1.0, %v6539_v43  ;;  %v5081_v21 = vmul.f32 %v5080_v24, %v10023_v14  ;;  %v2928_v17 = vmul.f32 3.8918573e-05, %v10128_v48  ;;  %v3834_v40 = vadd.f32 0.4994258, %v3833_v63 }
 0x415   :  { %v10148_v62 = vadd.f32 1.1283791, %v2885_v31  ;;  %v5118_v45 = vadd.f32 0.0036580483, %v5117_v37  ;;  %v5129_v26 = vadd.f32 0.014752088, %v5128_v16  ;;  %v2661_v54 = vmul.f32 %v10098_v53, %v2660_v55 }
 0x416   :  { %v10151_v9 = vmul.f32 %v2871_v58, %v2847_v41  ;;  %v2907_v35 = vand.u32 2147483647, %v10095_v13  ;;  %v5098_v46 = vsub.f32 1.0, %v5097_v32  ;;  %v2696_v39 = vmul.f32 %v2695_v1, %v9749_v0 }
 0x417   :  { %v2899_v43 = vmul.f32 %v10142_v12, %v10095_v13  ;;  %v10164_v4 = vadd.f32 %v10161_v44, %v3300_v61  ;;  %v5130_v24 = vmul.f32 %v5129_v26, %v10103_v2  ;;  %v5082_v7 = vadd.f32 0.18741608, %v5081_v21 }
 0x418   :  { %v2929_v63 = vadd.f32 0.001143296, %v2928_v17  ;;  %v10167_v22 = vadd.f32 1.0, %v2696_v39  ;;  %v3835_v0 = vmul.f32 %v3834_v40, %v9652_v25  ;;  %v5119_v31 = vmul.f32 %v5118_v45, %v10103_v2 }
 0x419   :  { %v5131_v42 = vadd.f32 0.112945676, %v5130_v24  ;;  %v2662_v55 = vadd.f32 %v10098_v53, %v2661_v54  ;;  %vm2664_vm7 = vweird.f32 %v10098_v53  ;;  %v6540_v37 = vclamps-f32 %v10151_v9, 1.0 }
 0x41a   :  { %v5099_v1 = vmul.f32 %v10132_v38, %v5098_v46  ;;  %v2669_v41 = vand.u32 2147483648, %v10065_v27  ;;  %7006 = vrcp.f32 %v10167_v22  ;;  %v10178_v58 = vmul.f32 0.5, %v9980_v5 }
 0x41b   :  { %v2917_v25 = vmul.f32 2.1237322e-06, %v10128_v48  ;;  %vm2663_vm8 = vweird.f32 %v10065_v27  ;;  %v2667_v32 = vand.u32 2147483647, %v10065_v27  ;;  %v2900_v16 = vsub.f32 1.0, %v2899_v43 }
 0x41c   :  { %v10184_v21 = vmul.f32 0.70710677, %v10164_v4  ;;  %v5132_v17 = vmul.f32 %v5131_v42, %v10103_v2  ;;  %vm10187_vm9 = vmor %vm2663_vm8, %vm2664_vm7  ;;  %v10191_v40 = vadd.f32 1.0, %v3835_v0  ;;  %v5083_v5 = vmul.f32 %v5082_v7, %v10023_v14 }
 0x41d   :  { %v2930_v45 = vmul.f32 %v2929_v63, %v10128_v48  ;;  %v5120_v26 = vadd.f32 0.05243302, %v5119_v31  ;;  %v2666_v27 = vsel %vm10187_vm9, %v10098_v53, %v2662_v55  ;;  %v5100_v54 = vadd.f32 %v10132_v38, %v5099_v1 }
 0x41e   :  { %vm5102_vm10 = vweird.f32 %v10132_v38  ;;  %v5133_v46 = vadd.f32 0.4994258, %v5132_v17  ;;  %v2670_v39 = vor.u32 1.1754944e-38, %v2669_v41  ;;  %vm5101_vm11 = vweird.f32 %v10101_v50 }
 0x41f   :  { %v5107_v43 = vand.u32 2147483648, %v10101_v50  ;;  %v2918_v24 = vadd.f32 0.00028619796, %v2917_v25  ;;  %vm2668_vm12 = vcmp.eq.f32.partialorder %v2667_v32, 8.507059e+37  ;;  %v5105_v7 = vand.u32 2147483647, %v10101_v50  ;;  %vm10208_vm13 = vmor %vm5101_vm11, %vm5102_vm10 }
 0x420   :  { %v7007_v14 = vpop.eup %7006  ;;  %v5134_v63 = vmul.f32 %v5133_v46, %v10103_v2  ;;  %v2671_v0 = vsel %vm2668_vm12, %v2670_v39, %v2666_v27  ;;  %7008 = vrcp.f32 %v10191_v40  ;;  %v10206_v53 = vmul.f32 %v10142_v12, %v2900_v16 }
 0x421   :  { %v3894_v42 = vmul.f32 %v10184_v21, %v10184_v21  ;;  %v5121_v55 = vmul.f32 %v5120_v26, %v10103_v2  ;;  %v2699_v1 = vmul.f32 %v7007_v14, %v10167_v22  ;;  %v5084_v50 = vadd.f32 1.1283791, %v5083_v5 }
 0x422   :  { %v5104_v41 = vsel %vm10208_vm13, %v10132_v38, %v5100_v54  ;;  %v2931_v25 = vadd.f32 0.014752088, %v2930_v45  ;;  %v10219_v32 = vadd.f32 1.0, %v5134_v63  ;;  %v5108_v16 = vor.u32 1.1754944e-38, %v5107_v43 }
 0x423   :  { %v2672_v17 = vmul.f32 %v2671_v0, %v9867_v30  ;;  %v2700_v61 = vsub.f32 1.0, %v2699_v1  ;;  %v2709_v27 = vand.u32 2147483648, %v10167_v22  ;;  %vm5106_vm14 = vcmp.eq.f32.partialorder %v5105_v7, 8.507059e+37 }
 0x424   :  { %v2919_v46 = vmul.f32 %v2918_v24, %v10128_v48  ;;  %7010 = vrcp.f32 %v10219_v32  ;;  %v2707_v5 = vand.u32 2147483647, %v10167_v22  ;;  %v5109_v26 = vsel %vm5106_vm14, %v5108_v16, %v5104_v41 }
 0x425   :  { %v5122_v39 = vadd.f32 0.18741608, %v5121_v55  ;;  %v2701_v31 = vmul.f32 %v7007_v14, %v2700_v61  ;;  %vm2704_vm15 = vweird.f32 %v7007_v14  ;;  %v5085_v45 = vmul.f32 %v5084_v50, %v9995_v23 }
 0x426   :  { %v10226_v38 = vpop.eup %7008  ;;  %v2932_v30 = vmul.f32 %v2931_v25, %v10128_v48  ;;  %v10230_v54 = vmin.f32 %v3894_v42, 16.0  ;;  %v3867_v43 = vmul.f32 3.8918573e-05, %v9785_v28  ;;  %v6535_v7 = vclamps-f32 %v2672_v17, 1.0 }
 0x427   :  { %v2702_v24 = vadd.f32 %v7007_v14, %v2701_v31  ;;  %vm2703_vm1 = vweird.f32 %v10167_v22  ;;  %v2710_v63 = vor.u32 1.1754944e-38, %v2709_v27  ;;  %v10234_v0 = vmul.f32 %v5109_v26, %v5085_v45 }
 0x428   :  { %vm2705_vm2 = vmor %vm2703_vm1, %vm2704_vm15  ;;  %v3868_v55 = vadd.f32 0.001143296, %v3867_v43  ;;  %v2728_v1 = vmul.f32 3.8918573e-05, %v9788_v3  ;;  %v2768_v41 = vmul.f32 3.8918573e-05, %v9816_v20  ;;  %v5123_v23 = vmul.f32 %v5122_v39, %v10103_v2 }
 0x429   :  { %v2706_v50 = vsel %vm2705_vm2, %v7007_v14, %v2702_v24  ;;  %vm2708_vm3 = vcmp.eq.f32.partialorder %v2707_v5, 8.507059e+37  ;;  %v3838_v42 = vmul.f32 %v10226_v38, %v10191_v40  ;;  %v2920_v16 = vadd.f32 0.0036580483, %v2919_v46 }
 0x42a   :  { %v7011_v25 = vpop.eup %7010  ;;  %v2711_v17 = vsel %vm2708_vm3, %v2710_v63, %v2706_v50  ;;  %v3869_v22 = vmul.f32 %v3868_v55, %v9785_v28  ;;  %v2729_v61 = vadd.f32 0.001143296, %v2728_v1  ;;  %v2933_v27 = vadd.f32 0.112945676, %v2932_v30 }
 0x42b   :  { %v5137_v26 = vmul.f32 %v7011_v25, %v10219_v32  ;;  %v2712_v31 = vmul.f32 %v2711_v17, %v9960_v10  ;;  %v3135_v45 = vadd.f32 1.0, %v6535_v7  ;;  %v6645_v43 = vclamps-f32 %v10234_v0, 1.0  ;;  %v12505_v0 = vld [vmem:[#allocation12_spill] sm:$0xff] }
 0x42c   :  { %v3870_v2 = vadd.f32 0.014752088, %v3869_v22  ;;  %v2730_v14 = vmul.f32 %v2729_v61, %v9788_v3  ;;  %v2769_v5 = vadd.f32 0.001143296, %v2768_v41  ;;  %v5124_v39 = vadd.f32 1.1283791, %v5123_v23 }
 0x42d   :  { %v5138_v24 = vsub.f32 1.0, %v5137_v26  ;;  %v6536_v47 = vclamps-f32 %v2712_v31, 1.0  ;;  %v3839_v46 = vsub.f32 1.0, %v3838_v42  ;;  %v5147_v63 = vand.u32 2147483648, %v10219_v32 }
 0x42e   :  { %v3871_v55 = vmul.f32 %v3870_v2, %v9785_v28  ;;  %v2731_v30 = vadd.f32 0.014752088, %v2730_v14  ;;  %v2770_v1 = vmul.f32 %v2769_v5, %v9816_v20  ;;  %vm5142_vm4 = vweird.f32 %v7011_v25 }
 0x42f   :  { %v5139_v50 = vmul.f32 %v7011_v25, %v5138_v24  ;;  %v5145_v10 = vand.u32 2147483647, %v10219_v32  ;;  %v3136_v7 = vadd.f32 1.0, %v6536_v47  ;;  %v3167_v17 = vmul.f32 %v3135_v45, %v12505_v0 }
 0x430   :  { %v3872_v22 = vadd.f32 0.112945676, %v3871_v55  ;;  %v2732_v41 = vmul.f32 %v2731_v30, %v9788_v3  ;;  %v2771_v23 = vadd.f32 0.014752088, %v2770_v1  ;;  %v5125_v42 = vmul.f32 %v5124_v39, %v10080_v15  ;;  %v4859_v1 = vpop.f32.mrf.mxu3 }
 0x431   :  { %v5140_v61 = vadd.f32 %v7011_v25, %v5139_v50  ;;  %vm5141_vm5 = vweird.f32 %v10219_v32  ;;  %v3168_v26 = vmul.f32 %v3136_v7, %v9842_v52  ;;  %v5148_v31 = vor.u32 1.1754944e-38, %v5147_v63 }
 0x432   :  { %vm5143_vm0 = vmor %vm5141_vm5, %vm5142_vm4  ;;  %v3873_v2 = vmul.f32 %v3872_v22, %v9785_v28  ;;  %v2733_v14 = vadd.f32 0.112945676, %v2732_v41  ;;  %v2772_v47 = vmul.f32 %v2771_v23, %v9816_v20  ;;  %vm2904_vm6 = vweird.f32 %v10142_v12 }
 0x433   :  { %v5144_v45 = vsel %vm5143_vm0, %v7011_v25, %v5140_v61  ;;  %vm5146_vm7 = vcmp.eq.f32.partialorder %v5145_v10, 8.507059e+37  ;;  %v3189_v5 = vpack.c.bf16 %v3168_v26, %v3167_v17  ;;  %v3840_v24 = vmul.f32 %v10226_v38, %v3839_v46  ;;  %v10272_v10 = vld [vmem:[%s12399_s4 + $0x2] ss:$0 sm:$0xff] }
 0x434   :  { %v5149_v15 = vsel %vm5146_vm7, %v5148_v31, %v5144_v45  ;;  %v3874_v39 = vadd.f32 0.4994258, %v3873_v2  ;;  %v2734_v32 = vmul.f32 %v2733_v14, %v9788_v3  ;;  %v2773_v55 = vadd.f32 0.112945676, %v2772_v47 }
 0x435   :  { %v10262_v52 = vadd.f32 %v10142_v12, %v10206_v53  ;;  %vm2903_vm8 = vweird.f32 %v10095_v13  ;;  %v2921_v63 = vmul.f32 %v2920_v16, %v10128_v48  ;;  %v4932_v30 = vmul.f32 0.5, %v10069_v57  ;;  %3319 = vmatmul.bf16.gmra.mxu2 %v3189_v5 }
 0x436   :  { %v5150_v25 = vmul.f32 %v5149_v15, %v5125_v42  ;;  %v2934_v46 = vmul.f32 %v2933_v27, %v10128_v48  ;;  %v3875_v50 = vmul.f32 %v3874_v39, %v9785_v28  ;;  %v10275_v53 = vadd.f32 %v10272_v10, %v4859_v1  ;;  %vm10317_vm12 = vmor %vm2903_vm8, %vm2904_vm6 }
 0x437   :  { %v2735_v7 = vadd.f32 0.4994258, %v2734_v32  ;;  %v6275_v0 = vadd.f32 1.0, %v6645_v43  ;;  %v3896_v16 = vmul.f32 2.1237322e-06, %v10230_v54  ;;  %v2774_v17 = vmul.f32 %v2773_v55, %v9816_v20 }
 0x438   :  { %v6646_v57 = vclamps-f32 %v5150_v25, 1.0  ;;  %v3841_v22 = vadd.f32 %v10226_v38, %v3840_v24  ;;  %vm3843_vm9 = vweird.f32 %v10226_v38  ;;  %v3848_v28 = vand.u32 2147483648, %v10191_v40 }
 0x439   :  { %v10282_v27 = vadd.f32 1.0, %v3875_v50  ;;  %v10285_v23 = vmul.f32 0.70710677, %v10275_v53  ;;  %v2736_v42 = vmul.f32 %v2735_v7, %v9788_v3  ;;  %v2775_v43 = vadd.f32 0.4994258, %v2774_v17  ;;  %v4861_v17 = vpop.f32.mrf.mxu3 }
 0x43a   :  { %v6276_v41 = vadd.f32 1.0, %v6646_v57  ;;  %v2935_v61 = vadd.f32 0.4994258, %v2934_v46  ;;  %vm3842_vm10 = vweird.f32 %v10191_v40  ;;  %v3846_v26 = vand.u32 2147483647, %v10191_v40 }
 0x43b   :  { %7012 = vrcp.f32 %v10282_v27  ;;  %v6307_v31 = vmul.f32 %v6275_v0, %v10178_v58  ;;  %vm10292_vm11 = vmor %vm3842_vm10, %vm3843_vm9  ;;  %v5153_v47 = vmul.f32 %v10285_v23, %v10285_v23  ;;  %v10298_v45 = vadd.f32 1.0, %v2736_v42 }
 0x43c   :  { %v6308_v2 = vmul.f32 %v6276_v41, %v4932_v30  ;;  %v3140_v3 = vadd.f32 1.0, %v6540_v37  ;;  %v2922_v5 = vadd.f32 0.05243302, %v2921_v63  ;;  %v3845_v40 = vsel %vm10292_vm11, %v10226_v38, %v3841_v22 }
 0x43d   :  { %v2776_v58 = vmul.f32 %v2775_v43, %v9816_v20  ;;  %v3849_v15 = vor.u32 1.1754944e-38, %v3848_v28  ;;  %v10306_v39 = vmin.f32 %v5153_v47, 16.0  ;;  %7014 = vrcp.f32 %v10298_v45 }
 0x43e   :  { %v6711_v24 = vpack.c.bf16 %v6308_v2, %v6307_v31  ;;  %v10311_v32 = vmul.f32 %v10144_v56, %v9986_v6  ;;  %v2936_v20 = vmul.f32 %v2935_v61, %v10128_v48  ;;  %vm3847_vm13 = vcmp.eq.f32.partialorder %v3846_v26, 8.507059e+37 }
 0x43f   :  { %v10322_v37 = vadd.f32 1.0, %v2776_v58  ;;  %v10326_v38 = vmul.f32 %v10148_v62, %v9906_v36  ;;  %v2906_v6 = vsel %vm10317_vm12, %v10142_v12, %v10262_v52  ;;  %v3897_v56 = vadd.f32 0.00028619796, %v3896_v16  ;;  %v3302_v36 = vpop.f32.mrf.mxu2 }
 0x440   :  { %6783 = vst [vmem:[#allocation2 + $0x8] sm:$0xff] %v6711_v24   ;;  %v3850_v55 = vsel %vm3847_vm13, %v3849_v15, %v3845_v40  ;;  %v10333_v30 = vmul.f32 %v3140_v3, %v9989_v19  ;;  %vm2908_vm14 = vcmp.eq.f32.partialorder %v2907_v35, 8.507059e+37  ;;  %v12510_v25 = vand.u32 2147483648, %v10095_v13 }
 0x441   :  { %v7013_v63 = vpop.eup %7012  ;;  %v5166_v62 = vmul.f32 3.8918573e-05, %v10306_v39  ;;  %v10341_v46 = vmul.f32 0.5, %v10072_v33  ;;  %v2923_v12 = vmul.f32 %v2922_v5, %v10128_v48  ;;  %7016 = vrcp.f32 %v10322_v37 }
 0x442   :  { %v2910_v1 = vor.u32 1.1754944e-38, %v12510_v25  ;;  %v3878_v52 = vmul.f32 %v7013_v63, %v10282_v27  ;;  %v10348_v50 = vadd.f32 1.0, %v2936_v20  ;;  %v3851_v35 = vmul.f32 %v3850_v55, %v9952_v18 }
 0x443   :  { %v5167_v13 = vadd.f32 0.001143296, %v5166_v62  ;;  %v10351_v7 = vpop.eup %7014  ;;  %v3898_v0 = vmul.f32 %v3897_v56, %v10230_v54  ;;  %v10355_v33 = vadd.f32 %v10161_v44, %v3302_v36  ;;  %v5155_v57 = vmul.f32 2.1237322e-06, %v10306_v39 }
 0x444   :  { %v10346_v19 = vsel %vm2908_vm14, %v2910_v1, %v2906_v6  ;;  %v3879_v16 = vsub.f32 1.0, %v3878_v52  ;;  %v3888_v22 = vand.u32 2147483648, %v10282_v27  ;;  %v10361_v41 = vadd.f32 %v10272_v10, %v4861_v17 }
 0x445   :  { %v5168_v28 = vmul.f32 %v5167_v13, %v10306_v39  ;;  %v2739_v18 = vmul.f32 %v10351_v7, %v10298_v45  ;;  %v2924_v42 = vadd.f32 0.18741608, %v2923_v12  ;;  %vm3883_vm15 = vweird.f32 %v7013_v63 }
 0x446   :  { %v3880_v43 = vmul.f32 %v7013_v63, %v3879_v16  ;;  %v3886_v61 = vand.u32 2147483647, %v10282_v27  ;;  %7018 = vrcp.f32 %v10348_v50  ;;  %v6589_v26 = vclamps-f32 %v3851_v35, 1.0 }
 0x447   :  { %v5169_v31 = vadd.f32 0.014752088, %v5168_v28  ;;  %v2740_v2 = vsub.f32 1.0, %v2739_v18  ;;  %v10367_v14 = vpop.eup %7016  ;;  %vm3882_vm1 = vweird.f32 %v10282_v27  ;;  %v5156_v10 = vadd.f32 0.00028619796, %v5155_v57 }
 0x448   :  { %v3881_v47 = vadd.f32 %v7013_v63, %v3880_v43  ;;  %v10371_v3 = vmul.f32 0.70710677, %v10361_v41  ;;  %vm3884_vm2 = vmor %vm3882_vm1, %vm3883_vm15  ;;  %v3889_v5 = vor.u32 1.1754944e-38, %v3888_v22  ;;  %v10374_v40 = vmul.f32 0.70710677, %v10355_v33 }
 0x449   :  { %v5170_v58 = vmul.f32 %v5169_v31, %v10306_v39  ;;  %v2741_v24 = vmul.f32 %v10351_v7, %v2740_v2  ;;  %vm3887_vm3 = vcmp.eq.f32.partialorder %v3886_v61, 8.507059e+37  ;;  %vm2744_vm4 = vweird.f32 %v10351_v7  ;;  %v12513_v31 = vld [vmem:[#allocation13_spill] sm:$0xff] }
 0x44a   :  { %v3885_v15 = vsel %vm3884_vm2, %v7013_v63, %v3881_v47  ;;  %v5193_v9 = vmul.f32 %v10371_v3, %v10371_v3  ;;  %v2779_v56 = vmul.f32 %v10367_v14, %v10322_v37  ;;  %v5157_v25 = vmul.f32 %v5156_v10, %v10306_v39 }
 0x44b   :  { %v3890_v27 = vsel %vm3887_vm3, %v3889_v5, %v3885_v15  ;;  %v5171_v20 = vadd.f32 0.112945676, %v5170_v58  ;;  %v2742_v6 = vadd.f32 %v10351_v7, %v2741_v24  ;;  %v2749_v63 = vand.u32 2147483648, %v10298_v45 }
 0x44c   :  { %v3891_v55 = vmul.f32 %v3890_v27, %v9967_v60  ;;  %v10386_v1 = vmin.f32 %v5193_v9, 16.0  ;;  %v10389_v36 = vpop.eup %7018  ;;  %v3899_v62 = vadd.f32 0.0036580483, %v3898_v0  ;;  %vm2743_vm5 = vweird.f32 %v10298_v45 }
 0x44d   :  { %v5172_v12 = vmul.f32 %v5171_v20, %v10306_v39  ;;  %v2747_v52 = vand.u32 2147483647, %v10298_v45  ;;  %v2925_v35 = vmul.f32 %v2924_v42, %v10128_v48  ;;  %v4704_v16 = vadd.f32 1.0, %v6589_v26  ;;  %vm10399_vm0 = vmor %vm2743_vm5, %vm2744_vm4 }
 0x44e   :  { %v6590_v13 = vclamps-f32 %v3891_v55, 1.0  ;;  %v3934_v60 = vmul.f32 %v10374_v40, %v10374_v40  ;;  %v5195_v17 = vmul.f32 2.1237322e-06, %v10386_v1  ;;  %v2746_v45 = vsel %vm10399_vm0, %v10351_v7, %v2742_v6 }
 0x44f   :  { %v5173_v0 = vadd.f32 0.4994258, %v5172_v12  ;;  %v2780_v22 = vsub.f32 1.0, %v2779_v56  ;;  %v5158_v28 = vadd.f32 0.0036580483, %v5157_v25  ;;  %v2750_v42 = vor.u32 1.1754944e-38, %v2749_v63 }
 0x450   :  { %v4705_v48 = vadd.f32 1.0, %v6590_v13  ;;  %v5206_v18 = vmul.f32 3.8918573e-05, %v10386_v1  ;;  %v2939_v43 = vmul.f32 %v10389_v36, %v10348_v50  ;;  %v5196_v26 = vadd.f32 0.00028619796, %v5195_v17 }
 0x451   :  { %v5174_v61 = vmul.f32 %v5173_v0, %v10306_v39  ;;  %vm2748_vm6 = vcmp.eq.f32.partialorder %v2747_v52, 8.507059e+37  ;;  %v4736_v2 = vmul.f32 %v4704_v16, %v12513_v31  ;;  %v10413_v7 = vmin.f32 %v3934_v60, 16.0  ;;  %v3305_v60 = vpop.f32.mrf.mxu2 }
 0x452   :  { %v4737_v47 = vmul.f32 %v4705_v48, %v9871_v51  ;;  %v5207_v10 = vadd.f32 0.001143296, %v5206_v18  ;;  %v2751_v5 = vsel %vm2748_vm6, %v2750_v42, %v2746_v45  ;;  %v5197_v24 = vmul.f32 %v5196_v26, %v10386_v1 }
 0x453   :  { %v10415_v58 = vadd.f32 1.0, %v5174_v61  ;;  %v2781_v15 = vmul.f32 %v10367_v14, %v2780_v22  ;;  %v5159_v27 = vmul.f32 %v5158_v28, %v10306_v39  ;;  %v2789_v6 = vand.u32 2147483648, %v10322_v37 }
 0x454   :  { %v4763_v9 = vpack.c.bf16 %v4737_v47, %v4736_v2  ;;  %v5208_v20 = vmul.f32 %v5207_v10, %v10386_v1  ;;  %v10424_v51 = vmul.f32 %v10346_v19, %v10326_v38  ;;  %v2752_v56 = vmul.f32 %v2751_v5, %v9970_v59 }
 0x455   :  { %7020 = vrcp.f32 %v10415_v58  ;;  %v2787_v55 = vand.u32 2147483647, %v10322_v37  ;;  %v3900_v25 = vmul.f32 %v3899_v62, %v10230_v54  ;;  %v5198_v63 = vadd.f32 0.0036580483, %v5197_v24 }
 0x456   :  { %4873 = vmatmul.bf16.gmra.mxu3 %v4763_v9  ;;  %v5209_v12 = vadd.f32 0.014752088, %v5208_v20  ;;  %v2782_v52 = vadd.f32 %v10367_v14, %v2781_v15  ;;  %v2926_v13 = vadd.f32 1.1283791, %v2925_v35  ;;  %v2940_v16 = vsub.f32 1.0, %v2939_v43 }
 0x457   :  { %vm2783_vm7 = vweird.f32 %v10322_v37  ;;  %vm2784_vm8 = vweird.f32 %v10367_v14  ;;  %v3936_v38 = vmul.f32 2.1237322e-06, %v10413_v7  ;;  %v5160_v19 = vadd.f32 0.05243302, %v5159_v27 }
 0x458   :  { %v5210_v59 = vmul.f32 %v5209_v12, %v10386_v1  ;;  %vm2785_vm9 = vmor %vm2783_vm7, %vm2784_vm8  ;;  %v2790_v57 = vor.u32 1.1754944e-38, %v2789_v6  ;;  %v6537_v62 = vclamps-f32 %v2752_v56, 1.0  ;;  %vm2788_vm10 = vcmp.eq.f32.partialorder %v2787_v55, 8.507059e+37  ;;  %v1729_v55 = vpop.f32.mrf.mxu1 }
 0x459   :  { %v2786_v0 = vsel %vm2785_vm9, %v10367_v14, %v2782_v52  ;;  %v3907_v17 = vmul.f32 3.8918573e-05, %v10230_v54  ;;  %v6541_v35 = vclamps-f32 %v10424_v51, 1.0  ;;  %v5199_v37 = vmul.f32 %v5198_v63, %v10386_v1 }
 0x45a   :  { %v5211_v45 = vadd.f32 0.112945676, %v5210_v59  ;;  %v2791_v22 = vsel %vm2788_vm10, %v2790_v57, %v2786_v0  ;;  %v10442_v28 = vmul.f32 %v2926_v13, %v10091_v29  ;;  %v2941_v18 = vmul.f32 %v10389_v36, %v2940_v16  ;;  %v12514_v13 = vld [vmem:[#allocation6_spill] sm:$0xff]  ;;  %v3307_v59 = vpop.f32.mrf.mxu2 }
 0x45b   :  { %v10439_v48 = vpop.eup %7020  ;;  %v3901_v42 = vadd.f32 0.05243302, %v3900_v25  ;;  %v2792_v43 = vmul.f32 %v2791_v22, %v9983_v49  ;;  %vm2943_vm11 = vweird.f32 %v10348_v50  ;;  %v3937_v14 = vadd.f32 0.00028619796, %v3936_v38 }
 0x45c   :  { %v5161_v61 = vmul.f32 %v5160_v19, %v10306_v39  ;;  %v5177_v26 = vmul.f32 %v10439_v48, %v10415_v58  ;;  %v5212_v31 = vmul.f32 %v5211_v45, %v10386_v1  ;;  %v3137_v47 = vadd.f32 1.0, %v6537_v62 }
 0x45d   :  { %v6538_v2 = vclamps-f32 %v2792_v43, 1.0  ;;  %v3908_v10 = vadd.f32 0.001143296, %v3907_v17  ;;  %v2947_v29 = vand.u32 2147483647, %v10348_v50  ;;  %v2949_v5 = vand.u32 2147483648, %v10348_v50 }
 0x45e   :  { %v5178_v24 = vsub.f32 1.0, %v5177_v26  ;;  %v5200_v15 = vadd.f32 0.05243302, %v5199_v37  ;;  %v2942_v49 = vadd.f32 %v10389_v36, %v2941_v18  ;;  %vm2944_vm12 = vweird.f32 %v10389_v36 }
 0x45f   :  { %v5213_v9 = vadd.f32 0.4994258, %v5212_v31  ;;  %v3138_v27 = vadd.f32 1.0, %v6538_v2  ;;  %v3938_v20 = vmul.f32 %v3937_v14, %v10413_v7  ;;  %v5162_v6 = vadd.f32 0.18741608, %v5161_v61  ;;  %vm10476_vm14 = vmor %vm2943_vm11, %vm2944_vm12 }
 0x460   :  { %v10457_v56 = vadd.f32 %v10161_v44, %v3305_v60  ;;  %v3909_v25 = vmul.f32 %v3908_v10, %v10230_v54  ;;  %v3169_v12 = vmul.f32 %v3137_v47, %v9955_v11  ;;  %v10464_v16 = vadd.f32 %v1729_v55, %v12514_v13 }
 0x461   :  { %v5214_v63 = vmul.f32 %v5213_v9, %v10386_v1  ;;  %v3170_v52 = vmul.f32 %v3138_v27, %v9963_v34  ;;  %vm10466_vm13 = vcmp.eq.f32.partialorder %v2947_v29, 8.507059e+37  ;;  %v5179_v19 = vmul.f32 %v10439_v48, %v5178_v24 }
 0x462   :  { %v5201_v60 = vmul.f32 %v5200_v15, %v10386_v1  ;;  %v3910_v57 = vadd.f32 0.014752088, %v3909_v25  ;;  %v2950_v34 = vor.u32 1.1754944e-38, %v2949_v5  ;;  %v3947_v17 = vmul.f32 3.8918573e-05, %v10413_v7 }
 0x463   :  { %v10480_v62 = vadd.f32 1.0, %v5214_v63  ;;  %v3190_v0 = vpack.c.bf16 %v3170_v52, %v3169_v12  ;;  %v2946_v37 = vsel %vm10476_vm14, %v10389_v36, %v2942_v49  ;;  %v10487_v45 = vmul.f32 0.70710677, %v10457_v56 }
 0x464   :  { %v10490_v22 = vmul.f32 0.70710677, %v10464_v16  ;;  %v3911_v50 = vmul.f32 %v3910_v57, %v10230_v54  ;;  %v3939_v18 = vadd.f32 0.0036580483, %v3938_v20  ;;  %v5163_v43 = vmul.f32 %v5162_v6, %v10306_v39 }
 0x465   :  { %7022 = vrcp.f32 %v10480_v62  ;;  %3324 = vmatmul.bf16.gmra.mxu2 %v3190_v0  ;;  %v10496_v14 = vadd.f32 %v10161_v44, %v3307_v59  ;;  %v5180_v61 = vadd.f32 %v10439_v48, %v5179_v19  ;;  %vm5182_vm15 = vweird.f32 %v10439_v48 }
 0x466   :  { %v5202_v36 = vadd.f32 0.18741608, %v5201_v60  ;;  %v2955_v26 = vmul.f32 %v10490_v22, %v10490_v22  ;;  %v2951_v31 = vsel %vm10466_vm13, %v2950_v34, %v2946_v37  ;;  %v5187_v2 = vand.u32 2147483648, %v10415_v58 }
 0x467   :  { %v3912_v39 = vadd.f32 0.112945676, %v3911_v50  ;;  %v3948_v47 = vadd.f32 0.001143296, %v3947_v17  ;;  %vm5181_vm1 = vweird.f32 %v10415_v58  ;;  %v5185_v10 = vand.u32 2147483647, %v10415_v58 }
 0x468   :  { %v3974_v29 = vmul.f32 %v10487_v45, %v10487_v45  ;;  %v10509_v5 = vmin.f32 %v2955_v26, 16.0  ;;  %v3902_v24 = vmul.f32 %v3901_v42, %v10230_v54  ;;  %v5164_v15 = vadd.f32 1.1283791, %v5163_v43  ;;  %vm10512_vm2 = vmor %vm5181_vm1, %vm5182_vm15 }
 0x469   :  { %v3913_v9 = vmul.f32 %v3912_v39, %v10230_v54  ;;  %v3949_v27 = vmul.f32 %v3948_v47, %v10413_v7  ;;  %v5184_v58 = vsel %vm10512_vm2, %v10439_v48, %v5180_v61  ;;  %v5203_v20 = vmul.f32 %v5202_v36, %v10386_v1 }
 0x46a   :  { %v10523_v6 = vmul.f32 0.70710677, %v10496_v14  ;;  %v2968_v42 = vmul.f32 3.8918573e-05, %v10509_v5  ;;  %v2952_v25 = vmul.f32 %v2951_v31, %v10442_v28  ;;  %v5188_v63 = vor.u32 1.1754944e-38, %v5187_v2 }
 0x46b   :  { %v7023_v55 = vpop.eup %7022  ;;  %v3914_v12 = vadd.f32 0.4994258, %v3913_v9  ;;  %v3950_v52 = vadd.f32 0.014752088, %v3949_v27  ;;  %v3940_v13 = vmul.f32 %v3939_v18, %v10413_v7  ;;  %vm5186_vm3 = vcmp.eq.f32.partialorder %v5185_v10, 8.507059e+37 }
 0x46c   :  { %v10528_v38 = vmin.f32 %v3974_v29, 16.0  ;;  %v5217_v48 = vmul.f32 %v7023_v55, %v10480_v62  ;;  %v5189_v19 = vsel %vm5186_vm3, %v5188_v63, %v5184_v58  ;;  %v2969_v1 = vadd.f32 0.001143296, %v2968_v42 }
 0x46d   :  { %v3915_v60 = vmul.f32 %v3914_v12, %v10230_v54  ;;  %v3951_v59 = vmul.f32 %v3950_v52, %v10413_v7  ;;  %v5165_v57 = vmul.f32 %v5164_v15, %v10285_v23  ;;  %v5204_v11 = vadd.f32 1.1283791, %v5203_v20  ;;  %v1731_v12 = vpop.f32.mrf.mxu1 }
 0x46e   :  { %v5218_v28 = vsub.f32 1.0, %v5217_v48  ;;  %v4014_v34 = vmul.f32 %v10523_v6, %v10523_v6  ;;  %v5225_v0 = vand.u32 2147483647, %v10480_v62  ;;  %v5227_v17 = vand.u32 2147483648, %v10480_v62 }
 0x46f   :  { %v2970_v37 = vmul.f32 %v2969_v1, %v10509_v5  ;;  %v10539_v50 = vadd.f32 1.0, %v3915_v60  ;;  %v5190_v18 = vmul.f32 %v5189_v19, %v5165_v57  ;;  %vm5222_vm4 = vweird.f32 %v7023_v55 }
 0x470   :  { %v5219_v43 = vmul.f32 %v7023_v55, %v5218_v28  ;;  %v3952_v61 = vadd.f32 0.112945676, %v3951_v59  ;;  %v6542_v36 = vclamps-f32 %v2952_v25, 1.0  ;;  %v3191_v23 = vpack.c.bf16 %v10333_v30, %v10311_v32 }
 0x471   :  { %v2971_v26 = vadd.f32 0.014752088, %v2970_v37  ;;  %7024 = vrcp.f32 %v10539_v50  ;;  %v3941_v31 = vadd.f32 0.05243302, %v3940_v13  ;;  %v3976_v2 = vmul.f32 2.1237322e-06, %v10528_v38 }
 0x472   :  { %v5220_v39 = vadd.f32 %v7023_v55, %v5219_v43  ;;  %vm5221_vm5 = vweird.f32 %v10480_v62  ;;  %v5228_v47 = vor.u32 1.1754944e-38, %v5227_v17  ;;  %v10546_v10 = vmin.f32 %v4014_v34, 16.0 }
 0x473   :  { %vm5223_vm0 = vmor %vm5221_vm5, %vm5222_vm4  ;;  %v2972_v29 = vmul.f32 %v2971_v26, %v10509_v5  ;;  %v3953_v15 = vmul.f32 %v3952_v61, %v10413_v7  ;;  %v6647_v49 = vclamps-f32 %v5190_v18, 1.0  ;;  %v5205_v32 = vmul.f32 %v5204_v11, %v10371_v3 }
 0x474   :  { %v5224_v30 = vsel %vm5223_vm0, %v7023_v55, %v5220_v39  ;;  %vm5226_vm6 = vcmp.eq.f32.partialorder %v5225_v0, 8.507059e+37  ;;  %v3141_v9 = vadd.f32 1.0, %v6541_v35  ;;  %v3903_v27 = vadd.f32 0.18741608, %v3902_v24  ;;  %v12521_v55 = vld [vmem:[#allocation7_spill] sm:$0xff] }
 0x475   :  { %v5229_v58 = vsel %vm5226_vm6, %v5228_v47, %v5224_v30  ;;  %3329 = vmatmul.bf16.gmra.mxu2 %v3191_v23  ;;  %v3954_v62 = vadd.f32 0.4994258, %v3953_v15  ;;  %v3142_v20 = vadd.f32 1.0, %v6542_v36  ;;  %v3942_v42 = vmul.f32 %v3941_v31, %v10413_v7 }
 0x476   :  { %v3977_v25 = vadd.f32 0.00028619796, %v3976_v2  ;;  %v5230_v63 = vmul.f32 %v5229_v58, %v5205_v32  ;;  %v4016_v13 = vmul.f32 2.1237322e-06, %v10546_v10  ;;  %v2973_v3 = vadd.f32 0.112945676, %v2972_v29 }
 0x477   :  { %v10554_v52 = vpop.eup %7024  ;;  %v10558_v48 = vadd.f32 %v1731_v12, %v12521_v55  ;;  %v3955_v51 = vmul.f32 %v3954_v62, %v10413_v7  ;;  %v6277_v35 = vadd.f32 1.0, %v6647_v49  ;;  %v3987_v1 = vmul.f32 3.8918573e-05, %v10528_v38  ;;  %v3310_v49 = vpop.f32.mrf.mxu2 }
 0x478   :  { %v6648_v24 = vclamps-f32 %v5230_v63, 1.0  ;;  %v3918_v19 = vmul.f32 %v10554_v52, %v10539_v50  ;;  %v4933_v60 = vmul.f32 0.5, %v10275_v53  ;;  %v4934_v59 = vmul.f32 0.5, %v10361_v41 }
 0x479   :  { %v2957_v57 = vmul.f32 2.1237322e-06, %v10509_v5  ;;  %v10567_v11 = vadd.f32 1.0, %v3955_v51  ;;  %v3943_v28 = vadd.f32 0.18741608, %v3942_v42  ;;  %v3978_v34 = vmul.f32 %v3977_v25, %v10528_v38 }
 0x47a   :  { %v6278_v0 = vadd.f32 1.0, %v6648_v24  ;;  %v10571_v17 = vmul.f32 0.70710677, %v10558_v48  ;;  %v4017_v37 = vadd.f32 0.00028619796, %v4016_v13  ;;  %v2974_v18 = vmul.f32 %v2973_v3, %v10509_v5 }
 0x47b   :  { %v3919_v43 = vsub.f32 1.0, %v3918_v19  ;;  %7026 = vrcp.f32 %v10567_v11  ;;  %v6309_v53 = vmul.f32 %v6277_v35, %v4933_v60  ;;  %v3988_v36 = vadd.f32 0.001143296, %v3987_v1 }
 0x47c   :  { %v6310_v61 = vmul.f32 %v6278_v0, %v4934_v59  ;;  %v2995_v41 = vmul.f32 %v10571_v17, %v10571_v17  ;;  %v3173_v23 = vmul.f32 %v3141_v9, %v10135_v8  ;;  %v3174_v26 = vmul.f32 %v3142_v20, %v10341_v46 }
 0x47d   :  { %v2958_v31 = vadd.f32 0.00028619796, %v2957_v57  ;;  %v3920_v2 = vmul.f32 %v10554_v52, %v3919_v43  ;;  %v3904_v39 = vmul.f32 %v3903_v27, %v10230_v54  ;;  %v3944_v47 = vmul.f32 %v3943_v28, %v10413_v7 }
 0x47e   :  { %v6716_v29 = vpack.c.bf16 %v6310_v61, %v6309_v53  ;;  %v10582_v15 = vmin.f32 %v2995_v41, 16.0  ;;  %v3979_v32 = vadd.f32 0.0036580483, %v3978_v34  ;;  %v2975_v30 = vadd.f32 0.4994258, %v2974_v18 }
 0x47f   :  { %vm3923_vm7 = vweird.f32 %v10554_v52  ;;  %v3928_v58 = vand.u32 2147483648, %v10539_v50  ;;  %v4018_v8 = vmul.f32 %v4017_v37, %v10546_v10  ;;  %v3926_v9 = vand.u32 2147483647, %v10539_v50  ;;  %v3312_v41 = vpop.f32.mrf.mxu2 }
 0x480   :  { %6784 = vst [vmem:[#allocation2 + $0x10] sm:$0xff] %v6716_v29   ;;  %v3008_v46 = vmul.f32 3.8918573e-05, %v10582_v15  ;;  %v3989_v54 = vmul.f32 %v3988_v36, %v10528_v38  ;;  %v2959_v27 = vmul.f32 %v2958_v31, %v10509_v5  ;;  %v3192_v62 = vpack.c.bf16 %v3174_v26, %v3173_v23 }
 0x481   :  { %v7027_v7 = vpop.eup %7026  ;;  %v3921_v20 = vadd.f32 %v10554_v52, %v3920_v2  ;;  %vm3922_vm8 = vweird.f32 %v10539_v50  ;;  %v3905_v42 = vadd.f32 1.1283791, %v3904_v39  ;;  %v3945_v25 = vadd.f32 1.1283791, %v3944_v47 }
 0x482   :  { %v3009_v63 = vadd.f32 0.001143296, %v3008_v46  ;;  %v10594_v12 = vadd.f32 %v10161_v44, %v3310_v49  ;;  %vm3924_vm9 = vmor %vm3922_vm8, %vm3923_vm7  ;;  %v2976_v13 = vmul.f32 %v2975_v30, %v10509_v5  ;;  %v3929_v55 = vor.u32 1.1754944e-38, %v3928_v58 }
 0x483   :  { %v3925_v3 = vsel %vm3924_vm9, %v10554_v52, %v3921_v20  ;;  %v3958_v51 = vmul.f32 %v7027_v7, %v10567_v11  ;;  %v3980_v35 = vmul.f32 %v3979_v32, %v10528_v38  ;;  %v4019_v24 = vadd.f32 0.0036580483, %v4018_v8 }
 0x484   :  { %v3010_v50 = vmul.f32 %v3009_v63, %v10582_v15  ;;  %vm3927_vm10 = vcmp.eq.f32.partialorder %v3926_v9, 8.507059e+37  ;;  %v2960_v19 = vadd.f32 0.0036580483, %v2959_v27  ;;  %v3990_v59 = vadd.f32 0.014752088, %v3989_v54 }
 0x485   :  { %3334 = vmatmul.bf16.gmra.mxu2 %v3192_v62  ;;  %v3930_v1 = vsel %vm3927_vm10, %v3929_v55, %v3925_v3  ;;  %v3959_v60 = vsub.f32 1.0, %v3958_v51  ;;  %v3906_v57 = vmul.f32 %v3905_v42, %v10184_v21  ;;  %v10605_v34 = vmul.f32 0.70710677, %v10594_v12 }
 0x486   :  { %v3011_v28 = vadd.f32 0.014752088, %v3010_v50  ;;  %v3968_v52 = vand.u32 2147483648, %v10567_v11  ;;  %v10608_v0 = vadd.f32 1.0, %v2976_v13  ;;  %vm3963_vm11 = vweird.f32 %v7027_v7 }
 0x487   :  { %v3960_v37 = vmul.f32 %v7027_v7, %v3959_v60  ;;  %v3966_v18 = vand.u32 2147483647, %v10567_v11  ;;  %v3946_v43 = vmul.f32 %v3945_v25, %v10374_v40  ;;  %v3981_v53 = vadd.f32 0.05243302, %v3980_v35 }
 0x488   :  { %v3012_v61 = vmul.f32 %v3011_v28, %v10582_v15  ;;  %v3931_v36 = vmul.f32 %v3930_v1, %v3906_v57  ;;  %v4020_v21 = vmul.f32 %v4019_v24, %v10546_v10  ;;  %v2997_v23 = vmul.f32 2.1237322e-06, %v10582_v15 }
 0x489   :  { %v3961_v26 = vadd.f32 %v7027_v7, %v3960_v37  ;;  %vm3962_vm12 = vweird.f32 %v10567_v11  ;;  %v2961_v31 = vmul.f32 %v2960_v19, %v10509_v5  ;;  %v3969_v39 = vor.u32 1.1754944e-38, %v3968_v52  ;;  %v3315_v19 = vpop.f32.mrf.mxu2 }
 0x48a   :  { %v3013_v2 = vadd.f32 0.112945676, %v3012_v61  ;;  %vm3964_vm13 = vmor %vm3962_vm12, %vm3963_vm11  ;;  %v3991_v47 = vmul.f32 %v3990_v59, %v10528_v38  ;;  %7028 = vrcp.f32 %v10608_v0  ;;  %v4054_v40 = vmul.f32 %v10605_v34, %v10605_v34 }
 0x48b   :  { %v3965_v29 = vsel %vm3964_vm13, %v7027_v7, %v3961_v26  ;;  %vm3967_vm14 = vcmp.eq.f32.partialorder %v3966_v18, 8.507059e+37  ;;  %v10623_v32 = vadd.f32 %v10161_v44, %v3312_v41  ;;  %v6591_v11 = vclamps-f32 %v3931_v36, 1.0 }
 0x48c   :  { %v3014_v49 = vmul.f32 %v3013_v2, %v10582_v15  ;;  %v3970_v30 = vsel %vm3967_vm14, %v3969_v39, %v3965_v29  ;;  %v3982_v58 = vmul.f32 %v3981_v53, %v10528_v38  ;;  %v2998_v8 = vadd.f32 0.00028619796, %v2997_v23 }
 0x48d   :  { %v3971_v46 = vmul.f32 %v3970_v30, %v3946_v43  ;;  %v4021_v9 = vadd.f32 0.05243302, %v4020_v21  ;;  %v2962_v27 = vadd.f32 0.05243302, %v2961_v31  ;;  %v10626_v62 = vmin.f32 %v4054_v40, 16.0 }
 0x48e   :  { %v3015_v54 = vadd.f32 0.4994258, %v3014_v49  ;;  %v10630_v42 = vmul.f32 0.70710677, %v10623_v32  ;;  %v4706_v25 = vadd.f32 1.0, %v6591_v11  ;;  %v3363_v13 = vmul.f32 0.5, %v10355_v33 }
 0x48f   :  { %v6592_v20 = vclamps-f32 %v3971_v46, 1.0  ;;  %v3992_v44 = vadd.f32 0.112945676, %v3991_v47  ;;  %v3983_v3 = vadd.f32 0.18741608, %v3982_v58  ;;  %v2999_v55 = vmul.f32 %v2998_v8, %v10582_v15 }
 0x490   :  { %v3016_v7 = vmul.f32 %v3015_v54, %v10582_v15  ;;  %v10632_v63 = vpop.eup %7028  ;;  %v3362_v35 = vmul.f32 0.5, %v10164_v4  ;;  %v4022_v24 = vmul.f32 %v4021_v9, %v10546_v10  ;;  %v2963_v1 = vmul.f32 %v2962_v27, %v10509_v5  ;;  %v10653_v43 = vld [vmem:[%s12399_s4 + $0x1] ss:$0 sm:$0xff] }
 0x491   :  { %v4707_v51 = vadd.f32 1.0, %v6592_v20  ;;  %v4056_v60 = vmul.f32 2.1237322e-06, %v10626_v62  ;;  %v4027_v57 = vmul.f32 3.8918573e-05, %v10546_v10  ;;  %v2979_v33 = vmul.f32 %v10632_v63, %v10608_v0 }
 0x492   :  { %v10638_v50 = vadd.f32 1.0, %v3016_v7  ;;  %v4094_v28 = vmul.f32 %v10630_v42, %v10630_v42  ;;  %v4738_v52 = vmul.f32 %v4706_v25, %v3362_v35  ;;  %v3993_v4 = vmul.f32 %v3992_v44, %v10528_v38 }
 0x493   :  { %v4739_v59 = vmul.f32 %v4707_v51, %v3363_v13  ;;  %v3984_v37 = vmul.f32 %v3983_v3, %v10528_v38  ;;  %v3000_v18 = vadd.f32 0.0036580483, %v2999_v55  ;;  %v10656_v53 = vadd.f32 %v10653_v43, %v3315_v19  ;;  %v3317_v19 = vpop.f32.mrf.mxu2 }
 0x494   :  { %7030 = vrcp.f32 %v10638_v50  ;;  %v4023_v61 = vadd.f32 0.18741608, %v4022_v24  ;;  %v2964_v36 = vadd.f32 0.18741608, %v2963_v1  ;;  %v4057_v21 = vadd.f32 0.00028619796, %v4056_v60 }
 0x495   :  { %v4764_v41 = vpack.c.bf16 %v4739_v59, %v4738_v52  ;;  %v2980_v23 = vsub.f32 1.0, %v2979_v33  ;;  %v10658_v26 = vmin.f32 %v4094_v28, 16.0  ;;  %v3994_v31 = vadd.f32 0.4994258, %v3993_v4 }
 0x496   :  { %v4028_v2 = vadd.f32 0.001143296, %v4027_v57  ;;  %v3985_v39 = vadd.f32 1.1283791, %v3984_v37  ;;  %v3001_v47 = vmul.f32 %v3000_v18, %v10582_v15  ;;  %v10662_v40 = vmul.f32 0.70710677, %v10656_v53 }
 0x497   :  { %4878 = vmatmul.bf16.gmra.mxu3 %v4764_v41  ;;  %v4067_v29 = vmul.f32 3.8918573e-05, %v10626_v62  ;;  %v4024_v49 = vmul.f32 %v4023_v61, %v10546_v10  ;;  %v3995_v11 = vmul.f32 %v3994_v31, %v10528_v38  ;;  %v10671_v8 = vmul.f32 0.5, %v10457_v56 }
 0x498   :  { %v4029_v30 = vmul.f32 %v4028_v2, %v10546_v10  ;;  %v10674_v46 = vmul.f32 0.5, %v10496_v14  ;;  %v2965_v9 = vmul.f32 %v2964_v36, %v10509_v5  ;;  %v4058_v54 = vmul.f32 %v4057_v21, %v10626_v62 }
 0x499   :  { %v2981_v27 = vmul.f32 %v10632_v63, %v2980_v23  ;;  %v4096_v20 = vmul.f32 2.1237322e-06, %v10658_v26  ;;  %v10680_v7 = vadd.f32 1.0, %v3995_v11  ;;  %v10683_v25 = vmul.f32 %v3985_v39, %v10487_v45 }
 0x49a   :  { %v10668_v58 = vpop.eup %7030  ;;  %v4030_v38 = vadd.f32 0.014752088, %v4029_v30  ;;  %v3002_v44 = vadd.f32 0.05243302, %v3001_v47  ;;  %v4134_v56 = vmul.f32 %v10662_v40, %v10662_v40  ;;  %v4068_v14 = vadd.f32 0.001143296, %v4067_v29 }
 0x49b   :  { %v4025_v13 = vadd.f32 1.1283791, %v4024_v49  ;;  %v10688_v5 = vmul.f32 0.5, %v10464_v16  ;;  %v3019_v3 = vmul.f32 %v10668_v58, %v10638_v50  ;;  %7032 = vrcp.f32 %v10680_v7 }
 0x49c   :  { %v2966_v55 = vadd.f32 1.1283791, %v2965_v9  ;;  %vm2984_vm15 = vweird.f32 %v10632_v63  ;;  %v4059_v51 = vadd.f32 0.0036580483, %v4058_v54  ;;  %v4031_v45 = vmul.f32 %v4030_v38, %v10546_v10 }
 0x49d   :  { %v2982_v35 = vadd.f32 %v10632_v63, %v2981_v27  ;;  %v4097_v24 = vadd.f32 0.00028619796, %v4096_v20  ;;  %v4069_v1 = vmul.f32 %v4068_v14, %v10626_v62  ;;  %v4107_v16 = vmul.f32 3.8918573e-05, %v10658_v26  ;;  %v1734_v27 = vpop.f32.mrf.mxu1 }
 0x49e   :  { %v2989_v60 = vand.u32 2147483648, %v10608_v0  ;;  %v3003_v59 = vmul.f32 %v3002_v44, %v10582_v15  ;;  %v10700_v57 = vmin.f32 %v4134_v56, 16.0  ;;  %v4032_v33 = vadd.f32 0.112945676, %v4031_v45  ;;  %v12524_v44 = vld [vmem:[#allocation8_spill] sm:$0xff] }
 0x49f   :  { %vm2983_vm1 = vweird.f32 %v10608_v0  ;;  %v2987_v28 = vand.u32 2147483647, %v10608_v0  ;;  %v3020_v52 = vsub.f32 1.0, %v3019_v3  ;;  %v4108_v4 = vadd.f32 0.001143296, %v4107_v16 }
 0x4a0   :  { %v10705_v37 = vmul.f32 %v4025_v13, %v10523_v6  ;;  %vm10709_vm2 = vmor %vm2983_vm1, %vm2984_vm15  ;;  %v4060_v61 = vmul.f32 %v4059_v51, %v10626_v62  ;;  %v10715_v41 = vadd.f32 %v10653_v43, %v3317_v19  ;;  %v4033_v36 = vmul.f32 %v4032_v33, %v10546_v10 }
 0x4a1   :  { %v10718_v21 = vpop.eup %7032  ;;  %v2967_v0 = vmul.f32 %v2966_v55, %v10490_v22  ;;  %v2986_v6 = vsel %vm10709_vm2, %v10632_v63, %v2982_v35  ;;  %v4098_v23 = vmul.f32 %v4097_v24, %v10658_v26  ;;  %v4070_v31 = vadd.f32 0.014752088, %v4069_v1 }
 0x4a2   :  { %v2990_v2 = vor.u32 1.1754944e-38, %v2989_v60  ;;  %v3004_v39 = vadd.f32 0.18741608, %v3003_v59  ;;  %v4136_v47 = vmul.f32 2.1237322e-06, %v10700_v57  ;;  %v3998_v29 = vmul.f32 %v10718_v21, %v10680_v7 }
 0x4a3   :  { %vm2988_vm3 = vcmp.eq.f32.partialorder %v2987_v28, 8.507059e+37  ;;  %v3021_v49 = vmul.f32 %v10668_v58, %v3020_v52  ;;  %v4034_v11 = vadd.f32 0.4994258, %v4033_v36  ;;  %v4109_v22 = vmul.f32 %v4108_v4, %v10658_v26 }
 0x4a4   :  { %v2991_v30 = vsel %vm2988_vm3, %v2990_v2, %v2986_v6  ;;  %v4061_v9 = vadd.f32 0.05243302, %v4060_v61  ;;  %v10731_v63 = vmul.f32 0.70710677, %v10715_v41  ;;  %v3999_v54 = vsub.f32 1.0, %v3998_v29 }
 0x4a5   :  { %v4099_v20 = vadd.f32 0.0036580483, %v4098_v23  ;;  %v4035_v38 = vmul.f32 %v4034_v11, %v10546_v10  ;;  %v10735_v56 = vadd.f32 %v1734_v27, %v12524_v44  ;;  %v4071_v14 = vmul.f32 %v4070_v31, %v10626_v62 }
 0x4a6   :  { %v3005_v13 = vmul.f32 %v3004_v39, %v10582_v15  ;;  %vm3023_vm4 = vweird.f32 %v10638_v50  ;;  %v4137_v3 = vadd.f32 0.00028619796, %v4136_v47  ;;  %v4000_v55 = vmul.f32 %v10718_v21, %v3999_v54 }
 0x4a7   :  { %v3022_v51 = vadd.f32 %v10668_v58, %v3021_v49  ;;  %vm3024_vm5 = vweird.f32 %v10668_v58  ;;  %v10743_v45 = vadd.f32 1.0, %v4035_v38  ;;  %v4110_v35 = vadd.f32 0.014752088, %v4109_v22 }
 0x4a8   :  { %v3027_v10 = vand.u32 2147483647, %v10638_v50  ;;  %v3029_v24 = vand.u32 2147483648, %v10638_v50  ;;  %v4174_v19 = vmul.f32 %v10731_v63, %v10731_v63  ;;  %v10750_v15 = vmul.f32 0.70710677, %v10735_v56  ;;  %vm10757_vm6 = vmor %vm3023_vm4, %vm3024_vm5 }
 0x4a9   :  { %v4001_v1 = vadd.f32 %v10718_v21, %v4000_v55  ;;  %vm4003_vm0 = vweird.f32 %v10718_v21  ;;  %7034 = vrcp.f32 %v10743_v45  ;;  %v4072_v16 = vadd.f32 0.112945676, %v4071_v14  ;;  %v4864_v55 = vpop.f32.mrf.mxu3 }
 0x4aa   :  { %v2992_v60 = vmul.f32 %v2991_v30, %v2967_v0  ;;  %v3006_v59 = vadd.f32 1.1283791, %v3005_v13  ;;  %v4138_v28 = vmul.f32 %v4137_v3, %v10700_v57  ;;  %v4008_v52 = vand.u32 2147483648, %v10680_v7 }
 0x4ab   :  { %v3026_v4 = vsel %vm10757_vm6, %v10668_v58, %v3022_v51  ;;  %vm4002_vm7 = vweird.f32 %v10680_v7  ;;  %v4006_v18 = vand.u32 2147483647, %v10680_v7  ;;  %v4111_v61 = vmul.f32 %v4110_v35, %v10658_v26 }
 0x4ac   :  { %v3030_v36 = vor.u32 1.1754944e-38, %v3029_v24  ;;  %v4062_v50 = vmul.f32 %v4061_v9, %v10626_v62  ;;  %v4100_v0 = vmul.f32 %v4099_v20, %v10658_v26  ;;  %vm10773_vm8 = vmor %vm4002_vm7, %vm4003_vm0  ;;  %v3035_v58 = vmul.f32 %v10750_v15, %v10750_v15 }
 0x4ad   :  { %vm3028_vm9 = vcmp.eq.f32.partialorder %v3027_v10, 8.507059e+37  ;;  %v10779_v23 = vmin.f32 %v4174_v19, 16.0  ;;  %v4005_v7 = vsel %vm10773_vm8, %v10718_v21, %v4001_v1  ;;  %v4073_v31 = vmul.f32 %v4072_v16, %v10626_v62  ;;  %v10800_v10 = vld [vmem:[%s12399_s4 + $0x2] ss:$0 sm:$0xff]  ;;  %v1736_v19 = vpop.f32.mrf.mxu1 }
 0x4ae   :  { %v6543_v2 = vclamps-f32 %v2992_v60, 1.0  ;;  %v3031_v39 = vsel %vm3028_vm9, %v3030_v36, %v3026_v4  ;;  %v4139_v47 = vadd.f32 0.0036580483, %v4138_v28  ;;  %v4009_v29 = vor.u32 1.1754944e-38, %v4008_v52 }
 0x4af   :  { %v7035_v49 = vpop.eup %7034  ;;  %v1800_v11 = vmul.f32 0.5, %v10558_v48  ;;  %v3007_v22 = vmul.f32 %v3006_v59, %v10571_v17  ;;  %vm4007_vm10 = vcmp.eq.f32.partialorder %v4006_v18, 8.507059e+37  ;;  %v4112_v30 = vadd.f32 0.112945676, %v4111_v61  ;;  %v12529_v59 = vld [vmem:[#allocation9_spill] sm:$0xff] }
 0x4b0   :  { %v10787_v9 = vadd.f32 0.18741608, %v4062_v50  ;;  %v4010_v54 = vsel %vm4007_vm10, %v4009_v29, %v4005_v7  ;;  %v4038_v27 = vmul.f32 %v7035_v49, %v10743_v45  ;;  %v10790_v20 = vmin.f32 %v3035_v58, 16.0 }
 0x4b1   :  { %v3032_v21 = vmul.f32 %v3031_v39, %v3007_v22  ;;  %v4101_v38 = vadd.f32 0.05243302, %v4100_v0  ;;  %v4176_v44 = vmul.f32 2.1237322e-06, %v10779_v23  ;;  %v4074_v14 = vadd.f32 0.4994258, %v4073_v31 }
 0x4b2   :  { %v3143_v13 = vadd.f32 1.0, %v6543_v2  ;;  %v4140_v3 = vmul.f32 %v4139_v47, %v10700_v57  ;;  %v4039_v48 = vsub.f32 1.0, %v4038_v27  ;;  %v4046_v17 = vand.u32 2147483647, %v10743_v45 }
 0x4b3   :  { %v4011_v51 = vmul.f32 %v4010_v54, %v10683_v25  ;;  %v4048_v35 = vand.u32 2147483648, %v10743_v45  ;;  %v10803_v24 = vadd.f32 %v10800_v10, %v4864_v55  ;;  %v4113_v1 = vmul.f32 %v4112_v30, %v10658_v26 }
 0x4b4   :  { %v4040_v16 = vmul.f32 %v7035_v49, %v4039_v48  ;;  %vm4043_vm11 = vweird.f32 %v7035_v49  ;;  %v3048_v60 = vmul.f32 3.8918573e-05, %v10790_v20  ;;  %v10808_v33 = vadd.f32 %v1736_v19, %v12529_v59 }
 0x4b5   :  { %v6544_v25 = vclamps-f32 %v3032_v21, 1.0  ;;  %v4177_v28 = vadd.f32 0.00028619796, %v4176_v44  ;;  %v10811_v52 = vmul.f32 0.70710677, %v10803_v24  ;;  %v4075_v4 = vmul.f32 %v4074_v14, %v10626_v62 }
 0x4b6   :  { %v4041_v18 = vadd.f32 %v7035_v49, %v4040_v16  ;;  %vm4042_vm12 = vweird.f32 %v10743_v45  ;;  %vm4047_vm13 = vcmp.eq.f32.partialorder %v4046_v17, 8.507059e+37  ;;  %v10816_v61 = vmul.f32 0.70710677, %v10808_v33 }
 0x4b7   :  { %v6593_v36 = vclamps-f32 %v4011_v51, 1.0  ;;  %vm4044_vm14 = vmor %vm4042_vm12, %vm4043_vm11  ;;  %v4049_v50 = vor.u32 1.1754944e-38, %v4048_v35  ;;  %v3037_v0 = vmul.f32 2.1237322e-06, %v10790_v20  ;;  %v5233_v6 = vmul.f32 %v10811_v52, %v10811_v52 }
 0x4b8   :  { %v4045_v58 = vsel %vm4044_vm14, %v7035_v49, %v4041_v18  ;;  %v3049_v7 = vadd.f32 0.001143296, %v3048_v60  ;;  %v3075_v31 = vmul.f32 %v10816_v61, %v10816_v61  ;;  %v4114_v2 = vadd.f32 0.4994258, %v4113_v1  ;;  %v4866_v60 = vpop.f32.mrf.mxu3 }
 0x4b9   :  { %v3144_v39 = vadd.f32 1.0, %v6544_v25  ;;  %v4050_v45 = vsel %vm4047_vm13, %v4049_v50, %v4045_v58  ;;  %v10823_v47 = vmin.f32 %v5233_v6, 16.0  ;;  %v10825_v29 = vadd.f32 1.0, %v4075_v4 }
 0x4ba   :  { %v4102_v22 = vmul.f32 %v4101_v38, %v10658_v26  ;;  %v4141_v30 = vadd.f32 0.05243302, %v4140_v3  ;;  %v4051_v54 = vmul.f32 %v4050_v45, %v10705_v37  ;;  %v10829_v27 = vmin.f32 %v3075_v31, 16.0 }
 0x4bb   :  { %v4178_v49 = vmul.f32 %v4177_v28, %v10779_v23  ;;  %v4708_v21 = vadd.f32 1.0, %v6593_v36  ;;  %v3038_v44 = vadd.f32 0.00028619796, %v3037_v0  ;;  %v5246_v14 = vmul.f32 3.8918573e-05, %v10823_v47 }
 0x4bc   :  { %v3175_v48 = vmul.f32 %v3143_v13, %v10688_v5  ;;  %v6594_v17 = vclamps-f32 %v4051_v54, 1.0  ;;  %v3050_v55 = vmul.f32 %v3049_v7, %v10790_v20  ;;  %v4115_v51 = vmul.f32 %v4114_v2, %v10658_v26 }
 0x4bd   :  { %v3176_v35 = vmul.f32 %v3144_v39, %v1800_v11  ;;  %v5235_v38 = vmul.f32 2.1237322e-06, %v10823_v47  ;;  %v5247_v3 = vadd.f32 0.001143296, %v5246_v14  ;;  %7036 = vrcp.f32 %v10825_v29 }
 0x4be   :  { %v4103_v37 = vadd.f32 0.18741608, %v4102_v22  ;;  %v4142_v19 = vmul.f32 %v4141_v30, %v10700_v57  ;;  %v4709_v1 = vadd.f32 1.0, %v6594_v17  ;;  %v3088_v16 = vmul.f32 3.8918573e-05, %v10829_v27 }
 0x4bf   :  { %v4179_v59 = vadd.f32 0.0036580483, %v4178_v49  ;;  %v4740_v5 = vmul.f32 %v4708_v21, %v10671_v8  ;;  %v3039_v13 = vmul.f32 %v3038_v44, %v10790_v20  ;;  %v5248_v25 = vmul.f32 %v5247_v3, %v10823_v47 }
 0x4c0   :  { %v4741_v11 = vmul.f32 %v4709_v1, %v10674_v46  ;;  %v3051_v28 = vadd.f32 0.014752088, %v3050_v55  ;;  %v3089_v4 = vadd.f32 0.001143296, %v3088_v16  ;;  %v10844_v18 = vadd.f32 1.0, %v4115_v51 }
 0x4c1   :  { %v5236_v36 = vadd.f32 0.00028619796, %v5235_v38  ;;  %v5249_v50 = vadd.f32 0.014752088, %v5248_v25  ;;  %v10847_v0 = vadd.f32 %v10800_v10, %v4866_v60  ;;  %v3193_v6 = vpack.c.bf16 %v3176_v35, %v3175_v48 }
 0x4c2   :  { %v4143_v58 = vadd.f32 0.18741608, %v4142_v19  ;;  %v4765_v7 = vpack.c.bf16 %v4741_v11, %v4740_v5  ;;  %v3090_v8 = vmul.f32 %v3089_v4, %v10829_v27  ;;  %v4064_v2 = vmul.f32 %v10787_v9, %v10626_v62  ;;  %v4869_v4 = vpop.f32.mrf.mxu3 }
 0x4c3   :  { %v10850_v31 = vpop.eup %7036  ;;  %v4104_v46 = vmul.f32 %v4103_v37, %v10658_v26  ;;  %v3040_v39 = vadd.f32 0.0036580483, %v3039_v13  ;;  %3339 = vmatmul.bf16.gmra.mxu2 %v3193_v6  ;;  %v3052_v45 = vmul.f32 %v3051_v28, %v10790_v20  ;;  %v5250_v22 = vmul.f32 %v5249_v50, %v10823_v47 }
 0x4c4   :  { %4883 = vmatmul.bf16.gmra.mxu3 %v4765_v7  ;;  %v3091_v30 = vadd.f32 0.014752088, %v3090_v8  ;;  %7038 = vrcp.f32 %v10844_v18  ;;  %v4180_v54 = vmul.f32 %v4179_v59, %v10779_v23  ;;  %v5237_v49 = vmul.f32 %v5236_v36, %v10823_v47 }
 0x4c5   :  { %v10861_v21 = vmul.f32 0.70710677, %v10847_v0  ;;  %v4144_v62 = vmul.f32 %v4143_v58, %v10700_v57  ;;  %v5251_v26 = vadd.f32 0.112945676, %v5250_v22  ;;  %v4078_v9 = vmul.f32 %v10850_v31, %v10825_v29 }
 0x4c6   :  { %v4065_v44 = vadd.f32 1.1283791, %v4064_v2  ;;  %v4105_v14 = vadd.f32 1.1283791, %v4104_v46  ;;  %v3092_v48 = vmul.f32 %v3091_v30, %v10829_v27  ;;  %v3041_v55 = vmul.f32 %v3040_v39, %v10790_v20 }
 0x4c7   :  { %v5273_v17 = vmul.f32 %v10861_v21, %v10861_v21  ;;  %v3053_v51 = vadd.f32 0.112945676, %v3052_v45  ;;  %v5252_v35 = vmul.f32 %v5251_v26, %v10823_v47  ;;  %v3077_v38 = vmul.f32 2.1237322e-06, %v10829_v27 }
 0x4c8   :  { %v10873_v3 = vmul.f32 0.5, %v10594_v12  ;;  %v4181_v37 = vadd.f32 0.05243302, %v4180_v54  ;;  %v5238_v19 = vadd.f32 0.0036580483, %v5237_v49  ;;  %v10880_v60 = vmul.f32 0.5, %v10623_v32 }
 0x4c9   :  { %v10875_v1 = vmin.f32 %v5273_v17, 16.0  ;;  %v10882_v59 = vadd.f32 1.1283791, %v4144_v62  ;;  %v5253_v5 = vadd.f32 0.4994258, %v5252_v35  ;;  %v4079_v13 = vsub.f32 1.0, %v4078_v9 }
 0x4ca   :  { %v10877_v16 = vpop.eup %7038  ;;  %v10885_v25 = vmul.f32 %v4065_v44, %v10605_v34  ;;  %v3093_v11 = vadd.f32 0.112945676, %v3092_v48  ;;  %v3042_v36 = vadd.f32 0.05243302, %v3041_v55  ;;  %v3054_v50 = vmul.f32 %v3053_v51, %v10790_v20 }
 0x4cb   :  { %v5275_v12 = vmul.f32 2.1237322e-06, %v10875_v1  ;;  %v5286_v28 = vmul.f32 3.8918573e-05, %v10875_v1  ;;  %v5254_v6 = vmul.f32 %v5253_v5, %v10823_v47  ;;  %v3078_v32 = vadd.f32 0.00028619796, %v3077_v38 }
 0x4cc   :  { %v5239_v58 = vmul.f32 %v5238_v19, %v10823_v47  ;;  %v4118_v34 = vmul.f32 %v10877_v16, %v10844_v18  ;;  %v4182_v2 = vmul.f32 %v4181_v37, %v10779_v23  ;;  %v10898_v39 = vadd.f32 %v10800_v10, %v4869_v4  ;;  %v4871_v4 = vpop.f32.mrf.mxu3 }
 0x4cd   :  { %v5276_v7 = vadd.f32 0.00028619796, %v5275_v12  ;;  %v5287_v8 = vadd.f32 0.001143296, %v5286_v28  ;;  %v10895_v46 = vadd.f32 1.0, %v5254_v6  ;;  %v3094_v22 = vmul.f32 %v3093_v11, %v10829_v27 }
 0x4ce   :  { %v4086_v45 = vand.u32 2147483647, %v10825_v29  ;;  %v4080_v49 = vmul.f32 %v10850_v31, %v4079_v13  ;;  %v3043_v62 = vmul.f32 %v3042_v36, %v10790_v20  ;;  %v3055_v26 = vadd.f32 0.4994258, %v3054_v50 }
 0x4cf   :  { %v5277_v30 = vmul.f32 %v5276_v7, %v10875_v1  ;;  %v5288_v54 = vmul.f32 %v5287_v8, %v10875_v1  ;;  %7040 = vrcp.f32 %v10895_v46  ;;  %v3079_v9 = vmul.f32 %v3078_v32, %v10829_v27 }
 0x4d0   :  { %v5240_v44 = vadd.f32 0.05243302, %v5239_v58  ;;  %v4088_v48 = vand.u32 2147483648, %v10825_v29  ;;  %v4119_v17 = vsub.f32 1.0, %v4118_v34  ;;  %v4147_v55 = vmul.f32 3.8918573e-05, %v10700_v57 }
 0x4d1   :  { %v10911_v51 = vmul.f32 %v4105_v14, %v10630_v42  ;;  %v5278_v35 = vadd.f32 0.0036580483, %v5277_v30  ;;  %v5289_v38 = vadd.f32 0.014752088, %v5288_v54  ;;  %v10914_v37 = vmul.f32 0.70710677, %v10898_v39 }
 0x4d2   :  { %v10916_v19 = vadd.f32 0.18741608, %v4182_v2  ;;  %v3095_v5 = vadd.f32 0.4994258, %v3094_v22  ;;  %v4081_v13 = vadd.f32 %v10850_v31, %v4080_v49  ;;  %vm4083_vm15 = vweird.f32 %v10850_v31 }
 0x4d3   :  { %v3044_v11 = vadd.f32 0.18741608, %v3043_v62  ;;  %v3056_v12 = vmul.f32 %v3055_v26, %v10790_v20  ;;  %v3080_v28 = vadd.f32 0.0036580483, %v3079_v9  ;;  %vm4082_vm1 = vweird.f32 %v10825_v29 }
 0x4d4   :  { %v5290_v42 = vmul.f32 %v5289_v38, %v10875_v1  ;;  %v5313_v14 = vmul.f32 %v10914_v37, %v10914_v37  ;;  %vm10925_vm2 = vcmp.eq.f32.partialorder %v4086_v45, 8.507059e+37  ;;  %v4089_v36 = vor.u32 1.1754944e-38, %v4088_v48  ;;  %vm10933_vm3 = vmor %vm4082_vm1, %vm4083_vm15 }
 0x4d5   :  { %v10929_v50 = vpop.eup %7040  ;;  %v5241_v6 = vmul.f32 %v5240_v44, %v10823_v47  ;;  %v5279_v32 = vmul.f32 %v5278_v35, %v10875_v1  ;;  %v4120_v29 = vmul.f32 %v10877_v16, %v4119_v17  ;;  %v4148_v7 = vadd.f32 0.001143296, %v4147_v55 }
 0x4d6   :  { %v5257_v8 = vmul.f32 %v10929_v50, %v10895_v46  ;;  %v3096_v34 = vmul.f32 %v3095_v5, %v10829_v27  ;;  %v5291_v2 = vadd.f32 0.112945676, %v5290_v42  ;;  %v4085_v45 = vsel %vm10933_vm3, %v10850_v31, %v4081_v13 }
 0x4d7   :  { %v3045_v22 = vmul.f32 %v3044_v11, %v10790_v20  ;;  %v10945_v30 = vadd.f32 1.0, %v3056_v12  ;;  %v3081_v54 = vmul.f32 %v3080_v28, %v10829_v27  ;;  %v10948_v49 = vmin.f32 %v5313_v14, 16.0 }
 0x4d8   :  { %v5258_v62 = vsub.f32 1.0, %v5257_v8  ;;  %v5292_v26 = vmul.f32 %v5291_v2, %v10875_v1  ;;  %v4121_v9 = vadd.f32 %v10877_v16, %v4120_v29  ;;  %vm4123_vm4 = vweird.f32 %v10877_v16 }
 0x4d9   :  { %v5242_v44 = vadd.f32 0.18741608, %v5241_v6  ;;  %v5280_v48 = vadd.f32 0.05243302, %v5279_v32  ;;  %v4090_v31 = vsel %vm10925_vm2, %v4089_v36, %v4085_v45  ;;  %v4126_v20 = vand.u32 2147483647, %v10844_v18 }
 0x4da   :  { %v10956_v17 = vadd.f32 1.0, %v3096_v34  ;;  %v5293_v55 = vadd.f32 0.4994258, %v5292_v26  ;;  %v5326_v35 = vmul.f32 3.8918573e-05, %v10948_v49  ;;  %vm4122_vm5 = vweird.f32 %v10844_v18 }
 0x4db   :  { %v3046_v38 = vadd.f32 1.1283791, %v3045_v22  ;;  %7042 = vrcp.f32 %v10945_v30  ;;  %v5259_v5 = vmul.f32 %v10929_v50, %v5258_v62  ;;  %vm10962_vm0 = vmor %vm4122_vm5, %vm4123_vm4  ;;  %v4128_v11 = vand.u32 2147483648, %v10844_v18 }
 0x4dc   :  { %v5294_v12 = vmul.f32 %v5293_v55, %v10875_v1  ;;  %v5327_v28 = vadd.f32 0.001143296, %v5326_v35  ;;  %v4091_v42 = vmul.f32 %v4090_v31, %v10885_v25  ;;  %v4125_v14 = vsel %vm10962_vm0, %v10877_v16, %v4121_v9 }
 0x4dd   :  { %v5243_v36 = vmul.f32 %v5242_v44, %v10823_v47  ;;  %v3082_v6 = vadd.f32 0.05243302, %v3081_v54  ;;  %v5281_v32 = vmul.f32 %v5280_v48, %v10875_v1  ;;  %v4129_v58 = vor.u32 1.1754944e-38, %v4128_v11  ;;  %v4874_v11 = vpop.f32.mrf.mxu3 }
 0x4de   :  { %7044 = vrcp.f32 %v10956_v17  ;;  %v10975_v29 = vadd.f32 1.0, %v5294_v12  ;;  %v5328_v18 = vmul.f32 %v5327_v28, %v10948_v49  ;;  %vm4127_vm6 = vcmp.eq.f32.partialorder %v4126_v20, 8.507059e+37 }
 0x4df   :  { %v5260_v25 = vadd.f32 %v10929_v50, %v5259_v5  ;;  %vm5262_vm7 = vweird.f32 %v10929_v50  ;;  %v5315_v16 = vmul.f32 2.1237322e-06, %v10948_v49  ;;  %v4130_v8 = vsel %vm4127_vm6, %v4129_v58, %v4125_v14 }
 0x4e0   :  { %v10982_v47 = vmul.f32 0.5, %v10803_v24  ;;  %v5267_v34 = vand.u32 2147483648, %v10895_v46  ;;  %7046 = vrcp.f32 %v10975_v29  ;;  %v6595_v2 = vclamps-f32 %v4091_v42, 1.0 }
 0x4e1   :  { %v10986_v45 = vpop.eup %7042  ;;  %vm5261_vm8 = vweird.f32 %v10895_v46  ;;  %v5265_v22 = vand.u32 2147483647, %v10895_v46  ;;  %v5282_v54 = vadd.f32 0.18741608, %v5281_v32  ;;  %v4149_v62 = vmul.f32 %v4148_v7, %v10700_v57 }
 0x4e2   :  { %v5244_v26 = vadd.f32 1.1283791, %v5243_v36  ;;  %vm10991_vm9 = vmor %vm5261_vm8, %vm5262_vm7  ;;  %v10996_v24 = vmul.f32 0.5, %v10847_v0  ;;  %v5329_v44 = vadd.f32 0.014752088, %v5328_v18  ;;  %v4131_v48 = vmul.f32 %v4130_v8, %v10911_v51 }
 0x4e3   :  { %v11000_v31 = vmul.f32 %v3046_v38, %v10750_v15  ;;  %v5264_v46 = vsel %vm10991_vm9, %v10929_v50, %v5260_v25  ;;  %v11006_v7 = vmul.f32 %v3082_v6, %v10829_v27  ;;  %v5316_v20 = vadd.f32 0.00028619796, %v5315_v16 }
 0x4e4   :  { %v11008_v55 = vpop.eup %7044  ;;  %v5268_v35 = vor.u32 1.1754944e-38, %v5267_v34  ;;  %v5330_v0 = vmul.f32 %v5329_v44, %v10948_v49  ;;  %v6596_v5 = vclamps-f32 %v4131_v48, 1.0  ;;  %v4710_v13 = vadd.f32 1.0, %v6595_v2 }
 0x4e5   :  { %v3059_v15 = vmul.f32 %v10986_v45, %v10945_v30  ;;  %vm5266_vm10 = vcmp.eq.f32.partialorder %v5265_v22, 8.507059e+37  ;;  %v5283_v51 = vmul.f32 %v5282_v54, %v10875_v1  ;;  %v11015_v50 = vadd.f32 %v10800_v10, %v4871_v4 }
 0x4e6   :  { %v7047_v38 = vpop.eup %7046  ;;  %v5245_v12 = vmul.f32 %v5244_v26, %v10811_v52  ;;  %v5269_v28 = vsel %vm5266_vm10, %v5268_v35, %v5264_v46  ;;  %v5331_v42 = vadd.f32 0.112945676, %v5330_v0  ;;  %v4711_v14 = vadd.f32 1.0, %v6596_v5 }
 0x4e7   :  { %v3099_v36 = vmul.f32 %v11008_v55, %v10956_v17  ;;  %v5297_v6 = vmul.f32 %v7047_v38, %v10975_v29  ;;  %v5317_v32 = vmul.f32 %v5316_v20, %v10948_v49  ;;  %v11023_v58 = vadd.f32 %v10800_v10, %v4874_v11 }
 0x4e8   :  { %v5332_v1 = vmul.f32 %v5331_v42, %v10948_v49  ;;  %v4742_v4 = vmul.f32 %v4710_v13, %v10873_v3  ;;  %v4743_v18 = vmul.f32 %v4711_v14, %v10880_v60  ;;  %v11029_v52 = vmul.f32 0.70710677, %v11015_v50 }
 0x4e9   :  { %v3060_v25 = vsub.f32 1.0, %v3059_v15  ;;  %v5270_v16 = vmul.f32 %v5269_v28, %v5245_v12  ;;  %v5284_v8 = vadd.f32 1.1283791, %v5283_v51  ;;  %v5298_v34 = vsub.f32 1.0, %v5297_v6 }
 0x4ea   :  { %v5307_v2 = vand.u32 2147483648, %v10975_v29  ;;  %v5333_v22 = vadd.f32 0.4994258, %v5332_v1  ;;  %v4766_v54 = vpack.c.bf16 %v4743_v18, %v4742_v4  ;;  %v5353_v26 = vmul.f32 %v11029_v52, %v11029_v52 }
 0x4eb   :  { %v5299_v9 = vmul.f32 %v7047_v38, %v5298_v34  ;;  %vm5302_vm11 = vweird.f32 %v7047_v38  ;;  %v5305_v3 = vand.u32 2147483647, %v10975_v29  ;;  %v11036_v60 = vmul.f32 0.70710677, %v11023_v58 }
 0x4ec   :  { %v3100_v44 = vsub.f32 1.0, %v3099_v36  ;;  %v5318_v48 = vadd.f32 0.0036580483, %v5317_v32  ;;  %v5334_v46 = vmul.f32 %v5333_v22, %v10948_v49  ;;  %4888 = vmatmul.bf16.gmra.mxu3 %v4766_v54  ;;  %v11039_v20 = vmin.f32 %v5353_v26, 16.0 }
 0x4ed   :  { %v5300_v35 = vadd.f32 %v7047_v38, %v5299_v9  ;;  %vm5301_vm12 = vweird.f32 %v10975_v29  ;;  %v5393_v0 = vmul.f32 %v11036_v60, %v11036_v60  ;;  %v4150_v5 = vadd.f32 0.014752088, %v4149_v62 }
 0x4ee   :  { %vm5303_vm13 = vmor %vm5301_vm12, %vm5302_vm11  ;;  %v5308_v13 = vor.u32 1.1754944e-38, %v5307_v2  ;;  %v11044_v11 = vadd.f32 1.0, %v5334_v46  ;;  %v5355_v15 = vmul.f32 2.1237322e-06, %v11039_v20  ;;  %v5366_v51 = vmul.f32 3.8918573e-05, %v11039_v20 }
 0x4ef   :  { %v6649_v12 = vclamps-f32 %v5270_v16, 1.0  ;;  %v5285_v28 = vmul.f32 %v5284_v8, %v10861_v21  ;;  %v5304_v42 = vsel %vm5303_vm13, %v7047_v38, %v5300_v35  ;;  %vm5306_vm14 = vcmp.eq.f32.partialorder %v5305_v3, 8.507059e+37 }
 0x4f0   :  { %v5309_v14 = vsel %vm5306_vm14, %v5308_v13, %v5304_v42  ;;  %7048 = vrcp.f32 %v11044_v11  ;;  %v11050_v29 = vmin.f32 %v5393_v0, 16.0  ;;  %v4187_v62 = vmul.f32 3.8918573e-05, %v10779_v23 }
 0x4f1   :  { %v5310_v36 = vmul.f32 %v5309_v14, %v5285_v28  ;;  %v5319_v6 = vmul.f32 %v5318_v48, %v10948_v49  ;;  %v5356_v32 = vadd.f32 0.00028619796, %v5355_v15  ;;  %v5367_v1 = vadd.f32 0.001143296, %v5366_v51 }
 0x4f2   :  { %v3061_v4 = vmul.f32 %v10986_v45, %v3060_v25  ;;  %v3067_v18 = vand.u32 2147483647, %v10945_v30  ;;  %v3069_v21 = vand.u32 2147483648, %v10945_v30  ;;  %v4151_v38 = vmul.f32 %v4150_v5, %v10700_v57 }
 0x4f3   :  { %v6279_v16 = vadd.f32 1.0, %v6649_v12  ;;  %v6650_v8 = vclamps-f32 %v5310_v36, 1.0  ;;  %v5357_v34 = vmul.f32 %v5356_v32, %v11039_v20  ;;  %v5368_v2 = vmul.f32 %v5367_v1, %v11039_v20 }
 0x4f4   :  { %vm3063_vm15 = vweird.f32 %v10945_v30  ;;  %v3084_v22 = vadd.f32 0.18741608, %v11006_v7  ;;  %v5406_v54 = vmul.f32 3.8918573e-05, %v11050_v29  ;;  %v4188_v26 = vadd.f32 0.001143296, %v4187_v62 }
 0x4f5   :  { %v3101_v25 = vmul.f32 %v11008_v55, %v3100_v44  ;;  %v6280_v9 = vadd.f32 1.0, %v6650_v8  ;;  %v5320_v3 = vadd.f32 0.05243302, %v5319_v6  ;;  %v5369_v48 = vadd.f32 0.014752088, %v5368_v2 }
 0x4f6   :  { %v11064_v46 = vpop.eup %7048  ;;  %vm3064_vm1 = vweird.f32 %v10986_v45  ;;  %v5358_v35 = vadd.f32 0.0036580483, %v5357_v34  ;;  %v5407_v0 = vadd.f32 0.001143296, %v5406_v54  ;;  %v4152_v5 = vadd.f32 0.112945676, %v4151_v38 }
 0x4f7   :  { %v3062_v13 = vadd.f32 %v10986_v45, %v3061_v4  ;;  %v6311_v15 = vmul.f32 %v6279_v16, %v10982_v47  ;;  %v6312_v7 = vmul.f32 %v6280_v9, %v10996_v24  ;;  %v5337_v51 = vmul.f32 %v11064_v46, %v11044_v11  ;;  %vm11084_vm3 = vmor %vm3063_vm15, %vm3064_vm1 }
 0x4f8   :  { %vm3104_vm2 = vweird.f32 %v11008_v55  ;;  %v5370_v44 = vmul.f32 %v5369_v48, %v11039_v20  ;;  %v5408_v12 = vmul.f32 %v5407_v0, %v11050_v29  ;;  %v4189_v28 = vmul.f32 %v4188_v26, %v10779_v23 }
 0x4f9   :  { %v3102_v42 = vadd.f32 %v11008_v55, %v3101_v25  ;;  %v6721_v14 = vpack.c.bf16 %v6312_v7, %v6311_v15  ;;  %v5321_v62 = vmul.f32 %v5320_v3, %v10948_v49  ;;  %v4153_v47 = vmul.f32 %v4152_v5, %v10700_v57 }
 0x4fa   :  { %v5338_v36 = vsub.f32 1.0, %v5337_v51  ;;  %v5359_v24 = vmul.f32 %v5358_v35, %v11039_v20  ;;  %v5371_v6 = vadd.f32 0.112945676, %v5370_v44  ;;  %v5409_v32 = vadd.f32 0.014752088, %v5408_v12  ;;  %v3320_v51 = vpop.f32.mrf.mxu2 }
 0x4fb   :  { %v3085_v4 = vmul.f32 %v3084_v22, %v10829_v27  ;;  %vm3103_vm4 = vweird.f32 %v10956_v17  ;;  %v3109_v38 = vand.u32 2147483648, %v10956_v17  ;;  %6785 = vst [vmem:[#allocation2 + $0x18] sm:$0xff] %v6721_v14   ;;  %v4154_v16 = vadd.f32 0.4994258, %v4153_v47 }
 0x4fc   :  { %v3070_v8 = vor.u32 1.1754944e-38, %v3069_v21  ;;  %vm11093_vm5 = vmor %vm3103_vm4, %vm3104_vm2  ;;  %v3107_v30 = vand.u32 2147483647, %v10956_v17  ;;  %v5372_v2 = vmul.f32 %v5371_v6, %v11039_v20  ;;  %v4190_v54 = vadd.f32 0.014752088, %v4189_v28 }
 0x4fd   :  { %v3066_v27 = vsel %vm11084_vm3, %v10986_v45, %v3062_v13  ;;  %v3106_v22 = vsel %vm11093_vm5, %v11008_v55, %v3102_v42  ;;  %v5322_v21 = vadd.f32 0.18741608, %v5321_v62  ;;  %v4155_v26 = vmul.f32 %v4154_v16, %v10700_v57 }
 0x4fe   :  { %v5339_v25 = vmul.f32 %v11064_v46, %v5338_v36  ;;  %v5360_v9 = vadd.f32 0.05243302, %v5359_v24  ;;  %v5373_v3 = vadd.f32 0.4994258, %v5372_v2  ;;  %v5410_v17 = vmul.f32 %v5409_v32, %v11050_v29 }
 0x4ff   :  { %vm3068_vm0 = vcmp.eq.f32.partialorder %v3067_v18, 8.507059e+37  ;;  %v3086_v48 = vadd.f32 1.1283791, %v3085_v4  ;;  %v3110_v35 = vor.u32 1.1754944e-38, %v3109_v38  ;;  %v11108_v0 = vadd.f32 1.0, %v4155_v26 }
 0x500   :  { %v3071_v5 = vsel %vm3068_vm0, %v3070_v8, %v3066_v27  ;;  %vm3108_vm6 = vcmp.eq.f32.partialorder %v3107_v30, 8.507059e+37  ;;  %v5374_v45 = vmul.f32 %v5373_v3, %v11039_v20  ;;  %v4191_v55 = vmul.f32 %v4190_v54, %v10779_v23  ;;  %v4876_v3 = vpop.f32.mrf.mxu3 }
 0x501   :  { %v3111_v13 = vsel %vm3108_vm6, %v3110_v35, %v3106_v22  ;;  %v5323_v57 = vmul.f32 %v5322_v21, %v10948_v49  ;;  %vm5342_vm7 = vweird.f32 %v11064_v46  ;;  %7050 = vrcp.f32 %v11108_v0 }
 0x502   :  { %v5340_v15 = vadd.f32 %v11064_v46, %v5339_v25  ;;  %v5361_v18 = vmul.f32 %v5360_v9, %v11039_v20  ;;  %v11117_v7 = vadd.f32 1.0, %v5374_v45  ;;  %v5411_v44 = vadd.f32 0.112945676, %v5410_v17 }
 0x503   :  { %v3072_v12 = vmul.f32 %v3071_v5, %v11000_v31  ;;  %v3087_v28 = vmul.f32 %v3086_v48, %v10816_v61  ;;  %vm5341_vm8 = vweird.f32 %v11044_v11  ;;  %v5347_v49 = vand.u32 2147483648, %v11044_v11 }
 0x504   :  { %v5345_v42 = vand.u32 2147483647, %v11044_v11  ;;  %7052 = vrcp.f32 %v11117_v7  ;;  %v5395_v14 = vmul.f32 2.1237322e-06, %v11050_v29  ;;  %v4192_v62 = vadd.f32 0.112945676, %v4191_v55  ;;  %vm11128_vm9 = vmor %vm5341_vm8, %vm5342_vm7 }
 0x505   :  { %v3112_v47 = vmul.f32 %v3111_v13, %v3087_v28  ;;  %v5324_v36 = vadd.f32 1.1283791, %v5323_v57  ;;  %v11133_v61 = vadd.f32 %v10653_v43, %v3320_v51  ;;  %v11137_v31 = vmul.f32 %v10882_v59, %v10662_v40 }
 0x506   :  { %v5344_v11 = vsel %vm11128_vm9, %v11064_v46, %v5340_v15  ;;  %v5362_v6 = vadd.f32 0.18741608, %v5361_v18  ;;  %v5412_v32 = vmul.f32 %v5411_v44, %v11050_v29  ;;  %v4184_v4 = vmul.f32 %v10916_v19, %v10779_v23 }
 0x507   :  { %v11143_v1 = vpop.eup %7050  ;;  %v1801_v38 = vmul.f32 0.5, %v10735_v56  ;;  %v6545_v43 = vclamps-f32 %v3072_v12, 1.0  ;;  %v5348_v16 = vor.u32 1.1754944e-38, %v5347_v49  ;;  %vm5346_vm10 = vcmp.eq.f32.partialorder %v5345_v42, 8.507059e+37  ;;  %v3322_v12 = vpop.f32.mrf.mxu2 }
 0x508   :  { %v5396_v8 = vadd.f32 0.00028619796, %v5395_v14  ;;  %v4158_v40 = vmul.f32 %v11143_v1, %v11108_v0  ;;  %v4193_v59 = vmul.f32 %v4192_v62, %v10779_v23  ;;  %v6546_v46 = vclamps-f32 %v3112_v47, 1.0 }
 0x509   :  { %v5325_v34 = vmul.f32 %v5324_v36, %v10914_v37  ;;  %v5349_v30 = vsel %vm5346_vm10, %v5348_v16, %v5344_v11  ;;  %v11153_v2 = vmul.f32 0.70710677, %v11133_v61  ;;  %v5363_v19 = vmul.f32 %v5362_v6, %v11039_v20 }
 0x50a   :  { %v7053_v54 = vpop.eup %7052  ;;  %v5413_v56 = vadd.f32 0.4994258, %v5412_v32  ;;  %v4159_v27 = vsub.f32 1.0, %v4158_v40  ;;  %v4194_v22 = vadd.f32 0.4994258, %v4193_v59  ;;  %v3145_v26 = vadd.f32 1.0, %v6545_v43 }
 0x50b   :  { %v11156_v21 = vadd.f32 1.1283791, %v4184_v4  ;;  %v1802_v25 = vmul.f32 0.5, %v10808_v33  ;;  %v5377_v9 = vmul.f32 %v7053_v54, %v11117_v7  ;;  %v5350_v17 = vmul.f32 %v5349_v30, %v5325_v34 }
 0x50c   :  { %v5397_v37 = vmul.f32 %v5396_v8, %v11050_v29  ;;  %v4195_v48 = vmul.f32 %v4194_v22, %v10779_v23  ;;  %v11163_v35 = vadd.f32 %v10800_v10, %v4876_v3  ;;  %v3146_v20 = vadd.f32 1.0, %v6546_v46 }
 0x50d   :  { %v5378_v5 = vsub.f32 1.0, %v5377_v9  ;;  %v4214_v45 = vmul.f32 %v11153_v2, %v11153_v2  ;;  %v4160_v55 = vmul.f32 %v11143_v1, %v4159_v27  ;;  %v5364_v13 = vadd.f32 1.1283791, %v5363_v19 }
 0x50e   :  { %v5387_v33 = vand.u32 2147483648, %v11117_v7  ;;  %v5414_v57 = vmul.f32 %v5413_v56, %v11050_v29  ;;  %v11170_v15 = vadd.f32 1.0, %v4195_v48  ;;  %vm5382_vm11 = vweird.f32 %v7053_v54 }
 0x50f   :  { %v5379_v18 = vmul.f32 %v7053_v54, %v5378_v5  ;;  %v5385_v23 = vand.u32 2147483647, %v11117_v7  ;;  %v11174_v10 = vmul.f32 0.70710677, %v11163_v35  ;;  %v6651_v51 = vclamps-f32 %v5350_v17, 1.0  ;;  %v3325_v17 = vpop.f32.mrf.mxu2 }
 0x510   :  { %v5398_v44 = vadd.f32 0.0036580483, %v5397_v37  ;;  %vm4162_vm12 = vweird.f32 %v11108_v0  ;;  %7054 = vrcp.f32 %v11170_v15  ;;  %vm5381_vm13 = vweird.f32 %v11117_v7 }
 0x511   :  { %v5380_v28 = vadd.f32 %v7053_v54, %v5379_v18  ;;  %v4161_v49 = vadd.f32 %v11143_v1, %v4160_v55  ;;  %vm4163_vm14 = vweird.f32 %v11143_v1  ;;  %v5365_v42 = vmul.f32 %v5364_v13, %v11029_v52  ;;  %vm5383_vm15 = vmor %vm5381_vm13, %vm5382_vm11 }
 0x512   :  { %v5388_v14 = vor.u32 1.1754944e-38, %v5387_v33  ;;  %v11182_v62 = vadd.f32 1.0, %v5414_v57  ;;  %v4168_v47 = vand.u32 2147483648, %v11108_v0  ;;  %vm5386_vm1 = vcmp.eq.f32.partialorder %v5385_v23, 8.507059e+37  ;;  %vm11191_vm2 = vmor %vm4162_vm12, %vm4163_vm14 }
 0x513   :  { %v5384_v36 = vsel %vm5383_vm15, %v7053_v54, %v5380_v28  ;;  %v4166_v24 = vand.u32 2147483647, %v11108_v0  ;;  %v5433_v11 = vmul.f32 %v11174_v10, %v11174_v10  ;;  %v3177_v7 = vmul.f32 %v3145_v26, %v1801_v38 }
 0x514   :  { %v4937_v6 = vmul.f32 0.5, %v10898_v39  ;;  %v6281_v32 = vadd.f32 1.0, %v6651_v51  ;;  %v5389_v4 = vsel %vm5386_vm1, %v5388_v14, %v5384_v36  ;;  %v11195_v16 = vmin.f32 %v4214_v45, 16.0 }
 0x515   :  { %v5390_v43 = vmul.f32 %v5389_v4, %v5365_v42  ;;  %v4165_v8 = vsel %vm11191_vm2, %v11143_v1, %v4161_v49  ;;  %v11200_v40 = vmin.f32 %v5433_v11, 16.0  ;;  %v3178_v59 = vmul.f32 %v3146_v20, %v1802_v25 }
 0x516   :  { %v7055_v38 = vpop.eup %7054  ;;  %v4938_v39 = vmul.f32 0.5, %v11015_v50  ;;  %7056 = vrcp.f32 %v11182_v62  ;;  %v4169_v0 = vor.u32 1.1754944e-38, %v4168_v47  ;;  %v5399_v34 = vmul.f32 %v5398_v44, %v11050_v29  ;;  %v11222_v44 = vld [vmem:[%s12399_s4 + $0x1] ss:$0 sm:$0xff] }
 0x517   :  { %v6652_v46 = vclamps-f32 %v5390_v43, 1.0  ;;  %vm4167_vm3 = vcmp.eq.f32.partialorder %v4166_v24, 8.507059e+37  ;;  %v4198_v30 = vmul.f32 %v7055_v38, %v11170_v15  ;;  %v6313_v54 = vmul.f32 %v6281_v32, %v4937_v6  ;;  %v3327_v6 = vpop.f32.mrf.mxu2 }
 0x518   :  { %v4170_v19 = vsel %vm4167_vm3, %v4169_v0, %v4165_v8  ;;  %v5435_v56 = vmul.f32 2.1237322e-06, %v11200_v40  ;;  %v5446_v1 = vmul.f32 3.8918573e-05, %v11200_v40  ;;  %v4206_v26 = vand.u32 2147483647, %v11170_v15 }
 0x519   :  { %v6282_v27 = vadd.f32 1.0, %v6652_v46  ;;  %v4199_v22 = vsub.f32 1.0, %v4198_v30  ;;  %v4227_v50 = vmul.f32 3.8918573e-05, %v11195_v16  ;;  %v4208_v25 = vand.u32 2147483648, %v11170_v15 }
 0x51a   :  { %v5436_v9 = vadd.f32 0.00028619796, %v5435_v56  ;;  %v5447_v3 = vadd.f32 0.001143296, %v5446_v1  ;;  %v3194_v37 = vpack.c.bf16 %v3178_v59, %v3177_v7  ;;  %v4171_v20 = vmul.f32 %v4170_v19, %v11137_v31 }
 0x51b   :  { %v6314_v48 = vmul.f32 %v6282_v27, %v4938_v39  ;;  %v4200_v5 = vmul.f32 %v7055_v38, %v4199_v22  ;;  %vm4203_vm4 = vweird.f32 %v7055_v38  ;;  %v4186_v55 = vmul.f32 %v11156_v21, %v10731_v63 }
 0x51c   :  { %v11212_v45 = vpop.eup %7056  ;;  %v5400_v13 = vadd.f32 0.05243302, %v5399_v34  ;;  %v5437_v33 = vmul.f32 %v5436_v9, %v11200_v40  ;;  %v5448_v57 = vmul.f32 %v5447_v3, %v11200_v40  ;;  %3344 = vmatmul.bf16.gmra.mxu2 %v3194_v37  ;;  %vm4202_vm5 = vweird.f32 %v11170_v15 }
 0x51d   :  { %v6726_v18 = vpack.c.bf16 %v6314_v48, %v6313_v54  ;;  %v4201_v23 = vadd.f32 %v7055_v38, %v4200_v5  ;;  %v4228_v51 = vadd.f32 0.001143296, %v4227_v50  ;;  %vm4204_vm0 = vmor %vm4202_vm5, %vm4203_vm4  ;;  %v4209_v31 = vor.u32 1.1754944e-38, %v4208_v25 }
 0x51e   :  { %v11225_v63 = vadd.f32 %v11222_v44, %v3322_v12  ;;  %v5438_v21 = vadd.f32 0.0036580483, %v5437_v33  ;;  %v5449_v28 = vadd.f32 0.014752088, %v5448_v57  ;;  %v5417_v49 = vmul.f32 %v11212_v45, %v11182_v62 }
 0x51f   :  { %6786 = vst [vmem:[#allocation2 + $0x20] sm:$0xff] %v6726_v18   ;;  %v6597_v42 = vclamps-f32 %v4171_v20, 1.0  ;;  %v4205_v14 = vsel %vm4204_vm0, %v7055_v38, %v4201_v23  ;;  %vm4207_vm6 = vcmp.eq.f32.partialorder %v4206_v26, 8.507059e+37  ;;  %v4229_v11 = vmul.f32 %v4228_v51, %v11195_v16  ;;  %v3330_v48 = vpop.f32.mrf.mxu2 }
 0x520   :  { %v4210_v15 = vsel %vm4207_vm6, %v4209_v31, %v4205_v14  ;;  %v5450_v47 = vmul.f32 %v5449_v28, %v11200_v40  ;;  %v5439_v24 = vmul.f32 %v5438_v21, %v11200_v40  ;;  %v5401_v12 = vmul.f32 %v5400_v13, %v11050_v29 }
 0x521   :  { %v4211_v36 = vmul.f32 %v4210_v15, %v4186_v55  ;;  %v5418_v32 = vsub.f32 1.0, %v5417_v49  ;;  %v4712_v52 = vadd.f32 1.0, %v6597_v42  ;;  %v11234_v43 = vmul.f32 0.70710677, %v11225_v63 }
 0x522   :  { %v5451_v7 = vadd.f32 0.112945676, %v5450_v47  ;;  %v3368_v8 = vmul.f32 0.5, %v10656_v53  ;;  %v11239_v59 = vadd.f32 %v11222_v44, %v3325_v17  ;;  %v3369_v39 = vmul.f32 0.5, %v10715_v41 }
 0x523   :  { %v6598_v4 = vclamps-f32 %v4211_v36, 1.0  ;;  %v5440_v46 = vadd.f32 0.05243302, %v5439_v24  ;;  %v4230_v34 = vadd.f32 0.014752088, %v4229_v11  ;;  %v5419_v56 = vmul.f32 %v11212_v45, %v5418_v32 }
 0x524   :  { %v5452_v38 = vmul.f32 %v5451_v7, %v11200_v40  ;;  %v4216_v30 = vmul.f32 2.1237322e-06, %v11195_v16  ;;  %v5402_v54 = vadd.f32 0.18741608, %v5401_v12  ;;  %v4744_v1 = vmul.f32 %v4712_v52, %v3368_v8 }
 0x525   :  { %v4713_v0 = vadd.f32 1.0, %v6598_v4  ;;  %v4254_v53 = vmul.f32 %v11234_v43, %v11234_v43  ;;  %v11248_v26 = vmul.f32 0.70710677, %v11239_v59  ;;  %v11251_v41 = vadd.f32 %v11222_v44, %v3327_v6 }
 0x526   :  { %v5453_v19 = vadd.f32 0.4994258, %v5452_v38  ;;  %v5441_v25 = vmul.f32 %v5440_v46, %v11200_v40  ;;  %v4231_v9 = vmul.f32 %v4230_v34, %v11195_v16  ;;  %v4217_v3 = vadd.f32 0.00028619796, %v4216_v30 }
 0x527   :  { %v4745_v27 = vmul.f32 %v4713_v0, %v3369_v39  ;;  %v5403_v17 = vmul.f32 %v5402_v54, %v11050_v29  ;;  %v5420_v20 = vadd.f32 %v11212_v45, %v5419_v56  ;;  %vm5422_vm7 = vweird.f32 %v11212_v45  ;;  %v3332_v32 = vpop.f32.mrf.mxu2 }
 0x528   :  { %v5454_v22 = vmul.f32 %v5453_v19, %v11200_v40  ;;  %v11260_v5 = vmin.f32 %v4254_v53, 16.0  ;;  %v11263_v55 = vadd.f32 %v11222_v44, %v3330_v48  ;;  %v5427_v13 = vand.u32 2147483648, %v11182_v62 }
 0x529   :  { %v4767_v50 = vpack.c.bf16 %v4745_v27, %v4744_v1  ;;  %v4294_v29 = vmul.f32 %v11248_v26, %v11248_v26  ;;  %v11270_v33 = vmul.f32 0.70710677, %v11251_v41  ;;  %vm5421_vm8 = vweird.f32 %v11182_v62 }
 0x52a   :  { %v11256_v37 = vadd.f32 1.0, %v5454_v22  ;;  %v5425_v57 = vand.u32 2147483647, %v11182_v62  ;;  %v5442_v18 = vadd.f32 0.18741608, %v5441_v25  ;;  %v4218_v51 = vmul.f32 %v4217_v3, %v11195_v16  ;;  %vm11275_vm9 = vmor %vm5421_vm8, %vm5422_vm7 }
 0x52b   :  { %4893 = vmatmul.bf16.gmra.mxu3 %v4767_v50  ;;  %v4232_v23 = vadd.f32 0.112945676, %v4231_v9  ;;  %v11280_v21 = vmul.f32 0.70710677, %v11263_v55  ;;  %v5404_v28 = vadd.f32 1.1283791, %v5403_v17  ;;  %v5424_v49 = vsel %vm11275_vm9, %v11212_v45, %v5420_v20 }
 0x52c   :  { %7058 = vrcp.f32 %v11256_v37  ;;  %v4256_v42 = vmul.f32 2.1237322e-06, %v11260_v5  ;;  %v4267_v62 = vmul.f32 3.8918573e-05, %v11260_v5  ;;  %v5428_v14 = vor.u32 1.1754944e-38, %v5427_v13 }
 0x52d   :  { %v11287_v15 = vmin.f32 %v4294_v29, 16.0  ;;  %v4334_v47 = vmul.f32 %v11270_v33, %v11270_v33  ;;  %v4374_v36 = vmul.f32 %v11280_v21, %v11280_v21  ;;  %vm5426_vm10 = vcmp.eq.f32.partialorder %v5425_v57, 8.507059e+37 }
 0x52e   :  { %v5443_v24 = vmul.f32 %v5442_v18, %v11200_v40  ;;  %v4233_v11 = vmul.f32 %v4232_v23, %v11195_v16  ;;  %v4219_v45 = vadd.f32 0.0036580483, %v4218_v51  ;;  %v5429_v7 = vsel %vm5426_vm10, %v5428_v14, %v5424_v49 }
 0x52f   :  { %v11295_v6 = vmin.f32 %v4374_v36, 16.0  ;;  %v5405_v4 = vmul.f32 %v5404_v28, %v11036_v60  ;;  %v4257_v52 = vadd.f32 0.00028619796, %v4256_v42  ;;  %v4268_v38 = vadd.f32 0.001143296, %v4267_v62  ;;  %v3335_v18 = vpop.f32.mrf.mxu2 }
 0x530   :  { %v4296_v39 = vmul.f32 2.1237322e-06, %v11287_v15  ;;  %v11300_v0 = vmin.f32 %v4334_v47, 16.0  ;;  %v11304_v46 = vadd.f32 %v11222_v44, %v3332_v32  ;;  %v5444_v30 = vadd.f32 1.1283791, %v5443_v24 }
 0x531   :  { %v4387_v40 = vmul.f32 3.8918573e-05, %v11295_v6  ;;  %v5430_v34 = vmul.f32 %v5429_v7, %v5405_v4  ;;  %v4234_v19 = vadd.f32 0.4994258, %v4233_v11  ;;  %v4220_v56 = vmul.f32 %v4219_v45, %v11195_v16 }
 0x532   :  { %v7059_v12 = vpop.eup %7058  ;;  %v5465_v60 = vand.u32 2147483647, %v11256_v37  ;;  %v5467_v1 = vand.u32 2147483648, %v11256_v37  ;;  %v4258_v53 = vmul.f32 %v4257_v52, %v11260_v5  ;;  %v11311_v50 = vmul.f32 0.70710677, %v11304_v46 }
 0x533   :  { %v5457_v8 = vmul.f32 %v7059_v12, %v11256_v37  ;;  %v4388_v27 = vadd.f32 0.001143296, %v4387_v40  ;;  %vm5462_vm11 = vweird.f32 %v7059_v12  ;;  %v4297_v25 = vadd.f32 0.00028619796, %v4296_v39 }
 0x534   :  { %v4336_v9 = vmul.f32 2.1237322e-06, %v11300_v0  ;;  %v4269_v17 = vmul.f32 %v4268_v38, %v11260_v5  ;;  %v6653_v48 = vclamps-f32 %v5430_v34, 1.0  ;;  %vm5461_vm12 = vweird.f32 %v11256_v37 }
 0x535   :  { %v5458_v54 = vsub.f32 1.0, %v5457_v8  ;;  %v4389_v3 = vmul.f32 %v4388_v27, %v11295_v6  ;;  %v4414_v13 = vmul.f32 %v11311_v50, %v11311_v50  ;;  %v5445_v29 = vmul.f32 %v5444_v30, %v11174_v10  ;;  %vm5463_vm13 = vmor %vm5461_vm12, %vm5462_vm11 }
 0x536   :  { %vm5466_vm14 = vcmp.eq.f32.partialorder %v5465_v60, 8.507059e+37  ;;  %v5468_v57 = vor.u32 1.1754944e-38, %v5467_v1  ;;  %v4235_v23 = vmul.f32 %v4234_v19, %v11195_v16  ;;  %v4376_v31 = vmul.f32 2.1237322e-06, %v11295_v6 }
 0x537   :  { %v5459_v22 = vmul.f32 %v7059_v12, %v5458_v54  ;;  %v4390_v28 = vadd.f32 0.014752088, %v4389_v3  ;;  %v11322_v49 = vmin.f32 %v4414_v13, 16.0  ;;  %v4298_v37 = vmul.f32 %v4297_v25, %v11287_v15  ;;  %v3337_v27 = vpop.f32.mrf.mxu2 }
 0x538   :  { %v4337_v62 = vadd.f32 0.00028619796, %v4336_v9  ;;  %v4270_v14 = vadd.f32 0.014752088, %v4269_v17  ;;  %v4221_v47 = vadd.f32 0.05243302, %v4220_v56  ;;  %v11327_v45 = vadd.f32 %v11222_v44, %v3335_v18 }
 0x539   :  { %v5460_v20 = vadd.f32 %v7059_v12, %v5459_v22  ;;  %v4416_v10 = vmul.f32 2.1237322e-06, %v11322_v49  ;;  %v6283_v24 = vadd.f32 1.0, %v6653_v48  ;;  %v4259_v11 = vadd.f32 0.0036580483, %v4258_v53 }
 0x53a   :  { %v4377_v32 = vadd.f32 0.00028619796, %v4376_v31  ;;  %v4391_v4 = vmul.f32 %v4390_v28, %v11295_v6  ;;  %v4427_v52 = vmul.f32 3.8918573e-05, %v11322_v49  ;;  %v4939_v8 = vmul.f32 0.5, %v11023_v58 }
 0x53b   :  { %v5464_v51 = vsel %vm5463_vm13, %v7059_v12, %v5460_v20  ;;  %v11329_v12 = vadd.f32 1.0, %v4235_v23  ;;  %v4299_v38 = vadd.f32 0.0036580483, %v4298_v37  ;;  %v4338_v39 = vmul.f32 %v4337_v62, %v11300_v0  ;;  %v4879_v37 = vpop.f32.mrf.mxu3 }
 0x53c   :  { %v5469_v42 = vsel %vm5466_vm14, %v5468_v57, %v5464_v51  ;;  %v4271_v40 = vmul.f32 %v4270_v14, %v11260_v5  ;;  %v4222_v34 = vmul.f32 %v4221_v47, %v11195_v16  ;;  %v4940_v30 = vmul.f32 0.5, %v11163_v35 }
 0x53d   :  { %v5470_v36 = vmul.f32 %v5469_v42, %v5445_v29  ;;  %v4417_v19 = vadd.f32 0.00028619796, %v4416_v10  ;;  %v6315_v56 = vmul.f32 %v6283_v24, %v4939_v8  ;;  %v4260_v60 = vmul.f32 %v4259_v11, %v11260_v5  ;;  %v11366_v10 = vld [vmem:[%s12399_s4 + $0x2] ss:$0 sm:$0xff] }
 0x53e   :  { %v11340_v1 = vmul.f32 0.70710677, %v11327_v45  ;;  %7060 = vrcp.f32 %v11329_v12  ;;  %v4378_v53 = vmul.f32 %v4377_v32, %v11295_v6  ;;  %v4392_v22 = vadd.f32 0.112945676, %v4391_v4 }
 0x53f   :  { %v6654_v7 = vclamps-f32 %v5470_v36, 1.0  ;;  %v4428_v25 = vadd.f32 0.001143296, %v4427_v52  ;;  %v4300_v9 = vmul.f32 %v4299_v38, %v11287_v15  ;;  %v4339_v3 = vadd.f32 0.0036580483, %v4338_v39 }
 0x540   :  { %v4272_v35 = vadd.f32 0.112945676, %v4271_v40  ;;  %v4418_v48 = vmul.f32 %v4417_v19, %v11322_v49  ;;  %v11347_v20 = vadd.f32 %v11222_v44, %v3337_v27  ;;  %v4261_v13 = vadd.f32 0.05243302, %v4260_v60 }
 0x541   :  { %v6284_v54 = vadd.f32 1.0, %v6654_v7  ;;  %v4454_v29 = vmul.f32 %v11340_v1, %v11340_v1  ;;  %v4223_v57 = vadd.f32 0.18741608, %v4222_v34  ;;  %v4379_v18 = vadd.f32 0.0036580483, %v4378_v53 }
 0x542   :  { %v4393_v23 = vmul.f32 %v4392_v22, %v11295_v6  ;;  %v4429_v51 = vmul.f32 %v4428_v25, %v11322_v49  ;;  %v4301_v28 = vadd.f32 0.05243302, %v4300_v9  ;;  %v4340_v42 = vmul.f32 %v4339_v3, %v11300_v0 }
 0x543   :  { %v6316_v58 = vmul.f32 %v6284_v54, %v4940_v30  ;;  %v4273_v44 = vmul.f32 %v4272_v35, %v11260_v5  ;;  %v4419_v62 = vadd.f32 0.0036580483, %v4418_v48  ;;  %v11358_v14 = vmul.f32 0.70710677, %v11347_v20 }
 0x544   :  { %v11353_v31 = vpop.eup %7060  ;;  %v4262_v47 = vmul.f32 %v4261_v13, %v11260_v5  ;;  %v11361_v36 = vmin.f32 %v4454_v29, 16.0  ;;  %v11369_v24 = vadd.f32 %v11366_v10, %v4879_v37  ;;  %v4224_v11 = vmul.f32 %v4223_v57, %v11195_v16 }
 0x545   :  { %v6731_v17 = vpack.c.bf16 %v6316_v58, %v6315_v56  ;;  %v4380_v7 = vmul.f32 %v4379_v18, %v11295_v6  ;;  %v4394_v32 = vadd.f32 0.4994258, %v4393_v23  ;;  %v4430_v4 = vadd.f32 0.014752088, %v4429_v51 }
 0x546   :  { %v4302_v52 = vmul.f32 %v4301_v28, %v11287_v15  ;;  %v4341_v8 = vadd.f32 0.05243302, %v4340_v42  ;;  %v4238_v38 = vmul.f32 %v11353_v31, %v11329_v12  ;;  %v4274_v39 = vadd.f32 0.4994258, %v4273_v44 }
 0x547   :  { %6787 = vst [vmem:[#allocation2 + $0x28] sm:$0xff] %v6731_v17   ;;  %v4420_v40 = vmul.f32 %v4419_v62, %v11322_v49  ;;  %v4494_v34 = vmul.f32 %v11358_v14, %v11358_v14  ;;  %v4263_v30 = vadd.f32 0.18741608, %v4262_v47  ;;  %v4467_v54 = vmul.f32 3.8918573e-05, %v11361_v36 }
 0x548   :  { %v11381_v16 = vmul.f32 0.70710677, %v11369_v24  ;;  %v4225_v19 = vadd.f32 1.1283791, %v4224_v11  ;;  %v4381_v56 = vadd.f32 0.05243302, %v4380_v7  ;;  %v4395_v60 = vmul.f32 %v4394_v32, %v11295_v6 }
 0x549   :  { %v4431_v27 = vmul.f32 %v4430_v4, %v11322_v49  ;;  %v4303_v58 = vadd.f32 0.18741608, %v4302_v52  ;;  %v4342_v53 = vmul.f32 %v4341_v8, %v11300_v0  ;;  %v4239_v22 = vsub.f32 1.0, %v4238_v38 }
 0x54a   :  { %v4275_v25 = vmul.f32 %v4274_v39, %v11260_v5  ;;  %v4421_v9 = vadd.f32 0.05243302, %v4420_v40  ;;  %v4456_v3 = vmul.f32 2.1237322e-06, %v11361_v36  ;;  %v11388_v35 = vmin.f32 %v4494_v34, 16.0 }
 0x54b   :  { %v11391_v17 = vmul.f32 0.5, %v11133_v61  ;;  %v4264_v48 = vmul.f32 %v4263_v30, %v11260_v5  ;;  %v4468_v13 = vadd.f32 0.001143296, %v4467_v54  ;;  %v5473_v29 = vmul.f32 %v11381_v16, %v11381_v16 }
 0x54c   :  { %v11397_v57 = vmul.f32 %v4225_v19, %v11153_v2  ;;  %v4382_v18 = vmul.f32 %v4381_v56, %v11295_v6  ;;  %v11400_v23 = vadd.f32 1.0, %v4395_v60  ;;  %v4432_v51 = vadd.f32 0.112945676, %v4431_v27 }
 0x54d   :  { %v11403_v28 = vmul.f32 0.5, %v11225_v63  ;;  %v4343_v42 = vadd.f32 0.18741608, %v4342_v53  ;;  %v4240_v61 = vmul.f32 %v11353_v31, %v4239_v22  ;;  %v11406_v37 = vadd.f32 1.0, %v4275_v25 }
 0x54e   :  { %v4304_v5 = vmul.f32 %v4303_v58, %v11287_v15  ;;  %v4422_v44 = vmul.f32 %v4421_v9, %v11322_v49  ;;  %v4457_v62 = vadd.f32 0.00028619796, %v4456_v3  ;;  %v4507_v2 = vmul.f32 3.8918573e-05, %v11388_v35 }
 0x54f   :  { %v4265_v47 = vadd.f32 1.1283791, %v4264_v48  ;;  %v4469_v11 = vmul.f32 %v4468_v13, %v11361_v36  ;;  %v11412_v7 = vmin.f32 %v5473_v29, 16.0  ;;  %v4246_v63 = vand.u32 2147483647, %v11329_v12 }
 0x550   :  { %v4383_v32 = vadd.f32 0.18741608, %v4382_v18  ;;  %7062 = vrcp.f32 %v11400_v23  ;;  %v4433_v4 = vmul.f32 %v4432_v51, %v11322_v49  ;;  %v4248_v52 = vand.u32 2147483648, %v11329_v12 }
 0x551   :  { %v4344_v8 = vmul.f32 %v4343_v42, %v11300_v0  ;;  %v4241_v38 = vadd.f32 %v11353_v31, %v4240_v61  ;;  %vm4243_vm15 = vweird.f32 %v11353_v31  ;;  %7064 = vrcp.f32 %v11406_v37 }
 0x552   :  { %v4305_v39 = vadd.f32 1.1283791, %v4304_v5  ;;  %v4423_v40 = vadd.f32 0.18741608, %v4422_v44  ;;  %v4458_v34 = vmul.f32 %v4457_v62, %v11361_v36  ;;  %v4508_v30 = vadd.f32 0.001143296, %v4507_v2 }
 0x553   :  { %v4470_v54 = vadd.f32 0.014752088, %v4469_v11  ;;  %v4496_v19 = vmul.f32 2.1237322e-06, %v11388_v35  ;;  %v5486_v56 = vmul.f32 3.8918573e-05, %v11412_v7  ;;  %vm4242_vm1 = vweird.f32 %v11329_v12 }
 0x554   :  { %v11427_v60 = vmul.f32 0.5, %v11239_v59  ;;  %v11430_v27 = vmul.f32 0.5, %v11251_v41  ;;  %v4384_v58 = vmul.f32 %v4383_v32, %v11295_v6  ;;  %v4434_v53 = vadd.f32 0.4994258, %v4433_v4  ;;  %vm11433_vm2 = vmor %vm4242_vm1, %vm4243_vm15 }
 0x555   :  { %v11438_v25 = vmul.f32 %v4265_v47, %v11234_v43  ;;  %v4345_v9 = vadd.f32 1.1283791, %v4344_v8  ;;  %v4245_v12 = vsel %vm11433_vm2, %v11353_v31, %v4241_v38  ;;  %vm4247_vm3 = vcmp.eq.f32.partialorder %v4246_v63, 8.507059e+37 }
 0x556   :  { %v11443_v59 = vpop.eup %7062  ;;  %v4424_v41 = vmul.f32 %v4423_v40, %v11322_v49  ;;  %v4459_v3 = vadd.f32 0.0036580483, %v4458_v34  ;;  %v4509_v6 = vmul.f32 %v4508_v30, %v11388_v35  ;;  %v4249_v48 = vor.u32 1.1754944e-38, %v4248_v52 }
 0x557   :  { %v11447_v13 = vpop.eup %7064  ;;  %v11450_v29 = vmul.f32 %v4305_v39, %v11248_v26  ;;  %v4471_v43 = vmul.f32 %v4470_v54, %v11361_v36  ;;  %v4497_v18 = vadd.f32 0.00028619796, %v4496_v19  ;;  %v5487_v51 = vadd.f32 0.001143296, %v5486_v56 }
 0x558   :  { %v4385_v42 = vadd.f32 1.1283791, %v4384_v58  ;;  %v4435_v31 = vmul.f32 %v4434_v53, %v11322_v49  ;;  %v5475_v61 = vmul.f32 2.1237322e-06, %v11412_v7  ;;  %v4250_v5 = vsel %vm4247_vm3, %v4249_v48, %v4245_v12 }
 0x559   :  { %v11456_v44 = vmul.f32 %v4345_v9, %v11270_v33  ;;  %v4398_v62 = vmul.f32 %v11443_v59, %v11400_v23  ;;  %v4408_v2 = vand.u32 2147483648, %v11400_v23  ;;  %v5488_v26 = vmul.f32 %v5487_v51, %v11412_v7 }
 0x55a   :  { %v4425_v47 = vadd.f32 1.1283791, %v4424_v41  ;;  %v4460_v11 = vmul.f32 %v4459_v3, %v11361_v36  ;;  %v4510_v63 = vadd.f32 0.014752088, %v4509_v6  ;;  %v4278_v49 = vmul.f32 %v11447_v13, %v11406_v37 }
 0x55b   :  { %v4472_v32 = vadd.f32 0.112945676, %v4471_v43  ;;  %v4498_v4 = vmul.f32 %v4497_v18, %v11388_v35  ;;  %v5489_v52 = vadd.f32 0.014752088, %v5488_v26  ;;  %v4251_v33 = vmul.f32 %v4250_v5, %v11397_v57 }
 0x55c   :  { %v11468_v8 = vmul.f32 %v4385_v42, %v11280_v21  ;;  %v11470_v38 = vadd.f32 1.0, %v4435_v31  ;;  %v5476_v39 = vadd.f32 0.00028619796, %v5475_v61  ;;  %v4279_v40 = vsub.f32 1.0, %v4278_v49  ;;  %v4881_v42 = vpop.f32.mrf.mxu3 }
 0x55d   :  { %v4399_v34 = vsub.f32 1.0, %v4398_v62  ;;  %v4406_v30 = vand.u32 2147483647, %v11400_v23  ;;  %v11473_v54 = vor.u32 1.1754944e-38, %v4408_v2  ;;  %v11476_v19 = vmul.f32 0.5, %v11369_v24 }
 0x55e   :  { %vm4403_vm4 = vweird.f32 %v11443_v59  ;;  %v11480_v56 = vmul.f32 %v4425_v47, %v11311_v50  ;;  %v4461_v57 = vadd.f32 0.05243302, %v4460_v11  ;;  %v4511_v21 = vmul.f32 %v4510_v63, %v11388_v35 }
 0x55f   :  { %v5490_v58 = vmul.f32 %v5489_v52, %v11412_v7  ;;  %v4473_v53 = vmul.f32 %v4472_v32, %v11361_v36  ;;  %v4499_v22 = vadd.f32 0.0036580483, %v4498_v4  ;;  %v4280_v9 = vmul.f32 %v11447_v13, %v4279_v40 }
 0x560   :  { %vm4283_vm5 = vweird.f32 %v11447_v13  ;;  %vm4402_vm0 = vweird.f32 %v11400_v23  ;;  %7066 = vrcp.f32 %v11470_v38  ;;  %v5477_v24 = vmul.f32 %v5476_v39, %v11412_v7 }
 0x561   :  { %v5491_v50 = vadd.f32 0.112945676, %v5490_v58  ;;  %v4286_v12 = vand.u32 2147483647, %v11406_v37  ;;  %v4400_v41 = vmul.f32 %v11443_v59, %v4399_v34  ;;  %v4281_v3 = vadd.f32 %v11447_v13, %v4280_v9  ;;  %vm11527_vm10 = vmor %vm4402_vm0, %vm4403_vm4 }
 0x562   :  { %vm4282_vm6 = vweird.f32 %v11406_v37  ;;  %v4288_v6 = vand.u32 2147483648, %v11406_v37  ;;  %v4446_v48 = vand.u32 2147483647, %v11470_v38  ;;  %v4448_v43 = vand.u32 2147483648, %v11470_v38 }
 0x563   :  { %v4512_v18 = vadd.f32 0.112945676, %v4511_v21  ;;  %v5492_v51 = vmul.f32 %v5491_v50, %v11412_v7  ;;  %vm4284_vm7 = vmor %vm4282_vm6, %vm4283_vm5  ;;  %v4474_v31 = vadd.f32 0.4994258, %v4473_v53  ;;  %v4307_v62 = vmul.f32 3.8918573e-05, %v11287_v15 }
 0x564   :  { %v4285_v61 = vsel %vm4284_vm7, %v11447_v13, %v4281_v3  ;;  %v4289_v5 = vor.u32 1.1754944e-38, %v4288_v6  ;;  %vm11500_vm8 = vcmp.eq.f32.partialorder %v4406_v30, 8.507059e+37  ;;  %v4462_v37 = vmul.f32 %v4461_v57, %v11361_v36 }
 0x565   :  { %v5478_v26 = vadd.f32 0.0036580483, %v5477_v24  ;;  %v6599_v47 = vclamps-f32 %v4251_v33, 1.0  ;;  %vm4287_vm9 = vcmp.eq.f32.partialorder %v4286_v12, 8.507059e+37  ;;  %v4500_v11 = vmul.f32 %v4499_v22, %v11388_v35 }
 0x566   :  { %v5493_v63 = vadd.f32 0.4994258, %v5492_v51  ;;  %v4290_v49 = vsel %vm4287_vm9, %v4289_v5, %v4285_v61  ;;  %v11507_v32 = vadd.f32 %v11366_v10, %v4881_v42  ;;  %v11509_v13 = vpop.eup %7066  ;;  %v4401_v4 = vadd.f32 %v11443_v59, %v4400_v41 }
 0x567   :  { %v11512_v52 = vor.u32 1.1754944e-38, %v4448_v43  ;;  %v4513_v39 = vmul.f32 %v4512_v18, %v11388_v35  ;;  %v4291_v40 = vmul.f32 %v4290_v49, %v11438_v25  ;;  %v4475_v33 = vmul.f32 %v4474_v31, %v11361_v36  ;;  %v4884_v43 = vpop.f32.mrf.mxu3 }
 0x568   :  { %v5494_v34 = vmul.f32 %v5493_v63, %v11412_v7  ;;  %v11519_v30 = vmul.f32 0.70710677, %v11507_v32  ;;  %v4308_v57 = vadd.f32 0.001143296, %v4307_v62  ;;  %v5479_v21 = vmul.f32 %v5478_v26, %v11412_v7 }
 0x569   :  { %v6600_v58 = vclamps-f32 %v4291_v40, 1.0  ;;  %v4714_v53 = vadd.f32 1.0, %v6599_v47  ;;  %v4347_v22 = vmul.f32 3.8918573e-05, %v11300_v0  ;;  %v4438_v9 = vmul.f32 %v11509_v13, %v11470_v38 }
 0x56a   :  { %v4501_v24 = vadd.f32 0.05243302, %v4500_v11  ;;  %v11533_v50 = vadd.f32 1.0, %v5494_v34  ;;  %v5513_v12 = vmul.f32 %v11519_v30, %v11519_v30  ;;  %v4405_v41 = vsel %vm11527_vm10, %v11443_v59, %v4401_v4 }
 0x56b   :  { %v4463_v3 = vadd.f32 0.18741608, %v4462_v37  ;;  %v4514_v6 = vadd.f32 0.4994258, %v4513_v39  ;;  %v4715_v23 = vadd.f32 1.0, %v6600_v58  ;;  %v11540_v18 = vadd.f32 1.0, %v4475_v33 }
 0x56c   :  { %7068 = vrcp.f32 %v11533_v50  ;;  %v4309_v51 = vmul.f32 %v4308_v57, %v11287_v15  ;;  %v4348_v42 = vadd.f32 0.001143296, %v4347_v22  ;;  %v5480_v31 = vadd.f32 0.05243302, %v5479_v21 }
 0x56d   :  { %v4746_v61 = vmul.f32 %v4714_v53, %v11391_v17  ;;  %v4747_v5 = vmul.f32 %v4715_v23, %v11403_v28  ;;  %v11546_v62 = vmin.f32 %v5513_v12, 16.0  ;;  %v11551_v59 = vsel %vm11500_vm8, %v11473_v54, %v4405_v41 }
 0x56e   :  { %v4439_v37 = vsub.f32 1.0, %v4438_v9  ;;  %v4502_v26 = vmul.f32 %v4501_v24, %v11388_v35  ;;  %v11555_v47 = vadd.f32 %v11366_v10, %v4884_v43  ;;  %v4515_v11 = vmul.f32 %v4514_v6, %v11388_v35 }
 0x56f   :  { %v4768_v63 = vpack.c.bf16 %v4747_v5, %v4746_v61  ;;  %v5515_v17 = vmul.f32 2.1237322e-06, %v11546_v62  ;;  %v5526_v28 = vmul.f32 3.8918573e-05, %v11546_v62  ;;  %7070 = vrcp.f32 %v11540_v18 }
 0x570   :  { %v11562_v49 = vmul.f32 0.70710677, %v11555_v47  ;;  %v4310_v54 = vadd.f32 0.014752088, %v4309_v51  ;;  %v4349_v2 = vmul.f32 %v4348_v42, %v11300_v0  ;;  %v11566_v4 = vmul.f32 %v4463_v3, %v11361_v36 }
 0x571   :  { %v5481_v39 = vmul.f32 %v5480_v31, %v11412_v7  ;;  %4898 = vmatmul.bf16.gmra.mxu3 %v4768_v63  ;;  %v5516_v40 = vadd.f32 0.00028619796, %v5515_v17  ;;  %v5527_v33 = vadd.f32 0.001143296, %v5526_v28  ;;  %vm4442_vm11 = vweird.f32 %v11470_v38 }
 0x572   :  { %v11569_v34 = vpop.eup %7068  ;;  %v11572_v57 = vadd.f32 0.18741608, %v4502_v26  ;;  %v5553_v21 = vmul.f32 %v11562_v49, %v11562_v49  ;;  %v4311_v58 = vmul.f32 %v4310_v54, %v11287_v15  ;;  %v4350_v53 = vadd.f32 0.014752088, %v4349_v2 }
 0x573   :  { %v4440_v36 = vmul.f32 %v11509_v13, %v4439_v37  ;;  %v11578_v22 = vadd.f32 1.0, %v4515_v11  ;;  %v5497_v25 = vmul.f32 %v11569_v34, %v11533_v50  ;;  %v5517_v9 = vmul.f32 %v5516_v40, %v11546_v62 }
 0x574   :  { %v5528_v24 = vmul.f32 %v5527_v33, %v11546_v62  ;;  %v11584_v12 = vmin.f32 %v5553_v21, 16.0  ;;  %v4312_v41 = vadd.f32 0.112945676, %v4311_v58  ;;  %v4351_v3 = vmul.f32 %v4350_v53, %v11300_v0 }
 0x575   :  { %vm4443_vm12 = vweird.f32 %v11509_v13  ;;  %v5482_v6 = vadd.f32 0.18741608, %v5481_v39  ;;  %v5498_v23 = vsub.f32 1.0, %v5497_v25  ;;  %v5518_v43 = vadd.f32 0.0036580483, %v5517_v9  ;;  %v11588_v51 = vpop.eup %7070 }
 0x576   :  { %v5529_v42 = vadd.f32 0.014752088, %v5528_v24  ;;  %v5555_v31 = vmul.f32 2.1237322e-06, %v11584_v12  ;;  %v5566_v61 = vmul.f32 3.8918573e-05, %v11584_v12  ;;  %v4313_v5 = vmul.f32 %v4312_v41, %v11287_v15  ;;  %vm11614_vm14 = vmor %vm4442_vm11, %vm4443_vm12 }
 0x577   :  { %7072 = vrcp.f32 %v11578_v22  ;;  %v5499_v37 = vmul.f32 %v11569_v34, %v5498_v23  ;;  %v5519_v26 = vmul.f32 %v5518_v43, %v11546_v62  ;;  %v4352_v11 = vadd.f32 0.112945676, %v4351_v3 }
 0x578   :  { %v4441_v63 = vadd.f32 %v11509_v13, %v4440_v36  ;;  %v5530_v17 = vmul.f32 %v5529_v42, %v11546_v62  ;;  %v5567_v28 = vadd.f32 0.001143296, %v5566_v61  ;;  %v4314_v54 = vadd.f32 0.4994258, %v4313_v5 }
 0x579   :  { %v4478_v2 = vmul.f32 %v11588_v51, %v11540_v18  ;;  %v5483_v39 = vmul.f32 %v5482_v6, %v11412_v7  ;;  %v5520_v40 = vadd.f32 0.05243302, %v5519_v26  ;;  %v4353_v33 = vmul.f32 %v4352_v11, %v11300_v0 }
 0x57a   :  { %vm11604_vm13 = vcmp.eq.f32.partialorder %v4446_v48, 8.507059e+37  ;;  %v5531_v58 = vadd.f32 0.112945676, %v5530_v17  ;;  %v5556_v53 = vadd.f32 0.00028619796, %v5555_v31  ;;  %v5568_v36 = vmul.f32 %v5567_v28, %v11584_v12 }
 0x57b   :  { %v4315_v25 = vmul.f32 %v4314_v54, %v11287_v15  ;;  %v5500_v9 = vadd.f32 %v11569_v34, %v5499_v37  ;;  %vm5502_vm15 = vweird.f32 %v11569_v34  ;;  %v5521_v48 = vmul.f32 %v5520_v40, %v11546_v62 }
 0x57c   :  { %v4354_v24 = vadd.f32 0.4994258, %v4353_v33  ;;  %v4445_v41 = vsel %vm11614_vm14, %v11509_v13, %v4441_v63  ;;  %v5507_v15 = vand.u32 2147483648, %v11533_v50  ;;  %v5532_v3 = vmul.f32 %v5531_v58, %v11546_v62 }
 0x57d   :  { %v5569_v38 = vadd.f32 0.014752088, %v5568_v36  ;;  %v11626_v6 = vpop.eup %7072  ;;  %vm5501_vm1 = vweird.f32 %v11533_v50  ;;  %v5505_v23 = vand.u32 2147483647, %v11533_v50  ;;  %v11630_v43 = vadd.f32 1.0, %v4315_v25 }
 0x57e   :  { %v4355_v42 = vmul.f32 %v4354_v24, %v11300_v0  ;;  %v4479_v31 = vsub.f32 1.0, %v4478_v2  ;;  %vm11633_vm2 = vmor %vm5501_vm1, %vm5502_vm15  ;;  %v5533_v13 = vadd.f32 0.4994258, %v5532_v3  ;;  %v5557_v5 = vmul.f32 %v5556_v53, %v11584_v12 }
 0x57f   :  { %v5570_v37 = vmul.f32 %v5569_v38, %v11584_v12  ;;  %v5484_v26 = vadd.f32 1.1283791, %v5483_v39  ;;  %v5504_v11 = vsel %vm11633_vm2, %v11569_v34, %v5500_v9  ;;  %v5522_v50 = vadd.f32 0.18741608, %v5521_v48 }
 0x580   :  { %7074 = vrcp.f32 %v11630_v43  ;;  %v4518_v0 = vmul.f32 %v11626_v6, %v11578_v22  ;;  %v5508_v63 = vor.u32 1.1754944e-38, %v5507_v15  ;;  %v5534_v17 = vmul.f32 %v5533_v13, %v11546_v62  ;;  %v4886_v15 = vpop.f32.mrf.mxu3 }
 0x581   :  { %v5571_v28 = vadd.f32 0.112945676, %v5570_v37  ;;  %v4488_v54 = vand.u32 2147483648, %v11540_v18  ;;  %v4504_v2 = vmul.f32 %v11572_v57, %v11388_v35  ;;  %vm5506_vm3 = vcmp.eq.f32.partialorder %v5505_v23, 8.507059e+37 }
 0x582   :  { %v11649_v39 = vadd.f32 1.0, %v4355_v42  ;;  %v5509_v40 = vsel %vm5506_vm3, %v5508_v63, %v5504_v11  ;;  %v11651_v34 = vadd.f32 1.0, %v5534_v17  ;;  %v5558_v33 = vadd.f32 0.0036580483, %v5557_v5 }
 0x583   :  { %v5572_v58 = vmul.f32 %v5571_v28, %v11584_v12  ;;  %v4450_v53 = vsel %vm11604_vm13, %v11512_v52, %v4445_v41  ;;  %v5485_v36 = vmul.f32 %v5484_v26, %v11381_v16  ;;  %v5523_v25 = vmul.f32 %v5522_v50, %v11546_v62 }
 0x584   :  { %7076 = vrcp.f32 %v11649_v39  ;;  %v11661_v35 = vadd.f32 1.1283791, %v11566_v4  ;;  %v4480_v57 = vmul.f32 %v11588_v51, %v4479_v31  ;;  %v4519_v7 = vsub.f32 1.0, %v4518_v0 }
 0x585   :  { %7078 = vrcp.f32 %v11651_v34  ;;  %v4486_v48 = vand.u32 2147483647, %v11540_v18  ;;  %v11666_v24 = vor.u32 1.1754944e-38, %v4488_v54  ;;  %v11668_v52 = vmul.f32 %v5509_v40, %v5485_v36 }
 0x586   :  { %v7075_v9 = vpop.eup %7074  ;;  %v5573_v16 = vadd.f32 0.4994258, %v5572_v58  ;;  %v11671_v62 = vmul.f32 %v4450_v53, %v11480_v56  ;;  %v11673_v21 = vadd.f32 1.1283791, %v4504_v2  ;;  %v5559_v4 = vmul.f32 %v5558_v33, %v11584_v12 }
 0x587   :  { %v4318_v41 = vmul.f32 %v7075_v9, %v11630_v43  ;;  %v4528_v3 = vand.u32 2147483648, %v11578_v22  ;;  %v5524_v38 = vadd.f32 1.1283791, %v5523_v25  ;;  %v4326_v42 = vand.u32 2147483647, %v11630_v43 }
 0x588   :  { %v5574_v23 = vmul.f32 %v5573_v16, %v11584_v12  ;;  %v11681_v31 = vadd.f32 %v11588_v51, %v4480_v57  ;;  %v4520_v56 = vmul.f32 %v11626_v6, %v4519_v7  ;;  %v4328_v13 = vand.u32 2147483648, %v11630_v43 }
 0x589   :  { %v4319_v61 = vsub.f32 1.0, %v4318_v41  ;;  %v6655_v37 = vclamps-f32 %v11668_v52, 1.0  ;;  %vm4322_vm4 = vweird.f32 %v11630_v43  ;;  %v11690_v11 = vadd.f32 %v11366_v10, %v4886_v15 }
 0x58a   :  { %v7077_v5 = vpop.eup %7076  ;;  %v11686_v26 = vadd.f32 1.0, %v5574_v23  ;;  %v5560_v0 = vadd.f32 0.05243302, %v5559_v4  ;;  %vm4323_vm5 = vweird.f32 %v7075_v9  ;;  %v5525_v28 = vmul.f32 %v5524_v38, %v11519_v30 }
 0x58b   :  { %v7079_v50 = vpop.eup %7078  ;;  %v4320_v63 = vmul.f32 %v7075_v9, %v4319_v61  ;;  %v4358_v17 = vmul.f32 %v7077_v5, %v11649_v39  ;;  %vm11696_vm0 = vcmp.eq.f32.partialorder %v4326_v42, 8.507059e+37  ;;  %vm4483_vm6 = vweird.f32 %v11588_v51  ;;  %vm4324_vm7 = vmor %vm4322_vm4, %vm4323_vm5 }
 0x58c   :  { %v5537_v54 = vmul.f32 %v7079_v50, %v11651_v34  ;;  %7080 = vrcp.f32 %v11686_v26  ;;  %v5545_v40 = vand.u32 2147483647, %v11651_v34  ;;  %v5547_v33 = vand.u32 2147483648, %v11651_v34 }
 0x58d   :  { %v4321_v58 = vadd.f32 %v7075_v9, %v4320_v63  ;;  %v4329_v53 = vor.u32 1.1754944e-38, %v4328_v13  ;;  %v4359_v30 = vsub.f32 1.0, %v4358_v17  ;;  %v4366_v25 = vand.u32 2147483647, %v11649_v39 }
 0x58e   :  { %v5538_v36 = vsub.f32 1.0, %v5537_v54  ;;  %v11707_v57 = vmul.f32 0.70710677, %v11690_v11  ;;  %vm4482_vm8 = vweird.f32 %v11540_v18  ;;  %vm5542_vm9 = vweird.f32 %v7079_v50 }
 0x58f   :  { %v4325_v7 = vsel %vm4324_vm7, %v7075_v9, %v4321_v58  ;;  %vm4363_vm10 = vweird.f32 %v7077_v5  ;;  %v4368_v52 = vand.u32 2147483648, %v11649_v39  ;;  %v4360_v41 = vmul.f32 %v7077_v5, %v4359_v30  ;;  %vm11755_vm5 = vmor %vm4482_vm8, %vm4483_vm6 }
 0x590   :  { %v5539_v16 = vmul.f32 %v7079_v50, %v5538_v36  ;;  %v4330_v4 = vsel %vm11696_vm0, %v4329_v53, %v4325_v7  ;;  %v5593_v43 = vmul.f32 %v11707_v57, %v11707_v57  ;;  %vm4522_vm11 = vweird.f32 %v11578_v22 }
 0x591   :  { %vm5541_vm12 = vweird.f32 %v11651_v34  ;;  %vm11717_vm13 = vcmp.eq.f32.partialorder %v5545_v40, 8.507059e+37  ;;  %v4331_v9 = vmul.f32 %v4330_v4, %v11450_v29  ;;  %vm4362_vm14 = vweird.f32 %v11649_v39 }
 0x592   :  { %v11723_v38 = vpop.eup %7080  ;;  %v5540_v23 = vadd.f32 %v7079_v50, %v5539_v16  ;;  %v5548_v42 = vor.u32 1.1754944e-38, %v5547_v33  ;;  %v4361_v61 = vadd.f32 %v7077_v5, %v4360_v41  ;;  %vm11726_vm15 = vmor %vm4362_vm14, %vm4363_vm10  ;;  %v11730_v63 = vmin.f32 %v5593_v43, 16.0 }
 0x593   :  { %vm5543_vm1 = vmor %vm5541_vm12, %vm5542_vm9  ;;  %v5577_v34 = vmul.f32 %v11723_v38, %v11686_v26  ;;  %v6601_v29 = vclamps-f32 %v4331_v9, 1.0  ;;  %vm4367_vm2 = vcmp.eq.f32.partialorder %v4366_v25, 8.507059e+37  ;;  %v4369_v39 = vor.u32 1.1754944e-38, %v4368_v52 }
 0x594   :  { %vm11737_vm3 = vcmp.eq.f32.partialorder %v4486_v48, 8.507059e+37  ;;  %v5544_v54 = vsel %vm5543_vm1, %v7079_v50, %v5540_v23  ;;  %v4365_v2 = vsel %vm11726_vm15, %v7077_v5, %v4361_v61  ;;  %v5595_v40 = vmul.f32 2.1237322e-06, %v11730_v63 }
 0x595   :  { %v5606_v33 = vmul.f32 3.8918573e-05, %v11730_v63  ;;  %v4521_v58 = vadd.f32 %v11626_v6, %v4520_v56  ;;  %vm4523_vm4 = vweird.f32 %v11626_v6  ;;  %v5549_v53 = vsel %vm11717_vm13, %v5548_v42, %v5544_v54 }
 0x596   :  { %v4370_v36 = vsel %vm4367_vm2, %v4369_v39, %v4365_v2  ;;  %v5550_v48 = vmul.f32 %v5549_v53, %v5525_v28  ;;  %v5596_v25 = vadd.f32 0.00028619796, %v5595_v40  ;;  %v6285_v7 = vadd.f32 1.0, %v6655_v37  ;;  %vm11773_vm0 = vmor %vm4522_vm11, %vm4523_vm4 }
 0x597   :  { %v4371_v30 = vmul.f32 %v4370_v36, %v11456_v44  ;;  %v5607_v50 = vadd.f32 0.001143296, %v5606_v33  ;;  %v5561_v5 = vmul.f32 %v5560_v0, %v11584_v12  ;;  %v5578_v52 = vsub.f32 1.0, %v5577_v34 }
 0x598   :  { %v4716_v16 = vadd.f32 1.0, %v6601_v29  ;;  %v6656_v4 = vclamps-f32 %v5550_v48, 1.0  ;;  %v5597_v28 = vmul.f32 %v5596_v25, %v11730_v63  ;;  %v4485_v37 = vsel %vm11755_vm5, %v11588_v51, %v11681_v31 }
 0x599   :  { %v6602_v41 = vclamps-f32 %v4371_v30, 1.0  ;;  %v5608_v44 = vmul.f32 %v5607_v50, %v11730_v63  ;;  %v4526_v0 = vand.u32 2147483647, %v11578_v22  ;;  %v4529_v18 = vor.u32 1.1754944e-38, %v4528_v3 }
 0x59a   :  { %v4942_v43 = vmul.f32 0.5, %v11507_v32  ;;  %v6286_v9 = vadd.f32 1.0, %v6656_v4  ;;  %v5598_v42 = vadd.f32 0.0036580483, %v5597_v28  ;;  %v4525_v51 = vsel %vm11773_vm0, %v11626_v6, %v4521_v58 }
 0x59b   :  { %v4717_v23 = vadd.f32 1.0, %v6602_v41  ;;  %v5609_v61 = vadd.f32 0.014752088, %v5608_v44  ;;  %v6317_v3 = vmul.f32 %v6285_v7, %v11476_v19  ;;  %v5562_v31 = vadd.f32 0.18741608, %v5561_v5 }
 0x59c   :  { %v5579_v32 = vmul.f32 %v11723_v38, %v5578_v52  ;;  %v6318_v13 = vmul.f32 %v6286_v9, %v4942_v43  ;;  %v4748_v22 = vmul.f32 %v4716_v16, %v11427_v60  ;;  %v5599_v29 = vmul.f32 %v5598_v42, %v11730_v63 }
 0x59d   :  { %v4749_v34 = vmul.f32 %v4717_v23, %v11430_v27  ;;  %v4411_v39 = vmul.f32 %v11551_v59, %v11468_v8  ;;  %v4490_v54 = vsel %vm11737_vm3, %v11666_v24, %v4485_v37  ;;  %vm4527_vm6 = vcmp.eq.f32.partialorder %v4526_v0, 8.507059e+37 }
 0x59e   :  { %v5610_v19 = vmul.f32 %v5609_v61, %v11730_v63  ;;  %v4530_v6 = vsel %vm4527_vm6, %v4529_v18, %v4525_v51  ;;  %v6736_v2 = vpack.c.bf16 %v6318_v13, %v6317_v3  ;;  %v5600_v33 = vadd.f32 0.05243302, %v5599_v29 }
 0x59f   :  { %v4769_v40 = vpack.c.bf16 %v4749_v34, %v4748_v22  ;;  %v5563_v60 = vmul.f32 %v5562_v31, %v11584_v12  ;;  %v5580_v27 = vadd.f32 %v11723_v38, %v5579_v32  ;;  %vm5582_vm7 = vweird.f32 %v11723_v38  ;;  %v4889_v31 = vpop.f32.mrf.mxu3 }
 0x5a0   :  { %v5611_v58 = vadd.f32 0.112945676, %v5610_v19  ;;  %v6604_v8 = vclamps-f32 %v11671_v62, 1.0  ;;  %v4466_v59 = vmul.f32 %v11661_v35, %v11340_v1  ;;  %v4506_v24 = vmul.f32 %v11673_v21, %v11358_v14  ;;  %6788 = vst [vmem:[#allocation2 + $0x30] sm:$0xff] %v6736_v2   ;;  %v3340_v14 = vpop.f32.mrf.mxu2 }
 0x5a1   :  { %v5587_v17 = vand.u32 2147483648, %v11686_v26  ;;  %4903 = vmatmul.bf16.gmra.mxu3 %v4769_v40  ;;  %vm5581_vm8 = vweird.f32 %v11686_v26  ;;  %v5585_v12 = vand.u32 2147483647, %v11686_v26  ;;  %v6603_v36 = vclamps-f32 %v4411_v39, 1.0  ;;  %v11814_v26 = vld [vmem:[%s12399_s4 + $0x1] ss:$0 sm:$0xff] }
 0x5a2   :  { %v5612_v53 = vmul.f32 %v5611_v58, %v11730_v63  ;;  %v4491_v48 = vmul.f32 %v4490_v54, %v4466_v59  ;;  %v4531_v30 = vmul.f32 %v4530_v6, %v4506_v24  ;;  %vm11803_vm9 = vmor %vm5581_vm8, %vm5582_vm7  ;;  %v5601_v1 = vmul.f32 %v5600_v33, %v11730_v63 }
 0x5a3   :  { %v5564_v35 = vadd.f32 1.1283791, %v5563_v60  ;;  %v5584_v21 = vsel %vm11803_vm9, %v11723_v38, %v5580_v27  ;;  %v11817_v50 = vadd.f32 %v11814_v26, %v3340_v14  ;;  %v4719_v7 = vadd.f32 1.0, %v6604_v8 }
 0x5a4   :  { %v5613_v25 = vadd.f32 0.4994258, %v5612_v53  ;;  %v5588_v5 = vor.u32 1.1754944e-38, %v5587_v17  ;;  %v3375_v52 = vmul.f32 0.5, %v11304_v46  ;;  %vm5586_vm10 = vcmp.eq.f32.partialorder %v5585_v12, 8.507059e+37 }
 0x5a5   :  { %v11822_v56 = vmul.f32 0.70710677, %v11817_v50  ;;  %v4718_v38 = vadd.f32 1.0, %v6603_v36  ;;  %v6605_v4 = vclamps-f32 %v4491_v48, 1.0  ;;  %v5602_v28 = vadd.f32 0.18741608, %v5601_v1 }
 0x5a6   :  { %v5614_v16 = vmul.f32 %v5613_v25, %v11730_v63  ;;  %v5589_v41 = vsel %vm5586_vm10, %v5588_v5, %v5584_v21  ;;  %v6606_v44 = vclamps-f32 %v4531_v30, 1.0  ;;  %v5565_v37 = vmul.f32 %v5564_v35, %v11562_v49 }
 0x5a7   :  { %v4534_v18 = vmul.f32 %v11822_v56, %v11822_v56  ;;  %v3374_v46 = vmul.f32 0.5, %v11263_v55  ;;  %v4751_v43 = vmul.f32 %v4719_v7, %v3375_v52  ;;  %v5603_v23 = vmul.f32 %v5602_v28, %v11730_v63  ;;  %v4891_v21 = vpop.f32.mrf.mxu3 }
 0x5a8   :  { %v11825_v0 = vadd.f32 1.0, %v5614_v16  ;;  %v5590_v15 = vmul.f32 %v5589_v41, %v5565_v37  ;;  %v3342_v61 = vpop.f32.mrf.mxu2  ;;  %v4720_v51 = vadd.f32 1.0, %v6605_v4  ;;  %v4721_v3 = vadd.f32 1.0, %v6606_v44 }
 0x5a9   :  { %v4750_v9 = vmul.f32 %v4718_v38, %v3374_v46  ;;  %v11832_v42 = vmin.f32 %v4534_v18, 16.0  ;;  %v11835_v49 = vadd.f32 %v11814_v26, %v3342_v61  ;;  %v11840_v22 = vadd.f32 %v11366_v10, %v4889_v31 }
 0x5aa   :  { %7082 = vrcp.f32 %v11825_v0  ;;  %v3376_v34 = vmul.f32 0.5, %v11327_v45  ;;  %v3377_v63 = vmul.f32 0.5, %v11347_v20  ;;  %v6657_v29 = vclamps-f32 %v5590_v15, 1.0 }
 0x5ab   :  { %v4770_v32 = vpack.c.bf16 %v4751_v43, %v4750_v9  ;;  %v4536_v13 = vmul.f32 2.1237322e-06, %v11832_v42  ;;  %v4547_v55 = vmul.f32 3.8918573e-05, %v11832_v42  ;;  %v11845_v39 = vmul.f32 0.70710677, %v11835_v49 }
 0x5ac   :  { %v5604_v54 = vadd.f32 1.1283791, %v5603_v23  ;;  %v11847_v40 = vmul.f32 %v4720_v51, %v3376_v34  ;;  %v5627_v33 = vand.u32 2147483648, %v11825_v0  ;;  %v11853_v27 = vmul.f32 0.70710677, %v11840_v22 }
 0x5ad   :  { %v4537_v19 = vadd.f32 0.00028619796, %v4536_v13  ;;  %v4548_v6 = vadd.f32 0.001143296, %v4547_v55  ;;  %v4574_v60 = vmul.f32 %v11845_v39, %v11845_v39  ;;  %v11855_v45 = vmul.f32 %v4721_v3, %v3377_v63 }
 0x5ae   :  { %v11860_v59 = vadd.f32 1.0, %v6657_v29  ;;  %v5625_v24 = vand.u32 2147483647, %v11825_v0  ;;  %v5633_v12 = vmul.f32 %v11853_v27, %v11853_v27  ;;  %v5605_v53 = vmul.f32 %v5604_v54, %v11707_v57 }
 0x5af   :  { %v4538_v58 = vmul.f32 %v4537_v19, %v11832_v42  ;;  %v4549_v8 = vmul.f32 %v4548_v6, %v11832_v42  ;;  %v11863_v17 = vmin.f32 %v4574_v60, 16.0  ;;  %v5628_v62 = vor.u32 1.1754944e-38, %v5627_v33 }
 0x5b0   :  { %v7083_v2 = vpop.eup %7082  ;;  %v11870_v35 = vmin.f32 %v5633_v12, 16.0  ;;  %vm5621_vm12 = vweird.f32 %v11825_v0  ;;  %v11880_v46 = vadd.f32 %v11366_v10, %v4891_v21  ;;  %vm5626_vm14 = vcmp.eq.f32.partialorder %v5625_v24, 8.507059e+37 }
 0x5b1   :  { %v5617_v20 = vmul.f32 %v7083_v2, %v11825_v0  ;;  %4908 = vmatmul.bf16.gmra.mxu3 %v4770_v32  ;;  %v4539_v48 = vadd.f32 0.0036580483, %v4538_v58  ;;  %v4550_v30 = vadd.f32 0.014752088, %v4549_v8  ;;  %v4576_v1 = vmul.f32 2.1237322e-06, %v11863_v17  ;;  %v4894_v58 = vpop.f32.mrf.mxu3 }
 0x5b2   :  { %v4587_v14 = vmul.f32 3.8918573e-05, %v11863_v17  ;;  %vm5622_vm11 = vweird.f32 %v7083_v2  ;;  %v5635_v16 = vmul.f32 2.1237322e-06, %v11870_v35  ;;  %v5646_v28 = vmul.f32 3.8918573e-05, %v11870_v35 }
 0x5b3   :  { %v5618_v36 = vsub.f32 1.0, %v5617_v20  ;;  %v4540_v7 = vmul.f32 %v4539_v48, %v11832_v42  ;;  %v4551_v5 = vmul.f32 %v4550_v30, %v11832_v42  ;;  %v4577_v57 = vadd.f32 0.00028619796, %v4576_v1  ;;  %vm5623_vm13 = vmor %vm5621_vm12, %vm5622_vm11 }
 0x5b4   :  { %v4588_v52 = vadd.f32 0.001143296, %v4587_v14  ;;  %v5636_v18 = vadd.f32 0.00028619796, %v5635_v16  ;;  %v5647_v15 = vadd.f32 0.001143296, %v5646_v28  ;;  %v4771_v19 = vpack.c.bf16 %v11855_v45, %v11847_v40 }
 0x5b5   :  { %v5619_v25 = vmul.f32 %v7083_v2, %v5618_v36  ;;  %v4541_v4 = vadd.f32 0.05243302, %v4540_v7  ;;  %v4552_v41 = vadd.f32 0.112945676, %v4551_v5  ;;  %v4578_v44 = vmul.f32 %v4577_v57, %v11863_v17 }
 0x5b6   :  { %v4589_v37 = vmul.f32 %v4588_v52, %v11863_v17  ;;  %v5637_v51 = vmul.f32 %v5636_v18, %v11870_v35  ;;  %v5648_v13 = vmul.f32 %v5647_v15, %v11870_v35  ;;  %v11889_v63 = vmul.f32 0.70710677, %v11880_v46 }
 0x5b7   :  { %v5620_v38 = vadd.f32 %v7083_v2, %v5619_v25  ;;  %v4553_v0 = vmul.f32 %v4552_v41, %v11832_v42  ;;  %v4579_v23 = vadd.f32 0.0036580483, %v4578_v44  ;;  %v4542_v31 = vmul.f32 %v4541_v4, %v11832_v42 }
 0x5b8   :  { %v4590_v61 = vadd.f32 0.014752088, %v4589_v37  ;;  %v5638_v34 = vadd.f32 0.0036580483, %v5637_v51  ;;  %v5649_v6 = vadd.f32 0.014752088, %v5648_v13  ;;  %v5673_v20 = vmul.f32 %v11889_v63, %v11889_v63 }
 0x5b9   :  { %v5624_v43 = vsel %vm5623_vm13, %v7083_v2, %v5620_v38  ;;  %v4554_v32 = vadd.f32 0.4994258, %v4553_v0  ;;  %v4580_v55 = vmul.f32 %v4579_v23, %v11863_v17  ;;  %v4943_v2 = vmul.f32 0.5, %v11555_v47 }
 0x5ba   :  { %v5629_v9 = vsel %vm5626_vm14, %v5628_v62, %v5624_v43  ;;  %v4591_v10 = vmul.f32 %v4590_v61, %v11863_v17  ;;  %v4944_v8 = vmul.f32 0.5, %v11690_v11  ;;  %v4543_v36 = vadd.f32 0.18741608, %v4542_v31  ;;  %v4896_v43 = vpop.f32.mrf.mxu3 }
 0x5bb   :  { %v5630_v3 = vmul.f32 %v5629_v9, %v5605_v53  ;;  %v4555_v54 = vmul.f32 %v4554_v32, %v11832_v42  ;;  %v4581_v33 = vadd.f32 0.05243302, %v4580_v55  ;;  %v5650_v53 = vmul.f32 %v5649_v6, %v11870_v35 }
 0x5bc   :  { %v4592_v60 = vadd.f32 0.112945676, %v4591_v10  ;;  %v5639_v40 = vmul.f32 %v5638_v34, %v11870_v35  ;;  %v11903_v45 = vmin.f32 %v5673_v20, 16.0  ;;  %v6319_v47 = vmul.f32 %v11860_v59, %v4943_v2 }
 0x5bd   :  { %v6658_v29 = vclamps-f32 %v5630_v3, 1.0  ;;  %v11898_v12 = vadd.f32 1.0, %v4555_v54  ;;  %v4582_v11 = vmul.f32 %v4581_v33, %v11863_v17  ;;  %v5651_v14 = vadd.f32 0.112945676, %v5650_v53 }
 0x5be   :  { %v4593_v48 = vmul.f32 %v4592_v60, %v11863_v17  ;;  %v5675_v21 = vmul.f32 2.1237322e-06, %v11903_v45  ;;  %v4544_v25 = vmul.f32 %v4543_v36, %v11832_v42  ;;  %v5640_v7 = vadd.f32 0.05243302, %v5639_v40  ;;  %v11920_v42 = vld [vmem:[%s12399_s4 + $0x2] ss:$0 sm:$0xff] }
 0x5bf   :  { %v6288_v24 = vadd.f32 1.0, %v6658_v29  ;;  %7084 = vrcp.f32 %v11898_v12  ;;  %v5652_v57 = vmul.f32 %v5651_v14, %v11870_v35  ;;  %v5686_v52 = vmul.f32 3.8918573e-05, %v11903_v45 }
 0x5c0   :  { %v4594_v1 = vadd.f32 0.4994258, %v4593_v48  ;;  %v5676_v59 = vadd.f32 0.00028619796, %v5675_v21  ;;  %v4583_v16 = vadd.f32 0.18741608, %v4582_v11  ;;  %v11923_v18 = vadd.f32 %v11920_v42, %v4894_v58 }
 0x5c1   :  { %v6320_v30 = vmul.f32 %v6288_v24, %v4944_v8  ;;  %4913 = vmatmul.bf16.gmra.mxu3 %v4771_v19  ;;  %v5653_v41 = vadd.f32 0.4994258, %v5652_v57  ;;  %v5687_v44 = vadd.f32 0.001143296, %v5686_v52  ;;  %v4545_v0 = vadd.f32 1.1283791, %v4544_v25 }
 0x5c2   :  { %v4595_v5 = vmul.f32 %v4594_v1, %v11863_v17  ;;  %v5677_v28 = vmul.f32 %v5676_v59, %v11903_v45  ;;  %v5641_v15 = vmul.f32 %v5640_v7, %v11870_v35  ;;  %v4584_v23 = vmul.f32 %v4583_v16, %v11863_v17  ;;  %v3345_v7 = vpop.f32.mrf.mxu2 }
 0x5c3   :  { %v6741_v62 = vpack.c.bf16 %v6320_v30, %v6319_v47  ;;  %v5654_v61 = vmul.f32 %v5653_v41, %v11870_v35  ;;  %v4568_v3 = vand.u32 2147483648, %v11898_v12  ;;  %v5688_v31 = vmul.f32 %v5687_v44, %v11903_v45 }
 0x5c4   :  { %v11913_v4 = vadd.f32 1.0, %v4595_v5  ;;  %v5678_v51 = vadd.f32 0.0036580483, %v5677_v28  ;;  %v11932_v32 = vadd.f32 %v11920_v42, %v4896_v43  ;;  %v11938_v34 = vmul.f32 0.70710677, %v11923_v18 }
 0x5c5   :  { %6789 = vst [vmem:[#allocation2 + $0x38] sm:$0xff] %v6741_v62   ;;  %v7085_v38 = vpop.eup %7084  ;;  %v11934_v55 = vadd.f32 1.0, %v5654_v61  ;;  %v4566_v17 = vand.u32 2147483647, %v11898_v12  ;;  %v5642_v29 = vadd.f32 0.18741608, %v5641_v15  ;;  %vm4562_vm1 = vweird.f32 %v11898_v12 }
 0x5c6   :  { %v4558_v37 = vmul.f32 %v7085_v38, %v11898_v12  ;;  %7086 = vrcp.f32 %v11913_v4  ;;  %vm4563_vm15 = vweird.f32 %v7085_v38  ;;  %v5679_v10 = vmul.f32 %v5678_v51, %v11903_v45 }
 0x5c7   :  { %v5689_v54 = vadd.f32 0.014752088, %v5688_v31  ;;  %v4585_v6 = vadd.f32 1.1283791, %v4584_v23  ;;  %7088 = vrcp.f32 %v11934_v55  ;;  %v11944_v33 = vmul.f32 0.5, %v11817_v50  ;;  %vm4564_vm2 = vmor %vm4562_vm1, %vm4563_vm15 }
 0x5c8   :  { %v4559_v9 = vsub.f32 1.0, %v4558_v37  ;;  %v5713_v20 = vmul.f32 %v11938_v34, %v11938_v34  ;;  %v11951_v58 = vmul.f32 0.70710677, %v11932_v32  ;;  %v4569_v24 = vor.u32 1.1754944e-38, %v4568_v3 }
 0x5c9   :  { %v5690_v60 = vmul.f32 %v5689_v54, %v11903_v45  ;;  %v5680_v53 = vadd.f32 0.05243302, %v5679_v10  ;;  %v4546_v36 = vmul.f32 %v4545_v0, %v11822_v56  ;;  %vm4567_vm3 = vcmp.eq.f32.partialorder %v4566_v17, 8.507059e+37 }
 0x5ca   :  { %v4560_v13 = vmul.f32 %v7085_v38, %v4559_v9  ;;  %v5643_v50 = vmul.f32 %v5642_v29, %v11870_v35  ;;  %v4586_v47 = vmul.f32 %v4585_v6, %v11845_v39  ;;  %v11957_v11 = vmin.f32 %v5713_v20, 16.0 }
 0x5cb   :  { %v5691_v48 = vadd.f32 0.112945676, %v5690_v60  ;;  %v4608_v62 = vand.u32 2147483648, %v11913_v4  ;;  %v5753_v14 = vmul.f32 %v11951_v58, %v11951_v58  ;;  %v5681_v35 = vmul.f32 %v5680_v53, %v11903_v45 }
 0x5cc   :  { %v4561_v19 = vadd.f32 %v7085_v38, %v4560_v13  ;;  %v7087_v2 = vpop.eup %7086  ;;  %v5715_v25 = vmul.f32 2.1237322e-06, %v11957_v11  ;;  %v5726_v39 = vmul.f32 3.8918573e-05, %v11957_v11  ;;  %v4606_v57 = vand.u32 2147483647, %v11913_v4 }
 0x5cd   :  { %v4598_v12 = vmul.f32 %v7087_v2, %v11913_v4  ;;  %vm4603_vm4 = vweird.f32 %v7087_v2  ;;  %v5692_v1 = vmul.f32 %v5691_v48, %v11903_v45  ;;  %v11963_v21 = vpop.eup %7088  ;;  %vm4602_vm5 = vweird.f32 %v11913_v4 }
 0x5ce   :  { %v4565_v8 = vsel %vm4564_vm2, %v7085_v38, %v4561_v19  ;;  %v5657_v59 = vmul.f32 %v11963_v21, %v11934_v55  ;;  %v5716_v38 = vadd.f32 0.00028619796, %v5715_v25  ;;  %v5727_v41 = vadd.f32 0.001143296, %v5726_v39  ;;  %vm4604_vm0 = vmor %vm4602_vm5, %vm4603_vm4 }
 0x5cf   :  { %v4570_v40 = vsel %vm4567_vm3, %v4569_v24, %v4565_v8  ;;  %v4599_v30 = vsub.f32 1.0, %v4598_v12  ;;  %v5693_v52 = vadd.f32 0.4994258, %v5692_v1  ;;  %v11974_v37 = vmin.f32 %v5753_v14, 16.0 }
 0x5d0   :  { %v4571_v5 = vmul.f32 %v4570_v40, %v4546_v36  ;;  %v5658_v28 = vsub.f32 1.0, %v5657_v59  ;;  %v11977_v43 = vadd.f32 %v11814_v26, %v3345_v7  ;;  %v4609_v15 = vor.u32 1.1754944e-38, %v4608_v62 }
 0x5d1   :  { %v4600_v56 = vmul.f32 %v7087_v2, %v4599_v30  ;;  %v5694_v44 = vmul.f32 %v5693_v52, %v11903_v45  ;;  %v5682_v9 = vadd.f32 0.18741608, %v5681_v35  ;;  %v5728_v23 = vmul.f32 %v5727_v41, %v11957_v11 }
 0x5d2   :  { %v6607_v61 = vclamps-f32 %v4571_v5, 1.0  ;;  %vm4607_vm6 = vcmp.eq.f32.partialorder %v4606_v57, 8.507059e+37  ;;  %v5659_v4 = vmul.f32 %v11963_v21, %v5658_v28  ;;  %v5717_v31 = vmul.f32 %v5716_v38, %v11957_v11 }
 0x5d3   :  { %v4601_v16 = vadd.f32 %v7087_v2, %v4600_v56  ;;  %v11981_v51 = vadd.f32 1.0, %v5694_v44  ;;  %v5729_v13 = vadd.f32 0.014752088, %v5728_v23  ;;  %v5755_v10 = vmul.f32 2.1237322e-06, %v11974_v37 }
 0x5d4   :  { %v5644_v17 = vadd.f32 1.1283791, %v5643_v50  ;;  %v5665_v29 = vand.u32 2147483647, %v11934_v55  ;;  %v11988_v54 = vmul.f32 0.70710677, %v11977_v43  ;;  %v5660_v19 = vadd.f32 %v11963_v21, %v5659_v4 }
 0x5d5   :  { %v4605_v0 = vsel %vm4604_vm0, %v7087_v2, %v4601_v16  ;;  %7090 = vrcp.f32 %v11981_v51  ;;  %vm5662_vm7 = vweird.f32 %v11963_v21  ;;  %v5683_v6 = vmul.f32 %v5682_v9, %v11903_v45 }
 0x5d6   :  { %v4610_v3 = vsel %vm4607_vm6, %v4609_v15, %v4605_v0  ;;  %v5730_v2 = vmul.f32 %v5729_v13, %v11957_v11  ;;  %v5667_v20 = vand.u32 2147483648, %v11934_v55  ;;  %v5756_v8 = vadd.f32 0.00028619796, %v5755_v10 }
 0x5d7   :  { %v4611_v60 = vmul.f32 %v4610_v3, %v4586_v47  ;;  %v5766_v24 = vmul.f32 3.8918573e-05, %v11974_v37  ;;  %v4722_v12 = vadd.f32 1.0, %v6607_v61  ;;  %v3379_v53 = vmul.f32 0.5, %v11835_v49  ;;  %v3347_v61 = vpop.f32.mrf.mxu2 }
 0x5d8   :  { %vm5661_vm8 = vweird.f32 %v11934_v55  ;;  %v5718_v36 = vadd.f32 0.0036580483, %v5717_v31  ;;  %v5645_v50 = vmul.f32 %v5644_v17, %v11853_v27  ;;  %v5731_v45 = vadd.f32 0.112945676, %v5730_v2 }
 0x5d9   :  { %vm11999_vm9 = vmor %vm5661_vm8, %vm5662_vm7  ;;  %v5757_v40 = vmul.f32 %v5756_v8, %v11974_v37  ;;  %v5767_v47 = vadd.f32 0.001143296, %v5766_v24  ;;  %vm5666_vm10 = vcmp.eq.f32.partialorder %v5665_v29, 8.507059e+37  ;;  %v5684_v62 = vadd.f32 1.1283791, %v5683_v6 }
 0x5da   :  { %v5664_v30 = vsel %vm11999_vm9, %v11963_v21, %v5660_v19  ;;  %v4614_v49 = vmul.f32 %v11988_v54, %v11988_v54  ;;  %v6608_v1 = vclamps-f32 %v4611_v60, 1.0  ;;  %v5668_v27 = vor.u32 1.1754944e-38, %v5667_v20 }
 0x5db   :  { %v7091_v55 = vpop.eup %7090  ;;  %v5732_v14 = vmul.f32 %v5731_v45, %v11957_v11  ;;  %v5768_v56 = vmul.f32 %v5767_v47, %v11974_v37  ;;  %v4754_v35 = vmul.f32 %v4722_v12, %v11944_v33  ;;  %v5719_v39 = vmul.f32 %v5718_v36, %v11957_v11 }
 0x5dc   :  { %v5697_v25 = vmul.f32 %v7091_v55, %v11981_v51  ;;  %v12014_v7 = vmin.f32 %v4614_v49, 16.0  ;;  %v5669_v21 = vsel %vm5666_vm10, %v5668_v27, %v5664_v30  ;;  %v5758_v57 = vadd.f32 0.0036580483, %v5757_v40 }
 0x5dd   :  { %v5733_v5 = vadd.f32 0.4994258, %v5732_v14  ;;  %v5769_v59 = vadd.f32 0.014752088, %v5768_v56  ;;  %v5685_v52 = vmul.f32 %v5684_v62, %v11889_v63  ;;  %v5707_v38 = vand.u32 2147483648, %v11981_v51 }
 0x5de   :  { %v5698_v16 = vsub.f32 1.0, %v5697_v25  ;;  %v4627_v41 = vmul.f32 3.8918573e-05, %v12014_v7  ;;  %v4723_v28 = vadd.f32 1.0, %v6608_v1  ;;  %v5705_v33 = vand.u32 2147483647, %v11981_v51 }
 0x5df   :  { %v5734_v44 = vmul.f32 %v5733_v5, %v11957_v11  ;;  %v5770_v0 = vmul.f32 %v5769_v59, %v11974_v37  ;;  %v5670_v15 = vmul.f32 %v5669_v21, %v5645_v50  ;;  %vm5702_vm11 = vweird.f32 %v7091_v55 }
 0x5e0   :  { %v5699_v9 = vmul.f32 %v7091_v55, %v5698_v16  ;;  %v4628_v23 = vadd.f32 0.001143296, %v4627_v41  ;;  %v5720_v4 = vadd.f32 0.05243302, %v5719_v39  ;;  %v5759_v63 = vmul.f32 %v5758_v57, %v11974_v37 }
 0x5e1   :  { %v12022_v3 = vadd.f32 1.0, %v5734_v44  ;;  %v5771_v31 = vadd.f32 0.112945676, %v5770_v0  ;;  %vm5701_vm12 = vweird.f32 %v11981_v51  ;;  %v5708_v10 = vor.u32 1.1754944e-38, %v5707_v38 }
 0x5e2   :  { %v5700_v13 = vadd.f32 %v7091_v55, %v5699_v9  ;;  %v4629_v17 = vmul.f32 %v4628_v23, %v12014_v7  ;;  %v4755_v29 = vmul.f32 %v4723_v28, %v3379_v53  ;;  %vm5703_vm13 = vmor %vm5701_vm12, %vm5702_vm11  ;;  %v4616_v19 = vmul.f32 2.1237322e-06, %v12014_v7 }
 0x5e3   :  { %7092 = vrcp.f32 %v12022_v3  ;;  %v12030_v6 = vadd.f32 %v11814_v26, %v3347_v61  ;;  %v6659_v2 = vclamps-f32 %v5670_v15, 1.0  ;;  %vm5706_vm14 = vcmp.eq.f32.partialorder %v5705_v33, 8.507059e+37 }
 0x5e4   :  { %v5704_v60 = vsel %vm5703_vm13, %v7091_v55, %v5700_v13  ;;  %v5772_v20 = vmul.f32 %v5771_v31, %v11974_v37  ;;  %v5721_v51 = vmul.f32 %v5720_v4, %v11957_v11  ;;  %v5760_v24 = vadd.f32 0.05243302, %v5759_v63 }
 0x5e5   :  { %v5709_v8 = vsel %vm5706_vm14, %v5708_v10, %v5704_v60  ;;  %v4630_v12 = vadd.f32 0.014752088, %v4629_v17  ;;  %v4617_v50 = vadd.f32 0.00028619796, %v4616_v19  ;;  %v12036_v45 = vmul.f32 0.70710677, %v12030_v6 }
 0x5e6   :  { %v5710_v36 = vmul.f32 %v5709_v8, %v5685_v52  ;;  %v5773_v53 = vadd.f32 0.4994258, %v5772_v20  ;;  %v4772_v26 = vpack.c.bf16 %v4755_v29, %v4754_v35  ;;  %v6289_v40 = vadd.f32 1.0, %v6659_v2 }
 0x5e7   :  { %v4631_v48 = vmul.f32 %v4630_v12, %v12014_v7  ;;  %v5722_v49 = vadd.f32 0.18741608, %v5721_v51  ;;  %v5761_v55 = vmul.f32 %v5760_v24, %v11974_v37  ;;  %v4654_v27 = vmul.f32 %v12036_v45, %v12036_v45 }
 0x5e8   :  { %v6660_v47 = vclamps-f32 %v5710_v36, 1.0  ;;  %v5774_v30 = vmul.f32 %v5773_v53, %v11974_v37  ;;  %4918 = vmatmul.bf16.gmra.mxu3 %v4772_v26  ;;  %v4945_v14 = vmul.f32 0.5, %v11840_v22  ;;  %v4946_v56 = vmul.f32 0.5, %v11880_v46 }
 0x5e9   :  { %v7093_v62 = vpop.eup %7092  ;;  %v4632_v1 = vadd.f32 0.112945676, %v4631_v48  ;;  %v4618_v21 = vmul.f32 %v4617_v50, %v12014_v7  ;;  %v12049_v57 = vmin.f32 %v4654_v27, 16.0  ;;  %v5723_v38 = vmul.f32 %v5722_v49, %v11957_v11 }
 0x5ea   :  { %v6290_v25 = vadd.f32 1.0, %v6660_v47  ;;  %v5737_v35 = vmul.f32 %v7093_v62, %v12022_v3  ;;  %v12045_v39 = vadd.f32 1.0, %v5774_v30  ;;  %v6321_v59 = vmul.f32 %v6289_v40, %v4945_v14 }
 0x5eb   :  { %v4633_v5 = vmul.f32 %v4632_v1, %v12014_v7  ;;  %v5747_v22 = vand.u32 2147483648, %v12022_v3  ;;  %v5762_v41 = vadd.f32 0.18741608, %v5761_v55  ;;  %vm5742_vm15 = vweird.f32 %v7093_v62 }
 0x5ec   :  { %v6322_v52 = vmul.f32 %v6290_v25, %v4946_v56  ;;  %v5738_v16 = vsub.f32 1.0, %v5737_v35  ;;  %7094 = vrcp.f32 %v12045_v39  ;;  %v4619_v44 = vadd.f32 0.0036580483, %v4618_v21 }
 0x5ed   :  { %v4634_v33 = vadd.f32 0.4994258, %v4633_v5  ;;  %v4656_v0 = vmul.f32 2.1237322e-06, %v12049_v57  ;;  %v4667_v15 = vmul.f32 3.8918573e-05, %v12049_v57  ;;  %vm5741_vm1 = vweird.f32 %v12022_v3 }
 0x5ee   :  { %v6746_v46 = vpack.c.bf16 %v6322_v52, %v6321_v59  ;;  %v5739_v28 = vmul.f32 %v7093_v62, %v5738_v16  ;;  %v5745_v11 = vand.u32 2147483647, %v12022_v3  ;;  %vm12059_vm2 = vmor %vm5741_vm1, %vm5742_vm15  ;;  %v5763_v4 = vmul.f32 %v5762_v41, %v11974_v37 }
 0x5ef   :  { %v4635_v23 = vmul.f32 %v4634_v33, %v12014_v7  ;;  %v4657_v63 = vadd.f32 0.00028619796, %v4656_v0  ;;  %v4668_v31 = vadd.f32 0.001143296, %v4667_v15  ;;  %v5724_v13 = vadd.f32 1.1283791, %v5723_v38 }
 0x5f0   :  { %6790 = vst [vmem:[#allocation2 + $0x40] sm:$0xff] %v6746_v46   ;;  %v5740_v9 = vadd.f32 %v7093_v62, %v5739_v28  ;;  %v5748_v19 = vor.u32 1.1754944e-38, %v5747_v22  ;;  %v4620_v3 = vmul.f32 %v4619_v44, %v12014_v7  ;;  %vm5746_vm3 = vcmp.eq.f32.partialorder %v5745_v11, 8.507059e+37 }
 0x5f1   :  { %v12066_v17 = vadd.f32 1.0, %v4635_v23  ;;  %v4658_v2 = vmul.f32 %v4657_v63, %v12049_v57  ;;  %v4669_v60 = vmul.f32 %v4668_v31, %v12049_v57  ;;  %v5764_v51 = vadd.f32 1.1283791, %v5763_v4 }
 0x5f2   :  { %v5744_v10 = vsel %vm12059_vm2, %v7093_v62, %v5740_v9  ;;  %v7095_v29 = vpop.eup %7094  ;;  %v5725_v24 = vmul.f32 %v5724_v13, %v11938_v34  ;;  %v5785_v50 = vand.u32 2147483647, %v12045_v39  ;;  %v5787_v48 = vand.u32 2147483648, %v12045_v39 }
 0x5f3   :  { %v5777_v37 = vmul.f32 %v7095_v29, %v12045_v39  ;;  %v5749_v8 = vsel %vm5746_vm3, %v5748_v19, %v5744_v10  ;;  %7096 = vrcp.f32 %v12066_v17  ;;  %v4659_v36 = vadd.f32 0.0036580483, %v4658_v2 }
 0x5f4   :  { %v4899_v20 = vpop.f32.mrf.mxu3  ;;  %v4670_v53 = vadd.f32 0.014752088, %v4669_v60  ;;  %v4621_v26 = vadd.f32 0.05243302, %v4620_v3  ;;  %v5750_v47 = vmul.f32 %v5749_v8, %v5725_v24  ;;  %vm5782_vm4 = vweird.f32 %v7095_v29 }
 0x5f5   :  { %v5778_v12 = vsub.f32 1.0, %v5777_v37  ;;  %v12077_v40 = vadd.f32 %v11920_v42, %v4899_v20  ;;  %vm5781_vm5 = vweird.f32 %v12045_v39  ;;  %v4660_v55 = vmul.f32 %v4659_v36, %v12049_v57 }
 0x5f6   :  { %v4671_v62 = vmul.f32 %v4670_v53, %v12049_v57  ;;  %v5765_v14 = vmul.f32 %v5764_v51, %v11951_v58  ;;  %vm5783_vm0 = vmor %vm5781_vm5, %vm5782_vm4  ;;  %v5788_v56 = vor.u32 1.1754944e-38, %v5787_v48  ;;  %v4622_v25 = vmul.f32 %v4621_v26, %v12014_v7 }
 0x5f7   :  { %v5779_v30 = vmul.f32 %v7095_v29, %v5778_v12  ;;  %v12081_v49 = vmul.f32 0.70710677, %v12077_v40  ;;  %v6661_v5 = vclamps-f32 %v5750_v47, 1.0  ;;  %vm5786_vm6 = vcmp.eq.f32.partialorder %v5785_v50, 8.507059e+37 }
 0x5f8   :  { %v4672_v1 = vadd.f32 0.112945676, %v4671_v62  ;;  %v4661_v46 = vadd.f32 0.05243302, %v4660_v55  ;;  %v4947_v0 = vmul.f32 0.5, %v11923_v18  ;;  %v4948_v9 = vmul.f32 0.5, %v11932_v32 }
 0x5f9   :  { %v5780_v34 = vadd.f32 %v7095_v29, %v5779_v30  ;;  %v12085_v27 = vpop.eup %7096  ;;  %v5793_v35 = vmul.f32 %v12081_v49, %v12081_v49  ;;  %v6291_v15 = vadd.f32 1.0, %v6661_v5  ;;  %v4623_v23 = vadd.f32 0.18741608, %v4622_v25 }
 0x5fa   :  { %v4638_v39 = vmul.f32 %v12085_v27, %v12066_v17  ;;  %v4673_v16 = vmul.f32 %v4672_v1, %v12049_v57  ;;  %v4662_v10 = vmul.f32 %v4661_v46, %v12049_v57  ;;  %vm4643_vm7 = vweird.f32 %v12085_v27 }
 0x5fb   :  { %v5784_v59 = vsel %vm5783_vm0, %v7095_v29, %v5780_v34  ;;  %v12094_v38 = vmin.f32 %v5793_v35, 16.0  ;;  %v6323_v3 = vmul.f32 %v6291_v15, %v4947_v0  ;;  %v4624_v60 = vmul.f32 %v4623_v23, %v12014_v7 }
 0x5fc   :  { %v4901_v21 = vpop.f32.mrf.mxu3  ;;  %v5789_v52 = vsel %vm5786_vm6, %v5788_v56, %v5784_v59  ;;  %v4639_v41 = vsub.f32 1.0, %v4638_v39  ;;  %v4674_v28 = vadd.f32 0.4994258, %v4673_v16  ;;  %v4648_v20 = vand.u32 2147483648, %v12066_v17 }
 0x5fd   :  { %v12097_v58 = vadd.f32 %v11920_v42, %v4901_v21  ;;  %v5790_v22 = vmul.f32 %v5789_v52, %v5765_v14  ;;  %v5795_v33 = vmul.f32 2.1237322e-06, %v12094_v38  ;;  %v5806_v44 = vmul.f32 3.8918573e-05, %v12094_v38 }
 0x5fe   :  { %v4675_v61 = vmul.f32 %v4674_v28, %v12049_v57  ;;  %v4640_v13 = vmul.f32 %v12085_v27, %v4639_v41  ;;  %v4663_v51 = vadd.f32 0.18741608, %v4662_v10  ;;  %vm4642_vm8 = vweird.f32 %v12066_v17 }
 0x5ff   :  { %v6662_v11 = vclamps-f32 %v5790_v22, 1.0  ;;  %v5807_v4 = vadd.f32 0.001143296, %v5806_v44  ;;  %v12105_v63 = vmul.f32 0.70710677, %v12097_v58  ;;  %vm4644_vm9 = vmor %vm4642_vm8, %vm4643_vm7  ;;  %v4649_v30 = vor.u32 1.1754944e-38, %v4648_v20 }
 0x600   :  { %v5796_v29 = vadd.f32 0.00028619796, %v5795_v33  ;;  %v12109_v19 = vadd.f32 1.0, %v4675_v61  ;;  %v4641_v8 = vadd.f32 %v12085_v27, %v4640_v13  ;;  %v4646_v7 = vand.u32 2147483647, %v12066_v17 }
 0x601   :  { %v6292_v31 = vadd.f32 1.0, %v6662_v11  ;;  %v5808_v18 = vmul.f32 %v5807_v4, %v12094_v38  ;;  %v5833_v32 = vmul.f32 %v12105_v63, %v12105_v63  ;;  %v4625_v53 = vadd.f32 1.1283791, %v4624_v60 }
 0x602   :  { %7098 = vrcp.f32 %v12109_v19  ;;  %v5797_v24 = vmul.f32 %v5796_v29, %v12094_v38  ;;  %v4645_v47 = vsel %vm4644_vm9, %v12085_v27, %v4641_v8  ;;  %v4664_v62 = vmul.f32 %v4663_v51, %v12049_v57 }
 0x603   :  { %v6324_v2 = vmul.f32 %v6292_v31, %v4948_v9  ;;  %v5809_v12 = vadd.f32 0.014752088, %v5808_v18  ;;  %v12120_v36 = vmin.f32 %v5833_v32, 16.0  ;;  %vm4647_vm10 = vcmp.eq.f32.partialorder %v4646_v7, 8.507059e+37 }
 0x604   :  { %v5798_v34 = vadd.f32 0.0036580483, %v5797_v24  ;;  %v4650_v25 = vsel %vm4647_vm10, %v4649_v30, %v4645_v47  ;;  %v4626_v27 = vmul.f32 %v4625_v53, %v11988_v54  ;;  %v4665_v59 = vadd.f32 1.1283791, %v4664_v62 }
 0x605   :  { %v6751_v37 = vpack.c.bf16 %v6324_v2, %v6323_v3  ;;  %v5810_v50 = vmul.f32 %v5809_v12, %v12094_v38  ;;  %v5835_v48 = vmul.f32 2.1237322e-06, %v12120_v36  ;;  %v5846_v26 = vmul.f32 3.8918573e-05, %v12120_v36 }
 0x606   :  { %v4688_v57 = vand.u32 2147483648, %v12109_v19  ;;  %v5799_v52 = vmul.f32 %v5798_v34, %v12094_v38  ;;  %v4651_v46 = vmul.f32 %v4650_v25, %v4626_v27  ;;  %v4686_v33 = vand.u32 2147483647, %v12109_v19 }
 0x607   :  { %6791 = vst [vmem:[#allocation2 + $0x48] sm:$0xff] %v6751_v37   ;;  %v5811_v1 = vadd.f32 0.112945676, %v5810_v50  ;;  %v5836_v14 = vadd.f32 0.00028619796, %v5835_v48  ;;  %vm4682_vm12 = vweird.f32 %v12109_v19  ;;  %v4666_v31 = vmul.f32 %v4665_v59, %v12036_v45 }
 0x608   :  { %v7099_v55 = vpop.eup %7098  ;;  %v5847_v56 = vadd.f32 0.001143296, %v5846_v26  ;;  %v4689_v54 = vor.u32 1.1754944e-38, %v4688_v57  ;;  %v5800_v9 = vadd.f32 0.05243302, %v5799_v52  ;;  %v6609_v4 = vclamps-f32 %v4651_v46, 1.0 }
 0x609   :  { %v4678_v17 = vmul.f32 %v7099_v55, %v12109_v19  ;;  %v5812_v35 = vmul.f32 %v5811_v1, %v12094_v38  ;;  %v5837_v21 = vmul.f32 %v5836_v14, %v12120_v36  ;;  %vm4683_vm11 = vweird.f32 %v7099_v55 }
 0x60a   :  { %v5848_v5 = vmul.f32 %v5847_v56, %v12120_v36  ;;  %vm4684_vm13 = vmor %vm4682_vm12, %vm4683_vm11  ;;  %vm4687_vm14 = vcmp.eq.f32.partialorder %v4686_v33, 8.507059e+37  ;;  %v5801_v32 = vmul.f32 %v5800_v9, %v12094_v38  ;;  %v4724_v3 = vadd.f32 1.0, %v6609_v4 }
 0x60b   :  { %v4679_v39 = vsub.f32 1.0, %v4678_v17  ;;  %v5813_v16 = vadd.f32 0.4994258, %v5812_v35  ;;  %v5838_v22 = vadd.f32 0.0036580483, %v5837_v21  ;;  %v3380_v20 = vmul.f32 0.5, %v11977_v43 }
 0x60c   :  { %v5849_v41 = vadd.f32 0.014752088, %v5848_v5  ;;  %v3381_v37 = vmul.f32 0.5, %v12030_v6  ;;  %v5802_v24 = vadd.f32 0.18741608, %v5801_v32 }
 0x60d   :  { %v4680_v28 = vmul.f32 %v7099_v55, %v4679_v39  ;;  %v5814_v44 = vmul.f32 %v5813_v16, %v12094_v38  ;;  %v5839_v23 = vmul.f32 %v5838_v22, %v12120_v36  ;;  %v4756_v7 = vmul.f32 %v4724_v3, %v3380_v20 }
 0x60e   :  { %v5850_v0 = vmul.f32 %v5849_v41, %v12120_v36  ;;  %v5803_v62 = vmul.f32 %v5802_v24, %v12094_v38 }
 0x60f   :  { %v4681_v15 = vadd.f32 %v7099_v55, %v4680_v28  ;;  %v5815_v11 = vadd.f32 1.0, %v5814_v44  ;;  %v5840_v19 = vadd.f32 0.05243302, %v5839_v23 }
 0x610   :  { %v5851_v61 = vadd.f32 0.112945676, %v5850_v0  ;;  %v5804_v17 = vadd.f32 1.1283791, %v5803_v62 }
 0x611   :  { %v4685_v13 = vsel %vm4684_vm13, %v7099_v55, %v4681_v15  ;;  %7100 = vrcp.f32 %v5815_v11  ;;  %v5841_v12 = vmul.f32 %v5840_v19, %v12120_v36  ;;  %v5827_v6 = vand.u32 2147483648, %v5815_v11 }
 0x612   :  { %v4690_v10 = vsel %vm4687_vm14, %v4689_v54, %v4685_v13  ;;  %v5852_v18 = vmul.f32 %v5851_v61, %v12120_v36  ;;  %v5825_v1 = vand.u32 2147483647, %v5815_v11  ;;  %vm5821_vm1 = vweird.f32 %v5815_v11 }
 0x613   :  { %v4691_v29 = vmul.f32 %v4690_v10, %v4666_v31  ;;  %v5842_v34 = vadd.f32 0.18741608, %v5841_v12  ;;  %v5828_v35 = vor.u32 1.1754944e-38, %v5827_v6  ;;  %v5805_v52 = vmul.f32 %v5804_v17, %v12081_v49 }
 0x614   :  { %v5853_v60 = vadd.f32 0.4994258, %v5852_v18  ;;  %vm5826_vm3 = vcmp.eq.f32.partialorder %v5825_v1, 8.507059e+37 }
 0x615   :  { %v6610_v2 = vclamps-f32 %v4691_v29, 1.0  ;;  %v5843_v25 = vmul.f32 %v5842_v34, %v12120_v36 }
 0x616   :  { %v5854_v45 = vmul.f32 %v5853_v60, %v12120_v36 }
 0x617   :  { %v4725_v8 = vadd.f32 1.0, %v6610_v2  ;;  %v7101_v51 = vpop.eup %7100  ;;  %v5844_v16 = vadd.f32 1.1283791, %v5843_v25 }
 0x618   :  { %v5817_v50 = vmul.f32 %v7101_v51, %v5815_v11  ;;  %v5855_v48 = vadd.f32 1.0, %v5854_v45  ;;  %vm5822_vm15 = vweird.f32 %v7101_v51 }
 0x619   :  { %v4757_v53 = vmul.f32 %v4725_v8, %v3381_v37  ;;  %vm5823_vm2 = vmor %vm5821_vm1, %vm5822_vm15  ;;  %v5845_v4 = vmul.f32 %v5844_v16, %v12105_v63 }
 0x61a   :  { %v5818_v26 = vsub.f32 1.0, %v5817_v50  ;;  %7102 = vrcp.f32 %v5855_v48  ;;  %v5865_v33 = vand.u32 2147483647, %v5855_v48  ;;  %v5867_v44 = vand.u32 2147483648, %v5855_v48 }
 0x61b   :  { %v4773_v30 = vpack.c.bf16 %v4757_v53, %v4756_v7  ;;  %vm5861_vm5 = vweird.f32 %v5855_v48 }
 0x61c   :  { %v5819_v43 = vmul.f32 %v7101_v51, %v5818_v26  ;;  %vm5866_vm6 = vcmp.eq.f32.partialorder %v5865_v33, 8.507059e+37  ;;  %v5868_v31 = vor.u32 1.1754944e-38, %v5867_v44 }
 0x61d   :  { %4923 = vmatmul.bf16.gmra.mxu3 %v4773_v30  ;;  %v4950_v30 = vmul.f32 0.5, %v12097_v58 }
 0x61e   :  { %v5820_v14 = vadd.f32 %v7101_v51, %v5819_v43 }
 0x620   :  { %v5824_v38 = vsel %vm5823_vm2, %v7101_v51, %v5820_v14  ;;  %v7103_v5 = vpop.eup %7102 }
 0x621   :  { %v5829_v27 = vsel %vm5826_vm3, %v5828_v35, %v5824_v38  ;;  %v5857_v59 = vmul.f32 %v7103_v5, %v5855_v48  ;;  %vm5862_vm4 = vweird.f32 %v7103_v5 }
 0x622   :  { %v5830_v28 = vmul.f32 %v5829_v27, %v5805_v52  ;;  %vm5863_vm0 = vmor %vm5861_vm5, %vm5862_vm4 }
 0x623   :  { %v5858_v41 = vsub.f32 1.0, %v5857_v59 }
 0x624   :  { %v4904_v47 = vpop.f32.mrf.mxu3  ;;  %v6663_v10 = vclamps-f32 %v5830_v28, 1.0 }
 0x625   :  { %v12150_v55 = vadd.f32 %v11920_v42, %v4904_v47  ;;  %v5859_v15 = vmul.f32 %v7103_v5, %v5858_v41  ;;  %v4949_v47 = vmul.f32 0.5, %v12077_v40 }
 0x626   :  { %v6293_v24 = vadd.f32 1.0, %v6663_v10 }
 0x627   :  { %v12153_v56 = vmul.f32 0.70710677, %v12150_v55  ;;  %v5860_v11 = vadd.f32 %v7103_v5, %v5859_v15 }
 0x628   :  { %v6325_v14 = vmul.f32 %v6293_v24, %v4949_v47 }
 0x629   :  { %v5873_v21 = vmul.f32 %v12153_v56, %v12153_v56  ;;  %v5864_v29 = vsel %vm5863_vm0, %v7103_v5, %v5860_v11 }
 0x62a   :  { %v5869_v3 = vsel %vm5866_vm6, %v5868_v31, %v5864_v29 }
 0x62b   :  { %v12158_v39 = vmin.f32 %v5873_v21, 16.0  ;;  %v5870_v37 = vmul.f32 %v5869_v3, %v5845_v4 }
 0x62c   :  { %v4906_v57 = vpop.f32.mrf.mxu3 }
 0x62d   :  { %v12162_v22 = vadd.f32 %v11920_v42, %v4906_v57  ;;  %v5875_v36 = vmul.f32 2.1237322e-06, %v12158_v39  ;;  %v5886_v46 = vmul.f32 3.8918573e-05, %v12158_v39  ;;  %v6664_v12 = vclamps-f32 %v5870_v37, 1.0 }
 0x62f   :  { %v12167_v0 = vmul.f32 0.70710677, %v12162_v22  ;;  %v5876_v54 = vadd.f32 0.00028619796, %v5875_v36  ;;  %v5887_v9 = vadd.f32 0.001143296, %v5886_v46 }
 0x630   :  { %v6294_v62 = vadd.f32 1.0, %v6664_v12 }
 0x631   :  { %v5913_v49 = vmul.f32 %v12167_v0, %v12167_v0  ;;  %v5877_v23 = vmul.f32 %v5876_v54, %v12158_v39  ;;  %v5888_v61 = vmul.f32 %v5887_v9, %v12158_v39 }
 0x632   :  { %v6326_v17 = vmul.f32 %v6294_v62, %v4950_v30 }
 0x633   :  { %v12174_v13 = vmin.f32 %v5913_v49, 16.0  ;;  %v5878_v18 = vadd.f32 0.0036580483, %v5877_v23  ;;  %v5889_v32 = vadd.f32 0.014752088, %v5888_v61 }
 0x634   :  { %v4909_v19 = vpop.f32.mrf.mxu3  ;;  %v6756_v40 = vpack.c.bf16 %v6326_v17, %v6325_v14 }
 0x635   :  { %v5915_v2 = vmul.f32 2.1237322e-06, %v12174_v13  ;;  %v5926_v60 = vmul.f32 3.8918573e-05, %v12174_v13  ;;  %v12179_v20 = vadd.f32 %v11920_v42, %v4909_v19  ;;  %v5879_v63 = vmul.f32 %v5878_v18, %v12158_v39 }
 0x636   :  { %v5890_v8 = vmul.f32 %v5889_v32, %v12158_v39  ;;  %6792 = vst [vmem:[#allocation2 + $0x50] sm:$0xff] %v6756_v40  }
 0x637   :  { %v5916_v45 = vadd.f32 0.00028619796, %v5915_v2  ;;  %v5927_v51 = vadd.f32 0.001143296, %v5926_v60  ;;  %v5880_v53 = vadd.f32 0.05243302, %v5879_v63 }
 0x638   :  { %v5891_v7 = vadd.f32 0.112945676, %v5890_v8  ;;  %v12186_v26 = vmul.f32 0.70710677, %v12179_v20 }
 0x639   :  { %v5917_v50 = vmul.f32 %v5916_v45, %v12174_v13  ;;  %v5928_v48 = vmul.f32 %v5927_v51, %v12174_v13  ;;  %v5881_v35 = vmul.f32 %v5880_v53, %v12158_v39 }
 0x63a   :  { %v5892_v34 = vmul.f32 %v5891_v7, %v12158_v39  ;;  %v5953_v1 = vmul.f32 %v12186_v26, %v12186_v26 }
 0x63b   :  { %v5918_v43 = vadd.f32 0.0036580483, %v5917_v50  ;;  %v5929_v6 = vadd.f32 0.014752088, %v5928_v48  ;;  %v5882_v36 = vadd.f32 0.18741608, %v5881_v35 }
 0x63c   :  { %v5893_v25 = vadd.f32 0.4994258, %v5892_v34  ;;  %v4911_v38 = vpop.f32.mrf.mxu3  ;;  %v12195_v5 = vmin.f32 %v5953_v1, 16.0 }
 0x63d   :  { %v5930_v21 = vmul.f32 %v5929_v6, %v12174_v13  ;;  %v5919_v27 = vmul.f32 %v5918_v43, %v12174_v13  ;;  %v12202_v41 = vadd.f32 %v11920_v42, %v4911_v38  ;;  %v5883_v49 = vmul.f32 %v5882_v36, %v12158_v39 }
 0x63e   :  { %v5894_v58 = vmul.f32 %v5893_v25, %v12158_v39  ;;  %v5955_v52 = vmul.f32 2.1237322e-06, %v12195_v5  ;;  %v5966_v16 = vmul.f32 3.8918573e-05, %v12195_v5 }
 0x63f   :  { %v5931_v59 = vadd.f32 0.112945676, %v5930_v21  ;;  %v5920_v28 = vadd.f32 0.05243302, %v5919_v27  ;;  %v12206_v54 = vmul.f32 0.70710677, %v12202_v41 }
 0x640   :  { %v5895_v57 = vadd.f32 1.0, %v5894_v58  ;;  %v5956_v44 = vadd.f32 0.00028619796, %v5955_v52  ;;  %v5967_v15 = vadd.f32 0.001143296, %v5966_v16 }
 0x641   :  { %v5932_v46 = vmul.f32 %v5931_v59, %v12174_v13  ;;  %v5921_v23 = vmul.f32 %v5920_v28, %v12174_v13  ;;  %v5993_v4 = vmul.f32 %v12206_v54, %v12206_v54  ;;  %v5884_v2 = vadd.f32 1.1283791, %v5883_v49 }
 0x642   :  { %7104 = vrcp.f32 %v5895_v57  ;;  %v5968_v61 = vmul.f32 %v5967_v15, %v12195_v5  ;;  %v5957_v18 = vmul.f32 %v5956_v44, %v12195_v5  ;;  %v5905_v60 = vand.u32 2147483647, %v5895_v57 }
 0x643   :  { %v5933_v33 = vadd.f32 0.4994258, %v5932_v46  ;;  %v12220_v19 = vmin.f32 %v5993_v4, 16.0  ;;  %v5922_v37 = vadd.f32 0.18741608, %v5921_v23  ;;  %v5907_v51 = vand.u32 2147483648, %v5895_v57 }
 0x644   :  { %v4914_v9 = vpop.f32.mrf.mxu3  ;;  %v5969_v32 = vadd.f32 0.014752088, %v5968_v61  ;;  %v5958_v24 = vadd.f32 0.0036580483, %v5957_v18  ;;  %v5885_v47 = vmul.f32 %v5884_v2, %v12153_v56  ;;  %vm5901_vm8 = vweird.f32 %v5895_v57 }
 0x645   :  { %v5934_v11 = vmul.f32 %v5933_v33, %v12174_v13  ;;  %v12215_v31 = vadd.f32 %v11920_v42, %v4914_v9  ;;  %v5995_v8 = vmul.f32 2.1237322e-06, %v12220_v19  ;;  %v6006_v45 = vmul.f32 3.8918573e-05, %v12220_v19 }
 0x646   :  { %v5970_v42 = vmul.f32 %v5969_v32, %v12195_v5  ;;  %v5923_v30 = vmul.f32 %v5922_v37, %v12174_v13  ;;  %vm5906_vm10 = vcmp.eq.f32.partialorder %v5905_v60, 8.507059e+37  ;;  %v5908_v14 = vor.u32 1.1754944e-38, %v5907_v51 }
 0x647   :  { %v12217_v10 = vadd.f32 1.0, %v5934_v11  ;;  %v12223_v39 = vmul.f32 0.70710677, %v12215_v31  ;;  %v5996_v50 = vadd.f32 0.00028619796, %v5995_v8  ;;  %v5959_v38 = vmul.f32 %v5958_v24, %v12195_v5 }
 0x648   :  { %v7105_v29 = vpop.eup %7104  ;;  %v5971_v53 = vadd.f32 0.112945676, %v5970_v42  ;;  %v6007_v48 = vadd.f32 0.001143296, %v6006_v45  ;;  %v5924_v40 = vadd.f32 1.1283791, %v5923_v30 }
 0x649   :  { %v5897_v3 = vmul.f32 %v7105_v29, %v5895_v57  ;;  %7106 = vrcp.f32 %v12217_v10  ;;  %vm5902_vm7 = vweird.f32 %v7105_v29  ;;  %v6033_v12 = vmul.f32 %v12223_v39, %v12223_v39 }
 0x64a   :  { %v5972_v43 = vmul.f32 %v5971_v53, %v12195_v5  ;;  %v5997_v6 = vmul.f32 %v5996_v50, %v12220_v19  ;;  %v6008_v1 = vmul.f32 %v6007_v48, %v12220_v19  ;;  %vm5903_vm9 = vmor %vm5901_vm8, %vm5902_vm7  ;;  %v5947_v27 = vand.u32 2147483648, %v12217_v10 }
 0x64b   :  { %v5898_v63 = vsub.f32 1.0, %v5897_v3  ;;  %v12238_v25 = vmin.f32 %v6033_v12, 16.0  ;;  %v5945_v59 = vand.u32 2147483647, %v12217_v10  ;;  %v5960_v44 = vadd.f32 0.05243302, %v5959_v38 }
 0x64c   :  { %v5973_v13 = vadd.f32 0.4994258, %v5972_v43  ;;  %v6009_v35 = vadd.f32 0.014752088, %v6008_v1  ;;  %v5998_v52 = vadd.f32 0.0036580483, %v5997_v6  ;;  %v4916_v33 = vpop.f32.mrf.mxu3  ;;  %v5925_v49 = vmul.f32 %v5924_v40, %v12167_v0 }
 0x64d   :  { %v5899_v7 = vmul.f32 %v7105_v29, %v5898_v63  ;;  %v6046_v28 = vmul.f32 3.8918573e-05, %v12238_v25  ;;  %vm5941_vm12 = vweird.f32 %v12217_v10  ;;  %v5948_v23 = vor.u32 1.1754944e-38, %v5947_v27 }
 0x64e   :  { %v5974_v57 = vmul.f32 %v5973_v13, %v12195_v5  ;;  %v6010_v16 = vmul.f32 %v6009_v35, %v12220_v19  ;;  %v5999_v61 = vmul.f32 %v5998_v52, %v12220_v19  ;;  %vm5946_vm14 = vcmp.eq.f32.partialorder %v5945_v59, 8.507059e+37 }
 0x64f   :  { %v7107_v62 = vpop.eup %7106  ;;  %v5900_v34 = vadd.f32 %v7105_v29, %v5899_v7  ;;  %v6047_v4 = vadd.f32 0.001143296, %v6046_v28  ;;  %v5961_v2 = vmul.f32 %v5960_v44, %v12195_v5  ;;  %v6035_v60 = vmul.f32 2.1237322e-06, %v12238_v25 }
 0x650   :  { %v5937_v17 = vmul.f32 %v7107_v62, %v12217_v10  ;;  %vm5942_vm11 = vweird.f32 %v7107_v62  ;;  %v12246_v15 = vadd.f32 1.0, %v5974_v57  ;;  %v6011_v9 = vadd.f32 0.112945676, %v6010_v16 }
 0x651   :  { %v5904_v56 = vsel %vm5903_vm9, %v7105_v29, %v5900_v34  ;;  %vm5943_vm13 = vmor %vm5941_vm12, %vm5942_vm11  ;;  %v12255_v29 = vld [vmem:[%s12399_s4 + $0x2] ss:$0 sm:$0xff]  ;;  %v6000_v42 = vadd.f32 0.05243302, %v5999_v61  ;;  %v6048_v8 = vmul.f32 %v6047_v4, %v12238_v25  ;;  %v5962_v53 = vadd.f32 0.18741608, %v5961_v2 }
 0x652   :  { %v5909_v21 = vsel %vm5906_vm10, %v5908_v14, %v5904_v56  ;;  %v5938_v58 = vsub.f32 1.0, %v5937_v17  ;;  %7108 = vrcp.f32 %v12246_v15  ;;  %v12258_v18 = vadd.f32 %v12255_v29, %v4916_v33 }
 0x653   :  { %v5910_v36 = vmul.f32 %v5909_v21, %v5885_v47  ;;  %v6012_v10 = vmul.f32 %v6011_v9, %v12220_v19  ;;  %v6036_v50 = vadd.f32 0.00028619796, %v6035_v60  ;;  %v6049_v48 = vadd.f32 0.014752088, %v6048_v8 }
 0x654   :  { %v5939_v46 = vmul.f32 %v7107_v62, %v5938_v58  ;;  %v12265_v45 = vmul.f32 0.70710677, %v12258_v18  ;;  %v4951_v30 = vmul.f32 0.5, %v12150_v55  ;;  %v6001_v6 = vmul.f32 %v6000_v42, %v12220_v19 }
 0x655   :  { %v6665_v32 = vclamps-f32 %v5910_v36, 1.0  ;;  %v6013_v63 = vadd.f32 0.4994258, %v6012_v10  ;;  %v6050_v14 = vmul.f32 %v6049_v48, %v12238_v25  ;;  %v5963_v35 = vmul.f32 %v5962_v53, %v12195_v5 }
 0x656   :  { %v5940_v11 = vadd.f32 %v7107_v62, %v5939_v46  ;;  %v6073_v47 = vmul.f32 %v12265_v45, %v12265_v45  ;;  %v5987_v55 = vand.u32 2147483648, %v12246_v15  ;;  %v6002_v27 = vadd.f32 0.18741608, %v6001_v6 }
 0x657   :  { %v6295_v51 = vadd.f32 1.0, %v6665_v32  ;;  %v6014_v12 = vmul.f32 %v6013_v63, %v12220_v19  ;;  %v6051_v58 = vadd.f32 0.112945676, %v6050_v14  ;;  %vm5981_vm1 = vweird.f32 %v12246_v15 }
 0x658   :  { %v5944_v0 = vsel %vm5943_vm13, %v7107_v62, %v5940_v11  ;;  %v7109_v7 = vpop.eup %7108  ;;  %v4952_v62 = vmul.f32 0.5, %v12162_v22  ;;  %v12277_v17 = vmin.f32 %v6073_v47, 16.0  ;;  %v6037_v22 = vmul.f32 %v6036_v50, %v12238_v25 }
 0x659   :  { %v5949_v3 = vsel %vm5946_vm14, %v5948_v23, %v5944_v0  ;;  %v5977_v43 = vmul.f32 %v7109_v7, %v12246_v15  ;;  %v12274_v1 = vadd.f32 1.0, %v6014_v12  ;;  %v6327_v56 = vmul.f32 %v6295_v51, %v4951_v30 }
 0x65a   :  { %v5950_v37 = vmul.f32 %v5949_v3, %v5925_v49  ;;  %vm5982_vm15 = vweird.f32 %v7109_v7  ;;  %v6075_v59 = vmul.f32 2.1237322e-06, %v12277_v17  ;;  %v6086_v57 = vmul.f32 3.8918573e-05, %v12277_v17 }
 0x65b   :  { %v5978_v13 = vsub.f32 1.0, %v5977_v43  ;;  %7110 = vrcp.f32 %v12274_v1  ;;  %v5985_v5 = vand.u32 2147483647, %v12246_v15  ;;  %v6052_v16 = vmul.f32 %v6051_v58, %v12238_v25  ;;  %vm12288_vm2 = vmor %vm5981_vm1, %vm5982_vm15 }
 0x65c   :  { %v6666_v24 = vclamps-f32 %v5950_v37, 1.0  ;;  %v6038_v46 = vadd.f32 0.0036580483, %v6037_v22  ;;  %v6076_v28 = vadd.f32 0.00028619796, %v6075_v59  ;;  %v5988_v23 = vor.u32 1.1754944e-38, %v5987_v55 }
 0x65d   :  { %v5979_v40 = vmul.f32 %v7109_v7, %v5978_v13  ;;  %v6087_v33 = vadd.f32 0.001143296, %v6086_v57  ;;  %v5964_v44 = vadd.f32 1.1283791, %v5963_v35  ;;  %v6053_v49 = vadd.f32 0.4994258, %v6052_v16 }
 0x65e   :  { %v6296_v34 = vadd.f32 1.0, %v6666_v24  ;;  %v6003_v61 = vmul.f32 %v6002_v27, %v12220_v19  ;;  %v6077_v15 = vmul.f32 %v6076_v28, %v12277_v17  ;;  %vm5986_vm3 = vcmp.eq.f32.partialorder %v5985_v5, 8.507059e+37 }
 0x65f   :  { %v5980_v52 = vadd.f32 %v7109_v7, %v5979_v40  ;;  %v6088_v4 = vmul.f32 %v6087_v33, %v12277_v17  ;;  %v6054_v0 = vmul.f32 %v6053_v49, %v12238_v25  ;;  %v6039_v3 = vmul.f32 %v6038_v46, %v12238_v25 }
 0x660   :  { %v6328_v38 = vmul.f32 %v6296_v34, %v4952_v62  ;;  %v5965_v60 = vmul.f32 %v5964_v44, %v12186_v26  ;;  %v6078_v42 = vadd.f32 0.0036580483, %v6077_v15  ;;  %v6004_v19 = vadd.f32 1.1283791, %v6003_v61 }
 0x661   :  { %v5984_v9 = vsel %vm12288_vm2, %v7109_v7, %v5980_v52  ;;  %v7111_v11 = vpop.eup %7110  ;;  %v6089_v2 = vadd.f32 0.014752088, %v6088_v4  ;;  %v12301_v63 = vadd.f32 1.0, %v6054_v0  ;;  %v6025_v8 = vand.u32 2147483647, %v12274_v1 }
 0x662   :  { %v6761_v21 = vpack.c.bf16 %v6328_v38, %v6327_v56  ;;  %v6017_v32 = vmul.f32 %v7111_v11, %v12274_v1  ;;  %v5989_v10 = vsel %vm5986_vm3, %v5988_v23, %v5984_v9  ;;  %v6027_v51 = vand.u32 2147483648, %v12274_v1 }
 0x663   :  { %v6090_v24 = vmul.f32 %v6089_v2, %v12277_v17  ;;  %v5990_v12 = vmul.f32 %v5989_v10, %v5965_v60  ;;  %vm6022_vm4 = vweird.f32 %v7111_v11  ;;  %7112 = vrcp.f32 %v12301_v63 }
 0x664   :  { %6793 = vst [vmem:[#allocation2 + $0x58] sm:$0xff] %v6761_v21   ;;  %v6018_v37 = vsub.f32 1.0, %v6017_v32  ;;  %v6040_v53 = vadd.f32 0.05243302, %v6039_v3  ;;  %vm6021_vm5 = vweird.f32 %v12274_v1  ;;  %v6079_v26 = vmul.f32 %v6078_v42, %v12277_v17 }
 0x665   :  { %v6091_v48 = vadd.f32 0.112945676, %v6090_v24  ;;  %v6005_v47 = vmul.f32 %v6004_v19, %v12206_v54  ;;  %vm6023_vm0 = vmor %vm6021_vm5, %vm6022_vm4  ;;  %v6028_v30 = vor.u32 1.1754944e-38, %v6027_v51  ;;  %v6667_v62 = vclamps-f32 %v5990_v12, 1.0 }
 0x666   :  { %v6019_v7 = vmul.f32 %v7111_v11, %v6018_v37  ;;  %vm6026_vm6 = vcmp.eq.f32.partialorder %v6025_v8, 8.507059e+37  ;;  %v6041_v14 = vmul.f32 %v6040_v53, %v12238_v25  ;;  %v6080_v13 = vadd.f32 0.05243302, %v6079_v26 }
 0x667   :  { %v6092_v43 = vmul.f32 %v6091_v48, %v12277_v17  ;;  %v6297_v54 = vadd.f32 1.0, %v6667_v62  ;;  %v4953_v58 = vmul.f32 0.5, %v12179_v20  ;;  %v4954_v52 = vmul.f32 0.5, %v12202_v41 }
 0x668   :  { %v6020_v50 = vadd.f32 %v7111_v11, %v6019_v7  ;;  %v6042_v27 = vadd.f32 0.18741608, %v6041_v14  ;;  %v6081_v16 = vmul.f32 %v6080_v13, %v12277_v17  ;;  %v6067_v41 = vand.u32 2147483648, %v12301_v63 }
 0x669   :  { %v7113_v56 = vpop.eup %7112  ;;  %v6093_v35 = vadd.f32 0.4994258, %v6092_v43  ;;  %v6329_v33 = vmul.f32 %v6297_v54, %v4953_v58  ;;  %vm6061_vm8 = vweird.f32 %v12301_v63  ;;  %v6065_v15 = vand.u32 2147483647, %v12301_v63 }
 0x66a   :  { %v6024_v34 = vsel %vm6023_vm0, %v7111_v11, %v6020_v50  ;;  %v6057_v55 = vmul.f32 %v7113_v56, %v12301_v63  ;;  %v6043_v20 = vmul.f32 %v6042_v27, %v12238_v25  ;;  %vm6062_vm7 = vweird.f32 %v7113_v56 }
 0x66b   :  { %v6029_v6 = vsel %vm6026_vm6, %v6028_v30, %v6024_v34  ;;  %v4919_v1 = vpop.f32.mrf.mxu3  ;;  %v6094_v40 = vmul.f32 %v6093_v35, %v12277_v17  ;;  %v6082_v23 = vadd.f32 0.18741608, %v6081_v16  ;;  %vm6063_vm9 = vmor %vm6061_vm8, %vm6062_vm7  ;;  %v6068_v37 = vor.u32 1.1754944e-38, %v6067_v41 }
 0x66c   :  { %v6030_v38 = vmul.f32 %v6029_v6, %v6005_v47  ;;  %v12314_v22 = vadd.f32 %v12255_v29, %v4919_v1  ;;  %v6058_v59 = vsub.f32 1.0, %v6057_v55  ;;  %v6044_v0 = vadd.f32 1.1283791, %v6043_v20 }
 0x66d   :  { %v6095_v36 = vadd.f32 1.0, %v6094_v40  ;;  %v6083_v42 = vmul.f32 %v6082_v23, %v12277_v17  ;;  %vm6066_vm10 = vcmp.eq.f32.partialorder %v6065_v15, 8.507059e+37  ;;  %v4956_v20 = vmul.f32 0.5, %v12258_v18 }
 0x66e   :  { %v6668_v21 = vclamps-f32 %v6030_v38, 1.0  ;;  %v12319_v57 = vmul.f32 0.70710677, %v12314_v22  ;;  %v6059_v46 = vmul.f32 %v7113_v56, %v6058_v59  ;;  %v6045_v12 = vmul.f32 %v6044_v0, %v12223_v39 }
 0x66f   :  { %7114 = vrcp.f32 %v6095_v36  ;;  %v6107_v53 = vand.u32 2147483648, %v6095_v36  ;;  %v6084_v26 = vadd.f32 1.1283791, %v6083_v42  ;;  %v6105_v62 = vand.u32 2147483647, %v6095_v36 }
 0x670   :  { %v6298_v5 = vadd.f32 1.0, %v6668_v21  ;;  %v6113_v28 = vmul.f32 %v12319_v57, %v12319_v57  ;;  %v6060_v9 = vadd.f32 %v7113_v56, %v6059_v46  ;;  %vm6101_vm12 = vweird.f32 %v6095_v36 }
 0x671   :  { %v6108_v39 = vor.u32 1.1754944e-38, %v6107_v53  ;;  %v6085_v55 = vmul.f32 %v6084_v26, %v12265_v45  ;;  %vm6106_vm14 = vcmp.eq.f32.partialorder %v6105_v62, 8.507059e+37 }
 0x672   :  { %v6330_v44 = vmul.f32 %v6298_v5, %v4954_v52  ;;  %v12326_v49 = vmin.f32 %v6113_v28, 16.0  ;;  %v6064_v10 = vsel %vm6063_vm9, %v7113_v56, %v6060_v9 }
 0x673   :  { %v4921_v61 = vpop.f32.mrf.mxu3  ;;  %v6069_v8 = vsel %vm6066_vm10, %v6068_v37, %v6064_v10 }
 0x674   :  { %v6766_v11 = vpack.c.bf16 %v6330_v44, %v6329_v33  ;;  %v6115_v4 = vmul.f32 2.1237322e-06, %v12326_v49  ;;  %v6126_v32 = vmul.f32 3.8918573e-05, %v12326_v49  ;;  %v12334_v25 = vadd.f32 %v12255_v29, %v4921_v61 }
 0x675   :  { %v7115_v60 = vpop.eup %7114  ;;  %v6070_v47 = vmul.f32 %v6069_v8, %v6045_v12  ;;  %v4955_v44 = vmul.f32 0.5, %v12215_v31 }
 0x676   :  { %6794 = vst [vmem:[#allocation2 + $0x60] sm:$0xff] %v6766_v11   ;;  %v6116_v3 = vadd.f32 0.00028619796, %v6115_v4  ;;  %v6127_v2 = vadd.f32 0.001143296, %v6126_v32  ;;  %v6097_v63 = vmul.f32 %v7115_v60, %v6095_v36  ;;  %vm6102_vm11 = vweird.f32 %v7115_v60 }
 0x677   :  { %v12338_v19 = vmul.f32 0.70710677, %v12334_v25  ;;  %vm6103_vm13 = vmor %vm6101_vm12, %vm6102_vm11  ;;  %v6669_v1 = vclamps-f32 %v6070_v47, 1.0 }
 0x678   :  { %v6128_v51 = vmul.f32 %v6127_v2, %v12326_v49  ;;  %v6098_v7 = vsub.f32 1.0, %v6097_v63  ;;  %v6117_v50 = vmul.f32 %v6116_v3, %v12326_v49 }
 0x679   :  { %v6153_v24 = vmul.f32 %v12338_v19, %v12338_v19  ;;  %v6299_v36 = vadd.f32 1.0, %v6669_v1 }
 0x67a   :  { %v6129_v48 = vadd.f32 0.014752088, %v6128_v51  ;;  %v6099_v30 = vmul.f32 %v7115_v60, %v6098_v7  ;;  %v6118_v56 = vadd.f32 0.0036580483, %v6117_v50 }
 0x67b   :  { %v12345_v17 = vmin.f32 %v6153_v24, 16.0  ;;  %v6331_v61 = vmul.f32 %v6299_v36, %v4955_v44 }
 0x67c   :  { %v6130_v34 = vmul.f32 %v6129_v48, %v12326_v49  ;;  %v6100_v14 = vadd.f32 %v7115_v60, %v6099_v30  ;;  %v6119_v52 = vmul.f32 %v6118_v56, %v12326_v49 }
 0x67d   :  { %v6155_v43 = vmul.f32 2.1237322e-06, %v12345_v17  ;;  %v6166_v6 = vmul.f32 3.8918573e-05, %v12345_v17 }
 0x67e   :  { %v6131_v38 = vadd.f32 0.112945676, %v6130_v34  ;;  %v6104_v54 = vsel %vm6103_vm13, %v7115_v60, %v6100_v14  ;;  %v6120_v11 = vadd.f32 0.05243302, %v6119_v52 }
 0x67f   :  { %v6156_v13 = vadd.f32 0.00028619796, %v6155_v43  ;;  %v6167_v35 = vadd.f32 0.001143296, %v6166_v6  ;;  %v6109_v21 = vsel %vm6106_vm14, %v6108_v39, %v6104_v54 }
 0x680   :  { %v6132_v40 = vmul.f32 %v6131_v38, %v12326_v49  ;;  %v6110_v59 = vmul.f32 %v6109_v21, %v6085_v55  ;;  %v6121_v10 = vmul.f32 %v6120_v11, %v12326_v49 }
 0x681   :  { %v6157_v58 = vmul.f32 %v6156_v13, %v12345_v17  ;;  %v6168_v27 = vmul.f32 %v6167_v35, %v12345_v17 }
 0x682   :  { %v6133_v5 = vadd.f32 0.4994258, %v6132_v40  ;;  %v6670_v46 = vclamps-f32 %v6110_v59, 1.0  ;;  %v6122_v60 = vadd.f32 0.18741608, %v6121_v10 }
 0x683   :  { %v6169_v16 = vadd.f32 0.014752088, %v6168_v27  ;;  %v6158_v28 = vadd.f32 0.0036580483, %v6157_v58 }
 0x684   :  { %v6134_v33 = vmul.f32 %v6133_v5, %v12326_v49  ;;  %v6300_v9 = vadd.f32 1.0, %v6670_v46  ;;  %v6123_v51 = vmul.f32 %v6122_v60, %v12326_v49  ;;  %v4957_v5 = vmul.f32 0.5, %v12314_v22 }
 0x685   :  { %v6170_v45 = vmul.f32 %v6169_v16, %v12345_v17  ;;  %v6159_v4 = vmul.f32 %v6158_v28, %v12345_v17  ;;  %v4958_v16 = vmul.f32 0.5, %v12334_v25 }
 0x686   :  { %v6135_v41 = vadd.f32 1.0, %v6134_v33  ;;  %v6332_v15 = vmul.f32 %v6300_v9, %v4956_v20  ;;  %v6124_v26 = vadd.f32 1.1283791, %v6123_v51 }
 0x687   :  { %v6171_v23 = vadd.f32 0.112945676, %v6170_v45  ;;  %v6160_v3 = vadd.f32 0.05243302, %v6159_v4 }
 0x688   :  { %7116 = vrcp.f32 %v6135_v41  ;;  %v6771_v32 = vpack.c.bf16 %v6332_v15, %v6331_v61  ;;  %v6147_v12 = vand.u32 2147483648, %v6135_v41  ;;  %v6145_v53 = vand.u32 2147483647, %v6135_v41 }
 0x689   :  { %v6172_v0 = vmul.f32 %v6171_v23, %v12345_v17  ;;  %v6161_v42 = vmul.f32 %v6160_v3, %v12345_v17  ;;  %vm6141_vm1 = vweird.f32 %v6135_v41  ;;  %v6125_v6 = vmul.f32 %v6124_v26, %v12319_v57 }
 0x68a   :  { %6795 = vst [vmem:[#allocation2 + $0x68] sm:$0xff] %v6771_v32   ;;  %v6148_v30 = vor.u32 1.1754944e-38, %v6147_v12  ;;  %vm6146_vm3 = vcmp.eq.f32.partialorder %v6145_v53, 8.507059e+37 }
 0x68b   :  { %v6173_v2 = vadd.f32 0.4994258, %v6172_v0  ;;  %v6162_v7 = vadd.f32 0.18741608, %v6161_v42 }
 0x68d   :  { %v6174_v31 = vmul.f32 %v6173_v2, %v12345_v17  ;;  %v6163_v62 = vmul.f32 %v6162_v7, %v12345_v17 }
 0x68e   :  { %v7117_v18 = vpop.eup %7116 }
 0x68f   :  { %v6137_v37 = vmul.f32 %v7117_v18, %v6135_v41  ;;  %v6175_v63 = vadd.f32 1.0, %v6174_v31  ;;  %vm6142_vm15 = vweird.f32 %v7117_v18  ;;  %v6164_v14 = vadd.f32 1.1283791, %v6163_v62 }
 0x690   :  { %vm6143_vm2 = vmor %vm6141_vm1, %vm6142_vm15 }
 0x691   :  { %v6138_v8 = vsub.f32 1.0, %v6137_v37  ;;  %7118 = vrcp.f32 %v6175_v63  ;;  %v6187_v39 = vand.u32 2147483648, %v6175_v63  ;;  %v6185_v13 = vand.u32 2147483647, %v6175_v63 }
 0x692   :  { %vm6181_vm5 = vweird.f32 %v6175_v63  ;;  %v6165_v54 = vmul.f32 %v6164_v14, %v12338_v19 }
 0x693   :  { %v6139_v24 = vmul.f32 %v7117_v18, %v6138_v8  ;;  %v6188_v1 = vor.u32 1.1754944e-38, %v6187_v39  ;;  %vm6186_vm6 = vcmp.eq.f32.partialorder %v6185_v13, 8.507059e+37 }
 0x695   :  { %v6140_v50 = vadd.f32 %v7117_v18, %v6139_v24 }
 0x697   :  { %v7119_v48 = vpop.eup %7118  ;;  %v6144_v47 = vsel %vm6143_vm2, %v7117_v18, %v6140_v50 }
 0x698   :  { %v6177_v34 = vmul.f32 %v7119_v48, %v6175_v63  ;;  %v6149_v43 = vsel %vm6146_vm3, %v6148_v30, %v6144_v47  ;;  %vm6182_vm4 = vweird.f32 %v7119_v48 }
 0x699   :  { %v6150_v56 = vmul.f32 %v6149_v43, %v6125_v6  ;;  %vm6183_vm0 = vmor %vm6181_vm5, %vm6182_vm4 }
 0x69a   :  { %v6178_v49 = vsub.f32 1.0, %v6177_v34 }
 0x69b   :  { %v6671_v55 = vclamps-f32 %v6150_v56, 1.0 }
 0x69c   :  { %v6179_v38 = vmul.f32 %v7119_v48, %v6178_v49 }
 0x69d   :  { %v6301_v27 = vadd.f32 1.0, %v6671_v55 }
 0x69e   :  { %v6180_v35 = vadd.f32 %v7119_v48, %v6179_v38 }
 0x69f   :  { %v6333_v46 = vmul.f32 %v6301_v27, %v4957_v5 }
 0x6a0   :  { %v6184_v17 = vsel %vm6183_vm0, %v7119_v48, %v6180_v35  ;;  %v4924_v40 = vpop.f32.mrf.mxu3 }
 0x6a1   :  { %v6189_v21 = vsel %vm6186_vm6, %v6188_v1, %v6184_v17  ;;  %v12369_v57 = vadd.f32 %v12255_v29, %v4924_v40 }
 0x6a2   :  { %v6190_v58 = vmul.f32 %v6189_v21, %v6165_v54 }
 0x6a3   :  { %v12372_v52 = vmul.f32 0.70710677, %v12369_v57 }
 0x6a4   :  { %v6672_v59 = vclamps-f32 %v6190_v58, 1.0 }
 0x6a5   :  { %v6193_v19 = vmul.f32 %v12372_v52, %v12372_v52 }
 0x6a6   :  { %v6302_v36 = vadd.f32 1.0, %v6672_v59 }
 0x6a7   :  { %v6194_v33 = vmin.f32 %v6193_v19, 16.0 }
 0x6a8   :  { %v6334_v28 = vmul.f32 %v6302_v36, %v4958_v16  ;;  %v4926_v45 = vpop.f32.mrf.mxu3 }
 0x6a9   :  { %v6195_v20 = vmul.f32 2.1237322e-06, %v6194_v33  ;;  %v6206_v9 = vmul.f32 3.8918573e-05, %v6194_v33  ;;  %v12379_v11 = vadd.f32 %v12255_v29, %v4926_v45 }
 0x6aa   :  { %v6776_v44 = vpack.c.bf16 %v6334_v28, %v6333_v46 }
 0x6ab   :  { %v6196_v41 = vadd.f32 0.00028619796, %v6195_v20  ;;  %v6207_v23 = vadd.f32 0.001143296, %v6206_v9  ;;  %v12382_v22 = vmul.f32 0.70710677, %v12379_v11 }
 0x6ac   :  { %6796 = vst [vmem:[#allocation2 + $0x70] sm:$0xff] %v6776_v44  }
 0x6ad   :  { %v6208_v25 = vmul.f32 %v6207_v23, %v6194_v33  ;;  %v6233_v61 = vmul.f32 %v12382_v22, %v12382_v22  ;;  %v6197_v15 = vmul.f32 %v6196_v41, %v6194_v33 }
 0x6af   :  { %v6209_v4 = vadd.f32 0.014752088, %v6208_v25  ;;  %v6234_v32 = vmin.f32 %v6233_v61, 16.0  ;;  %v6198_v2 = vadd.f32 0.0036580483, %v6197_v15 }
 0x6b1   :  { %v6210_v0 = vmul.f32 %v6209_v4, %v6194_v33  ;;  %v6235_v10 = vmul.f32 2.1237322e-06, %v6234_v32  ;;  %v6246_v3 = vmul.f32 3.8918573e-05, %v6234_v32  ;;  %v6199_v63 = vmul.f32 %v6198_v2, %v6194_v33 }
 0x6b3   :  { %v6211_v31 = vadd.f32 0.112945676, %v6210_v0  ;;  %v6236_v29 = vadd.f32 0.00028619796, %v6235_v10  ;;  %v6247_v18 = vadd.f32 0.001143296, %v6246_v3 }
 0x6b4   :  { %v6200_v53 = vadd.f32 0.05243302, %v6199_v63  ;;  %v4960_v0 = vmul.f32 0.5, %v12379_v11 }
 0x6b5   :  { %v6212_v60 = vmul.f32 %v6211_v31, %v6194_v33  ;;  %v6237_v37 = vmul.f32 %v6236_v29, %v6234_v32  ;;  %v6248_v42 = vmul.f32 %v6247_v18, %v6234_v32 }
 0x6b6   :  { %v6201_v30 = vmul.f32 %v6200_v53, %v6194_v33 }
 0x6b7   :  { %v6213_v8 = vadd.f32 0.4994258, %v6212_v60  ;;  %v6238_v51 = vadd.f32 0.0036580483, %v6237_v37  ;;  %v6249_v24 = vadd.f32 0.014752088, %v6248_v42 }
 0x6b8   :  { %v6202_v49 = vadd.f32 0.18741608, %v6201_v30 }
 0x6b9   :  { %v6214_v12 = vmul.f32 %v6213_v8, %v6194_v33  ;;  %v6250_v7 = vmul.f32 %v6249_v24, %v6234_v32  ;;  %v6239_v26 = vmul.f32 %v6238_v51, %v6234_v32 }
 0x6ba   :  { %v6203_v13 = vmul.f32 %v6202_v49, %v6194_v33 }
 0x6bb   :  { %v6215_v50 = vadd.f32 1.0, %v6214_v12  ;;  %v6251_v48 = vadd.f32 0.112945676, %v6250_v7  ;;  %v6240_v62 = vadd.f32 0.05243302, %v6239_v26 }
 0x6bc   :  { %v6204_v21 = vadd.f32 1.1283791, %v6203_v13 }
 0x6bd   :  { %7120 = vrcp.f32 %v6215_v50  ;;  %v6252_v47 = vmul.f32 %v6251_v48, %v6234_v32  ;;  %v6241_v39 = vmul.f32 %v6240_v62, %v6234_v32  ;;  %v6227_v1 = vand.u32 2147483648, %v6215_v50 }
 0x6be   :  { %v6225_v54 = vand.u32 2147483647, %v6215_v50  ;;  %vm6221_vm8 = vweird.f32 %v6215_v50  ;;  %v6205_v36 = vmul.f32 %v6204_v21, %v12372_v52 }
 0x6bf   :  { %v6253_v34 = vadd.f32 0.4994258, %v6252_v47  ;;  %v6242_v55 = vadd.f32 0.18741608, %v6241_v39  ;;  %v6228_v27 = vor.u32 1.1754944e-38, %v6227_v1 }
 0x6c0   :  { %vm6226_vm10 = vcmp.eq.f32.partialorder %v6225_v54, 8.507059e+37 }
 0x6c1   :  { %v6254_v43 = vmul.f32 %v6253_v34, %v6234_v32  ;;  %v6243_v59 = vmul.f32 %v6242_v55, %v6234_v32  ;;  %v4959_v32 = vmul.f32 0.5, %v12369_v57 }
 0x6c3   :  { %v7121_v6 = vpop.eup %7120  ;;  %v6255_v56 = vadd.f32 1.0, %v6254_v43  ;;  %v6244_v46 = vadd.f32 1.1283791, %v6243_v59 }
 0x6c4   :  { %v6217_v14 = vmul.f32 %v7121_v6, %v6215_v50  ;;  %vm6222_vm7 = vweird.f32 %v7121_v6 }
 0x6c5   :  { %7122 = vrcp.f32 %v6255_v56  ;;  %vm6223_vm9 = vmor %vm6221_vm8, %vm6222_vm7  ;;  %v6267_v28 = vand.u32 2147483648, %v6255_v56  ;;  %v6265_v44 = vand.u32 2147483647, %v6255_v56  ;;  %vm6261_vm12 = vweird.f32 %v6255_v56 }
 0x6c6   :  { %v6218_v38 = vsub.f32 1.0, %v6217_v14  ;;  %v6245_v23 = vmul.f32 %v6244_v46, %v12382_v22 }
 0x6c7   :  { %v6268_v9 = vor.u32 1.1754944e-38, %v6267_v28  ;;  %vm6266_vm14 = vcmp.eq.f32.partialorder %v6265_v44, 8.507059e+37 }
 0x6c8   :  { %v6219_v35 = vmul.f32 %v7121_v6, %v6218_v38 }
 0x6ca   :  { %v6220_v17 = vadd.f32 %v7121_v6, %v6219_v35 }
 0x6cb   :  { %v7123_v40 = vpop.eup %7122 }
 0x6cc   :  { %v6224_v58 = vsel %vm6223_vm9, %v7121_v6, %v6220_v17  ;;  %v6257_v5 = vmul.f32 %v7123_v40, %v6255_v56  ;;  %vm6262_vm11 = vweird.f32 %v7123_v40 }
 0x6cd   :  { %v6229_v16 = vsel %vm6226_vm10, %v6228_v27, %v6224_v58  ;;  %vm6263_vm13 = vmor %vm6261_vm12, %vm6262_vm11 }
 0x6ce   :  { %v6258_v19 = vsub.f32 1.0, %v6257_v5  ;;  %v6230_v33 = vmul.f32 %v6229_v16, %v6205_v36 }
 0x6d0   :  { %v6259_v45 = vmul.f32 %v7123_v40, %v6258_v19  ;;  %v6673_v41 = vclamps-f32 %v6230_v33, 1.0 }
 0x6d2   :  { %v6260_v20 = vadd.f32 %v7123_v40, %v6259_v45  ;;  %v6303_v4 = vadd.f32 1.0, %v6673_v41 }
 0x6d4   :  { %v6264_v25 = vsel %vm6263_vm13, %v7123_v40, %v6260_v20  ;;  %v6335_v3 = vmul.f32 %v6303_v4, %v4959_v32 }
 0x6d5   :  { %v6269_v61 = vsel %vm6266_vm14, %v6268_v9, %v6264_v25 }
 0x6d6   :  { %v6270_v15 = vmul.f32 %v6269_v61, %v6245_v23 }
 0x6d8   :  { %v6674_v52 = vclamps-f32 %v6270_v15, 1.0 }
 0x6da   :  { %v6304_v10 = vadd.f32 1.0, %v6674_v52 }
 0x6dc   :  { %v6336_v2 = vmul.f32 %v6304_v10, %v4960_v0 }
 0x6de   :  { %v6781_v22 = vpack.c.bf16 %v6336_v2, %v6335_v3 }
 0x6e0   :  { %6797 = vst [vmem:[#allocation2 + $0x78] sm:$0xff] %v6781_v22  }
 0x6e1   :  { %6413 = dma.vmem_to_hbm [thread:$0]  %s6406_s12, 2048, %s6408_s10, [#allocation3], %s7205_s23, %s7205_s23, %s7207_s13  }
 0x6e2   :  { %7203 = dma.done.wait [#allocation3], 2048  }
 0x6e3   :  { %7204 = vsyncadd [#allocation3], 4294965248 }
 0x6e4   :  { %6418 = vsyncpa [#allocation3], 1 }

</bundles_post_ra>
